<compile_context>
chip_gen: v5e
topology: v5e:2x2
jax: 0.10.0
libtpu: 0.0.40
codegen_flags: <defaults>
</compile_context>

<pallas_src>
import functools

import jax
import jax.numpy as jnp
from jax.experimental import pallas as pl
from jax.experimental.pallas import tpu as pltpu


def _round_up(x, m):
    return (x + m - 1) // m * m


def _cdiv(a, b):
    return -(-a // b)


# MXU contraction granularity on v6e/v7x (also a multiple of 128 for v5e and of
# 16 for clean bf16 sublane packing).
_MIN_TILE_N = 256
_MAX_TILE_N = 2048


def _redundancy_kernel(x_ref, out_ref, gram_acc, sumr_acc, stdr_ref,
                       meanc_ref, stdc_ref, shift_ref, *,
                       target, n_valid, n_features, tile_f):
    """One grid step: accumulate statistics of one (TILE_N, F) activation tile.

    x_ref:      (1, TILE_N, F) activation tile (native dtype), layer li, tile t
    out_ref:    (1, 8, 128)    per-layer loss broadcast into a lane-dense block
    gram_acc:   (F, F)  f32    running sum_n x_n x_n^T (shift-protected)
    sumr_acc:   (8, F)  f32    running column sums (8 identical rows, MXU-fed)
    stdr_ref:   (1, F)  f32    per-feature std, row form (finalize scratch)
    meanc_ref:  (S, TILE_F, 1) per-strip mean, column form (finalize scratch)
    stdc_ref:   (S, TILE_F, 1) per-strip std, column form (finalize scratch)
    shift_ref:  (1, F)  native per-feature shift (first row of the layer)
    """
    t = pl.program_id(1)

    @pl.when(t == 0)
    def _init():
        # Per-feature shift = first row of this layer: protects the one-pass
        # covariance (Gram - n * mean (x) mean) from catastrophic cancellation
        # when activations have large means (e.g. post-ReLU/GELU).  The
        # wrapper pads the N axis with copies of this row, so padded rows are
        # exactly zero after the subtraction and contribute nothing.
        shift_ref[...] = x_ref[0, 0:1, :]
        gram_acc[...] = jnp.zeros_like(gram_acc)
        sumr_acc[...] = jnp.zeros_like(sumr_acc)

    x = x_ref[0]                    # (TILE_N, F), native dtype
    x = x - shift_ref[...]          # VPU broadcast subtract, stays native dtype

    # Gram update on the MXU, trans-A feed (contract dim 0 of both operands) so
    # bf16 activations stay on the fast MXU path with an f32 accumulator.
    # (Checked with pl.lower_as_mlir that no explicit (TILE_N, F) transpose is
    # emitted for this contraction pattern.)
    gram_acc[...] += jax.lax.dot_general(
        x, x, (((0,), (0,)), ((), ())), preferred_element_type=jnp.float32)
    # Column sums via ones @ x on the MXU (8 identical output rows): removes
    # the previous full-tile f32 cast + cross-sublane reduction per grid step.
    ones = jnp.ones((8, x.shape[0]), x.dtype)
    sumr_acc[...] += jax.lax.dot_general(
        ones, x, (((1,), (0,)), ((), ())), preferred_element_type=jnp.float32)

    @pl.when(t == pl.num_programs(1) - 1)
    def _finalize():
        f = n_features
        n_strips = f // tile_f
        n = jnp.float32(n_valid)
        inv_n = jnp.float32(1.0 / n_valid)
        inv_nm1 = jnp.float32(1.0 / (n_valid - 1))
        eps = jnp.float32(1e-8)
        tgt = jnp.float32(target)

        def recip(d):
            # EUP approximate reciprocal + one Newton-Raphson refinement
            # (~f32 accuracy, keeps the divide off the VALU critical path).
            r = pl.reciprocal(d, approx=True)
            return r * (2.0 - d * r)

        def diag_row(block):
            # diagonal of a (k, k) block as a (1, k) row vector
            k = block.shape[0]
            rows = jax.lax.broadcasted_iota(jnp.int32, (k, k), 0)
            cols = jax.lax.broadcasted_iota(jnp.int32, (k, k), 1)
            return jnp.sum(jnp.where(rows == cols, block, 0.0),
                           axis=0, keepdims=True)

        def row_to_col(v):
            # (1, k) row vector -> (k, 1) column vector without a transpose
            k = v.shape[1]
            rows = jax.lax.broadcasted_iota(jnp.int32, (k, k), 0)
            cols = jax.lax.broadcasted_iota(jnp.int32, (k, k), 1)
            return jnp.sum(jnp.where(rows == cols, v, 0.0),
                           axis=1, keepdims=True)

        def strip_std(diag_block, m_r):
            # per-feature variance from diag(Gram) + analytic diagonal term,
            # computed with exactly the same ops as the full-matrix path so it
            # cancels (almost) exactly when subtracted below.
            var_r = (diag_row(diag_block) - n * (m_r * m_r)) * inv_nm1
            std_r = jnp.sqrt(jnp.maximum(var_r, 0.0))
            corr_d = var_r * recip(std_r * std_r + eps)
            err_d = jnp.abs(corr_d) - tgt
            return std_r, err_d * err_d                       # (1, k), (1, k)

        def strip_err_rowsum(strip, m_c, s_c, m_r_full, s_r_full):
            # (TILE_F, F) strip epilogue: broadcast outer products on the VPU.
            cov = (strip - n * (m_c * m_r_full)) * inv_nm1
            corr = cov * recip(s_c * s_r_full + eps)
            err = jnp.abs(corr) - tgt
            return jnp.sum(err * err, axis=0, keepdims=True)  # (1, F)

        # Convert running sums to per-feature means in place (rows identical).
        sumr_acc[...] = sumr_acc[...] * inv_n

        if n_strips == 1:
            # Small F: single strip, no dynamic slicing needed.
            m_r = sumr_acc[0:1, :]
            std_r, dvec = strip_std(gram_acc[...], m_r)
            rowsum = strip_err_rowsum(gram_acc[...], row_to_col(m_r),
                                      row_to_col(std_r), m_r, std_r)
            total_sq = jnp.sum(rowsum)
            diag_sq = jnp.sum(dvec)
        else:
            # Phase 1 (static, tiny blocks): per-strip std (row + column form),
            # per-strip mean column form, analytic diagonal contribution.
            dacc = jnp.zeros((1, tile_f), jnp.float32)
            for s in range(n_strips):
                off = s * tile_f
                m_r = sumr_acc[0:1, off:off + tile_f]
                std_r, dvec = strip_std(
                    gram_acc[off:off + tile_f, off:off + tile_f], m_r)
                stdr_ref[:, off:off + tile_f] = std_r
                meanc_ref[s] = row_to_col(m_r)
                stdc_ref[s] = row_to_col(std_r)
                dacc = dacc + dvec

            # Phase 2 (fori_loop bounds live ranges): strip-blocked correlation
            # / MSE epilogue; peak extra VMEM ~ TILE_F x F, not several FxF.
            def phase2(s, racc):
                off = pl.multiple_of(s * tile_f, tile_f)
                strip = gram_acc[pl.ds(off, tile_f), :]
                return racc + strip_err_rowsum(
                    strip, meanc_ref[s], stdc_ref[s],
                    sumr_acc[0:1, :], stdr_ref[...])

            racc = jax.lax.fori_loop(
                0, n_strips, phase2, jnp.zeros((1, f), jnp.float32))
            total_sq = jnp.sum(racc)
            diag_sq = jnp.sum(dacc)

        loss = (total_sq - diag_sq) * jnp.float32(1.0 / (f * (f - 1)))
        out_ref[...] = jnp.zeros(out_ref.shape, jnp.float32) + loss


def _vmem_budget_bytes():
    """Generation-aware VMEM budget with headroom for Mosaic internal scratch."""
    phys = 64 << 20                      # conservative default (v7x per-TC VMEM)
    try:
        info = pltpu.get_tpu_info()
        phys = int(getattr(info, "vmem_capacity_bytes", phys) or phys)
    except Exception:
        pass
    # ~18% headroom below physical: ~52 of 64 MiB on v7x, ~105 of 128 MiB on
    # v5e/v6e, so Mosaic keeps slack for output double-buffering etc.
    return int(phys * 0.82)


def _choose_tile_f(f):
    # Largest 128-multiple strip height that divides F; otherwise one strip.
    for cand in (512, 256, 128):
        if f % cand == 0 and cand < f:
            return cand
    return f


def _choose_tiles(n, f, itemsize, vmem_limit):
    f_lane = _round_up(max(f, 128), 128)
    f_sub = _round_up(f, 8)
    tile_f = _choose_tile_f(f)
    n_strips = f // tile_f
    tf_sub = _round_up(tile_f, 8)

    fixed = f_sub * f_lane * 4                   # Gram accumulator
    fixed += 2 * 8 * f_lane * 4                  # column sums + std (row form)
    fixed += 8 * f_lane * itemsize               # per-feature shift
    fixed += 2 * n_strips * tf_sub * 128 * 4     # per-strip column-form chunks
    fixed += 2 * 8 * 128 * 4                     # output block (double-buffered)
    fixed += 6 * tf_sub * f_lane * 4             # strip-blocked finalize temporaries

    slab = 2 * f_lane * itemsize                 # double-buffered input, per row
    avail = max(vmem_limit - fixed, _MIN_TILE_N * slab)
    tile_n_max = max(_MIN_TILE_N,
                     min(_MAX_TILE_N, (avail // slab) // _MIN_TILE_N * _MIN_TILE_N))
    # Balance tiles to minimise padding while keeping TILE_N MXU-granular.
    n_tiles = _cdiv(n, tile_n_max)
    tile_n = _round_up(_cdiv(n, n_tiles), _MIN_TILE_N)
    return tile_n, n_tiles, tile_f, n_strips


def _redundancy_loss_group(stacked, similarity_threshold, vmem_limit):
    """stacked: (L, N, F) -- same-shape/dtype layers batched in one pallas_call."""
    l, n, f = stacked.shape
    assert n > 1 and f > 1, "need at least 2 samples and 2 features"
    dtype = stacked.dtype
    itemsize = jnp.dtype(dtype).itemsize

    tile_n, n_tiles, tile_f, n_strips = _choose_tiles(n, f, itemsize, vmem_limit)
    n_pad = tile_n * n_tiles
    if n_pad != n:
        # Pad with copies of row 0: after the in-kernel shift these rows are
        # exactly zero and contribute nothing to the accumulated statistics.
        fill = jnp.broadcast_to(stacked[:, :1, :], (l, n_pad - n, f))
        stacked = jnp.concatenate([stacked, fill], axis=1)

    kernel = functools.partial(
        _redundancy_kernel, target=float(similarity_threshold),
        n_valid=n, n_features=f, tile_f=tile_f)

    # TODO(synk): when l == 1, the "parallel" layer axis leaves one TensorCore
    # idle on v7x; a core_map split of the N-tile reduction (two partial Gram
    # accumulators + combine) would recover it.
    out = pl.pallas_call(
        kernel,
        out_shape=jax.ShapeDtypeStruct((l, 8, 128), jnp.float32),
        grid_spec=pltpu.PrefetchScalarGridSpec(
            num_scalar_prefetch=0,
            grid=(l, n_tiles),
            in_specs=[pl.BlockSpec((1, tile_n, f), lambda li, ti: (li, ti, 0))],
            out_specs=pl.BlockSpec((1, 8, 128), lambda li, ti: (li, 0, 0)),
            scratch_shapes=[
                pltpu.VMEM((f, f), jnp.float32),                  # Gram
                pltpu.VMEM((8, f), jnp.float32),                  # column sums
                pltpu.VMEM((1, f), jnp.float32),                  # std, row form
                pltpu.VMEM((n_strips, tile_f, 1), jnp.float32),   # mean, col form
                pltpu.VMEM((n_strips, tile_f, 1), jnp.float32),   # std, col form
                pltpu.VMEM((1, f), dtype),                        # shift
            ]),
        compiler_params=pltpu.CompilerParams(
            dimension_semantics=("parallel", "arbitrary"),
            vmem_limit_bytes=int(vmem_limit)),
    )(stacked)
    return out[:, 0, 0]                                            # (L,)


def _redundancy_loss_ref_2d(x2d, target):
    """Pure-JAX path (torch reference formula); also used for tiny layers."""
    x = x2d.astype(jnp.float32)
    n, f = x.shape
    c = x - jnp.mean(x, axis=0, keepdims=True)
    cov = jnp.dot(c.T, c, precision=jax.lax.Precision.HIGHEST) / (n - 1)
    std = jnp.sqrt(jnp.diagonal(cov))
    corr = cov / (std[None, :] * std[:, None] + 1e-8)
    mask = ~jnp.eye(f, dtype=bool)
    err = jnp.where(mask, jnp.abs(corr) - target, 0.0)
    return jnp.sum(err * err) / (f * (f - 1))


def robustness_loss(feature_activations,
                    similarity_threshold: float = 0.7,
                    margin: float = 0.1) -> jax.Array:
    """Pallas equivalent of RobustnesslLoss.forward (margin is unused, as in torch)."""
    # TODO(synk): the torch.randperm feature-subsampling branch (n_features > 1000)
    # is non-deterministic in the reference and is not replicated here.
    num_layers = len(feature_activations)
    vmem_limit = _vmem_budget_bytes()

    # Batch layers with identical (shape, dtype) into a single pallas_call with
    # a leading "parallel" layer axis (fewer launches; megacore split).
    groups = {}
    for acts in feature_activations:
        b, s, f = acts.shape
        key = (b * s, f, jnp.dtype(acts.dtype).name)
        groups.setdefault(key, []).append(acts.reshape(b * s, f))

    total = jnp.float32(0.0)
    for (n, f, _), layers in groups.items():
        itemsize = jnp.dtype(layers[0].dtype).itemsize
        tiny = f <= 128 or n < 32 or n * f * itemsize < (256 << 10)
        gram_too_big = 4 * f * f > int(0.45 * vmem_limit)
        if tiny or gram_too_big:
            # Launch/grid fixed costs (or a VMEM-resident FxF Gram) would
            # dominate; plain XLA handles these shapes fine.
            for x2d in layers:
                total = total + _redundancy_loss_ref_2d(x2d, similarity_threshold)
        else:
            stacked = jnp.stack(layers, axis=0)          # (L, N, F), native dtype
            total = total + jnp.sum(
                _redundancy_loss_group(stacked, similarity_threshold, vmem_limit))
    return total / num_layers


if __name__ == "__main__":
    key = jax.random.PRNGKey(0)
    ks = jax.random.split(key, 5)
    # Tiny layer -> pure-JAX fallback path.
    acts_a = jax.random.normal(ks[0], (2, 8, 32), dtype=jnp.float32)
    # Two identically-shaped layers -> batched into one pallas_call (L = 2).
    acts_b1 = jax.random.normal(ks[1], (4, 160, 256), dtype=jnp.float32)
    acts_b2 = jax.random.normal(ks[2], (4, 160, 256), dtype=jnp.float32)
    # bf16 layer: native-dtype MXU path, 3 finalize strips.
    acts_c = jax.random.normal(ks[3], (2, 320, 384),
                               dtype=jnp.float32).astype(jnp.bfloat16)
    # Non-zero-mean f32 layer spanning two N tiles: exercises the multi-tile
    # accumulation and the shift-protected one-pass covariance.
    acts_d = jax.random.normal(ks[4], (2, 1280, 256), dtype=jnp.float32) + 3.0
    feature_activations = [acts_a, acts_b1, acts_b2, acts_c, acts_d]

    loss = jax.block_until_ready(
        robustness_loss(feature_activations, similarity_threshold=0.7, margin=0.1))

    ref = sum(_redundancy_loss_ref_2d(a.reshape(-1, a.shape[-1]), 0.7)
              for a in feature_activations) / len(feature_activations)
    ref = jax.block_until_ready(ref)

    assert jnp.isfinite(loss), float(loss)
    assert jnp.allclose(loss, ref, rtol=2e-4, atol=1e-5), (float(loss), float(ref))
    print("KERNEL_OK")
</pallas_src>

<mosaic_0001>
module attributes {stable_mosaic.version = 11 : i64} {
  func.func @_redundancy_kernel(%arg0: i32, %arg1: i32, %arg2: memref<1x768x256xf32, #tpu.memory_space<vmem>>, %arg3: memref<1x8x128xf32, #tpu.memory_space<vmem>>, %arg4: memref<256x256xf32, #tpu.memory_space<vmem>>, %arg5: memref<8x256xf32, #tpu.memory_space<vmem>>, %arg6: memref<1x256xf32, #tpu.memory_space<vmem>>, %arg7: memref<2x128x1xf32, #tpu.memory_space<vmem>>, %arg8: memref<2x128x1xf32, #tpu.memory_space<vmem>>, %arg9: memref<1x256xf32, #tpu.memory_space<vmem>>) attributes {dimension_semantics = [#tpu.dimension_semantics<parallel>, #tpu.dimension_semantics<arbitrary>], iteration_bounds = array<i64: 2, 1>, scalar_prefetch = 0 : i64, scratch_operands = 6 : i64, tpu.core_type = #tpu.core_type<tc>, window_params = [{transform_indices = @transform_0, window_bounds = array<i64: 1, 768, 256>}, {transform_indices = @transform_1, window_bounds = array<i64: 1, 8, 128>}]} {
    %c0_i32 = arith.constant 0 : i32
    %0 = arith.cmpi eq, %arg1, %c0_i32 : i32
    %1 = arith.extui %0 : i1 to i32
    %c0_i32_0 = arith.constant 0 : i32
    %2 = arith.cmpi ne, %1, %c0_i32_0 : i32
    scf.if %2 {
      %c0_17 = arith.constant 0 : index
      %c0_18 = arith.constant 0 : index
      %c0_19 = arith.constant 0 : index
      %20 = vector.load %arg2[%c0_17, %c0_18, %c0_19] : memref<1x768x256xf32, #tpu.memory_space<vmem>>, vector<1x1x256xf32>
      %21 = vector.shape_cast %20 : vector<1x1x256xf32> to vector<1x256xf32>
      %c0_20 = arith.constant 0 : index
      %c0_21 = arith.constant 0 : index
      %22 = vector.load %arg9[%c0_20, %c0_21] : memref<1x256xf32, #tpu.memory_space<vmem>>, vector<1x256xf32>
      tpu.vector_store %arg9[%c0_20, %c0_21], %21 {strides = array<i32>} : memref<1x256xf32, #tpu.memory_space<vmem>>, vector<1x256xf32>,
      %cst_22 = arith.constant 0.000000e+00 : f32
      %23 = vector.broadcast %cst_22 : f32 to vector<256x256xf32>
      %c0_23 = arith.constant 0 : index
      %c0_24 = arith.constant 0 : index
      %24 = vector.load %arg4[%c0_23, %c0_24] : memref<256x256xf32, #tpu.memory_space<vmem>>, vector<256x256xf32>
      tpu.vector_store %arg4[%c0_23, %c0_24], %23 {strides = array<i32>} : memref<256x256xf32, #tpu.memory_space<vmem>>, vector<256x256xf32>,
      %cst_25 = arith.constant 0.000000e+00 : f32
      %25 = vector.broadcast %cst_25 : f32 to vector<8x256xf32>
      %c0_26 = arith.constant 0 : index
      %c0_27 = arith.constant 0 : index
      %26 = vector.load %arg5[%c0_26, %c0_27] : memref<8x256xf32, #tpu.memory_space<vmem>>, vector<8x256xf32>
      tpu.vector_store %arg5[%c0_26, %c0_27], %25 {strides = array<i32>} : memref<8x256xf32, #tpu.memory_space<vmem>>, vector<8x256xf32>,
    } else {
    }
    %c0 = arith.constant 0 : index
    %c0_1 = arith.constant 0 : index
    %c0_2 = arith.constant 0 : index
    %3 = vector.load %arg2[%c0, %c0_1, %c0_2] : memref<1x768x256xf32, #tpu.memory_space<vmem>>, vector<1x768x256xf32>
    %4 = vector.shape_cast %3 : vector<1x768x256xf32> to vector<768x256xf32>
    %c0_3 = arith.constant 0 : index
    %c0_4 = arith.constant 0 : index
    %5 = vector.load %arg9[%c0_3, %c0_4] : memref<1x256xf32, #tpu.memory_space<vmem>>, vector<1x256xf32>
    %6 = vector.broadcast %5 : vector<1x256xf32> to vector<768x256xf32>
    %7 = arith.subf %4, %6 : vector<768x256xf32>
    %c0_5 = arith.constant 0 : index
    %c0_6 = arith.constant 0 : index
    %8 = vector.load %arg4[%c0_5, %c0_6] : memref<256x256xf32, #tpu.memory_space<vmem>>, vector<256x256xf32>
    %cst = arith.constant dense<0.000000e+00> : vector<256x256xf32>
    %9 = tpu.matmul %7, %7, %cst {dimension_numbers = #tpu.dot_dimension_numbers<[0], [0], [1], [1], [0, 1, 1, 1], [], []>} : vector<768x256xf32>, vector<768x256xf32>, vector<256x256xf32> -> vector<256x256xf32>
    %10 = arith.addf %8, %9 : vector<256x256xf32>
    %c0_7 = arith.constant 0 : index
    %c0_8 = arith.constant 0 : index
    %11 = vector.load %arg4[%c0_7, %c0_8] : memref<256x256xf32, #tpu.memory_space<vmem>>, vector<256x256xf32>
    tpu.vector_store %arg4[%c0_7, %c0_8], %10 {strides = array<i32>} : memref<256x256xf32, #tpu.memory_space<vmem>>, vector<256x256xf32>,
    %cst_9 = arith.constant 1.000000e+00 : f32
    %12 = vector.broadcast %cst_9 : f32 to vector<8x768xf32>
    %c0_10 = arith.constant 0 : index
    %c0_11 = arith.constant 0 : index
    %13 = vector.load %arg5[%c0_10, %c0_11] : memref<8x256xf32, #tpu.memory_space<vmem>>, vector<8x256xf32>
    %cst_12 = arith.constant dense<0.000000e+00> : vector<8x256xf32>
    %14 = tpu.matmul %12, %7, %cst_12 {dimension_numbers = #tpu.dot_dimension_numbers<[1], [0], [0], [1], [0, 0, 1, 1], [], []>} : vector<8x768xf32>, vector<768x256xf32>, vector<8x256xf32> -> vector<8x256xf32>
    %15 = arith.addf %13, %14 : vector<8x256xf32>
    %c0_13 = arith.constant 0 : index
    %c0_14 = arith.constant 0 : index
    %16 = vector.load %arg5[%c0_13, %c0_14] : memref<8x256xf32, #tpu.memory_space<vmem>>, vector<8x256xf32>
    tpu.vector_store %arg5[%c0_13, %c0_14], %15 {strides = array<i32>} : memref<8x256xf32, #tpu.memory_space<vmem>>, vector<8x256xf32>,
    %c0_i32_15 = arith.constant 0 : i32
    %17 = arith.cmpi eq, %arg1, %c0_i32_15 : i32
    %18 = arith.extui %17 : i1 to i32
    %c0_i32_16 = arith.constant 0 : i32
    %19 = arith.cmpi ne, %18, %c0_i32_16 : i32
    scf.if %19 {
      %c0_17 = arith.constant 0 : index
      %c0_18 = arith.constant 0 : index
      %20 = vector.load %arg5[%c0_17, %c0_18] : memref<8x256xf32, #tpu.memory_space<vmem>>, vector<8x256xf32>
      %cst_19 = arith.constant 1.562500e-03 : f32
      %21 = vector.broadcast %cst_19 : f32 to vector<8x256xf32>
      %22 = arith.mulf %20, %21 : vector<8x256xf32>
      %c0_20 = arith.constant 0 : index
      %c0_21 = arith.constant 0 : index
      %23 = vector.load %arg5[%c0_20, %c0_21] : memref<8x256xf32, #tpu.memory_space<vmem>>, vector<8x256xf32>
      tpu.vector_store %arg5[%c0_20, %c0_21], %22 {strides = array<i32>} : memref<8x256xf32, #tpu.memory_space<vmem>>, vector<8x256xf32>,
      %cst_22 = arith.constant 0.000000e+00 : f32
      %24 = vector.broadcast %cst_22 : f32 to vector<1x128xf32>
      %c0_23 = arith.constant 0 : index
      %c0_24 = arith.constant 0 : index
      %25 = vector.load %arg5[%c0_23, %c0_24] : memref<8x256xf32, #tpu.memory_space<vmem>>, vector<1x128xf32>
      %c0_25 = arith.constant 0 : index
      %c0_26 = arith.constant 0 : index
      %26 = vector.load %arg4[%c0_25, %c0_26] : memref<256x256xf32, #tpu.memory_space<vmem>>, vector<128x128xf32>
      %27 = tpu.iota {dimensions = array<i32: 0>} : vector<128x128xi32>
      %28 = tpu.iota {dimensions = array<i32: 1>} : vector<128x128xi32>
      %29 = arith.cmpi eq, %27, %28 : vector<128x128xi32>
      %cst_27 = arith.constant 0.000000e+00 : f32
      %30 = vector.broadcast %cst_27 : f32 to vector<128x128xf32>
      %31 = arith.select %29, %26, %30 : vector<128x128xi1>, vector<128x128xf32>
      %cst_28 = arith.constant dense<0.000000e+00> : vector<128xf32>
      %32 = vector.multi_reduction <add>, %31, %cst_28 [0] : vector<128x128xf32> to vector<128xf32>
      %33 = vector.shape_cast %32 : vector<128xf32> to vector<1x128xf32>
      %34 = arith.mulf %25, %25 : vector<1x128xf32>
      %cst_29 = arith.constant 6.400000e+02 : f32
      %35 = vector.broadcast %cst_29 : f32 to vector<1x128xf32>
      %36 = arith.mulf %35, %34 : vector<1x128xf32>
      %37 = arith.subf %33, %36 : vector<1x128xf32>
      %cst_30 = arith.constant 0.00156494521 : f32
      %38 = vector.broadcast %cst_30 : f32 to vector<1x128xf32>
      %39 = arith.mulf %37, %38 : vector<1x128xf32>
      %cst_31 = arith.constant 0.000000e+00 : f32
      %40 = vector.broadcast %cst_31 : f32 to vector<1x128xf32>
      %41 = arith.maximumf %39, %40 : vector<1x128xf32>
      %42 = math.sqrt %41 : vector<1x128xf32>
      %43 = arith.mulf %42, %42 : vector<1x128xf32>
      %cst_32 = arith.constant 9.99999993E-9 : f32
      %44 = vector.broadcast %cst_32 : f32 to vector<1x128xf32>
      %45 = arith.addf %43, %44 : vector<1x128xf32>
      %46 = tpu.reciprocal %45 {approx = true} : vector<1x128xf32> -> vector<1x128xf32>
      %47 = arith.mulf %45, %46 : vector<1x128xf32>
      %cst_33 = arith.constant 2.000000e+00 : f32
      %48 = vector.broadcast %cst_33 : f32 to vector<1x128xf32>
      %49 = arith.subf %48, %47 : vector<1x128xf32>
      %50 = arith.mulf %46, %49 : vector<1x128xf32>
      %51 = arith.mulf %39, %50 : vector<1x128xf32>
      %52 = math.absf %51 : vector<1x128xf32>
      %cst_34 = arith.constant 0.699999988 : f32
      %53 = vector.broadcast %cst_34 : f32 to vector<1x128xf32>
      %54 = arith.subf %52, %53 : vector<1x128xf32>
      %55 = arith.mulf %54, %54 : vector<1x128xf32>
      %c0_35 = arith.constant 0 : index
      %c0_36 = arith.constant 0 : index
      %56 = vector.load %arg6[%c0_35, %c0_36] : memref<1x256xf32, #tpu.memory_space<vmem>>, vector<1x128xf32>
      tpu.vector_store %arg6[%c0_35, %c0_36], %42 {strides = array<i32>} : memref<1x256xf32, #tpu.memory_space<vmem>>, vector<1x128xf32>,
      %57 = tpu.iota {dimensions = array<i32: 0>} : vector<128x128xi32>
      %58 = tpu.iota {dimensions = array<i32: 1>} : vector<128x128xi32>
      %59 = arith.cmpi eq, %57, %58 : vector<128x128xi32>
      %cst_37 = arith.constant 0.000000e+00 : f32
      %60 = vector.shape_cast %25 : vector<1x128xf32> to vector<1x128xf32>
      %61 = vector.broadcast %60 : vector<1x128xf32> to vector<128x128xf32>
      %62 = vector.broadcast %cst_37 : f32 to vector<128x128xf32>
      %63 = arith.select %59, %61, %62 : vector<128x128xi1>, vector<128x128xf32>
      %cst_38 = arith.constant dense<0.000000e+00> : vector<128xf32>
      %64 = vector.multi_reduction <add>, %63, %cst_38 [1] : vector<128x128xf32> to vector<128xf32>
      %65 = vector.shape_cast %64 : vector<128xf32> to vector<128x1xf32>
      %c0_39 = arith.constant 0 : index
      %c0_40 = arith.constant 0 : index
      %c0_41 = arith.constant 0 : index
      %66 = vector.load %arg7[%c0_39, %c0_40, %c0_41] : memref<2x128x1xf32, #tpu.memory_space<vmem>>, vector<1x128x1xf32>
      %67 = vector.shape_cast %66 : vector<1x128x1xf32> to vector<128x1xf32>
      %68 = vector.shape_cast %65 : vector<128x1xf32> to vector<1x128x1xf32>
      tpu.vector_store %arg7[%c0_39, %c0_40, %c0_41], %68 {strides = array<i32>} : memref<2x128x1xf32, #tpu.memory_space<vmem>>, vector<1x128x1xf32>,
      %69 = tpu.iota {dimensions = array<i32: 0>} : vector<128x128xi32>
      %70 = tpu.iota {dimensions = array<i32: 1>} : vector<128x128xi32>
      %71 = arith.cmpi eq, %69, %70 : vector<128x128xi32>
      %cst_42 = arith.constant 0.000000e+00 : f32
      %72 = vector.shape_cast %42 : vector<1x128xf32> to vector<1x128xf32>
      %73 = vector.broadcast %72 : vector<1x128xf32> to vector<128x128xf32>
      %74 = vector.broadcast %cst_42 : f32 to vector<128x128xf32>
      %75 = arith.select %71, %73, %74 : vector<128x128xi1>, vector<128x128xf32>
      %cst_43 = arith.constant dense<0.000000e+00> : vector<128xf32>
      %76 = vector.multi_reduction <add>, %75, %cst_43 [1] : vector<128x128xf32> to vector<128xf32>
      %77 = vector.shape_cast %76 : vector<128xf32> to vector<128x1xf32>
      %c0_44 = arith.constant 0 : index
      %c0_45 = arith.constant 0 : index
      %c0_46 = arith.constant 0 : index
      %78 = vector.load %arg8[%c0_44, %c0_45, %c0_46] : memref<2x128x1xf32, #tpu.memory_space<vmem>>, vector<1x128x1xf32>
      %79 = vector.shape_cast %78 : vector<1x128x1xf32> to vector<128x1xf32>
      %80 = vector.shape_cast %77 : vector<128x1xf32> to vector<1x128x1xf32>
      tpu.vector_store %arg8[%c0_44, %c0_45, %c0_46], %80 {strides = array<i32>} : memref<2x128x1xf32, #tpu.memory_space<vmem>>, vector<1x128x1xf32>,
      %81 = arith.addf %24, %55 : vector<1x128xf32>
      %c0_47 = arith.constant 0 : index
      %c128 = arith.constant 128 : index
      %82 = vector.load %arg5[%c0_47, %c128] : memref<8x256xf32, #tpu.memory_space<vmem>>, vector<1x128xf32>
      %c128_48 = arith.constant 128 : index
      %c128_49 = arith.constant 128 : index
      %83 = vector.load %arg4[%c128_48, %c128_49] : memref<256x256xf32, #tpu.memory_space<vmem>>, vector<128x128xf32>
      %84 = tpu.iota {dimensions = array<i32: 0>} : vector<128x128xi32>
      %85 = tpu.iota {dimensions = array<i32: 1>} : vector<128x128xi32>
      %86 = arith.cmpi eq, %84, %85 : vector<128x128xi32>
      %cst_50 = arith.constant 0.000000e+00 : f32
      %87 = vector.broadcast %cst_50 : f32 to vector<128x128xf32>
      %88 = arith.select %86, %83, %87 : vector<128x128xi1>, vector<128x128xf32>
      %cst_51 = arith.constant dense<0.000000e+00> : vector<128xf32>
      %89 = vector.multi_reduction <add>, %88, %cst_51 [0] : vector<128x128xf32> to vector<128xf32>
      %90 = vector.shape_cast %89 : vector<128xf32> to vector<1x128xf32>
      %91 = arith.mulf %82, %82 : vector<1x128xf32>
      %cst_52 = arith.constant 6.400000e+02 : f32
      %92 = vector.broadcast %cst_52 : f32 to vector<1x128xf32>
      %93 = arith.mulf %92, %91 : vector<1x128xf32>
      %94 = arith.subf %90, %93 : vector<1x128xf32>
      %cst_53 = arith.constant 0.00156494521 : f32
      %95 = vector.broadcast %cst_53 : f32 to vector<1x128xf32>
      %96 = arith.mulf %94, %95 : vector<1x128xf32>
      %cst_54 = arith.constant 0.000000e+00 : f32
      %97 = vector.broadcast %cst_54 : f32 to vector<1x128xf32>
      %98 = arith.maximumf %96, %97 : vector<1x128xf32>
      %99 = math.sqrt %98 : vector<1x128xf32>
      %100 = arith.mulf %99, %99 : vector<1x128xf32>
      %cst_55 = arith.constant 9.99999993E-9 : f32
      %101 = vector.broadcast %cst_55 : f32 to vector<1x128xf32>
      %102 = arith.addf %100, %101 : vector<1x128xf32>
      %103 = tpu.reciprocal %102 {approx = true} : vector<1x128xf32> -> vector<1x128xf32>
      %104 = arith.mulf %102, %103 : vector<1x128xf32>
      %cst_56 = arith.constant 2.000000e+00 : f32
      %105 = vector.broadcast %cst_56 : f32 to vector<1x128xf32>
      %106 = arith.subf %105, %104 : vector<1x128xf32>
      %107 = arith.mulf %103, %106 : vector<1x128xf32>
      %108 = arith.mulf %96, %107 : vector<1x128xf32>
      %109 = math.absf %108 : vector<1x128xf32>
      %cst_57 = arith.constant 0.699999988 : f32
      %110 = vector.broadcast %cst_57 : f32 to vector<1x128xf32>
      %111 = arith.subf %109, %110 : vector<1x128xf32>
      %112 = arith.mulf %111, %111 : vector<1x128xf32>
      %c0_58 = arith.constant 0 : index
      %c128_59 = arith.constant 128 : index
      %113 = vector.load %arg6[%c0_58, %c128_59] : memref<1x256xf32, #tpu.memory_space<vmem>>, vector<1x128xf32>
      tpu.vector_store %arg6[%c0_58, %c128_59], %99 {strides = array<i32>} : memref<1x256xf32, #tpu.memory_space<vmem>>, vector<1x128xf32>,
      %114 = tpu.iota {dimensions = array<i32: 0>} : vector<128x128xi32>
      %115 = tpu.iota {dimensions = array<i32: 1>} : vector<128x128xi32>
      %116 = arith.cmpi eq, %114, %115 : vector<128x128xi32>
      %cst_60 = arith.constant 0.000000e+00 : f32
      %117 = vector.shape_cast %82 : vector<1x128xf32> to vector<1x128xf32>
      %118 = vector.broadcast %117 : vector<1x128xf32> to vector<128x128xf32>
      %119 = vector.broadcast %cst_60 : f32 to vector<128x128xf32>
      %120 = arith.select %116, %118, %119 : vector<128x128xi1>, vector<128x128xf32>
      %cst_61 = arith.constant dense<0.000000e+00> : vector<128xf32>
      %121 = vector.multi_reduction <add>, %120, %cst_61 [1] : vector<128x128xf32> to vector<128xf32>
      %122 = vector.shape_cast %121 : vector<128xf32> to vector<128x1xf32>
      %c1 = arith.constant 1 : index
      %c0_62 = arith.constant 0 : index
      %c0_63 = arith.constant 0 : index
      %123 = vector.load %arg7[%c1, %c0_62, %c0_63] : memref<2x128x1xf32, #tpu.memory_space<vmem>>, vector<1x128x1xf32>
      %124 = vector.shape_cast %123 : vector<1x128x1xf32> to vector<128x1xf32>
      %125 = vector.shape_cast %122 : vector<128x1xf32> to vector<1x128x1xf32>
      tpu.vector_store %arg7[%c1, %c0_62, %c0_63], %125 {strides = array<i32>} : memref<2x128x1xf32, #tpu.memory_space<vmem>>, vector<1x128x1xf32>,
      %126 = tpu.iota {dimensions = array<i32: 0>} : vector<128x128xi32>
      %127 = tpu.iota {dimensions = array<i32: 1>} : vector<128x128xi32>
      %128 = arith.cmpi eq, %126, %127 : vector<128x128xi32>
      %cst_64 = arith.constant 0.000000e+00 : f32
      %129 = vector.shape_cast %99 : vector<1x128xf32> to vector<1x128xf32>
      %130 = vector.broadcast %129 : vector<1x128xf32> to vector<128x128xf32>
      %131 = vector.broadcast %cst_64 : f32 to vector<128x128xf32>
      %132 = arith.select %128, %130, %131 : vector<128x128xi1>, vector<128x128xf32>
      %cst_65 = arith.constant dense<0.000000e+00> : vector<128xf32>
      %133 = vector.multi_reduction <add>, %132, %cst_65 [1] : vector<128x128xf32> to vector<128xf32>
      %134 = vector.shape_cast %133 : vector<128xf32> to vector<128x1xf32>
      %c1_66 = arith.constant 1 : index
      %c0_67 = arith.constant 0 : index
      %c0_68 = arith.constant 0 : index
      %135 = vector.load %arg8[%c1_66, %c0_67, %c0_68] : memref<2x128x1xf32, #tpu.memory_space<vmem>>, vector<1x128x1xf32>
      %136 = vector.shape_cast %135 : vector<1x128x1xf32> to vector<128x1xf32>
      %137 = vector.shape_cast %134 : vector<128x1xf32> to vector<1x128x1xf32>
      tpu.vector_store %arg8[%c1_66, %c0_67, %c0_68], %137 {strides = array<i32>} : memref<2x128x1xf32, #tpu.memory_space<vmem>>, vector<1x128x1xf32>,
      %138 = arith.addf %81, %112 : vector<1x128xf32>
      %cst_69 = arith.constant 0.000000e+00 : f32
      %139 = vector.broadcast %cst_69 : f32 to vector<1x256xf32>
      %cst_70 = arith.constant 6.400000e+02 : f32
      %cst_71 = arith.constant 0.00156494521 : f32
      %cst_72 = arith.constant 9.99999993E-9 : f32
      %cst_73 = arith.constant 0.699999988 : f32
      %c0_i32_74 = arith.constant 0 : i32
      %c2_i32 = arith.constant 2 : i32
      %140 = arith.addi %c0_i32_74, %c2_i32 : i32
      %c1_i32 = arith.constant 1 : i32
      %141 = scf.for %arg10 = %c0_i32_74 to %140 step %c1_i32 iter_args(%arg11 = %139) -> (vector<1x256xf32>)  : i32 {
        %c128_i32 = arith.constant 128 : i32
        %156 = arith.muli %arg10, %c128_i32 : i32
        %157 = tpu.assume_multiple %156, 128 : i32
        %158 = arith.index_cast %157 : i32 to index
        %c0_83 = arith.constant 0 : index
        %159 = vector.load %arg4[%158, %c0_83] : memref<256x256xf32, #tpu.memory_space<vmem>>, vector<128x256xf32>
        %160 = arith.index_cast %arg10 : i32 to index
        %c0_84 = arith.constant 0 : index
        %c0_85 = arith.constant 0 : index
        %161 = vector.load %arg7[%160, %c0_84, %c0_85] : memref<2x128x1xf32, #tpu.memory_space<vmem>>, vector<1x128x1xf32>
        %162 = vector.shape_cast %161 : vector<1x128x1xf32> to vector<128x1xf32>
        %163 = arith.index_cast %arg10 : i32 to index
        %c0_86 = arith.constant 0 : index
        %c0_87 = arith.constant 0 : index
        %164 = vector.load %arg8[%163, %c0_86, %c0_87] : memref<2x128x1xf32, #tpu.memory_space<vmem>>, vector<1x128x1xf32>
        %165 = vector.shape_cast %164 : vector<1x128x1xf32> to vector<128x1xf32>
        %c0_88 = arith.constant 0 : index
        %c0_89 = arith.constant 0 : index
        %166 = vector.load %arg5[%c0_88, %c0_89] : memref<8x256xf32, #tpu.memory_space<vmem>>, vector<1x256xf32>
        %c0_90 = arith.constant 0 : index
        %c0_91 = arith.constant 0 : index
        %167 = vector.load %arg6[%c0_90, %c0_91] : memref<1x256xf32, #tpu.memory_space<vmem>>, vector<1x256xf32>
        %168 = vector.broadcast %162 : vector<128x1xf32> to vector<128x256xf32>
        %169 = vector.broadcast %166 : vector<1x256xf32> to vector<128x256xf32>
        %170 = arith.mulf %168, %169 : vector<128x256xf32>
        %171 = vector.broadcast %cst_70 : f32 to vector<128x256xf32>
        %172 = arith.mulf %171, %170 : vector<128x256xf32>
        %173 = arith.subf %159, %172 : vector<128x256xf32>
        %174 = vector.broadcast %cst_71 : f32 to vector<128x256xf32>
        %175 = arith.mulf %173, %174 : vector<128x256xf32>
        %176 = vector.broadcast %165 : vector<128x1xf32> to vector<128x256xf32>
        %177 = vector.broadcast %167 : vector<1x256xf32> to vector<128x256xf32>
        %178 = arith.mulf %176, %177 : vector<128x256xf32>
        %179 = vector.broadcast %cst_72 : f32 to vector<128x256xf32>
        %180 = arith.addf %178, %179 : vector<128x256xf32>
        %181 = tpu.reciprocal %180 {approx = true} : vector<128x256xf32> -> vector<128x256xf32>
        %182 = arith.mulf %180, %181 : vector<128x256xf32>
        %cst_92 = arith.constant 2.000000e+00 : f32
        %183 = vector.broadcast %cst_92 : f32 to vector<128x256xf32>
        %184 = arith.subf %183, %182 : vector<128x256xf32>
        %185 = arith.mulf %181, %184 : vector<128x256xf32>
        %186 = arith.mulf %175, %185 : vector<128x256xf32>
        %187 = math.absf %186 : vector<128x256xf32>
        %188 = vector.broadcast %cst_73 : f32 to vector<128x256xf32>
        %189 = arith.subf %187, %188 : vector<128x256xf32>
        %190 = arith.mulf %189, %189 : vector<128x256xf32>
        %cst_93 = arith.constant dense<0.000000e+00> : vector<256xf32>
        %191 = vector.multi_reduction <add>, %190, %cst_93 [0] : vector<128x256xf32> to vector<256xf32>
        %192 = vector.shape_cast %191 : vector<256xf32> to vector<1x256xf32>
        %193 = arith.addf %arg11, %192 : vector<1x256xf32>
        scf.yield %193 : vector<1x256xf32>
      }
      %c2_i32_75 = arith.constant 2 : i32
      %142 = vector.shape_cast %141 : vector<1x256xf32> to vector<1x1x256xf32>
      %cst_76 = arith.constant dense<0.000000e+00> : vector<1xf32>
      %143 = vector.multi_reduction <add>, %142, %cst_76 [1, 2] : vector<1x1x256xf32> to vector<1xf32>
      %144 = vector.shape_cast %143 : vector<1xf32> to vector<1x1x1xf32>
      %145 = vector.extract %144[0, 0, 0] : f32 from vector<1x1x1xf32>
      %146 = vector.shape_cast %138 : vector<1x128xf32> to vector<1x1x128xf32>
      %cst_77 = arith.constant dense<0.000000e+00> : vector<1xf32>
      %147 = vector.multi_reduction <add>, %146, %cst_77 [1, 2] : vector<1x1x128xf32> to vector<1xf32>
      %148 = vector.shape_cast %147 : vector<1xf32> to vector<1x1x1xf32>
      %149 = vector.extract %148[0, 0, 0] : f32 from vector<1x1x1xf32>
      %150 = arith.subf %145, %149 : f32
      %cst_78 = arith.constant 1.53186284E-5 : f32
      %151 = arith.mulf %150, %cst_78 : f32
      %cst_79 = arith.constant 0.000000e+00 : f32
      %152 = vector.broadcast %cst_79 : f32 to vector<1x8x128xf32>
      %153 = vector.broadcast %151 : f32 to vector<1x8x128xf32>
      %154 = arith.addf %152, %153 : vector<1x8x128xf32>
      %c0_80 = arith.constant 0 : index
      %c0_81 = arith.constant 0 : index
      %c0_82 = arith.constant 0 : index
      %155 = vector.load %arg3[%c0_80, %c0_81, %c0_82] : memref<1x8x128xf32, #tpu.memory_space<vmem>>, vector<1x8x128xf32>
      tpu.vector_store %arg3[%c0_80, %c0_81, %c0_82], %154 {strides = array<i32>} : memref<1x8x128xf32, #tpu.memory_space<vmem>>, vector<1x8x128xf32>,
    } else {
    }
    return
  }
  func.func @transform_0(%arg0: i32, %arg1: i32) -> (i32, i32, i32) {
    %c0_i32 = arith.constant 0 : i32
    %c0_i32_0 = arith.constant 0 : i32
    return %arg0, %arg1, %c0_i32 : i32, i32, i32
  }
  func.func @transform_1(%arg0: i32, %arg1: i32) -> (i32, i32, i32) {
    %c0_i32 = arith.constant 0 : i32
    %c0_i32_0 = arith.constant 0 : i32
    %c0_i32_1 = arith.constant 0 : i32
    return %arg0, %c0_i32, %c0_i32_0 : i32, i32, i32
  }
}

</mosaic_0001>

<bundles_post_ra>
// kernel: tpu_custom_call.1
= control target key start
LH: loop header
LB: loop body
LE: loop exit
PB: predicated region body
PF: predicated region fallthrough
CT: control target
= control target key end

     0   :  { %6 = vsyncpa [#allocation9], 0  ;;  %s8506_s0 = inlined_call_operand.hbm [shape: f32[2,768,256], index: 0, kind: input, shape index: {}]   ;;  %s8507_s1 = inlined_call_operand.hbm [shape: f32[2,8,128], index: 1, kind: output, shape index: {}]  }
   0x1   :  { %8 = vsyncpa [#allocation9 + $0x1], 0 }
   0x2   :  { %9 = vsyncpa [#allocation10], 0 }
   0x3   :  { %11 = vsyncpa [#allocation10 + $0x1], 0  ;;  %s5330_s6 = smov 0   ;;  %s5332_s7 = smov 0  }
   0x4   :  { %s5334_s8 = smov 0   ;;  %s5336_s9 = smov 0  }
   0x5   :  { %s5338_s10 = smov 0   ;;  %s5340_s11 = smov 0  }
   0x6 LB: > { %s4158_s12 = sadd.s32 4294967295, %s5290_s11   ;;  %s4159_s13 = sadd.s32 4294967294, %s5290_s11   ;;  %s5290_s11 = sphi %s5340_s11, %s17_s11   ;;  %s5286_s10 = sphi %s5338_s10, %s9701_s10   ;;  %s5282_s9 = sphi %s5336_s9, %s9700_s9   ;;  %s5278_s8 = sphi %s5334_s8, %s9699_s8   ;;  %s5274_s7 = sphi %s5332_s7, %s9698_s7   ;;  %s5270_s6 = sphi %s5330_s6, %s9697_s6  }
   0x7   : > { %s29_s14 = sadd.s32 1, %s5286_s10  ;;  %s38_s15 = sadd.s32 1, %s5278_s8 }
   0x8   : > { %p31_p0 = scmp.ge.s32.totalorder %s29_s14, 2  ;;  %p45_p1 = scmp.ne.s32.totalorder %s5278_s8, %s5274_s7 }
   0x9   : > { %p46_p2 = scmp.eq.s32.totalorder %s5290_s11, 0  ;;  %p51_p3 = scmp.ne.s32.totalorder %s5274_s7, %s5270_s6 }
   0xa   : > { %s9703_s14 = smov (%p31_p0, %s29_s14), 0  ;;  %p52_p5 = scmp.eq.s32.totalorder %s4158_s12, 0 }
   0xb   : > { %p5371_p4 = por %p46_p2, %p45_p1  ;;  %s33_s17 = ssub.s32 %s5286_s10, %s9703_s14 }
   0xc   : > { %p75_p6 = scmp.eq.s32.totalorder %s4158_s12, 1  ;;  %p36_p7 = scmp.eq.s32.totalorder %s33_s17, 0 }
   0xd   : > { %p5377_p8 = por %p52_p5, %p51_p3  ;;  %p81_p10 = scmp.eq.s32.totalorder %s4159_s13, 1 }
   0xe   : > { %p5381_p9 = por %p75_p6, %p45_p1  ;;  %p4161_p12 = scmp.ge.s32.totalorder %s5290_s11, 2 }
   0xf   : > { %s5386_s20 = scalar_select %p36_p7, %s5278_s8, %s38_s15  }
  0x10   : > { %p5388_p11 = por %p81_p10, %p51_p3  ;;  %p4676_p13 = scmp.lt.s32.totalorder %s5290_s11, 2 }
  0x11   : > { %s101_s22 = sand.u32 1, %s5278_s8   ;;  %s4658_s24 = smul.u32 1536, %s5286_s10 }
  0x12   : > { %s4657_s23 = smul.u32 1536, %s101_s22  ;;  %p4669_p0 = pnand %p4676_p13, %p5371_p4 }
  0x13   : > { %s113_s27 = scalar_lea.hbm %s8506_s0, %s4658_s24  ;;  %p4163_p1 = scmp.ge.s32.totalorder %s5290_s11, 1 }
  0x14   : > { %s105_s28 = scalar_lea.vmem [#allocation8], %s4657_s23  ;;  %s114_s30 = sshll.u32 %s113_s27, 4  ;;  %s115_s30 = int_to_ptr.hbm [resolvable:$true] %s114_s30 }
  0x15   : > { %s116_s29 = sshll.u32 %s105_s28, 4  ;;  %s102_s2 = scalar_lea.sflag [#allocation9], %s101_s22  ;;  %s117_s29 = int_to_ptr.vmem [resolvable:$true] %s116_s29 }
  0x16   : > { %s5304_s3 = smov 256   ;;  %s5305_s4 = smov 16  }
  0x17   : > { %4671 = dma.hbm_to_vmem [thread:$0]  (!%p4669_p0), %s115_s30, 24576, %s117_s29, %s102_s2, %s5304_s3, %s5304_s3, %s5305_s4  }
  0x18   : > { %p124_p2 = scmp.lt.s32.totalorder %s5290_s11, 3 }
  0x1a   : > { %p125_p3 = pnand %p4163_p1, %p124_p2 }
  0x1c   : > { %128 = sbr.rel (%p125_p3) target bundleno = 1940 (0x794), region = 24 }
  0x21   : > { %s5404_s5 = sand.u32 1, %s5274_s7  }
  0x22   : > { %s4659_s12 = smul.u32 1536, %s5404_s5  ;;  %s131_s13 = scalar_lea.sflag [#allocation9], %s5404_s5 }
  0x24   : > { %s5408_s15 = scalar_lea.vmem [#allocation8], %s4659_s12 }
  0x25   : > { %5261 = dma.done.wait (%p5377_p8), %s131_s13, 24576  }
  0x26   : > { %5263 = vsyncadd (%p5377_p8), %s131_s13, 4294942720  ;;  %v8508_v0 = vlaneseq  ;;  %v159_v1 = vld [vmem:[%s5408_s15] ss:$8 sm:$0x3]  ;;  %s4164_s16 = sshll.u32 %s5404_s5, 3  ;;  %v265_v12 = vld [vmem:[%s5408_s15 + $0x110] sm:$0xff] }
  0x27   : > { %v263_v2 = vld [vmem:[%s5408_s15 + $0x100] sm:$0xff]  ;;  %v329_v13 = vld [vmem:[%s5408_s15 + $0x310] sm:$0xff]  ;;  %s8106_s17 = scalar_lea.vmem [#allocation11], %s4164_s16  ;;  %s8112_s18 = smov 0  }
  0x28   : > { %vm162_vm0 = vcmp.lt.s32.totalorder %v8508_v0, 256  ;;  %v327_v3 = vld [vmem:[%s5408_s15 + $0x300] sm:$0xff]  ;;  %v233_v14 = vld [vmem:[%s5408_s15 + $0x10] sm:$0xff] }
  0x29   : > { %164 = vst.msk [vmem:[#allocation7] sm:$0x3] %vm162_vm0, %v159_v1  ;;  %v231_v5 = vld [vmem:[%s5408_s15] sm:$0xff]  ;;  %v297_v15 = vld [vmem:[%s5408_s15 + $0x210] sm:$0xff] }
  0x2a   : > { %v295_v6 = vld [vmem:[%s5408_s15 + $0x200] sm:$0xff]  ;;  %v269_v34 = vld [vmem:[%s5408_s15 + $0x130] sm:$0xff] }
  0x2b   : > { %v267_v24 = vld [vmem:[%s5408_s15 + $0x120] sm:$0xff]  ;;  %v333_v35 = vld [vmem:[%s5408_s15 + $0x330] sm:$0xff] }
  0x2c   : > { %v331_v25 = vld [vmem:[%s5408_s15 + $0x320] sm:$0xff]  ;;  %v237_v36 = vld [vmem:[%s5408_s15 + $0x30] sm:$0xff] }
  0x2d   : > { %v235_v26 = vld [vmem:[%s5408_s15 + $0x20] sm:$0xff]  ;;  %v301_v37 = vld [vmem:[%s5408_s15 + $0x230] sm:$0xff] }
  0x2e   : > { %v299_v27 = vld [vmem:[%s5408_s15 + $0x220] sm:$0xff]  ;;  %v273_v54 = vld [vmem:[%s5408_s15 + $0x150] sm:$0xff] }
  0x2f   : > { %v271_v44 = vld [vmem:[%s5408_s15 + $0x140] sm:$0xff]  ;;  %v337_v55 = vld [vmem:[%s5408_s15 + $0x350] sm:$0xff] }
  0x30   : > { %v5419_v4 = vld [vmem:[#allocation7] sm:$0x3]  ;;  %v335_v45 = vld [vmem:[%s5408_s15 + $0x340] sm:$0xff]  ;;  %v241_v56 = vld [vmem:[%s5408_s15 + $0x50] sm:$0xff] }
  0x31   : > { %8913 = vst [vmem:[#allocation14_spill] sm:$0xff] %v5419_v4  ;;  %v5424_v7 = vperm.slane %v5419_v4, 0  ;;  %v239_v46 = vld [vmem:[%s5408_s15 + $0x40] sm:$0xff]  ;;  %v305_v57 = vld [vmem:[%s5408_s15 + $0x250] sm:$0xff] }
  0x32   : > { %v303_v47 = vld [vmem:[%s5408_s15 + $0x240] sm:$0xff] }
  0x33   : > { %v5427_v8 = vsub.f32 %v263_v2, %v5424_v7  ;;  %v5430_v9 = vsub.f32 %v327_v3, %v5424_v7  ;;  %v5433_v10 = vsub.f32 %v231_v5, %v5424_v7  ;;  %v5436_v11 = vsub.f32 %v295_v6, %v5424_v7  ;;  %v275_v1 = vld [vmem:[%s5408_s15 + $0x160] sm:$0xff] }
  0x34   : > { %v5447_v18 = vsub.f32 %v265_v12, %v5424_v7  ;;  %v5450_v19 = vsub.f32 %v329_v13, %v5424_v7  ;;  %v5453_v20 = vsub.f32 %v233_v14, %v5424_v7  ;;  %v5456_v21 = vsub.f32 %v297_v15, %v5424_v7  ;;  %v339_v2 = vld [vmem:[%s5408_s15 + $0x360] sm:$0xff] }
  0x35   : > { %8914 = vst [vmem:[#allocation15_spill] sm:$0xff] %v5427_v8  ;;  %v4867_v16 = vpack.i.bf16 %v5427_v8, %v5430_v9  ;;  %v4755_v17 = vpack.i.bf16 %v5433_v10, %v5436_v11  ;;  %v5467_v28 = vsub.f32 %v267_v24, %v5424_v7  ;;  %v5470_v29 = vsub.f32 %v331_v25, %v5424_v7  ;;  %v243_v3 = vld [vmem:[%s5408_s15 + $0x60] sm:$0xff]  ;;  %v309_v24 = vld [vmem:[%s5408_s15 + $0x270] sm:$0xff] }
  0x36   : > { %8915 = vst [vmem:[#allocation16_spill] sm:$0xff] %v5430_v9  ;;  %v4869_v22 = vpack.i.bf16 %v5447_v18, %v5450_v19  ;;  %v4757_v23 = vpack.i.bf16 %v5453_v20, %v5456_v21  ;;  %v5473_v30 = vsub.f32 %v235_v26, %v5424_v7  ;;  %v5476_v31 = vsub.f32 %v299_v27, %v5424_v7  ;;  %v307_v5 = vld [vmem:[%s5408_s15 + $0x260] sm:$0xff] }
  0x37   : > { %8916 = vst [vmem:[#allocation17_spill] sm:$0xff] %v5433_v10  ;;  %4868 = vxpose.xlu1.b32.start [1/16] %v4867_v16, 128  ;;  %4756 = vxpose.xlu0.b32.start [1/16] %v4755_v17, 128  ;;  %v4871_v32 = vpack.i.bf16 %v5467_v28, %v5470_v29  ;;  %v5487_v38 = vsub.f32 %v269_v34, %v5424_v7  ;;  %v277_v17 = vld [vmem:[%s5408_s15 + $0x170] sm:$0xff]  ;;  %v323_v0 = vld [vmem:[%s5408_s15 + $0x2e0] sm:$0xff] }
  0x38   : > { %8917 = vst [vmem:[#allocation18_spill] sm:$0xff] %v5436_v11  ;;  %v4759_v33 = vpack.i.bf16 %v5473_v30, %v5476_v31  ;;  %v5490_v39 = vsub.f32 %v333_v35, %v5424_v7  ;;  %v5493_v40 = vsub.f32 %v237_v36, %v5424_v7  ;;  %v5496_v41 = vsub.f32 %v301_v37, %v5424_v7  ;;  %v279_v35 = vld [vmem:[%s5408_s15 + $0x180] sm:$0xff] }
  0x39   : > { %8918 = vst [vmem:[#allocation19_spill] sm:$0xff] %v5447_v18  ;;  %v5507_v48 = vsub.f32 %v271_v44, %v5424_v7  ;;  %v5510_v49 = vsub.f32 %v335_v45, %v5424_v7  ;;  %v5513_v50 = vsub.f32 %v239_v46, %v5424_v7  ;;  %v5516_v51 = vsub.f32 %v303_v47, %v5424_v7  ;;  %v343_v36 = vld [vmem:[%s5408_s15 + $0x380] sm:$0xff]  ;;  %v321_v18 = vld [vmem:[%s5408_s15 + $0x2d0] sm:$0xff] }
  0x3a   : > { %8919 = vst [vmem:[#allocation20_spill] sm:$0xff] %v5450_v19  ;;  %v4873_v42 = vpack.i.bf16 %v5487_v38, %v5490_v39  ;;  %v4761_v43 = vpack.i.bf16 %v5493_v40, %v5496_v41  ;;  %v5527_v58 = vsub.f32 %v273_v54, %v5424_v7  ;;  %v5530_v59 = vsub.f32 %v337_v55, %v5424_v7  ;;  %v247_v37 = vld [vmem:[%s5408_s15 + $0x80] sm:$0xff]  ;;  %v345_v54 = vld [vmem:[%s5408_s15 + $0x390] sm:$0xff] }
  0x3b   : > { %8920 = vst [vmem:[#allocation21_spill] sm:$0xff] %v5453_v20  ;;  %v4875_v52 = vpack.i.bf16 %v5507_v48, %v5510_v49  ;;  %v4763_v53 = vpack.i.bf16 %v5513_v50, %v5516_v51  ;;  %v5533_v60 = vsub.f32 %v241_v56, %v5424_v7  ;;  %v5536_v61 = vsub.f32 %v305_v57, %v5424_v7  ;;  %v249_v55 = vld [vmem:[%s5408_s15 + $0x90] sm:$0xff]  ;;  %v351_v9 = vld [vmem:[%s5408_s15 + $0x3c0] sm:$0xff] }
  0x3c   : > { %8921 = vst [vmem:[#allocation22_spill] sm:$0xff] %v5456_v21  ;;  %v4877_v62 = vpack.i.bf16 %v5527_v58, %v5530_v59  ;;  %v5547_v6 = vsub.f32 %v275_v1, %v5424_v7  ;;  %v5550_v12 = vsub.f32 %v339_v2, %v5424_v7  ;;  %v5553_v13 = vsub.f32 %v243_v3, %v5424_v7  ;;  %v313_v56 = vld [vmem:[%s5408_s15 + $0x290] sm:$0xff]  ;;  %v255_v11 = vld [vmem:[%s5408_s15 + $0xc0] sm:$0xff] }
  0x3d   : > { %8922 = vst [vmem:[#allocation23_spill] sm:$0xff] %v5467_v28  ;;  %v4765_v63 = vpack.i.bf16 %v5533_v60, %v5536_v61  ;;  %v5556_v14 = vsub.f32 %v307_v5, %v5424_v7  ;;  %v5567_v25 = vsub.f32 %v277_v17, %v5424_v7  ;;  %v5590_v44 = vsub.f32 %v343_v36, %v5424_v7  ;;  %v283_v5 = vld [vmem:[%s5408_s15 + $0x1a0] sm:$0xff]  ;;  %v285_v36 = vld [vmem:[%s5408_s15 + $0x1b0] sm:$0xff] }
  0x3e   : > { %8923 = vst [vmem:[#allocation24_spill] sm:$0xff] %v5470_v29  ;;  %v4879_v15 = vpack.i.bf16 %v5547_v6, %v5550_v12  ;;  %v5593_v45 = vsub.f32 %v247_v37, %v5424_v7  ;;  %v5616_v1 = vsub.f32 %v313_v56, %v5424_v7  ;;  %v315_v17 = vld [vmem:[%s5408_s15 + $0x2a0] sm:$0xff]  ;;  %v349_v37 = vld [vmem:[%s5408_s15 + $0x3b0] sm:$0xff]  ;;  %v5723_v20 = vsub.f32 %v255_v11, %v5424_v7 }
  0x3f   : > { %4870 = vxpose.xlu1.b32.cont [2/16] %v4869_v22, 128  ;;  %4758 = vxpose.xlu0.b32.cont [2/16] %v4757_v23, 128  ;;  %8924 = vst [vmem:[#allocation25_spill] sm:$0xff] %v5473_v30  ;;  %v4767_v16 = vpack.i.bf16 %v5553_v13, %v5556_v14  ;;  %v341_v22 = vld [vmem:[%s5408_s15 + $0x370] sm:$0xff]  ;;  %v319_v8 = vld [vmem:[%s5408_s15 + $0x2c0] sm:$0xff] }
  0x40   : > { %8925 = vst [vmem:[#allocation26_spill] sm:$0xff] %v5476_v31  ;;  %v245_v23 = vld [vmem:[%s5408_s15 + $0x70] sm:$0xff]  ;;  %v5570_v26 = vsub.f32 %v341_v22, %v5424_v7  ;;  %v5627_v22 = vsub.f32 %v283_v5, %v5424_v7 }
  0x41   : > { %8926 = vst [vmem:[#allocation27_spill] sm:$0xff] %v5487_v38  ;;  %v5573_v27 = vsub.f32 %v245_v23, %v5424_v7  ;;  %v357_v5 = vld [vmem:[%s5408_s15 + $0x3f0] sm:$0xff] }
  0x42   : > { %8927 = vst [vmem:[#allocation28_spill] sm:$0xff] %v5490_v39  ;;  %v257_v21 = vld [vmem:[%s5408_s15 + $0xd0] sm:$0xff] }
  0x43   : > { %8928 = vst [vmem:[#allocation29_spill] sm:$0xff] %v5493_v40 }
  0x44   : > { %8929 = vst [vmem:[#allocation30_spill] sm:$0xff] %v5496_v41 }
  0x45   : > { %8930 = vst [vmem:[#allocation31_spill] sm:$0xff] %v5507_v48 }
  0x46   : > { %8931 = vst [vmem:[#allocation32_spill] sm:$0xff] %v5510_v49 }
  0x47   : > { %4872 = vxpose.xlu1.b32.cont [3/16] %v4871_v32, 128  ;;  %4760 = vxpose.xlu0.b32.cont [3/16] %v4759_v33, 128  ;;  %8932 = vst [vmem:[#allocation33_spill] sm:$0xff] %v5513_v50  ;;  %v5576_v32 = vsub.f32 %v309_v24, %v5424_v7  ;;  %v4881_v33 = vpack.i.bf16 %v5567_v25, %v5570_v26 }
  0x48   : > { %8933 = vst [vmem:[#allocation34_spill] sm:$0xff] %v5516_v51 }
  0x49   : > { %8934 = vst [vmem:[#allocation35_spill] sm:$0xff] %v5527_v58  ;;  %v4769_v34 = vpack.i.bf16 %v5573_v27, %v5576_v32 }
  0x4a   : > { %8935 = vst [vmem:[#allocation36_spill] sm:$0xff] %v5530_v59 }
  0x4b   : > { %8936 = vst [vmem:[#allocation37_spill] sm:$0xff] %v5533_v60 }
  0x4c   : > { %8937 = vst [vmem:[#allocation38_spill] sm:$0xff] %v5536_v61 }
  0x4d   : > { %8938 = vst [vmem:[#allocation39_spill] sm:$0xff] %v5547_v6 }
  0x4e   : > { %8939 = vst [vmem:[#allocation40_spill] sm:$0xff] %v5550_v12 }
  0x4f   : > { %4874 = vxpose.xlu1.b32.cont [4/16] %v4873_v42, 128  ;;  %4762 = vxpose.xlu0.b32.cont [4/16] %v4761_v43, 128  ;;  %8940 = vst [vmem:[#allocation41_spill] sm:$0xff] %v5553_v13  ;;  %v311_v42 = vld [vmem:[%s5408_s15 + $0x280] sm:$0xff]  ;;  %v5587_v43 = vsub.f32 %v279_v35, %v5424_v7 }
  0x50   : > { %8941 = vst [vmem:[#allocation42_spill] sm:$0xff] %v5556_v14  ;;  %v5596_v46 = vsub.f32 %v311_v42, %v5424_v7  ;;  %v253_v42 = vld [vmem:[%s5408_s15 + $0xb0] sm:$0xff] }
  0x51   : > { %8942 = vst [vmem:[#allocation43_spill] sm:$0xff] %v5567_v25  ;;  %v4883_v47 = vpack.i.bf16 %v5587_v43, %v5590_v44 }
  0x52   : > { %8943 = vst [vmem:[#allocation44_spill] sm:$0xff] %v5570_v26 }
  0x53   : > { %8944 = vst [vmem:[#allocation45_spill] sm:$0xff] %v5573_v27 }
  0x54   : > { %8945 = vst [vmem:[#allocation46_spill] sm:$0xff] %v5576_v32 }
  0x55   : > { %8946 = vst [vmem:[#allocation47_spill] sm:$0xff] %v5587_v43 }
  0x56   : > { %8947 = vst [vmem:[#allocation48_spill] sm:$0xff] %v5590_v44 }
  0x57   : > { %4876 = vxpose.xlu1.b32.cont [5/16] %v4875_v52, 128  ;;  %4764 = vxpose.xlu0.b32.cont [5/16] %v4763_v53, 128  ;;  %8948 = vst [vmem:[#allocation49_spill] sm:$0xff] %v5593_v45  ;;  %v4771_v52 = vpack.i.bf16 %v5593_v45, %v5596_v46  ;;  %v281_v53 = vld [vmem:[%s5408_s15 + $0x190] sm:$0xff] }
  0x58   : > { %8949 = vst [vmem:[#allocation50_spill] sm:$0xff] %v5596_v46  ;;  %v5607_v57 = vsub.f32 %v281_v53, %v5424_v7  ;;  %v291_v53 = vld [vmem:[%s5408_s15 + $0x1e0] sm:$0xff] }
  0x59   : > { %8953 = vst [vmem:[#allocation54_spill] sm:$0xff] %v5616_v1 }
  0x5a   : > { %8950 = vst [vmem:[#allocation51_spill] sm:$0xff] %v5607_v57 }
  0x5b   : > { %8954 = vst [vmem:[#allocation55_spill] sm:$0xff] %v5627_v22 }
  0x5c   : > { %8974 = vst [vmem:[#allocation75_spill] sm:$0xff] %v5723_v20 }
  0x5f   : > { %4878 = vxpose.xlu1.b32.cont [6/16] %v4877_v62, 128  ;;  %4766 = vxpose.xlu0.b32.cont [6/16] %v4765_v63, 128  ;;  %v5610_v62 = vsub.f32 %v345_v54, %v5424_v7  ;;  %v5613_v63 = vsub.f32 %v249_v55, %v5424_v7  ;;  %v5651_v54 = vsub.f32 %v349_v37, %v5424_v7  ;;  %v261_v37 = vld [vmem:[%s5408_s15 + $0xf0] sm:$0xff] }
  0x60   : > { %v5654_v55 = vsub.f32 %v253_v42, %v5424_v7  ;;  %v325_v42 = vld [vmem:[%s5408_s15 + $0x2f0] sm:$0xff] }
  0x61   : > { %8951 = vst [vmem:[#allocation52_spill] sm:$0xff] %v5610_v62  ;;  %v4885_v2 = vpack.i.bf16 %v5607_v57, %v5610_v62  ;;  %v4773_v3 = vpack.i.bf16 %v5613_v63, %v5616_v1  ;;  %v5691_v4 = vsub.f32 %v325_v42, %v5424_v7 }
  0x62   : > { %8952 = vst [vmem:[#allocation53_spill] sm:$0xff] %v5613_v63 }
  0x63   : > { %8959 = vst [vmem:[#allocation60_spill] sm:$0xff] %v5651_v54  ;;  %1295 = vmatpush.msra.mxu2 %v5691_v4 }
  0x64   : > { %8960 = vst [vmem:[#allocation61_spill] sm:$0xff] %v5654_v55 }
  0x65   : > { %8967 = vst [vmem:[#allocation68_spill] sm:$0xff] %v5691_v4 }
  0x67   : > { %4880 = vxpose.xlu1.b32.cont [7/16] %v4879_v15, 128  ;;  %4768 = vxpose.xlu0.b32.cont [7/16] %v4767_v16, 128  ;;  %v347_v15 = vld [vmem:[%s5408_s15 + $0x3a0] sm:$0xff] }
  0x68   : > { %v251_v16 = vld [vmem:[%s5408_s15 + $0xa0] sm:$0xff]  ;;  %v5630_v23 = vsub.f32 %v347_v15, %v5424_v7 }
  0x69   : > { %v5633_v24 = vsub.f32 %v251_v16, %v5424_v7  ;;  %v5666_v16 = vsub.f32 %v357_v5, %v5424_v7  ;;  %v287_v5 = vld [vmem:[%s5408_s15 + $0x1c0] sm:$0xff] }
  0x6a   : > { %8955 = vst [vmem:[#allocation56_spill] sm:$0xff] %v5630_v23 }
  0x6b   : > { %8956 = vst [vmem:[#allocation57_spill] sm:$0xff] %v5633_v24  ;;  %1408 = vmatpush.msra.mxu3 %v5666_v16 }
  0x6c   : > { %8963 = vst [vmem:[#allocation64_spill] sm:$0xff] %v5666_v16 }
  0x6f   : > { %4882 = vxpose.xlu1.b32.cont [8/16] %v4881_v33, 128  ;;  %4770 = vxpose.xlu0.b32.cont [8/16] %v4769_v34, 128  ;;  %v5636_v33 = vsub.f32 %v315_v17, %v5424_v7  ;;  %v4887_v34 = vpack.i.bf16 %v5627_v22, %v5630_v23  ;;  %v289_v17 = vld [vmem:[%s5408_s15 + $0x1d0] sm:$0xff] }
  0x70   : > { %v5697_v10 = vsub.f32 %v289_v17, %v5424_v7  ;;  %v5715_v17 = vsub.f32 %v323_v0, %v5424_v7  ;;  %v5732_v0 = vsub.f32 %v321_v18, %v5424_v7 }
  0x71   : > { %8957 = vst [vmem:[#allocation58_spill] sm:$0xff] %v5636_v33  ;;  %v4775_v35 = vpack.i.bf16 %v5633_v24, %v5636_v33 }
  0x72   : > { %8968 = vst [vmem:[#allocation69_spill] sm:$0xff] %v5697_v10  ;;  %1296 = vmatpush.msra.mxu2 %v5715_v17 }
  0x73   : > { %8972 = vst [vmem:[#allocation73_spill] sm:$0xff] %v5715_v17 }
  0x74   : > { %8977 = vst [vmem:[#allocation78_spill] sm:$0xff] %v5732_v0  ;;  %1297 = vmatpush.msra.mxu2 %v5732_v0 }
  0x77   : > { %4884 = vxpose.xlu1.b32.cont [9/16] %v4883_v47, 128  ;;  %4772 = vxpose.xlu0.b32.cont [9/16] %v4771_v52, 128  ;;  %v317_v47 = vld [vmem:[%s5408_s15 + $0x2b0] sm:$0xff]  ;;  %v5647_v52 = vsub.f32 %v285_v36, %v5424_v7 }
  0x78   : > { %v5657_v56 = vsub.f32 %v317_v47, %v5424_v7 }
  0x79   : > { %8958 = vst [vmem:[#allocation59_spill] sm:$0xff] %v5647_v52  ;;  %v4889_v47 = vpack.i.bf16 %v5647_v52, %v5651_v54 }
  0x7a   : > { %8961 = vst [vmem:[#allocation62_spill] sm:$0xff] %v5657_v56 }
  0x7f   : > { %4886 = vxpose.xlu1.b32.cont [10/16] %v4885_v2, 128  ;;  %4774 = vxpose.xlu0.b32.cont [10/16] %v4773_v3, 128  ;;  %v355_v2 = vld [vmem:[%s5408_s15 + $0x3e0] sm:$0xff]  ;;  %v293_v3 = vld [vmem:[%s5408_s15 + $0x1f0] sm:$0xff] }
  0x80   : > { %v5663_v15 = vsub.f32 %v293_v3, %v5424_v7  ;;  %v5674_v36 = vsub.f32 %v355_v2, %v5424_v7  ;;  %v4777_v3 = vpack.i.bf16 %v5654_v55, %v5657_v56  ;;  %v5688_v2 = vsub.f32 %v261_v37, %v5424_v7 }
  0x81   : > { %v5709_v37 = vsub.f32 %v287_v5, %v5424_v7  ;;  %v5726_v5 = vsub.f32 %v319_v8, %v5424_v7 }
  0x82   : > { %8962 = vst [vmem:[#allocation63_spill] sm:$0xff] %v5663_v15  ;;  %1182 = vmatpush.msra.mxu1 %v5663_v15  ;;  %1409 = vmatpush.msra.mxu3 %v5674_v36 }
  0x83   : > { %8965 = vst [vmem:[#allocation66_spill] sm:$0xff] %v5674_v36  ;;  %1069 = vmatpush.msra.mxu0 %v5688_v2  ;;  %1298 = vmatpush.msra.mxu2 %v5726_v5 }
  0x84   : > { %8966 = vst [vmem:[#allocation67_spill] sm:$0xff] %v5688_v2 }
  0x85   : > { %8970 = vst [vmem:[#allocation71_spill] sm:$0xff] %v5709_v37  ;;  %1299 = vmatpush.msra.mxu2 %v5657_v56  ;;  %v286_v56 = vld [vmem:[%s5408_s15 + $0x1b8] sm:$0xff] }
  0x86   : > { %8975 = vst [vmem:[#allocation76_spill] sm:$0xff] %v5726_v5 }
  0x87   : > { %4888 = vxpose.xlu1.b32.cont [11/16] %v4887_v34, 128  ;;  %4776 = vxpose.xlu0.b32.cont [11/16] %v4775_v35, 128  ;;  %v353_v34 = vld [vmem:[%s5408_s15 + $0x3d0] sm:$0xff]  ;;  %v5671_v35 = vsub.f32 %v291_v53, %v5424_v7  ;;  %v259_v53 = vld [vmem:[%s5408_s15 + $0xe0] sm:$0xff] }
  0x88   : > { %v5700_v19 = vsub.f32 %v353_v34, %v5424_v7  ;;  %v5712_v42 = vsub.f32 %v259_v53, %v5424_v7  ;;  %v5720_v34 = vsub.f32 %v351_v9, %v5424_v7  ;;  %v5729_v53 = vsub.f32 %v257_v21, %v5424_v7  ;;  %1300 = vmatpush.msra.mxu2 %v5636_v33 }
  0x89   : > { %8964 = vst [vmem:[#allocation65_spill] sm:$0xff] %v5671_v35  ;;  %1183 = vmatpush.msra.mxu1 %v5671_v35  ;;  %v4779_v9 = vpack.i.bf16 %v5723_v20, %v5726_v5  ;;  %v4895_v21 = vpack.i.bf16 %v5671_v35, %v5674_v36  ;;  %v248_v35 = vld [vmem:[%s5408_s15 + $0x88] sm:$0xff] }
  0x8a   : > { %8969 = vst [vmem:[#allocation70_spill] sm:$0xff] %v5700_v19  ;;  %1410 = vmatpush.msra.mxu3 %v5700_v19  ;;  %1070 = vmatpush.msra.mxu0 %v5712_v42  ;;  %v4891_v8 = vpack.i.bf16 %v5709_v37, %v5720_v34  ;;  %v4893_v11 = vpack.i.bf16 %v5697_v10, %v5700_v19  ;;  %v344_v36 = vld [vmem:[%s5408_s15 + $0x388] sm:$0xff] }
  0x8b   : > { %8971 = vst [vmem:[#allocation72_spill] sm:$0xff] %v5712_v42  ;;  %1184 = vmatpush.msra.mxu1 %v5697_v10  ;;  %1301 = vmatpush.msra.mxu2 %v5616_v1  ;;  %v4781_v18 = vpack.i.bf16 %v5729_v53, %v5732_v0  ;;  %v282_v10 = vld [vmem:[%s5408_s15 + $0x198] sm:$0xff] }
  0x8c   : > { %8973 = vst [vmem:[#allocation74_spill] sm:$0xff] %v5720_v34  ;;  %1411 = vmatpush.msra.mxu3 %v5720_v34  ;;  %1071 = vmatpush.msra.mxu0 %v5729_v53 }
  0x8d   : > { %8976 = vst [vmem:[#allocation77_spill] sm:$0xff] %v5729_v53  ;;  %1185 = vmatpush.msra.mxu1 %v5709_v37  ;;  %1302 = vmatpush.msra.mxu2 %v5596_v46  ;;  %v358_v46 = vld [vmem:[%s5408_s15 + $0x3f8] sm:$0xff]  ;;  %v252_v37 = vld [vmem:[%s5408_s15 + $0xa8] sm:$0xff] }
  0x8e   : > { %1412 = vmatpush.msra.mxu3 %v5651_v54  ;;  %1072 = vmatpush.msra.mxu0 %v5723_v20  ;;  %v254_v54 = vld [vmem:[%s5408_s15 + $0xb8] sm:$0xff] }
  0x8f   : > { %4890 = vxpose.xlu1.b32.cont [12/16] %v4889_v47, 128  ;;  %4778 = vxpose.xlu0.b32.cont [12/16] %v4777_v3, 128  ;;  %v4783_v47 = vpack.i.bf16 %v5712_v42, %v5715_v17  ;;  %v4897_v3 = vpack.i.bf16 %v5663_v15, %v5666_v16  ;;  %v346_v53 = vld [vmem:[%s5408_s15 + $0x398] sm:$0xff]  ;;  %v280_v42 = vld [vmem:[%s5408_s15 + $0x188] sm:$0xff] }
  0x90   : > { %1186 = vmatpush.msra.mxu1 %v5647_v52  ;;  %1413 = vmatpush.msra.mxu3 %v5630_v23 }
  0x91   : > { %1073 = vmatpush.msra.mxu0 %v5654_v55  ;;  %1303 = vmatpush.msra.mxu2 %v5576_v32  ;;  %v350_v55 = vld [vmem:[%s5408_s15 + $0x3b8] sm:$0xff] }
  0x92   : > { %1187 = vmatpush.msra.mxu1 %v5627_v22  ;;  %1414 = vmatpush.msra.mxu3 %v5610_v62  ;;  %v324_v62 = vld [vmem:[%s5408_s15 + $0x2e8] sm:$0xff]  ;;  %v318_v22 = vld [vmem:[%s5408_s15 + $0x2b8] sm:$0xff] }
  0x93   : > { %1074 = vmatpush.msra.mxu0 %v5633_v24  ;;  %1304 = vmatpush.msra.mxu2 %v5556_v14  ;;  %v415_v14 = vld [vmem:[%s5408_s15 + $0x5c0] sm:$0xff] }
  0x94   : > { %1188 = vmatpush.msra.mxu1 %v5607_v57  ;;  %1415 = vmatpush.msra.mxu3 %v5590_v44  ;;  %v326_v44 = vld [vmem:[%s5408_s15 + $0x2f8] sm:$0xff]  ;;  %v320_v57 = vld [vmem:[%s5408_s15 + $0x2c8] sm:$0xff] }
  0x95   : > { %1075 = vmatpush.msra.mxu0 %v5613_v63  ;;  %1305 = vmatpush.msra.mxu2 %v5536_v61 }
  0x96   : > { %1189 = vmatpush.msra.mxu1 %v5587_v43  ;;  %1416 = vmatpush.msra.mxu3 %v5570_v26 }
  0x97   : > { %4892 = vxpose.xlu1.b32.cont [13/16] %v4891_v8, 128  ;;  %4780 = vxpose.xlu0.b32.cont [13/16] %v4779_v9, 128  ;;  %v4785_v8 = vpack.i.bf16 %v5688_v2, %v5691_v4  ;;  %v8978_v9 = vld [vmem:[#allocation21_spill] sm:$0xff] }
  0x98   : > { %1076 = vmatpush.msra.mxu0 %v5593_v45  ;;  %1190 = vmatpush.msra.mxu1 %v5567_v25 }
  0x99   : > { %1417 = vmatpush.msra.mxu3 %v5550_v12  ;;  %1306 = vmatpush.msra.mxu2 %v5516_v51  ;;  %v383_v12 = vld [vmem:[%s5408_s15 + $0x4c0] sm:$0xff] }
  0x9a   : > { %1077 = vmatpush.msra.mxu0 %v5573_v27  ;;  %1191 = vmatpush.msra.mxu1 %v5547_v6 }
  0x9b   : > { %1418 = vmatpush.msra.mxu3 %v5530_v59  ;;  %1307 = vmatpush.msra.mxu2 %v5496_v41  ;;  %v8986_v41 = vld [vmem:[#allocation14_spill] sm:$0xff] }
  0x9c   : > { %1078 = vmatpush.msra.mxu0 %v5553_v13  ;;  %1192 = vmatpush.msra.mxu1 %v5527_v58  ;;  %v5914_v58 = vsub.f32 %v383_v12, %v5424_v7 }
  0x9d   : > { %1419 = vmatpush.msra.mxu3 %v5510_v49  ;;  %1308 = vmatpush.msra.mxu2 %v5476_v31  ;;  %v8983_v31 = vld [vmem:[#allocation15_spill] sm:$0xff] }
  0x9e   : > { %1079 = vmatpush.msra.mxu0 %v5533_v60  ;;  %1193 = vmatpush.msra.mxu1 %v5507_v48  ;;  %9003 = vst [vmem:[#allocation94_spill] sm:$0xff] %v5914_v58  ;;  %v5917_v60 = vsub.f32 %v415_v14, %v5424_v7 }
  0x9f   : > { %4894 = vxpose.xlu1.b32.cont [14/16] %v4893_v11, 128  ;;  %4782 = vxpose.xlu0.b32.cont [14/16] %v4781_v18, 128  ;;  %v8979_v11 = vld [vmem:[#allocation19_spill] sm:$0xff]  ;;  %v8980_v18 = vld [vmem:[#allocation22_spill] sm:$0xff] }
  0xa0   : > { %1080 = vmatpush.msra.mxu0 %v5513_v50  ;;  %1194 = vmatpush.msra.mxu1 %v5487_v38  ;;  %v385_v38 = vld [vmem:[%s5408_s15 + $0x4d0] sm:$0xff]  ;;  %9004 = vst [vmem:[#allocation95_spill] sm:$0xff] %v5917_v60 }
  0xa1   : > { %1420 = vmatpush.msra.mxu3 %v5490_v39  ;;  %1309 = vmatpush.msra.mxu2 %v8980_v18  ;;  %v8985_v39 = vld [vmem:[#allocation16_spill] sm:$0xff]  ;;  %v262_v18 = vld [vmem:[%s5408_s15 + $0xf8] sm:$0xff] }
  0xa2   : > { %1081 = vmatpush.msra.mxu0 %v5493_v40  ;;  %1195 = vmatpush.msra.mxu1 %v5467_v28  ;;  %v387_v28 = vld [vmem:[%s5408_s15 + $0x4e0] sm:$0xff]  ;;  %v417_v40 = vld [vmem:[%s5408_s15 + $0x5d0] sm:$0xff] }
  0xa3   : > { %1421 = vmatpush.msra.mxu3 %v5470_v29  ;;  %v8984_v29 = vld [vmem:[#allocation18_spill] sm:$0xff] }
  0xa4   : > { %1082 = vmatpush.msra.mxu0 %v5473_v30  ;;  %1196 = vmatpush.msra.mxu1 %v8979_v11  ;;  %v294_v11 = vld [vmem:[%s5408_s15 + $0x1f8] sm:$0xff]  ;;  %v419_v30 = vld [vmem:[%s5408_s15 + $0x5e0] sm:$0xff] }
  0xa5   : > { %1310 = vmatpush.msra.mxu2 %v8984_v29 }
  0xa6   : > { %1083 = vmatpush.msra.mxu0 %v8978_v9  ;;  %1197 = vmatpush.msra.mxu1 %v8983_v31  ;;  %v5807_v9 = vperm.slane %v8986_v41, 1  ;;  %v389_v41 = vld [vmem:[%s5408_s15 + $0x4f0] sm:$0xff] }
  0xa7   : > { %4896 = vxpose.xlu1.b32.cont [15/16] %v4895_v21, 128  ;;  %4784 = vxpose.xlu0.b32.cont [15/16] %v4783_v47, 128  ;;  %v8981_v21 = vld [vmem:[#allocation20_spill] sm:$0xff]  ;;  %v8982_v47 = vld [vmem:[#allocation17_spill] sm:$0xff]  ;;  %v5836_v49 = vsub.f32 %v389_v41, %v5424_v7  ;;  %v5850_v41 = vsub.f32 %v387_v28, %v5424_v7  ;;  %v5867_v28 = vsub.f32 %v417_v40, %v5424_v7 }
  0xa8   : > { %1422 = vmatpush.msra.mxu3 %v8981_v21  ;;  %1084 = vmatpush.msra.mxu0 %v8982_v47  ;;  %v5812_v21 = vsub.f32 %v262_v18, %v5807_v9  ;;  %v5815_v47 = vsub.f32 %v294_v11, %v5807_v9  ;;  %v5960_v25 = vsub.f32 %v326_v44, %v5807_v9  ;;  %v381_v44 = vld [vmem:[%s5408_s15 + $0x4b0] sm:$0xff] }
  0xa9   : > { %8991 = vst [vmem:[#allocation82_spill] sm:$0xff] %v5836_v49  ;;  %v5963_v27 = vsub.f32 %v358_v46, %v5807_v9  ;;  %v5977_v46 = vsub.f32 %v324_v62, %v5807_v9  ;;  %v354_v62 = vld [vmem:[%s5408_s15 + $0x3d8] sm:$0xff]  ;;  %v6026_v63 = vsub.f32 %v320_v57, %v5807_v9  ;;  %v6047_v19 = vsub.f32 %v286_v56, %v5807_v9 }
  0xaa   : > { %1423 = vmatpush.msra.mxu3 %v8985_v39  ;;  %8987 = vst [vmem:[#allocation14_spill] sm:$0xff] %v5812_v21  ;;  %4225 = vmatpush.lsf.msrb.mxu0 %v5812_v21  ;;  %v6062_v56 = vsub.f32 %v252_v37, %v5807_v9  ;;  %v250_v37 = vld [vmem:[%s5408_s15 + $0x98] sm:$0xff]  ;;  %v6111_v2 = vsub.f32 %v346_v53, %v5807_v9 }
  0xab   : > { %8988 = vst [vmem:[#allocation79_spill] sm:$0xff] %v5815_v47  ;;  %4342 = vmatpush.lsf.msrb.mxu1 %v5815_v47  ;;  %v6096_v17 = vsub.f32 %v250_v37, %v5807_v9  ;;  %v278_v37 = vld [vmem:[%s5408_s15 + $0x178] sm:$0xff] }
  0xac   : > { %8993 = vst [vmem:[#allocation84_spill] sm:$0xff] %v5850_v41 }
  0xad   : > { %8998 = vst [vmem:[#allocation89_spill] sm:$0xff] %v5867_v28 }
  0xae   : > { %9011 = vst [vmem:[#allocation102_spill] sm:$0xff] %v5960_v25 }
  0xaf   : > { %4898 = vxpose.xlu1.b32.end [16/16] %v4897_v3, 128  ;;  %4786 = vxpose.xlu0.b32.end [16/16] %v4785_v8, 128  ;;  %v421_v8 = vld [vmem:[%s5408_s15 + $0x5f0] sm:$0xff]  ;;  %9012 = vst [vmem:[#allocation103_spill] sm:$0xff] %v5963_v27 }
  0xb0   : > { %v5839_v51 = vsub.f32 %v421_v8, %v5424_v7  ;;  %v5853_v8 = vsub.f32 %v419_v30, %v5424_v7  ;;  %v260_v30 = vld [vmem:[%s5408_s15 + $0xe8] sm:$0xff]  ;;  %9014 = vst [vmem:[#allocation104_spill] sm:$0xff] %v5977_v46 }
  0xb1   : > { %9024 = vst [vmem:[#allocation114_spill] sm:$0xff] %v6026_v63 }
  0xb2   : > { %8992 = vst [vmem:[#allocation83_spill] sm:$0xff] %v5839_v51 }
  0xb3   : > { %8994 = vst [vmem:[#allocation85_spill] sm:$0xff] %v5853_v8 }
  0xb4   : > { %9031 = vst [vmem:[#allocation117_spill] sm:$0xff] %v6047_v19 }
  0xb5   : > { %9034 = vst [vmem:[#allocation120_spill] sm:$0xff] %v6062_v56 }
  0xb6   : > { %9040 = vst [vmem:[#allocation126_spill] sm:$0xff] %v6096_v17 }
  0xb7   : > { %9045 = vst [vmem:[#allocation129_spill] sm:$0xff] %v6111_v2 }
  0xdb   : > { %v5819_v39 = vpop.trf.xlu1  ;;  %v5821_v3 = vpop.trf.xlu0 }
  0xdc   : > { %8989 = vst [vmem:[#allocation80_spill] sm:$0xff] %v5819_v39  ;;  %v8540_v29 = vunpack.i.h.bf16 %v5821_v3  ;;  %v8539_v18 = vunpack.i.h.bf16 %v5819_v39  ;;  %v8537_v31 = vunpack.i.l.bf16 %v5821_v3  ;;  %v8538_v11 = vunpack.i.l.bf16 %v5819_v39  ;;  %v395_v39 = vld [vmem:[%s5408_s15 + $0x520] sm:$0xff] }
  0xdd   : > { %8990 = vst [vmem:[#allocation81_spill] sm:$0xff] %v5821_v3 }
  0xde   : > { %1085 = vmatmul.f32.vlgmr.msra.gmra.mxu0 %v8540_v29  ;;  %1198 = vmatmul.f32.vlgmr.msra.gmra.mxu1 %v8539_v18  ;;  %v5864_v18 = vsub.f32 %v385_v38, %v5424_v7  ;;  %v292_v29 = vld [vmem:[%s5408_s15 + $0x1e8] sm:$0xff]  ;;  %v5878_v38 = vsub.f32 %v260_v30, %v5807_v9 }
  0xdf   : > { %1311 = vmatmul.f32.vlgmr.msra.gmra.mxu2 %v8537_v31  ;;  %1424 = vmatmul.f32.vlgmr.msra.gmra.mxu3 %v8538_v11  ;;  %v5881_v40 = vsub.f32 %v292_v29, %v5807_v9 }
  0xe0   : > { %1521 = vmatpush.msra.mxu0 %v5836_v49  ;;  %1634 = vmatpush.msra.mxu1 %v5839_v51  ;;  %8997 = vst [vmem:[#allocation88_spill] sm:$0xff] %v5864_v18 }
  0xe1   : > { %1747 = vmatpush.msra.mxu2 %v5812_v21  ;;  %1860 = vmatpush.msra.mxu3 %v5815_v47  ;;  %8999 = vst [vmem:[#allocation90_spill] sm:$0xff] %v5878_v38 }
  0xe2   : > { %1522 = vmatpush.msra.mxu0 %v5850_v41  ;;  %1635 = vmatpush.msra.mxu1 %v5853_v8  ;;  %9000 = vst [vmem:[#allocation91_spill] sm:$0xff] %v5881_v40 }
  0xe3   : > { %v5857_v31 = vpop.trf.xlu1  ;;  %v5859_v11 = vpop.trf.xlu0  ;;  %1748 = vmatpush.msra.mxu2 %v5878_v38  ;;  %1861 = vmatpush.msra.mxu3 %v5881_v40 }
  0xe4   : > { %8995 = vst [vmem:[#allocation86_spill] sm:$0xff] %v5857_v31  ;;  %v8548_v59 = vunpack.i.h.bf16 %v5859_v11  ;;  %v8545_v61 = vunpack.i.h.bf16 %v5857_v31  ;;  %v8546_v48 = vunpack.i.l.bf16 %v5859_v11  ;;  %v8547_v50 = vunpack.i.l.bf16 %v5857_v31  ;;  %1523 = vmatpush.msra.mxu0 %v5864_v18  ;;  %1636 = vmatpush.msra.mxu1 %v5867_v28 }
  0xe5   : > { %8996 = vst [vmem:[#allocation87_spill] sm:$0xff] %v5859_v11 }
  0xe6   : > { %1088 = vmatmul.f32.gmra.mxu0 %v8548_v59  ;;  %1201 = vmatmul.f32.gmra.mxu1 %v8545_v61 }
  0xe7   : > { %1314 = vmatmul.f32.gmra.mxu2 %v8546_v48  ;;  %1427 = vmatmul.f32.gmra.mxu3 %v8547_v50 }
  0xe8   : > { %4226 = vmatpush.lsf.msrb.mxu0 %v5878_v38  ;;  %4343 = vmatpush.lsf.msrb.mxu1 %v5881_v40 }
  0xea   : > { %1524 = vmatpush.msra.mxu0 %v5914_v58  ;;  %1637 = vmatpush.msra.mxu1 %v5917_v60 }
  0xeb   : > { %v5895_v29 = vpop.trf.xlu1  ;;  %v5897_v30 = vpop.trf.xlu0 }
  0xec   : > { %9001 = vst [vmem:[#allocation92_spill] sm:$0xff] %v5895_v29  ;;  %v8554_v61 = vunpack.i.h.bf16 %v5897_v30  ;;  %v8556_v48 = vunpack.i.h.bf16 %v5895_v29  ;;  %v8555_v50 = vunpack.i.l.bf16 %v5897_v30  ;;  %v8557_v59 = vunpack.i.l.bf16 %v5895_v29  ;;  %v411_v29 = vld [vmem:[%s5408_s15 + $0x5a0] sm:$0xff] }
  0xed   : > { %9002 = vst [vmem:[#allocation93_spill] sm:$0xff] %v5897_v30  ;;  %v306_v30 = vld [vmem:[%s5408_s15 + $0x258] sm:$0xff] }
  0xee   : > { %1091 = vmatmul.f32.gmra.mxu0 %v8554_v61  ;;  %1204 = vmatmul.f32.gmra.mxu1 %v8556_v48  ;;  %v290_v48 = vld [vmem:[%s5408_s15 + $0x1d8] sm:$0xff] }
  0xef   : > { %1317 = vmatmul.f32.gmra.mxu2 %v8555_v50  ;;  %1430 = vmatmul.f32.gmra.mxu3 %v8557_v59  ;;  %v258_v50 = vld [vmem:[%s5408_s15 + $0xd8] sm:$0xff]  ;;  %v5935_v13 = vsub.f32 %v290_v48, %v5807_v9 }
  0xf0   : > { %v5932_v14 = vsub.f32 %v258_v50, %v5807_v9 }
  0xf1   : > { %9008 = vst [vmem:[#allocation99_spill] sm:$0xff] %v5935_v13  ;;  %1862 = vmatpush.msra.mxu3 %v5935_v13  ;;  %4344 = vmatpush.lsf.msrb.mxu1 %v5935_v13 }
  0xf2   : > { %9007 = vst [vmem:[#allocation98_spill] sm:$0xff] %v5932_v14  ;;  %1749 = vmatpush.msra.mxu2 %v5932_v14  ;;  %4227 = vmatpush.lsf.msrb.mxu0 %v5932_v14 }
  0xf3   : > { %v5919_v26 = vpop.trf.xlu1  ;;  %v5921_v61 = vpop.trf.xlu0  ;;  %4558 = vmatpush.lsf.msrb.mxu3 %v5963_v27 }
  0xf4   : > { %9005 = vst [vmem:[#allocation96_spill] sm:$0xff] %v5919_v26  ;;  %v8564_v59 = vunpack.i.h.bf16 %v5921_v61  ;;  %v8562_v32 = vunpack.i.h.bf16 %v5919_v26  ;;  %v8561_v12 = vunpack.i.l.bf16 %v5921_v61  ;;  %v8563_v6 = vunpack.i.l.bf16 %v5919_v26  ;;  %4450 = vmatpush.lsf.msrb.mxu2 %v5960_v25  ;;  %v359_v25 = vld [vmem:[%s5408_s15 + $0x400] sm:$0xff] }
  0xf5   : > { %9006 = vst [vmem:[#allocation97_spill] sm:$0xff] %v5921_v61  ;;  %v379_v61 = vld [vmem:[%s5408_s15 + $0x4a0] sm:$0xff] }
  0xf6   : > { %1094 = vmatmul.f32.gmra.mxu0 %v8564_v59  ;;  %1207 = vmatmul.f32.gmra.mxu1 %v8562_v32 }
  0xf7   : > { %1320 = vmatmul.f32.gmra.mxu2 %v8561_v12  ;;  %1433 = vmatmul.f32.gmra.mxu3 %v8563_v6  ;;  %v356_v6 = vld [vmem:[%s5408_s15 + $0x3e8] sm:$0xff] }
  0xf8   : > { %v5980_v43 = vsub.f32 %v356_v6, %v5807_v9  ;;  %v5997_v6 = vsub.f32 %v354_v62, %v5807_v9  ;;  %4451 = vmatpush.lsf.msrb.mxu2 %v5977_v46 }
  0xfa   : > { %9015 = vst [vmem:[#allocation105_spill] sm:$0xff] %v5980_v43  ;;  %4559 = vmatpush.lsf.msrb.mxu3 %v5980_v43 }
  0xfb   : > { %v5949_v48 = vpop.trf.xlu1  ;;  %v5951_v50 = vpop.trf.xlu0  ;;  %9019 = vst [vmem:[#allocation109_spill] sm:$0xff] %v5997_v6 }
  0xfc   : > { %9009 = vst [vmem:[#allocation100_spill] sm:$0xff] %v5949_v48  ;;  %v8572_v12 = vunpack.i.h.bf16 %v5951_v50  ;;  %v8573_v32 = vunpack.i.h.bf16 %v5949_v48  ;;  %v8574_v59 = vunpack.i.l.bf16 %v5949_v48  ;;  %v9013_v1 = vunpack.i.l.bf16 %v5951_v50  ;;  %4560 = vmatpush.lsf.msrb.mxu3 %v5997_v6  ;;  %v328_v6 = vld [vmem:[%s5408_s15 + $0x308] sm:$0xff] }
  0xfd   : > { %9010 = vst [vmem:[#allocation101_spill] sm:$0xff] %v5951_v50  ;;  %v6120_v48 = vsub.f32 %v248_v35, %v5807_v9  ;;  %v242_v50 = vld [vmem:[%s5408_s15 + $0x58] sm:$0xff] }
  0xfe   : > { %1097 = vmatmul.f32.gmra.mxu0 %v8572_v12  ;;  %1210 = vmatmul.f32.gmra.mxu1 %v8573_v32  ;;  %v413_v12 = vld [vmem:[%s5408_s15 + $0x5b0] sm:$0xff]  ;;  %v322_v32 = vld [vmem:[%s5408_s15 + $0x2d8] sm:$0xff] }
  0xff   : > { %1323 = vmatmul.f32.gmra.mxu2 %v9013_v1  ;;  %1436 = vmatmul.f32.gmra.mxu3 %v8574_v59  ;;  %v5987_v1 = vsub.f32 %v381_v44, %v5424_v7  ;;  %v5990_v59 = vsub.f32 %v322_v32, %v5807_v9  ;;  %v5994_v45 = vsub.f32 %v413_v12, %v5424_v7  ;;  %v256_v44 = vld [vmem:[%s5408_s15 + $0xc8] sm:$0xff] }
 0x100   : > { %v288_v32 = vld [vmem:[%s5408_s15 + $0x1c8] sm:$0xff]  ;;  %v6020_v52 = vsub.f32 %v256_v44, %v5807_v9  ;;  %v6038_v44 = vsub.f32 %v254_v54, %v5807_v9  ;;  %v6054_v54 = vsub.f32 %v318_v22, %v5807_v9  ;;  %9048 = vst [vmem:[#allocation130_spill] sm:$0xff] %v6120_v48 }
 0x101   : > { %9016 = vst [vmem:[#allocation106_spill] sm:$0xff] %v5987_v1  ;;  %1525 = vmatpush.msra.mxu0 %v5987_v1  ;;  %1638 = vmatpush.msra.mxu1 %v5994_v45  ;;  %v352_v12 = vld [vmem:[%s5408_s15 + $0x3c8] sm:$0xff]  ;;  %v6023_v62 = vsub.f32 %v288_v32, %v5807_v9 }
 0x102   : > { %9017 = vst [vmem:[#allocation107_spill] sm:$0xff] %v5990_v59  ;;  %4452 = vmatpush.lsf.msrb.mxu2 %v5990_v59  ;;  %v6035_v5 = vsub.f32 %v352_v12, %v5807_v9  ;;  %v284_v32 = vld [vmem:[%s5408_s15 + $0x1a8] sm:$0xff] }
 0x103   : > { %9018 = vst [vmem:[#allocation108_spill] sm:$0xff] %v5994_v45  ;;  %v5999_v23 = vpop.trf.xlu1  ;;  %v6001_v33 = vpop.trf.xlu0  ;;  %4228 = vmatpush.lsf.msrb.mxu0 %v6020_v52  ;;  %4345 = vmatpush.lsf.msrb.mxu1 %v6023_v62  ;;  %v6065_v12 = vsub.f32 %v284_v32, %v5807_v9  ;;  %v314_v32 = vld [vmem:[%s5408_s15 + $0x298] sm:$0xff]  ;;  %v264_v59 = vld [vmem:[%s5408_s15 + $0x108] sm:$0xff] }
 0x104   : > { %9020 = vst [vmem:[#allocation110_spill] sm:$0xff] %v5999_v23  ;;  %v9025_v24 = vunpack.i.h.bf16 %v6001_v33  ;;  %v9026_v34 = vunpack.i.h.bf16 %v5999_v23  ;;  %v9029_v20 = vunpack.i.l.bf16 %v6001_v33  ;;  %v9030_v57 = vunpack.i.l.bf16 %v5999_v23  ;;  %1750 = vmatpush.msra.mxu2 %v6020_v52  ;;  %4561 = vmatpush.lsf.msrb.mxu3 %v6035_v5  ;;  %v246_v23 = vld [vmem:[%s5408_s15 + $0x78] sm:$0xff] }
 0x105   : > { %9021 = vst [vmem:[#allocation111_spill] sm:$0xff] %v6001_v33  ;;  %4229 = vmatpush.lsf.msrb.mxu0 %v6038_v44  ;;  %4346 = vmatpush.lsf.msrb.mxu1 %v6047_v19  ;;  %v6108_v15 = vsub.f32 %v314_v32, %v5807_v9  ;;  %v342_v32 = vld [vmem:[%s5408_s15 + $0x378] sm:$0xff]  ;;  %v6138_v35 = vsub.f32 %v246_v23, %v5807_v9  ;;  %v276_v23 = vld [vmem:[%s5408_s15 + $0x168] sm:$0xff] }
 0x106   : > { %9022 = vst [vmem:[#allocation112_spill] sm:$0xff] %v6020_v52  ;;  %1100 = vmatmul.f32.gmra.mxu0 %v9025_v24  ;;  %1213 = vmatmul.f32.gmra.mxu1 %v9026_v34  ;;  %v316_v24 = vld [vmem:[%s5408_s15 + $0x2a8] sm:$0xff]  ;;  %v6171_v26 = vsub.f32 %v276_v23, %v5807_v9 }
 0x107   : > { %9023 = vst [vmem:[#allocation113_spill] sm:$0xff] %v6023_v62  ;;  %1326 = vmatmul.f32.gmra.mxu2 %v9029_v20  ;;  %1439 = vmatmul.f32.gmra.mxu3 %v9030_v57  ;;  %v348_v34 = vld [vmem:[%s5408_s15 + $0x3a8] sm:$0xff]  ;;  %v6057_v20 = vsub.f32 %v350_v55, %v5807_v9  ;;  %v6074_v22 = vsub.f32 %v316_v24, %v5807_v9 }
 0x108   : > { %9027 = vst [vmem:[#allocation115_spill] sm:$0xff] %v6035_v5  ;;  %4453 = vmatpush.lsf.msrb.mxu2 %v6026_v63  ;;  %v6077_v55 = vsub.f32 %v348_v34, %v5807_v9  ;;  %1863 = vmatpush.msra.mxu3 %v6023_v62  ;;  %v6099_v24 = vsub.f32 %v282_v10, %v5807_v9  ;;  %v312_v34 = vld [vmem:[%s5408_s15 + $0x288] sm:$0xff] }
 0x109   : > { %9028 = vst [vmem:[#allocation116_spill] sm:$0xff] %v6038_v44  ;;  %4230 = vmatpush.lsf.msrb.mxu0 %v6062_v56  ;;  %4347 = vmatpush.lsf.msrb.mxu1 %v6065_v12  ;;  %v6130_v53 = vsub.f32 %v312_v34, %v5807_v9  ;;  %v6153_v34 = vsub.f32 %v342_v32, %v5807_v9 }
 0x10a   : > { %9032 = vst [vmem:[#allocation118_spill] sm:$0xff] %v6054_v54  ;;  %4454 = vmatpush.lsf.msrb.mxu2 %v6054_v54  ;;  %4562 = vmatpush.lsf.msrb.mxu3 %v6057_v20 }
 0x10b   : > { %9033 = vst [vmem:[#allocation119_spill] sm:$0xff] %v6057_v20  ;;  %v6067_v57 = vpop.trf.xlu1  ;;  %v6069_v0 = vpop.trf.xlu0  ;;  %4231 = vmatpush.lsf.msrb.mxu0 %v6096_v17  ;;  %4348 = vmatpush.lsf.msrb.mxu1 %v6099_v24  ;;  %v334_v20 = vld [vmem:[%s5408_s15 + $0x338] sm:$0xff] }
 0x10c   : > { %9035 = vst [vmem:[#allocation121_spill] sm:$0xff] %v6065_v12  ;;  %v9042_v16 = vunpack.i.h.bf16 %v6069_v0  ;;  %v9043_v4 = vunpack.i.h.bf16 %v6067_v57  ;;  %v9046_v33 = vunpack.i.l.bf16 %v6069_v0  ;;  %v9047_v10 = vunpack.i.l.bf16 %v6067_v57  ;;  %4455 = vmatpush.lsf.msrb.mxu2 %v6074_v22  ;;  %4563 = vmatpush.lsf.msrb.mxu3 %v6077_v55 }
 0x10d   : > { %9036 = vst [vmem:[#allocation122_spill] sm:$0xff] %v6067_v57  ;;  %4232 = vmatpush.lsf.msrb.mxu0 %v6120_v48 }
 0x10e   : > { %9037 = vst [vmem:[#allocation123_spill] sm:$0xff] %v6069_v0  ;;  %1103 = vmatmul.f32.gmra.mxu0 %v9042_v16  ;;  %1216 = vmatmul.f32.gmra.mxu1 %v9043_v4  ;;  %v6123_v16 = vsub.f32 %v280_v42, %v5807_v9  ;;  %v310_v4 = vld [vmem:[%s5408_s15 + $0x278] sm:$0xff]  ;;  %v6141_v42 = vsub.f32 %v278_v37, %v5807_v9  ;;  %v244_v37 = vld [vmem:[%s5408_s15 + $0x68] sm:$0xff] }
 0x10f   : > { %9038 = vst [vmem:[#allocation124_spill] sm:$0xff] %v6074_v22  ;;  %1329 = vmatmul.f32.gmra.mxu2 %v9046_v33  ;;  %1442 = vmatmul.f32.gmra.mxu3 %v9047_v10  ;;  %v6133_v33 = vsub.f32 %v344_v36, %v5807_v9  ;;  %v6150_v36 = vsub.f32 %v310_v4, %v5807_v9  ;;  %v308_v0 = vld [vmem:[%s5408_s15 + $0x268] sm:$0xff]  ;;  %v274_v4 = vld [vmem:[%s5408_s15 + $0x158] sm:$0xff] }
 0x110   : > { %9039 = vst [vmem:[#allocation125_spill] sm:$0xff] %v6077_v55  ;;  %4456 = vmatpush.lsf.msrb.mxu2 %v6108_v15  ;;  %4564 = vmatpush.lsf.msrb.mxu3 %v6111_v2  ;;  %v340_v2 = vld [vmem:[%s5408_s15 + $0x368] sm:$0xff]  ;;  %v338_v55 = vld [vmem:[%s5408_s15 + $0x358] sm:$0xff] }
 0x111   : > { %9041 = vst [vmem:[#allocation127_spill] sm:$0xff] %v6099_v24  ;;  %4349 = vmatpush.lsf.msrb.mxu1 %v6123_v16  ;;  %4233 = vmatpush.lsf.msrb.mxu0 %v6138_v35 }
 0x112   : > { %9044 = vst [vmem:[#allocation128_spill] sm:$0xff] %v6108_v15  ;;  %4457 = vmatpush.lsf.msrb.mxu2 %v6130_v53  ;;  %4565 = vmatpush.lsf.msrb.mxu3 %v6133_v33 }
 0x113   : > { %9049 = vst [vmem:[#allocation131_spill] sm:$0xff] %v6123_v16  ;;  %v6143_v10 = vpop.trf.xlu1  ;;  %v6145_v57 = vpop.trf.xlu0  ;;  %4350 = vmatpush.lsf.msrb.mxu1 %v6141_v42 }
 0x114   : > { %9050 = vst [vmem:[#allocation132_spill] sm:$0xff] %v6130_v53  ;;  %v9059_v15 = vunpack.i.h.bf16 %v6145_v57  ;;  %v9060_v32 = vunpack.i.h.bf16 %v6143_v10  ;;  %v6183_v53 = vsub.f32 %v308_v0, %v5807_v9  ;;  %v9063_v23 = vunpack.i.l.bf16 %v6145_v57  ;;  %4458 = vmatpush.lsf.msrb.mxu2 %v6150_v36  ;;  %4566 = vmatpush.lsf.msrb.mxu3 %v6153_v34 }
 0x115   : > { %9051 = vst [vmem:[#allocation133_spill] sm:$0xff] %v6133_v33  ;;  %v6180_v33 = vsub.f32 %v244_v37, %v5807_v9  ;;  %v9064_v22 = vunpack.i.l.bf16 %v6143_v10  ;;  %v240_v37 = vld [vmem:[%s5408_s15 + $0x48] sm:$0xff]  ;;  %v6202_v0 = vsub.f32 %v242_v50, %v5807_v9  ;;  %4351 = vmatpush.lsf.msrb.mxu1 %v6171_v26 }
 0x116   : > { %9052 = vst [vmem:[#allocation134_spill] sm:$0xff] %v6138_v35  ;;  %1106 = vmatmul.f32.gmra.mxu0 %v9059_v15  ;;  %1219 = vmatmul.f32.gmra.mxu1 %v9060_v32  ;;  %v6193_v15 = vsub.f32 %v379_v61, %v5424_v7  ;;  %v6196_v32 = vsub.f32 %v340_v2, %v5807_v9 }
 0x117   : > { %9053 = vst [vmem:[#allocation135_spill] sm:$0xff] %v6141_v42  ;;  %1332 = vmatmul.f32.gmra.mxu2 %v9063_v23  ;;  %1445 = vmatmul.f32.gmra.mxu3 %v9064_v22  ;;  %v6205_v23 = vsub.f32 %v274_v4, %v5807_v9  ;;  %v6210_v61 = vsub.f32 %v411_v29, %v5424_v7  ;;  %v272_v29 = vld [vmem:[%s5408_s15 + $0x148] sm:$0xff] }
 0x118   : > { %9054 = vst [vmem:[#allocation136_spill] sm:$0xff] %v6143_v10  ;;  %1526 = vmatpush.msra.mxu0 %v6193_v15  ;;  %v6213_v2 = vsub.f32 %v306_v30, %v5807_v9  ;;  %v6216_v22 = vsub.f32 %v338_v55, %v5807_v9  ;;  %4459 = vmatpush.lsf.msrb.mxu2 %v6183_v53  ;;  %v336_v30 = vld [vmem:[%s5408_s15 + $0x348] sm:$0xff]  ;;  %v238_v55 = vld [vmem:[%s5408_s15 + $0x38] sm:$0xff] }
 0x119   : > { %9055 = vst [vmem:[#allocation137_spill] sm:$0xff] %v6145_v57  ;;  %v6225_v4 = vsub.f32 %v240_v37, %v5807_v9  ;;  %v304_v57 = vld [vmem:[%s5408_s15 + $0x248] sm:$0xff]  ;;  %4567 = vmatpush.lsf.msrb.mxu3 %v6196_v32  ;;  %1639 = vmatpush.msra.mxu1 %v6210_v61  ;;  %v6255_v5 = vsub.f32 %v336_v30, %v5807_v9 }
 0x11a   : > { %9056 = vst [vmem:[#allocation138_spill] sm:$0xff] %v6150_v36  ;;  %4234 = vmatpush.lsf.msrb.mxu0 %v6180_v33  ;;  %4460 = vmatpush.lsf.msrb.mxu2 %v6213_v2  ;;  %v6246_v36 = vsub.f32 %v304_v57, %v5807_v9 }
 0x11b   : > { %9057 = vst [vmem:[#allocation139_spill] sm:$0xff] %v6153_v34  ;;  %v6218_v50 = vpop.trf.xlu1  ;;  %v6220_v10 = vpop.trf.xlu0  ;;  %4352 = vmatpush.lsf.msrb.mxu1 %v6205_v23  ;;  %4568 = vmatpush.lsf.msrb.mxu3 %v6216_v22  ;;  %v6243_v34 = vsub.f32 %v272_v29, %v5807_v9  ;;  %v268_v29 = vld [vmem:[%s5408_s15 + $0x128] sm:$0xff] }
 0x11c   : > { %9058 = vst [vmem:[#allocation140_spill] sm:$0xff] %v6171_v26  ;;  %4235 = vmatpush.lsf.msrb.mxu0 %v6202_v0  ;;  %v9077_v37 = vunpack.i.h.bf16 %v6220_v10  ;;  %v9078_v54 = vunpack.i.h.bf16 %v6218_v50  ;;  %v9081_v63 = vunpack.i.l.bf16 %v6220_v10  ;;  %v9082_v57 = vunpack.i.l.bf16 %v6218_v50  ;;  %1751 = vmatpush.msra.mxu2 %v6038_v44 }
 0x11d   : > { %9061 = vst [vmem:[#allocation141_spill] sm:$0xff] %v6180_v33  ;;  %4353 = vmatpush.lsf.msrb.mxu1 %v6243_v34  ;;  %4569 = vmatpush.lsf.msrb.mxu3 %v6255_v5 }
 0x11e   : > { %9062 = vst [vmem:[#allocation142_spill] sm:$0xff] %v6183_v53  ;;  %v302_v53 = vld [vmem:[%s5408_s15 + $0x238] sm:$0xff]  ;;  %1109 = vmatmul.f32.gmra.mxu0 %v9077_v37  ;;  %1222 = vmatmul.f32.gmra.mxu1 %v9078_v54  ;;  %v300_v37 = vld [vmem:[%s5408_s15 + $0x228] sm:$0xff] }
 0x11f   : > { %9065 = vst [vmem:[#allocation143_spill] sm:$0xff] %v6193_v15  ;;  %1335 = vmatmul.f32.gmra.mxu2 %v9081_v63  ;;  %1448 = vmatmul.f32.gmra.mxu3 %v9082_v57  ;;  %v332_v54 = vld [vmem:[%s5408_s15 + $0x328] sm:$0xff]  ;;  %v6274_v30 = vsub.f32 %v302_v53, %v5807_v9  ;;  %v6277_v63 = vsub.f32 %v334_v20, %v5807_v9 }
 0x120   : > { %9066 = vst [vmem:[#allocation144_spill] sm:$0xff] %v6196_v32  ;;  %v270_v32 = vld [vmem:[%s5408_s15 + $0x138] sm:$0xff]  ;;  %4236 = vmatpush.lsf.msrb.mxu0 %v6225_v4  ;;  %4461 = vmatpush.lsf.msrb.mxu2 %v6246_v36  ;;  %v6294_v20 = vsub.f32 %v300_v37, %v5807_v9  ;;  %v6297_v53 = vsub.f32 %v332_v54, %v5807_v9  ;;  %v232_v54 = vld [vmem:[%s5408_s15 + $0x8] sm:$0xff] }
 0x121   : > { %9067 = vst [vmem:[#allocation145_spill] sm:$0xff] %v6202_v0  ;;  %v6267_v31 = vsub.f32 %v270_v32, %v5807_v9  ;;  %1864 = vmatpush.msra.mxu3 %v6047_v19  ;;  %v296_v37 = vld [vmem:[%s5408_s15 + $0x208] sm:$0xff]  ;;  %v6338_v27 = vsub.f32 %v232_v54, %v5807_v9 }
 0x122   : > { %9068 = vst [vmem:[#allocation146_spill] sm:$0xff] %v6205_v23  ;;  %4462 = vmatpush.lsf.msrb.mxu2 %v6274_v30 }
 0x123   : > { %9069 = vst [vmem:[#allocation147_spill] sm:$0xff] %v6210_v61  ;;  %v6287_v57 = vpop.trf.xlu1  ;;  %4354 = vmatpush.lsf.msrb.mxu1 %v6267_v31  ;;  %4570 = vmatpush.lsf.msrb.mxu3 %v6277_v63 }
 0x124   : > { %9070 = vst [vmem:[#allocation148_spill] sm:$0xff] %v6213_v2  ;;  %v6258_v2 = vsub.f32 %v238_v55, %v5807_v9  ;;  %v6285_v55 = vsub.f32 %v268_v29, %v5807_v9  ;;  %v298_v29 = vld [vmem:[%s5408_s15 + $0x218] sm:$0xff]  ;;  %4463 = vmatpush.lsf.msrb.mxu2 %v6294_v20 }
 0x125   : > { %9071 = vst [vmem:[#allocation149_spill] sm:$0xff] %v6216_v22  ;;  %v236_v22 = vld [vmem:[%s5408_s15 + $0x28] sm:$0xff]  ;;  %v6328_v43 = vsub.f32 %v298_v29, %v5807_v9  ;;  %4571 = vmatpush.lsf.msrb.mxu3 %v6297_v53  ;;  %v6351_v29 = vsub.f32 %v328_v6, %v5807_v9 }
 0x126   : > { %9072 = vst [vmem:[#allocation150_spill] sm:$0xff] %v6218_v50  ;;  %v6282_v32 = vsub.f32 %v236_v22, %v5807_v9  ;;  %v6289_v50 = vpop.trf.xlu0  ;;  %4237 = vmatpush.lsf.msrb.mxu0 %v6258_v2  ;;  %v234_v22 = vld [vmem:[%s5408_s15 + $0x18] sm:$0xff]  ;;  %4355 = vmatpush.lsf.msrb.mxu1 %v6285_v55 }
 0x127   : > { %9073 = vst [vmem:[#allocation151_spill] sm:$0xff] %v6220_v10  ;;  %v266_v10 = vld [vmem:[%s5408_s15 + $0x118] sm:$0xff]  ;;  %4464 = vmatpush.lsf.msrb.mxu2 %v6328_v43 }
 0x128   : > { %9074 = vst [vmem:[#allocation152_spill] sm:$0xff] %v6225_v4  ;;  %4238 = vmatpush.lsf.msrb.mxu0 %v6282_v32  ;;  %v6319_v11 = vsub.f32 %v266_v10, %v5807_v9  ;;  %v9099_v10 = vunpack.i.l.bf16 %v6287_v57 }
 0x129   : > { %9075 = vst [vmem:[#allocation153_spill] sm:$0xff] %v6243_v34 }
 0x12a   : > { %9076 = vst [vmem:[#allocation154_spill] sm:$0xff] %v6246_v36  ;;  %v6316_v36 = vsub.f32 %v234_v22, %v5807_v9  ;;  %v9098_v22 = vunpack.i.l.bf16 %v6289_v50  ;;  %1451 = vmatmul.f32.gmra.mxu3 %v9099_v10  ;;  %4356 = vmatpush.lsf.msrb.mxu1 %v6319_v11 }
 0x12b   : > { %9079 = vst [vmem:[#allocation155_spill] sm:$0xff] %v6255_v5  ;;  %v330_v5 = vld [vmem:[%s5408_s15 + $0x318] sm:$0xff] }
 0x12c   : > { %9080 = vst [vmem:[#allocation156_spill] sm:$0xff] %v6258_v2  ;;  %v6331_v46 = vsub.f32 %v330_v5, %v5807_v9  ;;  %1338 = vmatmul.f32.gmra.mxu2 %v9098_v22  ;;  %v6348_v5 = vsub.f32 %v296_v37, %v5807_v9  ;;  %4239 = vmatpush.lsf.msrb.mxu0 %v6316_v36 }
 0x12d   : > { %9083 = vst [vmem:[#allocation157_spill] sm:$0xff] %v6267_v31  ;;  %v6362_v37 = vsub.f32 %v359_v25, %v5424_v7  ;;  %v377_v25 = vld [vmem:[%s5408_s15 + $0x490] sm:$0xff] }
 0x12e   : > { %9084 = vst [vmem:[#allocation158_spill] sm:$0xff] %v6274_v30  ;;  %v9094_v30 = vunpack.i.h.bf16 %v6289_v50  ;;  %v6357_v54 = vpop.trf.xlu0  ;;  %4572 = vmatpush.lsf.msrb.mxu3 %v6331_v46  ;;  %4240 = vmatpush.lsf.msrb.mxu0 %v6338_v27 }
 0x12f   : > { %9085 = vst [vmem:[#allocation159_spill] sm:$0xff] %v6277_v63  ;;  %v9095_v63 = vunpack.i.h.bf16 %v6287_v57  ;;  %v8698_v22 = vunpack.i.h.bf16 %v6357_v54  ;;  %4465 = vmatpush.lsf.msrb.mxu2 %v6348_v5 }
 0x130   : > { %9086 = vst [vmem:[#allocation160_spill] sm:$0xff] %v6282_v32  ;;  %1112 = vmatmul.f32.gmra.mxu0 %v9094_v30  ;;  %v6341_v30 = vsub.f32 %v264_v59, %v5807_v9  ;;  %v6355_v59 = vpop.trf.xlu1  ;;  %4573 = vmatpush.lsf.msrb.mxu3 %v6351_v29 }
 0x131   : > { %9087 = vst [vmem:[#allocation161_spill] sm:$0xff] %v6285_v55  ;;  %1225 = vmatmul.f32.gmra.mxu1 %v9095_v63  ;;  %v391_v63 = vld [vmem:[%s5408_s15 + $0x500] sm:$0xff]  ;;  %v8703_v10 = vunpack.i.h.bf16 %v6355_v59  ;;  %1752 = vmatpush.msra.mxu2 %v6062_v56 }
 0x132   : > { %9088 = vst [vmem:[#allocation162_spill] sm:$0xff] %v6287_v57  ;;  %v6365_v6 = vsub.f32 %v391_v63, %v5424_v7  ;;  %4357 = vmatpush.lsf.msrb.mxu1 %v6341_v30  ;;  %v409_v63 = vld [vmem:[%s5408_s15 + $0x590] sm:$0xff]  ;;  %1865 = vmatpush.msra.mxu3 %v6065_v12 }
 0x133   : > { %9089 = vst [vmem:[#allocation163_spill] sm:$0xff] %v6289_v50  ;;  %v361_v50 = vld [vmem:[%s5408_s15 + $0x410] sm:$0xff]  ;;  %1753 = vmatpush.msra.mxu2 %v6096_v17 }
 0x134   : > { %9090 = vst [vmem:[#allocation164_spill] sm:$0xff] %v6294_v20  ;;  %v4979_v57 = vpack.i.bf16 %v6365_v6, %v6362_v37  ;;  %v407_v20 = vld [vmem:[%s5408_s15 + $0x580] sm:$0xff]  ;;  %1866 = vmatpush.msra.mxu3 %v6099_v24 }
 0x135   : > { %9091 = vst [vmem:[#allocation165_spill] sm:$0xff] %v6297_v53  ;;  %v375_v53 = vld [vmem:[%s5408_s15 + $0x480] sm:$0xff] }
 0x136   : > { %9092 = vst [vmem:[#allocation166_spill] sm:$0xff] %v6316_v36  ;;  %4980 = vxpose.xlu2.b32.start [1/16] %v4979_v57, 128  ;;  %1867 = vmatpush.msra.mxu3 %v6123_v16 }
 0x137   : > { %9093 = vst [vmem:[#allocation167_spill] sm:$0xff] %v6319_v11  ;;  %4241 = vllmr.16.mxu0 }
 0x138   : > { %9096 = vst [vmem:[#allocation168_spill] sm:$0xff] %v6328_v43  ;;  %4358 = vllmr.16.mxu1  ;;  %1115 = vmatmul.f32.gmra.mxu0 %v8698_v22  ;;  %v6392_v43 = vsub.f32 %v409_v63, %v5424_v7  ;;  %v393_v22 = vld [vmem:[%s5408_s15 + $0x510] sm:$0xff] }
 0x139   : > { %9097 = vst [vmem:[#allocation169_spill] sm:$0xff] %v6331_v46  ;;  %1228 = vmatmul.f32.gmra.mxu1 %v8703_v10  ;;  %v9108_v46 = vunpack.i.l.bf16 %v6357_v54  ;;  %v6402_v10 = vpop.trf.xlu1  ;;  %v6411_v63 = vsub.f32 %v393_v22, %v5424_v7  ;;  %v363_v22 = vld [vmem:[%s5408_s15 + $0x420] sm:$0xff] }
 0x13a   : > { %9100 = vst [vmem:[#allocation170_spill] sm:$0xff] %v6338_v27  ;;  %1640 = vmatpush.msra.mxu1 %v6392_v43  ;;  %v8710_v57 = vunpack.i.h.bf16 %v6402_v10 }
 0x13b   : > { %9101 = vst [vmem:[#allocation171_spill] sm:$0xff] %v6341_v30  ;;  %1341 = vmatmul.f32.gmra.mxu2 %v9108_v46  ;;  %v6400_v46 = vsub.f32 %v375_v53, %v5424_v7 }
 0x13c   : > { %9102 = vst [vmem:[#allocation172_spill] sm:$0xff] %v6348_v5  ;;  %v9109_v5 = vunpack.i.l.bf16 %v6355_v59 }
 0x13d   : > { %9103 = vst [vmem:[#allocation173_spill] sm:$0xff] %v6351_v29  ;;  %v6389_v29 = vsub.f32 %v377_v25, %v5424_v7  ;;  %v6408_v25 = vsub.f32 %v361_v50, %v5424_v7  ;;  %v8713_v50 = vunpack.i.l.bf16 %v6402_v10 }
 0x13e   : > { %9104 = vst [vmem:[#allocation174_spill] sm:$0xff] %v6355_v59  ;;  %1454 = vmatmul.f32.gmra.mxu3 %v9109_v5  ;;  %v6404_v5 = vpop.trf.xlu0  ;;  %v6414_v59 = vsub.f32 %v407_v20, %v5424_v7 }
 0x13f   : > { %9105 = vst [vmem:[#allocation175_spill] sm:$0xff] %v6357_v54  ;;  %1527 = vmatpush.msra.mxu0 %v6389_v29  ;;  %v8711_v53 = vunpack.i.h.bf16 %v6404_v5  ;;  %v8712_v54 = vunpack.i.l.bf16 %v6404_v5  ;;  %v4981_v20 = vpack.i.bf16 %v6411_v63, %v6408_v25 }
 0x140   : > { %9106 = vst [vmem:[#allocation176_spill] sm:$0xff] %v6362_v37  ;;  %1641 = vmatpush.msra.mxu1 %v6414_v59 }
 0x141   : > { %9107 = vst [vmem:[#allocation177_spill] sm:$0xff] %v6365_v6  ;;  %1528 = vmatpush.msra.mxu0 %v6400_v46  ;;  %1231 = vmatmul.f32.gmra.mxu1 %v8710_v57  ;;  %v6442_v57 = vpop.trf.xlu1 }
 0x142   : > { %9110 = vst [vmem:[#allocation178_spill] sm:$0xff] %v6389_v29  ;;  %4466 = vllmr.16.mxu2  ;;  %1118 = vmatmul.f32.gmra.mxu0 %v8711_v53 }
 0x143   : > { %9111 = vst [vmem:[#allocation179_spill] sm:$0xff] %v6392_v43  ;;  %1344 = vmatmul.f32.gmra.mxu2 %v8712_v54  ;;  %4982 = vxpose.xlu2.b32.cont [2/16] %v4981_v20, 128  ;;  %v6447_v54 = vsub.f32 %v363_v22, %v5424_v7  ;;  %v8722_v20 = vunpack.i.h.bf16 %v6442_v57  ;;  %v365_v22 = vld [vmem:[%s5408_s15 + $0x430] sm:$0xff] }
 0x144   : > { %9112 = vst [vmem:[#allocation180_spill] sm:$0xff] %v6400_v46  ;;  %4483 = vmatpush.lsf.msrb.mxu2 %v5812_v21  ;;  %v373_v21 = vld [vmem:[%s5408_s15 + $0x470] sm:$0xff] }
 0x145   : > { %4574 = vllmr.16.mxu3  ;;  %9113 = vst [vmem:[#allocation181_spill] sm:$0xff] %v6402_v10  ;;  %v405_v10 = vld [vmem:[%s5408_s15 + $0x570] sm:$0xff] }
 0x146   : > { %9114 = vst [vmem:[#allocation182_spill] sm:$0xff] %v6408_v25  ;;  %1457 = vmatmul.f32.gmra.mxu3 %v8713_v50  ;;  %1754 = vmatpush.msra.mxu2 %v6120_v48  ;;  %v6444_v53 = vpop.trf.xlu0  ;;  %v6450_v50 = vsub.f32 %v395_v39, %v5424_v7 }
 0x147   : > { %9115 = vst [vmem:[#allocation183_spill] sm:$0xff] %v6411_v63  ;;  %4591 = vmatpush.lsf.msrb.mxu3 %v5815_v47  ;;  %v8723_v47 = vunpack.i.h.bf16 %v6444_v53 }
 0x148   : > { %9116 = vst [vmem:[#allocation184_spill] sm:$0xff] %v6414_v59  ;;  %4484 = vmatpush.lsf.msrb.mxu2 %v5878_v38  ;;  %v4983_v39 = vpack.i.bf16 %v6450_v50, %v6447_v54  ;;  %v9119_v38 = vunpack.i.l.bf16 %v6444_v53 }
 0x149   : > { %9117 = vst [vmem:[#allocation185_spill] sm:$0xff] %v6447_v54  ;;  %1868 = vmatpush.msra.mxu3 %v6141_v42  ;;  %1234 = vmatmul.f32.gmra.mxu1 %v8722_v20  ;;  %v6483_v20 = vsub.f32 %v405_v10, %v5424_v7 }
 0x14a   : > { %9118 = vst [vmem:[#allocation186_spill] sm:$0xff] %v6450_v50  ;;  %1755 = vmatpush.msra.mxu2 %v6138_v35  ;;  %1121 = vmatmul.f32.gmra.mxu0 %v8723_v47  ;;  %v6492_v47 = vsub.f32 %v365_v22, %v5424_v7 }
 0x14b   : > { %4592 = vmatpush.lsf.msrb.mxu3 %v5881_v40  ;;  %1347 = vmatmul.f32.gmra.mxu2 %v9119_v38  ;;  %v397_v40 = vld [vmem:[%s5408_s15 + $0x530] sm:$0xff]  ;;  %9122 = vst [vmem:[#allocation188_spill] sm:$0xff] %v6483_v20  ;;  %v6487_v38 = vpop.trf.xlu1 }
 0x14c   : > { %4485 = vmatpush.lsf.msrb.mxu2 %v5932_v14  ;;  %v9120_v14 = vunpack.i.l.bf16 %v6442_v57  ;;  %9123 = vst [vmem:[#allocation189_spill] sm:$0xff] %v6487_v38  ;;  %4984 = vxpose.xlu2.b32.cont [3/16] %v4983_v39, 128  ;;  %v8730_v22 = vunpack.i.l.bf16 %v6487_v38 }
 0x14d   : > { %1869 = vmatpush.msra.mxu3 %v6171_v26  ;;  %9125 = vst [vmem:[#allocation191_spill] sm:$0xff] %v6492_v47  ;;  %1642 = vmatpush.msra.mxu1 %v6483_v20 }
 0x14e   : > { %1756 = vmatpush.msra.mxu2 %v6180_v33  ;;  %1460 = vmatmul.f32.gmra.mxu3 %v9120_v14  ;;  %v6489_v14 = vpop.trf.xlu0 }
 0x14f   : > { %1870 = vmatpush.msra.mxu3 %v6205_v23  ;;  %9124 = vst [vmem:[#allocation190_spill] sm:$0xff] %v6489_v14  ;;  %v8728_v10 = vunpack.i.h.bf16 %v6489_v14  ;;  %v8729_v39 = vunpack.i.l.bf16 %v6489_v14 }
 0x150   : > { %4486 = vmatpush.lsf.msrb.mxu2 %v6020_v52  ;;  %v6478_v52 = vsub.f32 %v373_v21, %v5424_v7  ;;  %v6495_v21 = vsub.f32 %v397_v40, %v5424_v7 }
 0x151   : > { %4593 = vmatpush.lsf.msrb.mxu3 %v5935_v13  ;;  %v399_v13 = vld [vmem:[%s5408_s15 + $0x540] sm:$0xff] }
 0x152   : > { %9121 = vst [vmem:[#allocation187_spill] sm:$0xff] %v6478_v52  ;;  %1757 = vmatpush.msra.mxu2 %v6202_v0  ;;  %1529 = vmatpush.msra.mxu0 %v6478_v52  ;;  %v4985_v40 = vpack.i.bf16 %v6495_v21, %v6492_v47 }
 0x153   : > { %9126 = vst [vmem:[#allocation192_spill] sm:$0xff] %v6495_v21  ;;  %1871 = vmatpush.msra.mxu3 %v6243_v34  ;;  %1124 = vmatmul.f32.gmra.mxu0 %v8728_v10 }
 0x154   : > { %4487 = vmatpush.lsf.msrb.mxu2 %v6038_v44  ;;  %v8727_v44 = vunpack.i.h.bf16 %v6487_v38  ;;  %4986 = vxpose.xlu2.b32.cont [4/16] %v4985_v40, 128 }
 0x155   : > { %4594 = vmatpush.lsf.msrb.mxu3 %v6023_v62  ;;  %1350 = vmatmul.f32.gmra.mxu2 %v8729_v39  ;;  %v403_v62 = vld [vmem:[%s5408_s15 + $0x560] sm:$0xff] }
 0x156   : > { %1758 = vmatpush.msra.mxu2 %v6225_v4  ;;  %1237 = vmatmul.f32.gmra.mxu1 %v8727_v44  ;;  %v6524_v44 = vpop.trf.xlu1  ;;  %v6526_v10 = vpop.trf.xlu0 }
 0x157   : > { %1463 = vmatmul.f32.gmra.mxu3 %v8730_v22  ;;  %9127 = vst [vmem:[#allocation193_spill] sm:$0xff] %v6524_v44  ;;  %v6532_v22 = vsub.f32 %v399_v13, %v5424_v7  ;;  %v369_v13 = vld [vmem:[%s5408_s15 + $0x450] sm:$0xff]  ;;  %v9131_v38 = vunpack.i.l.bf16 %v6526_v10 }
 0x158   : > { %4488 = vmatpush.lsf.msrb.mxu2 %v6062_v56  ;;  %v367_v56 = vld [vmem:[%s5408_s15 + $0x440] sm:$0xff]  ;;  %1872 = vmatpush.msra.mxu3 %v6267_v31  ;;  %9128 = vst [vmem:[#allocation194_spill] sm:$0xff] %v6526_v10 }
 0x159   : > { %v6529_v39 = vsub.f32 %v367_v56, %v5424_v7  ;;  %9130 = vst [vmem:[#allocation196_spill] sm:$0xff] %v6532_v22  ;;  %v371_v56 = vld [vmem:[%s5408_s15 + $0x460] sm:$0xff] }
 0x15a   : > { %1759 = vmatpush.msra.mxu2 %v6258_v2  ;;  %4595 = vmatpush.lsf.msrb.mxu3 %v6047_v19  ;;  %v8740_v19 = vunpack.i.h.bf16 %v6524_v44 }
 0x15b   : > { %9129 = vst [vmem:[#allocation195_spill] sm:$0xff] %v6529_v39  ;;  %v4987_v40 = vpack.i.bf16 %v6532_v22, %v6529_v39 }
 0x15c   : > { %1760 = vmatpush.msra.mxu2 %v6282_v32  ;;  %1873 = vmatpush.msra.mxu3 %v6285_v55 }
 0x15d   : > { %1353 = vmatmul.f32.gmra.mxu2 %v9131_v38  ;;  %4988 = vxpose.xlu2.b32.cont [5/16] %v4987_v40, 128 }
 0x15e   : > { %4489 = vmatpush.lsf.msrb.mxu2 %v6096_v17  ;;  %4596 = vmatpush.lsf.msrb.mxu3 %v6065_v12  ;;  %v8739_v17 = vunpack.i.h.bf16 %v6526_v10  ;;  %v401_v12 = vld [vmem:[%s5408_s15 + $0x550] sm:$0xff]  ;;  %v6577_v38 = vpop.trf.xlu0  ;;  %v362_v10 = vld [vmem:[%s5408_s15 + $0x418] sm:$0xff] }
 0x15f   : > { %1240 = vmatmul.f32.gmra.mxu1 %v8740_v19  ;;  %v6568_v19 = vsub.f32 %v369_v13, %v5424_v7  ;;  %v6571_v14 = vsub.f32 %v401_v12, %v5424_v7  ;;  %9138 = vst [vmem:[#allocation202_spill] sm:$0xff] %v6577_v38  ;;  %v8745_v12 = vunpack.i.l.bf16 %v6577_v38  ;;  %v1086_v13 = vpop.f32.mrf.mxu0 }
 0x160   : > { %1761 = vmatpush.msra.mxu2 %v6316_v36  ;;  %1874 = vmatpush.msra.mxu3 %v6319_v11 }
 0x161   : > { %1127 = vmatmul.f32.gmra.mxu0 %v8739_v17  ;;  %v6563_v17 = vsub.f32 %v403_v62, %v5424_v7  ;;  %9135 = vst [vmem:[#allocation199_spill] sm:$0xff] %v6568_v19  ;;  %v8746_v62 = vunpack.i.h.bf16 %v6577_v38  ;;  %v4989_v40 = vpack.i.bf16 %v6571_v14, %v6568_v19 }
 0x162   : > { %4490 = vmatpush.lsf.msrb.mxu2 %v6120_v48  ;;  %4597 = vmatpush.lsf.msrb.mxu3 %v6099_v24  ;;  %v9132_v48 = vunpack.i.l.bf16 %v6524_v44  ;;  %v6560_v24 = vsub.f32 %v371_v56, %v5424_v7  ;;  %9136 = vst [vmem:[#allocation200_spill] sm:$0xff] %v6571_v14 }
 0x163   : > { %9134 = vst [vmem:[#allocation198_spill] sm:$0xff] %v6563_v17  ;;  %1643 = vmatpush.msra.mxu1 %v6563_v17 }
 0x164   : > { %1762 = vmatpush.msra.mxu2 %v6338_v27  ;;  %1466 = vmatmul.f32.gmra.mxu3 %v9132_v48  ;;  %9133 = vst [vmem:[#allocation197_spill] sm:$0xff] %v6560_v24  ;;  %v6575_v48 = vpop.trf.xlu1 }
 0x165   : > { %1875 = vmatpush.msra.mxu3 %v6341_v30  ;;  %1530 = vmatpush.msra.mxu0 %v6560_v24  ;;  %9137 = vst [vmem:[#allocation201_spill] sm:$0xff] %v6575_v48  ;;  %v8743_v7 = vunpack.i.h.bf16 %v6575_v48  ;;  %v8744_v56 = vunpack.i.l.bf16 %v6575_v48  ;;  %v366_v48 = vld [vmem:[%s5408_s15 + $0x438] sm:$0xff] }
 0x166   : > { %4491 = vmatpush.lsf.msrb.mxu2 %v6138_v35  ;;  %1644 = vmatpush.msra.mxu1 %v6571_v14 }
 0x167   : > { %4598 = vmatpush.lsf.msrb.mxu3 %v6123_v16  ;;  %1531 = vmatpush.msra.mxu0 %v6568_v19  ;;  %v9169_v16 = vld [vmem:[#allocation109_spill] sm:$0xff] }
 0x168   : > { %4492 = vmatpush.lsf.msrb.mxu2 %v6180_v33  ;;  %1645 = vmatpush.msra.mxu1 %v6532_v22 }
 0x169   : > { %4599 = vmatpush.lsf.msrb.mxu3 %v6141_v42  ;;  %1532 = vmatpush.msra.mxu0 %v6529_v39  ;;  %v9163_v42 = vld [vmem:[#allocation102_spill] sm:$0xff] }
 0x16a   : > { %1130 = vmatmul.f32.gmra.mxu0 %v8746_v62  ;;  %1243 = vmatmul.f32.gmra.mxu1 %v8743_v7  ;;  %v1199_v7 = vpop.f32.mrf.mxu1  ;;  %v1425_v62 = vpop.f32.mrf.mxu3 }
 0x16b   : > { %1356 = vmatmul.f32.gmra.mxu2 %v8745_v12  ;;  %1533 = vmatpush.msra.mxu0 %v6492_v47  ;;  %v1312_v12 = vpop.f32.mrf.mxu2 }
 0x16c   : > { %1469 = vmatmul.f32.gmra.mxu3 %v8744_v56  ;;  %1646 = vmatpush.msra.mxu1 %v6495_v21  ;;  %v1200_v56 = vadd.f32 %v1199_v7, %v1086_v13  ;;  %v4993_v7 = vpack.i.bf16 %v6483_v20, %v6478_v52 }
 0x16d   : > { %4600 = vmatpush.lsf.msrb.mxu3 %v6171_v26  ;;  %4493 = vmatpush.lsf.msrb.mxu2 %v6202_v0  ;;  %v422_v26 = vld [vmem:[%s5408_s15 + $0x5f8] sm:$0xff] }
 0x16e   : > { %4990 = vxpose.xlu2.b32.cont [6/16] %v4989_v40, 128  ;;  %1534 = vmatpush.msra.mxu0 %v6447_v54  ;;  %v4991_v40 = vpack.i.bf16 %v6563_v17, %v6560_v24 }
 0x16f   : > { %1647 = vmatpush.msra.mxu1 %v6450_v50  ;;  %4601 = vmatpush.lsf.msrb.mxu3 %v6205_v23  ;;  %v1089_v50 = vpop.f32.mrf.mxu0 }
 0x170   : > { %1535 = vmatpush.msra.mxu0 %v6408_v25  ;;  %4494 = vmatpush.lsf.msrb.mxu2 %v6225_v4 }
 0x171   : > { %1648 = vmatpush.msra.mxu1 %v6411_v63  ;;  %4602 = vmatpush.lsf.msrb.mxu3 %v6243_v34  ;;  %v1313_v63 = vadd.f32 %v1312_v12, %v1200_v56 }
 0x172   : > { %4242 = vmatmul.lmr.bf16.gmra.16.mxu0  ;;  %4359 = vmatmul.lmr.bf16.gmra.16.mxu1  ;;  %v1202_v25 = vpop.f32.mrf.mxu1  ;;  %v1428_v13 = vpop.f32.mrf.mxu3 }
 0x173   : > { %4467 = vmatmul.lmr.bf16.gmra.16.mxu2  ;;  %1536 = vmatpush.msra.mxu0 %v6362_v37  ;;  %v6619_v21 = vadd.f32 %v1425_v62, %v1313_v63  ;;  %v1203_v12 = vadd.f32 %v1202_v25, %v1089_v50  ;;  %v1315_v56 = vpop.f32.mrf.mxu2 }
 0x174   : > { %4575 = vmatmul.lmr.bf16.gmra.16.mxu3  ;;  %1649 = vmatpush.msra.mxu1 %v6365_v6 }
 0x175   : > { %4495 = vmatpush.lsf.msrb.mxu2 %v6258_v2  ;;  %4603 = vmatpush.lsf.msrb.mxu3 %v6267_v31  ;;  %9139 = vst [vmem:[#allocation203_spill] sm:$0xff] %v6619_v21  ;;  %v1316_v63 = vadd.f32 %v1315_v56, %v1203_v12  ;;  %v4997_v12 = vpack.i.bf16 %v6392_v43, %v6389_v29  ;;  %v9176_v43 = vld [vmem:[#allocation86_spill] sm:$0xff] }
 0x176   : > { %4992 = vxpose.xlu2.b32.cont [7/16] %v4991_v40, 128 }
 0x177   : > { %4496 = vmatpush.lsf.msrb.mxu2 %v6282_v32  ;;  %4604 = vmatpush.lsf.msrb.mxu3 %v6285_v55  ;;  %v1092_v62 = vpop.f32.mrf.mxu0  ;;  %v6627_v6 = vadd.f32 %v1428_v13, %v1316_v63 }
 0x179   : > { %4497 = vmatpush.lsf.msrb.mxu2 %v6316_v36  ;;  %4605 = vmatpush.lsf.msrb.mxu3 %v6319_v11  ;;  %9140 = vst [vmem:[#allocation204_spill] sm:$0xff] %v6627_v6  ;;  %v4995_v11 = vpack.i.bf16 %v6414_v59, %v6400_v46  ;;  %v420_v59 = vld [vmem:[%s5408_s15 + $0x5e8] sm:$0xff]  ;;  %v9177_v46 = vunpack.i.h.bf16 %v9176_v43 }
 0x17a   : > { %4243 = vmatmul.lmr.bf16.gmra.16.mxu0  ;;  %4360 = vmatmul.lmr.bf16.gmra.16.mxu1  ;;  %v1205_v40 = vpop.f32.mrf.mxu1  ;;  %v1431_v55 = vpop.f32.mrf.mxu3  ;;  %v6725_v52 = vsub.f32 %v420_v59, %v5807_v9  ;;  %v368_v6 = vld [vmem:[%s5408_s15 + $0x448] sm:$0xff] }
 0x17b   : > { %4468 = vmatmul.lmr.bf16.gmra.16.mxu2  ;;  %4606 = vmatpush.lsf.msrb.mxu3 %v6341_v30  ;;  %v1206_v37 = vadd.f32 %v1205_v40, %v1092_v62 }
 0x17c   : > { %4576 = vmatmul.lmr.bf16.gmra.16.mxu3  ;;  %4498 = vmatpush.lsf.msrb.mxu2 %v6338_v27  ;;  %v1318_v27 = vpop.f32.mrf.mxu2  ;;  %9173 = vst [vmem:[#allocation227_spill] sm:$0xff] %v6725_v52 }
 0x17d   : > { %v1319_v25 = vadd.f32 %v1318_v27, %v1206_v37  ;;  %v4999_v27 = vpack.i.bf16 %v6210_v61, %v6193_v15  ;;  %v9184_v61 = vld [vmem:[#allocation124_spill] sm:$0xff]  ;;  %v9185_v15 = vld [vmem:[#allocation125_spill] sm:$0xff] }
 0x17e   : > { %4994 = vxpose.xlu2.b32.cont [8/16] %v4993_v7, 128 }
 0x17f   : > { %v1095_v50 = vpop.f32.mrf.mxu0  ;;  %v6631_v7 = vadd.f32 %v1431_v55, %v1319_v25 }
 0x181   : > { %9141 = vst [vmem:[#allocation205_spill] sm:$0xff] %v6631_v7 }
 0x182   : > { %4244 = vmatmul.lmr.bf16.gmra.16.mxu0  ;;  %4361 = vmatmul.lmr.bf16.gmra.16.mxu1  ;;  %v1208_v30 = vpop.f32.mrf.mxu1  ;;  %v1434_v63 = vpop.f32.mrf.mxu3 }
 0x183   : > { %4469 = vmatmul.lmr.bf16.gmra.16.mxu2  ;;  %v1209_v56 = vadd.f32 %v1208_v30, %v1095_v50 }
 0x184   : > { %4577 = vmatmul.lmr.bf16.gmra.16.mxu3  ;;  %v1321_v13 = vpop.f32.mrf.mxu2 }
 0x185   : > { %v1322_v62 = vadd.f32 %v1321_v13, %v1209_v56  ;;  %v5001_v56 = vpack.i.bf16 %v5994_v45, %v5987_v1  ;;  %v9180_v45 = vld [vmem:[#allocation118_spill] sm:$0xff] }
 0x186   : > { %4996 = vxpose.xlu2.b32.cont [9/16] %v4995_v11, 128 }
 0x187   : > { %v1098_v40 = vpop.f32.mrf.mxu0  ;;  %v6635_v11 = vadd.f32 %v1434_v63, %v1322_v62 }
 0x189   : > { %9142 = vst [vmem:[#allocation206_spill] sm:$0xff] %v6635_v11  ;;  %v9249_v11 = vld [vmem:[#allocation122_spill] sm:$0xff] }
 0x18a   : > { %4245 = vmatmul.lmr.bf16.gmra.16.mxu0  ;;  %4362 = vmatmul.lmr.bf16.gmra.16.mxu1  ;;  %v1211_v36 = vpop.f32.mrf.mxu1  ;;  %v1437_v25 = vpop.f32.mrf.mxu3  ;;  %v9250_v7 = vunpack.i.h.bf16 %v9249_v11 }
 0x18b   : > { %4470 = vmatmul.lmr.bf16.gmra.16.mxu2  ;;  %v1212_v55 = vadd.f32 %v1211_v36, %v1098_v40 }
 0x18c   : > { %4578 = vmatmul.lmr.bf16.gmra.16.mxu3  ;;  %v1324_v37 = vpop.f32.mrf.mxu2 }
 0x18d   : > { %v1325_v30 = vadd.f32 %v1324_v37, %v1212_v55  ;;  %v5003_v55 = vpack.i.bf16 %v5917_v60, %v5914_v58  ;;  %v9188_v60 = vld [vmem:[#allocation93_spill] sm:$0xff] }
 0x18e   : > { %4998 = vxpose.xlu2.b32.cont [10/16] %v4997_v12, 128  ;;  %v9189_v1 = vunpack.i.h.bf16 %v9188_v60  ;;  %v418_v60 = vld [vmem:[%s5408_s15 + $0x5d8] sm:$0xff] }
 0x18f   : > { %v1101_v50 = vpop.f32.mrf.mxu0  ;;  %v6639_v12 = vadd.f32 %v1437_v25, %v1325_v30 }
 0x191   : > { %9143 = vst [vmem:[#allocation207_spill] sm:$0xff] %v6639_v12 }
 0x192   : > { %4246 = vmatmul.lmr.bf16.gmra.16.mxu0  ;;  %4363 = vmatmul.lmr.bf16.gmra.16.mxu1  ;;  %v1214_v31 = vpop.f32.mrf.mxu1  ;;  %v1440_v62 = vpop.f32.mrf.mxu3 }
 0x193   : > { %4471 = vmatmul.lmr.bf16.gmra.16.mxu2  ;;  %v1215_v13 = vadd.f32 %v1214_v31, %v1101_v50 }
 0x194   : > { %4579 = vmatmul.lmr.bf16.gmra.16.mxu3  ;;  %v1327_v63 = vpop.f32.mrf.mxu2 }
 0x195   : > { %v1328_v36 = vadd.f32 %v1327_v63, %v1215_v13  ;;  %v5005_v13 = vpack.i.bf16 %v5867_v28, %v5864_v18  ;;  %v9190_v28 = vld [vmem:[#allocation92_spill] sm:$0xff] }
 0x196   : > { %5000 = vxpose.xlu2.b32.cont [11/16] %v4999_v27, 128  ;;  %v9191_v58 = vunpack.i.h.bf16 %v9190_v28  ;;  %v9198_v28 = vld [vmem:[#allocation139_spill] sm:$0xff] }
 0x197   : > { %v1104_v40 = vpop.f32.mrf.mxu0  ;;  %v6643_v27 = vadd.f32 %v1440_v62, %v1328_v36 }
 0x199   : > { %9144 = vst [vmem:[#allocation208_spill] sm:$0xff] %v6643_v27 }
 0x19a   : > { %4247 = vmatmul.lmr.bf16.gmra.16.mxu0  ;;  %4364 = vmatmul.lmr.bf16.gmra.16.mxu1  ;;  %v1217_v32 = vpop.f32.mrf.mxu1  ;;  %v1443_v30 = vpop.f32.mrf.mxu3 }
 0x19b   : > { %4472 = vmatmul.lmr.bf16.gmra.16.mxu2  ;;  %v1218_v37 = vadd.f32 %v1217_v32, %v1104_v40 }
 0x19c   : > { %4580 = vmatmul.lmr.bf16.gmra.16.mxu3  ;;  %v1330_v25 = vpop.f32.mrf.mxu2 }
 0x19d   : > { %v1331_v31 = vadd.f32 %v1330_v25, %v1218_v37  ;;  %v5007_v37 = vpack.i.bf16 %v5853_v8, %v5850_v41 }
 0x19e   : > { %5002 = vxpose.xlu2.b32.cont [12/16] %v5001_v56, 128 }
 0x19f   : > { %v1107_v50 = vpop.f32.mrf.mxu0  ;;  %v6647_v56 = vadd.f32 %v1443_v30, %v1331_v31 }
 0x1a1   : > { %9145 = vst [vmem:[#allocation209_spill] sm:$0xff] %v6647_v56  ;;  %v374_v56 = vld [vmem:[%s5408_s15 + $0x478] sm:$0xff] }
 0x1a2   : > { %4248 = vmatmul.lmr.bf16.gmra.16.mxu0  ;;  %4365 = vmatmul.lmr.bf16.gmra.16.mxu1  ;;  %v1220_v54 = vpop.f32.mrf.mxu1  ;;  %v1446_v36 = vpop.f32.mrf.mxu3  ;;  %v6896_v12 = vsub.f32 %v374_v56, %v5807_v9 }
 0x1a3   : > { %4473 = vmatmul.lmr.bf16.gmra.16.mxu2  ;;  %v1221_v63 = vadd.f32 %v1220_v54, %v1107_v50 }
 0x1a4   : > { %4581 = vmatmul.lmr.bf16.gmra.16.mxu3  ;;  %v1333_v62 = vpop.f32.mrf.mxu2  ;;  %9246 = vst [vmem:[#allocation250_spill] sm:$0xff] %v6896_v12 }
 0x1a5   : > { %v1334_v32 = vadd.f32 %v1333_v62, %v1221_v63  ;;  %v5009_v63 = vpack.i.bf16 %v5839_v51, %v5836_v49  ;;  %v9195_v51 = vld [vmem:[#allocation133_spill] sm:$0xff] }
 0x1a6   : > { %5004 = vxpose.xlu2.b32.cont [13/16] %v5003_v55, 128 }
 0x1a7   : > { %v1110_v40 = vpop.f32.mrf.mxu0  ;;  %v6651_v55 = vadd.f32 %v1446_v36, %v1334_v32 }
 0x1a9   : > { %9146 = vst [vmem:[#allocation210_spill] sm:$0xff] %v6651_v55 }
 0x1aa   : > { %4249 = vmatmul.lmr.bf16.gmra.16.mxu0  ;;  %4366 = vmatmul.lmr.bf16.gmra.16.mxu1  ;;  %v1223_v34 = vpop.f32.mrf.mxu1  ;;  %v1449_v31 = vpop.f32.mrf.mxu3 }
 0x1ab   : > { %4474 = vmatmul.lmr.bf16.gmra.16.mxu2  ;;  %v1224_v25 = vadd.f32 %v1223_v34, %v1110_v40 }
 0x1ac   : > { %4582 = vmatmul.lmr.bf16.gmra.16.mxu3  ;;  %v1336_v30 = vpop.f32.mrf.mxu2 }
 0x1ad   : > { %v1337_v54 = vadd.f32 %v1336_v30, %v1224_v25 }
 0x1ae   : > { %5006 = vxpose.xlu2.b32.cont [14/16] %v5005_v13, 128 }
 0x1af   : > { %v1113_v50 = vpop.f32.mrf.mxu0  ;;  %v6655_v13 = vadd.f32 %v1449_v31, %v1337_v54 }
 0x1b1   : > { %9147 = vst [vmem:[#allocation211_spill] sm:$0xff] %v6655_v13  ;;  %v408_v13 = vld [vmem:[%s5408_s15 + $0x588] sm:$0xff] }
 0x1b2   : > { %4250 = vmatmul.lmr.bf16.gmra.16.mxu0  ;;  %4367 = vmatmul.lmr.bf16.gmra.16.mxu1  ;;  %v1226_v2 = vpop.f32.mrf.mxu1  ;;  %v1452_v32 = vpop.f32.mrf.mxu3 }
 0x1b3   : > { %4475 = vmatmul.lmr.bf16.gmra.16.mxu2  ;;  %v1227_v62 = vadd.f32 %v1226_v2, %v1113_v50 }
 0x1b4   : > { %4583 = vmatmul.lmr.bf16.gmra.16.mxu3  ;;  %v1339_v36 = vpop.f32.mrf.mxu2 }
 0x1b5   : > { %v1340_v34 = vadd.f32 %v1339_v36, %v1227_v62 }
 0x1b6   : > { %5008 = vxpose.xlu2.b32.cont [15/16] %v5007_v37, 128 }
 0x1b7   : > { %v1116_v40 = vpop.f32.mrf.mxu0  ;;  %v6659_v37 = vadd.f32 %v1452_v32, %v1340_v34 }
 0x1b9   : > { %9148 = vst [vmem:[#allocation212_spill] sm:$0xff] %v6659_v37 }
 0x1ba   : > { %4251 = vmatmul.lmr.bf16.gmra.16.mxu0  ;;  %4368 = vmatmul.lmr.bf16.gmra.16.mxu1  ;;  %v1229_v22 = vpop.f32.mrf.mxu1 }
 0x1bb   : > { %4476 = vmatmul.lmr.bf16.gmra.16.mxu2  ;;  %v1230_v25 = vadd.f32 %v1229_v22, %v1116_v40 }
 0x1bc   : > { %4584 = vmatmul.lmr.bf16.gmra.16.mxu3 }
 0x1be   : > { %5010 = vxpose.xlu2.b32.end [16/16] %v5009_v63, 128  ;;  %v1342_v30 = vpop.f32.mrf.mxu2 }
 0x1bf   : > { %v1343_v54 = vadd.f32 %v1342_v30, %v1230_v25  ;;  %v1119_v47 = vpop.f32.mrf.mxu0 }
 0x1c1   : > { %v1455_v31 = vpop.f32.mrf.mxu3 }
 0x1c2   : > { %4252 = vmatmul.lmr.bf16.gmra.16.mxu0  ;;  %4369 = vmatmul.lmr.bf16.gmra.16.mxu1  ;;  %v1232_v23 = vpop.f32.mrf.mxu1  ;;  %v6661_v4 = vadd.f32 %v1455_v31, %v1343_v54 }
 0x1c3   : > { %4477 = vmatmul.lmr.bf16.gmra.16.mxu2  ;;  %v1233_v2 = vadd.f32 %v1232_v23, %v1119_v47 }
 0x1c4   : > { %4585 = vmatmul.lmr.bf16.gmra.16.mxu3  ;;  %9149 = vst [vmem:[#allocation213_spill] sm:$0xff] %v6661_v4  ;;  %v9234_v4 = vld [vmem:[#allocation110_spill] sm:$0xff] }
 0x1c5   : > { %v9235_v37 = vunpack.i.h.bf16 %v9234_v4 }
 0x1c6   : > { %v1345_v50 = vpop.f32.mrf.mxu2 }
 0x1c7   : > { %v1346_v62 = vadd.f32 %v1345_v50, %v1233_v2  ;;  %v1122_v36 = vpop.f32.mrf.mxu0 }
 0x1c9   : > { %v1458_v63 = vpop.f32.mrf.mxu3 }
 0x1ca   : > { %4253 = vmatmul.lmr.bf16.gmra.16.mxu0  ;;  %4370 = vmatmul.lmr.bf16.gmra.16.mxu1  ;;  %v1235_v32 = vpop.f32.mrf.mxu1  ;;  %v6663_v34 = vadd.f32 %v1458_v63, %v1346_v62 }
 0x1cb   : > { %4478 = vmatmul.lmr.bf16.gmra.16.mxu2  ;;  %v1236_v22 = vadd.f32 %v1235_v32, %v1122_v36 }
 0x1cc   : > { %4586 = vmatmul.lmr.bf16.gmra.16.mxu3  ;;  %9150 = vst [vmem:[#allocation214_spill] sm:$0xff] %v6663_v34  ;;  %v380_v34 = vld [vmem:[%s5408_s15 + $0x4a8] sm:$0xff] }
 0x1ce   : > { %v1348_v40 = vpop.f32.mrf.mxu2 }
 0x1cf   : > { %v1349_v30 = vadd.f32 %v1348_v40, %v1236_v22 }
 0x1d0   : > { %v1125_v31 = vpop.f32.mrf.mxu0 }
 0x1d1   : > { %v1461_v25 = vpop.f32.mrf.mxu3 }
 0x1d2   : > { %4254 = vmatmul.lmr.bf16.gmra.16.mxu0  ;;  %4371 = vmatmul.lmr.bf16.gmra.16.mxu1  ;;  %v6665_v14 = vadd.f32 %v1461_v25, %v1349_v30 }
 0x1d3   : > { %4479 = vmatmul.lmr.bf16.gmra.16.mxu2  ;;  %v1238_v54 = vpop.f32.mrf.mxu1 }
 0x1d4   : > { %4587 = vmatmul.lmr.bf16.gmra.16.mxu3  ;;  %9151 = vst [vmem:[#allocation215_spill] sm:$0xff] %v6665_v14  ;;  %v1239_v47 = vadd.f32 %v1238_v54, %v1125_v31 }
 0x1d8   : > { %v1351_v23 = vpop.f32.mrf.mxu2 }
 0x1d9   : > { %v1352_v50 = vadd.f32 %v1351_v23, %v1239_v47  ;;  %v390_v23 = vld [vmem:[%s5408_s15 + $0x4f8] sm:$0xff] }
 0x1da   : > { %4255 = vmatmul.lmr.bf16.gmra.16.mxu0  ;;  %4372 = vmatmul.lmr.bf16.gmra.16.mxu1  ;;  %v1464_v2 = vpop.f32.mrf.mxu3 }
 0x1db   : > { %4480 = vmatmul.lmr.bf16.gmra.16.mxu2  ;;  %v6669_v32 = vadd.f32 %v1464_v2, %v1352_v50  ;;  %v6678_v2 = vsub.f32 %v390_v23, %v5807_v9  ;;  %v6681_v50 = vsub.f32 %v422_v26, %v5807_v9 }
 0x1dc   : > { %4588 = vmatmul.lmr.bf16.gmra.16.mxu3  ;;  %v1241_v62 = vpop.f32.mrf.mxu1 }
 0x1dd   : > { %9153 = vst [vmem:[#allocation217_spill] sm:$0xff] %v6669_v32  ;;  %4258 = vmatpush.lsf.msrb.mxu0 %v6678_v2  ;;  %4375 = vmatpush.lsf.msrb.mxu1 %v6681_v50  ;;  %v9226_v32 = vld [vmem:[#allocation165_spill] sm:$0xff] }
 0x1de   : > { %v1128_v63 = vpop.f32.mrf.mxu0  ;;  %9156 = vst [vmem:[#allocation220_spill] sm:$0xff] %v6678_v2 }
 0x1df   : > { %v6667_v36 = vpop.trf.xlu2  ;;  %v1242_v22 = vadd.f32 %v1241_v62, %v1128_v63  ;;  %9157 = vst [vmem:[#allocation221_spill] sm:$0xff] %v6681_v50 }
 0x1e0   : > { %9152 = vst [vmem:[#allocation216_spill] sm:$0xff] %v6667_v36  ;;  %v1354_v40 = vpop.f32.mrf.mxu2 }
 0x1e1   : > { %v1355_v30 = vadd.f32 %v1354_v40, %v1242_v22  ;;  %v8774_v40 = vunpack.i.h.bf16 %v6667_v36 }
 0x1e2   : > { %4256 = vmatmul.lmr.bf16.gmra.16.mxu0  ;;  %4373 = vmatmul.lmr.bf16.gmra.16.mxu1 }
 0x1e3   : > { %4481 = vmatmul.lmr.bf16.gmra.16.mxu2 }
 0x1e4   : > { %4589 = vmatmul.lmr.bf16.gmra.16.mxu3 }
 0x1e7   : > { %v1467_v25 = vpop.f32.mrf.mxu3  ;;  %v1131_v31 = vpop.f32.mrf.mxu0 }
 0x1e8   : > { %v1244_v54 = vpop.f32.mrf.mxu1  ;;  %v6671_v39 = vpop.trf.xlu2  ;;  %v6673_v47 = vadd.f32 %v1467_v25, %v1355_v30  ;;  %v8775_v25 = vunpack.i.l.bf16 %v6667_v36  ;;  %v9218_v36 = vld [vmem:[#allocation154_spill] sm:$0xff] }
 0x1e9   : > { %9154 = vst [vmem:[#allocation218_spill] sm:$0xff] %v6671_v39  ;;  %v1245_v63 = vadd.f32 %v1244_v54, %v1131_v31  ;;  %v9160_v31 = vunpack.i.h.bf16 %v5821_v3  ;;  %v9161_v54 = vld [vmem:[#allocation80_spill] sm:$0xff] }
 0x1ea   : > { %9155 = vst [vmem:[#allocation219_spill] sm:$0xff] %v6673_v47  ;;  %4257 = vmatmul.lmr.bf16.gmra.16.mxu0  ;;  %4374 = vmatmul.lmr.bf16.gmra.16.mxu1  ;;  %v9162_v19 = vunpack.i.h.bf16 %v9161_v54  ;;  %v9219_v54 = vld [vmem:[#allocation155_spill] sm:$0xff]  ;;  %v9225_v47 = vld [vmem:[#allocation164_spill] sm:$0xff] }
 0x1eb   : > { %4482 = vmatmul.lmr.bf16.gmra.16.mxu2 }
 0x1ec   : > { %4590 = vmatmul.lmr.bf16.gmra.16.mxu3 }
 0x1ee   : > { %v1357_v62 = vpop.f32.mrf.mxu2 }
 0x1ef   : > { %v1470_v22 = vpop.f32.mrf.mxu3  ;;  %v1358_v30 = vadd.f32 %v1357_v62, %v1245_v63  ;;  %v1134_v0 = vpop.f32.mrf.mxu0  ;;  %v9164_v63 = vld [vmem:[#allocation103_spill] sm:$0xff] }
 0x1f0   : > { %v1247_v23 = vpop.f32.mrf.mxu1  ;;  %v6687_v17 = vpop.trf.xlu2 }
 0x1f1   : > { %9158 = vst [vmem:[#allocation222_spill] sm:$0xff] %v6687_v17  ;;  %v6689_v26 = vadd.f32 %v1470_v22, %v1358_v30  ;;  %v1248_v62 = vadd.f32 %v1247_v23, %v1134_v0  ;;  %v9168_v23 = vld [vmem:[#allocation107_spill] sm:$0xff] }
 0x1f2   : > { %1537 = vmatmul.f32.vlgmr.msra.gmra.mxu0 %v8775_v25  ;;  %1650 = vmatmul.f32.vlgmr.msra.gmra.mxu1 %v8774_v40  ;;  %v9165_v25 = vld [vmem:[#allocation104_spill] sm:$0xff]  ;;  %v388_v40 = vld [vmem:[%s5408_s15 + $0x4e8] sm:$0xff] }
 0x1f3   : > { %9159 = vst [vmem:[#allocation223_spill] sm:$0xff] %v6689_v26  ;;  %1763 = vmatmul.f32.vlgmr.msra.gmra.mxu2 %v9160_v31  ;;  %1973 = vmatpush.msra.mxu0 %v9163_v42  ;;  %v8786_v31 = vunpack.i.h.bf16 %v6671_v39  ;;  %v414_v26 = vld [vmem:[%s5408_s15 + $0x5b8] sm:$0xff] }
 0x1f4   : > { %1876 = vmatmul.f32.vlgmr.msra.gmra.mxu3 %v9162_v19  ;;  %2086 = vmatpush.msra.mxu1 %v9164_v63  ;;  %v9166_v19 = vld [vmem:[#allocation105_spill] sm:$0xff]  ;;  %v6841_v14 = vsub.f32 %v414_v26, %v5807_v9  ;;  %v378_v26 = vld [vmem:[%s5408_s15 + $0x498] sm:$0xff] }
 0x1f5   : > { %2199 = vmatpush.msra.mxu2 %v6678_v2  ;;  %2312 = vmatpush.msra.mxu3 %v6681_v50 }
 0x1f6   : > { %v1360_v22 = vpop.f32.mrf.mxu2  ;;  %1974 = vmatpush.msra.mxu0 %v9165_v25  ;;  %2087 = vmatpush.msra.mxu1 %v9166_v19  ;;  %9231 = vst [vmem:[#allocation241_spill] sm:$0xff] %v6841_v14 }
 0x1f7   : > { %v1473_v30 = vpop.f32.mrf.mxu3  ;;  %v1361_v33 = vadd.f32 %v1360_v22, %v1248_v62  ;;  %v1137_v20 = vpop.f32.mrf.mxu0  ;;  %v9171_v62 = vunpack.i.l.bf16 %v6671_v39  ;;  %v6722_v22 = vsub.f32 %v388_v40, %v5807_v9  ;;  %v9202_v39 = vld [vmem:[#allocation97_spill] sm:$0xff] }
 0x1f8   : > { %v1250_v24 = vpop.f32.mrf.mxu1  ;;  %v6707_v0 = vpop.trf.xlu2  ;;  %1975 = vmatpush.msra.mxu0 %v9168_v23  ;;  %2088 = vmatpush.msra.mxu1 %v9169_v16  ;;  %v9203_v43 = vunpack.i.h.bf16 %v9202_v39 }
 0x1f9   : > { %9167 = vst [vmem:[#allocation224_spill] sm:$0xff] %v6707_v0  ;;  %v6711_v35 = vadd.f32 %v1473_v30, %v1361_v33  ;;  %v9174_v33 = vld [vmem:[#allocation87_spill] sm:$0xff]  ;;  %v8807_v18 = vunpack.i.h.bf16 %v6707_v0 }
 0x1fa   : > { %4499 = vllmr.16.mxu2  ;;  %1540 = vmatmul.f32.gmra.mxu0 %v9171_v62  ;;  %9172 = vst [vmem:[#allocation226_spill] sm:$0xff] %v6722_v22  ;;  %v9175_v30 = vunpack.i.h.bf16 %v9174_v33  ;;  %v1251_v62 = vadd.f32 %v1250_v24, %v1137_v20  ;;  %v9181_v24 = vld [vmem:[#allocation119_spill] sm:$0xff]  ;;  %v9204_v33 = vld [vmem:[#allocation96_spill] sm:$0xff] }
 0x1fb   : > { %4607 = vllmr.16.mxu3  ;;  %9170 = vst [vmem:[#allocation225_spill] sm:$0xff] %v6711_v35  ;;  %1653 = vmatmul.f32.gmra.mxu1 %v8786_v31  ;;  %v9179_v31 = vld [vmem:[#allocation115_spill] sm:$0xff] }
 0x1fc   : > { %4516 = vmatpush.lsf.msrb.mxu2 %v6678_v2  ;;  %1879 = vmatmul.f32.gmra.mxu3 %v9177_v46 }
 0x1fd   : > { %4624 = vmatpush.lsf.msrb.mxu3 %v6681_v50  ;;  %1766 = vmatmul.f32.gmra.mxu2 %v9175_v30  ;;  %v9178_v50 = vld [vmem:[#allocation114_spill] sm:$0xff] }
 0x1fe   : > { %2200 = vmatpush.msra.mxu2 %v6722_v22  ;;  %1976 = vmatpush.msra.mxu0 %v9178_v50  ;;  %v1363_v40 = vpop.f32.mrf.mxu2 }
 0x1ff   : > { %2313 = vmatpush.msra.mxu3 %v6725_v52  ;;  %2089 = vmatpush.msra.mxu1 %v9179_v31  ;;  %v1476_v2 = vpop.f32.mrf.mxu3  ;;  %v1364_v46 = vadd.f32 %v1363_v40, %v1251_v62  ;;  %v1140_v30 = vpop.f32.mrf.mxu0  ;;  %v9186_v62 = vunpack.i.l.bf16 %v6687_v17  ;;  %v9187_v40 = vunpack.i.h.bf16 %v6687_v17  ;;  %v9197_v17 = vld [vmem:[#allocation138_spill] sm:$0xff] }
 0x200   : > { %4259 = vmatpush.lsf.msrb.mxu0 %v6722_v22  ;;  %v1253_v29 = vpop.f32.mrf.mxu1  ;;  %v6741_v20 = vpop.trf.xlu2  ;;  %4517 = vmatpush.lsf.msrb.mxu2 %v6722_v22  ;;  %v9192_v22 = vld [vmem:[#allocation128_spill] sm:$0xff] }
 0x201   : > { %4376 = vmatpush.lsf.msrb.mxu1 %v6725_v52  ;;  %9182 = vst [vmem:[#allocation228_spill] sm:$0xff] %v6741_v20  ;;  %4625 = vmatpush.lsf.msrb.mxu3 %v6725_v52  ;;  %v6745_v59 = vadd.f32 %v1476_v2, %v1364_v46  ;;  %v9193_v2 = vld [vmem:[#allocation129_spill] sm:$0xff]  ;;  %v1254_v46 = vadd.f32 %v1253_v29, %v1140_v30  ;;  %v386_v30 = vld [vmem:[%s5408_s15 + $0x4d8] sm:$0xff] }
 0x202   : > { %1977 = vmatpush.msra.mxu0 %v9180_v45 }
 0x203   : > { %2090 = vmatpush.msra.mxu1 %v9181_v24  ;;  %9183 = vst [vmem:[#allocation229_spill] sm:$0xff] %v6745_v59  ;;  %1543 = vmatmul.f32.gmra.mxu0 %v9186_v62  ;;  %v8808_v62 = vunpack.i.l.bf16 %v6707_v0  ;;  %v9206_v0 = vld [vmem:[#allocation142_spill] sm:$0xff] }
 0x204   : > { %1978 = vmatpush.msra.mxu0 %v9184_v61  ;;  %1656 = vmatmul.f32.gmra.mxu1 %v9187_v40  ;;  %v9194_v40 = vld [vmem:[#allocation132_spill] sm:$0xff] }
 0x205   : > { %2091 = vmatpush.msra.mxu1 %v9185_v15  ;;  %1769 = vmatmul.f32.gmra.mxu2 %v9189_v1 }
 0x206   : > { %1882 = vmatmul.f32.gmra.mxu3 %v9191_v58  ;;  %1979 = vmatpush.msra.mxu0 %v9192_v22  ;;  %v1366_v52 = vpop.f32.mrf.mxu2 }
 0x207   : > { %2092 = vmatpush.msra.mxu1 %v9193_v2  ;;  %v1479_v8 = vpop.f32.mrf.mxu3  ;;  %v1367_v1 = vadd.f32 %v1366_v52, %v1254_v46  ;;  %v1143_v41 = vpop.f32.mrf.mxu0  ;;  %v6776_v52 = vsub.f32 %v386_v30, %v5807_v9  ;;  %v6779_v46 = vsub.f32 %v418_v60, %v5807_v9  ;;  %v9210_v60 = vld [vmem:[#allocation149_spill] sm:$0xff] }
 0x208   : > { %1980 = vmatpush.msra.mxu0 %v9194_v40  ;;  %v1256_v58 = vpop.f32.mrf.mxu1  ;;  %v6763_v49 = vpop.trf.xlu2 }
 0x209   : > { %2093 = vmatpush.msra.mxu1 %v9195_v51  ;;  %9196 = vst [vmem:[#allocation230_spill] sm:$0xff] %v6763_v49  ;;  %v6767_v29 = vadd.f32 %v1479_v8, %v1367_v1  ;;  %v9205_v8 = vunpack.i.h.bf16 %v9204_v33  ;;  %2201 = vmatpush.msra.mxu2 %v6776_v52  ;;  %v1257_v1 = vadd.f32 %v1256_v58, %v1143_v41  ;;  %v9209_v58 = vld [vmem:[#allocation148_spill] sm:$0xff] }
 0x20a   : > { %1981 = vmatpush.msra.mxu0 %v9197_v17  ;;  %9200 = vst [vmem:[#allocation232_spill] sm:$0xff] %v6776_v52  ;;  %2314 = vmatpush.msra.mxu3 %v6779_v46 }
 0x20b   : > { %2094 = vmatpush.msra.mxu1 %v9198_v28  ;;  %9199 = vst [vmem:[#allocation231_spill] sm:$0xff] %v6767_v29  ;;  %1546 = vmatmul.f32.gmra.mxu0 %v8808_v62  ;;  %v9212_v29 = vunpack.i.l.bf16 %v6741_v20 }
 0x20c   : > { %1659 = vmatmul.f32.gmra.mxu1 %v8807_v18  ;;  %9201 = vst [vmem:[#allocation233_spill] sm:$0xff] %v6779_v46  ;;  %4260 = vmatpush.lsf.msrb.mxu0 %v6776_v52 }
 0x20d   : > { %1772 = vmatmul.f32.gmra.mxu2 %v9203_v43  ;;  %4377 = vmatpush.lsf.msrb.mxu1 %v6779_v46  ;;  %v9207_v43 = vld [vmem:[#allocation144_spill] sm:$0xff] }
 0x20e   : > { %1885 = vmatmul.f32.gmra.mxu3 %v9205_v8  ;;  %v1369_v30 = vpop.f32.mrf.mxu2  ;;  %1982 = vmatpush.msra.mxu0 %v9206_v0 }
 0x20f   : > { %v1482_v18 = vpop.f32.mrf.mxu3  ;;  %2095 = vmatpush.msra.mxu1 %v9207_v43  ;;  %v1370_v8 = vadd.f32 %v1369_v30, %v1257_v1  ;;  %v1146_v33 = vpop.f32.mrf.mxu0  ;;  %4518 = vmatpush.lsf.msrb.mxu2 %v6776_v52  ;;  %v9213_v1 = vunpack.i.h.bf16 %v6741_v20  ;;  %v9214_v30 = vld [vmem:[#allocation101_spill] sm:$0xff]  ;;  %v382_v20 = vld [vmem:[%s5408_s15 + $0x4b8] sm:$0xff] }
 0x210   : > { %v1259_v39 = vpop.f32.mrf.mxu1  ;;  %4626 = vmatpush.lsf.msrb.mxu3 %v6779_v46  ;;  %v6795_v41 = vpop.trf.xlu2  ;;  %1983 = vmatpush.msra.mxu0 %v9209_v58  ;;  %v9215_v52 = vunpack.i.h.bf16 %v9214_v30  ;;  %v9216_v46 = vld [vmem:[#allocation100_spill] sm:$0xff]  ;;  %v9220_v30 = vld [vmem:[#allocation158_spill] sm:$0xff] }
 0x211   : > { %9208 = vst [vmem:[#allocation234_spill] sm:$0xff] %v6795_v41  ;;  %2096 = vmatpush.msra.mxu1 %v9210_v60  ;;  %v6799_v62 = vadd.f32 %v1482_v18, %v1370_v8  ;;  %v9217_v59 = vunpack.i.h.bf16 %v9216_v46  ;;  %v1260_v3 = vadd.f32 %v1259_v39, %v1146_v33  ;;  %v9243_v27 = vunpack.i.l.bf16 %v6795_v41 }
 0x212   : > { %1984 = vmatpush.msra.mxu0 %v9218_v36 }
 0x213   : > { %9211 = vst [vmem:[#allocation235_spill] sm:$0xff] %v6799_v62  ;;  %1549 = vmatmul.f32.gmra.mxu0 %v9212_v29  ;;  %2097 = vmatpush.msra.mxu1 %v9219_v54  ;;  %v416_v62 = vld [vmem:[%s5408_s15 + $0x5c8] sm:$0xff] }
 0x214   : > { %1662 = vmatmul.f32.gmra.mxu1 %v9213_v1  ;;  %v384_v1 = vld [vmem:[%s5408_s15 + $0x4c8] sm:$0xff]  ;;  %1985 = vmatpush.msra.mxu0 %v9220_v30  ;;  %v6823_v29 = vsub.f32 %v416_v62, %v5807_v9  ;;  %v6838_v62 = vsub.f32 %v382_v20, %v5807_v9 }
 0x215   : > { %1775 = vmatmul.f32.gmra.mxu2 %v9215_v52  ;;  %v9221_v52 = vld [vmem:[#allocation159_spill] sm:$0xff]  ;;  %v6818_v39 = vsub.f32 %v384_v1, %v5807_v9  ;;  %v9229_v1 = vunpack.i.h.bf16 %v6763_v49 }
 0x216   : > { %1888 = vmatmul.f32.gmra.mxu3 %v9217_v59  ;;  %v1372_v18 = vpop.f32.mrf.mxu2  ;;  %2098 = vmatpush.msra.mxu1 %v9221_v52  ;;  %9224 = vst [vmem:[#allocation238_spill] sm:$0xff] %v6823_v29  ;;  %v360_v52 = vld [vmem:[%s5408_s15 + $0x408] sm:$0xff] }
 0x217   : > { %v1485_v8 = vpop.f32.mrf.mxu3  ;;  %v1373_v59 = vadd.f32 %v1372_v18, %v1260_v3  ;;  %v1149_v46 = vpop.f32.mrf.mxu0  ;;  %9222 = vst [vmem:[#allocation236_spill] sm:$0xff] %v6818_v39  ;;  %1986 = vmatpush.msra.mxu0 %v9225_v47  ;;  %2202 = vmatpush.msra.mxu2 %v6818_v39  ;;  %v9228_v18 = vunpack.i.l.bf16 %v6763_v49 }
 0x218   : > { %v1262_v35 = vpop.f32.mrf.mxu1  ;;  %v6820_v33 = vpop.trf.xlu2  ;;  %2099 = vmatpush.msra.mxu1 %v9226_v32  ;;  %9230 = vst [vmem:[#allocation240_spill] sm:$0xff] %v6838_v62  ;;  %2315 = vmatpush.msra.mxu3 %v6823_v29 }
 0x219   : > { %9223 = vst [vmem:[#allocation237_spill] sm:$0xff] %v6820_v33  ;;  %v6829_v3 = vadd.f32 %v1485_v8, %v1373_v59  ;;  %4261 = vmatpush.lsf.msrb.mxu0 %v6818_v39  ;;  %v412_v8 = vld [vmem:[%s5408_s15 + $0x5a8] sm:$0xff]  ;;  %v9232_v59 = vld [vmem:[#allocation111_spill] sm:$0xff]  ;;  %2203 = vmatpush.msra.mxu2 %v6838_v62  ;;  %v9257_v38 = vunpack.i.l.bf16 %v6820_v33  ;;  %v9258_v32 = vunpack.i.h.bf16 %v6820_v33 }
 0x21a   : > { %4378 = vmatpush.lsf.msrb.mxu1 %v6823_v29  ;;  %v6855_v20 = vsub.f32 %v412_v8, %v5807_v9  ;;  %v376_v8 = vld [vmem:[%s5408_s15 + $0x488] sm:$0xff]  ;;  %2316 = vmatpush.msra.mxu3 %v6841_v14 }
 0x21b   : > { %9227 = vst [vmem:[#allocation239_spill] sm:$0xff] %v6829_v3  ;;  %1552 = vmatmul.f32.gmra.mxu0 %v9228_v18  ;;  %v9233_v3 = vunpack.i.h.bf16 %v9232_v59  ;;  %v6850_v18 = vsub.f32 %v380_v34, %v5807_v9  ;;  %v6879_v4 = vsub.f32 %v376_v8, %v5807_v9  ;;  %v6893_v8 = vsub.f32 %v408_v13, %v5807_v9  ;;  %v364_v33 = vld [vmem:[%s5408_s15 + $0x428] sm:$0xff] }
 0x21c   : > { %1665 = vmatmul.f32.gmra.mxu1 %v9229_v1  ;;  %9237 = vst [vmem:[#allocation243_spill] sm:$0xff] %v6855_v20  ;;  %v1263_v1 = vadd.f32 %v1262_v35, %v1149_v46  ;;  %4262 = vmatpush.lsf.msrb.mxu0 %v6838_v62 }
 0x21d   : > { %1778 = vmatmul.f32.gmra.mxu2 %v9233_v3  ;;  %9236 = vst [vmem:[#allocation242_spill] sm:$0xff] %v6850_v18  ;;  %v6860_v3 = vsub.f32 %v378_v26, %v5807_v9  ;;  %4379 = vmatpush.lsf.msrb.mxu1 %v6841_v14 }
 0x21e   : > { %1891 = vmatmul.f32.gmra.mxu3 %v9235_v37  ;;  %v410_v37 = vld [vmem:[%s5408_s15 + $0x598] sm:$0xff]  ;;  %v1375_v34 = vpop.f32.mrf.mxu2  ;;  %4263 = vmatpush.lsf.msrb.mxu0 %v6850_v18  ;;  %9241 = vst [vmem:[#allocation247_spill] sm:$0xff] %v6879_v4 }
 0x21f   : > { %9238 = vst [vmem:[#allocation244_spill] sm:$0xff] %v6860_v3  ;;  %v1488_v49 = vpop.f32.mrf.mxu3  ;;  %v1376_v35 = vadd.f32 %v1375_v34, %v1263_v1  ;;  %v1152_v46 = vpop.f32.mrf.mxu0  ;;  %2204 = vmatpush.msra.mxu2 %v6850_v18  ;;  %4380 = vmatpush.lsf.msrb.mxu1 %v6855_v20  ;;  %v6876_v59 = vsub.f32 %v410_v37, %v5807_v9  ;;  %v406_v34 = vld [vmem:[%s5408_s15 + $0x578] sm:$0xff]  ;;  %v9244_v37 = vunpack.i.h.bf16 %v6795_v41 }
 0x220   : > { %v1265_v26 = vpop.f32.mrf.mxu1  ;;  %v6872_v55 = vpop.trf.xlu2  ;;  %2317 = vmatpush.msra.mxu3 %v6855_v20  ;;  %4264 = vmatpush.lsf.msrb.mxu0 %v6860_v3  ;;  %9245 = vst [vmem:[#allocation249_spill] sm:$0xff] %v6893_v8  ;;  %v370_v41 = vld [vmem:[%s5408_s15 + $0x458] sm:$0xff] }
 0x221   : > { %9239 = vst [vmem:[#allocation245_spill] sm:$0xff] %v6872_v55  ;;  %v6883_v1 = vadd.f32 %v1488_v49, %v1376_v35  ;;  %2205 = vmatpush.msra.mxu2 %v6860_v3  ;;  %v372_v49 = vld [vmem:[%s5408_s15 + $0x468] sm:$0xff]  ;;  %v9247_v35 = vld [vmem:[#allocation123_spill] sm:$0xff]  ;;  %4381 = vmatpush.lsf.msrb.mxu1 %v6876_v59  ;;  %v1266_v56 = vadd.f32 %v1265_v26, %v1152_v46  ;;  %v9270_v30 = vunpack.i.l.bf16 %v6872_v55  ;;  %v9271_v54 = vunpack.i.h.bf16 %v6872_v55 }
 0x222   : > { %9240 = vst [vmem:[#allocation246_spill] sm:$0xff] %v6876_v59  ;;  %4265 = vmatpush.lsf.msrb.mxu0 %v6879_v4  ;;  %v6909_v13 = vsub.f32 %v372_v49, %v5807_v9  ;;  %2318 = vmatpush.msra.mxu3 %v6876_v59  ;;  %v402_v49 = vld [vmem:[%s5408_s15 + $0x558] sm:$0xff]  ;;  %v6931_v11 = vsub.f32 %v370_v41, %v5807_v9  ;;  %v392_v55 = vld [vmem:[%s5408_s15 + $0x508] sm:$0xff] }
 0x223   : > { %9242 = vst [vmem:[#allocation248_spill] sm:$0xff] %v6883_v1  ;;  %1555 = vmatmul.f32.gmra.mxu0 %v9243_v27  ;;  %v9248_v1 = vunpack.i.h.bf16 %v9247_v35  ;;  %v6906_v27 = vsub.f32 %v406_v34, %v5807_v9  ;;  %2206 = vmatpush.msra.mxu2 %v6879_v4  ;;  %v6947_v41 = vsub.f32 %v368_v6, %v5807_v9 }
 0x224   : > { %1668 = vmatmul.f32.gmra.mxu1 %v9244_v37  ;;  %9252 = vst [vmem:[#allocation252_spill] sm:$0xff] %v6909_v13  ;;  %v404_v37 = vld [vmem:[%s5408_s15 + $0x568] sm:$0xff]  ;;  %4266 = vmatpush.lsf.msrb.mxu0 %v6896_v12 }
 0x225   : > { %1781 = vmatmul.f32.gmra.mxu2 %v9248_v1  ;;  %9251 = vst [vmem:[#allocation251_spill] sm:$0xff] %v6906_v27  ;;  %4382 = vmatpush.lsf.msrb.mxu1 %v6893_v8  ;;  %v6928_v35 = vsub.f32 %v404_v37, %v5807_v9  ;;  %v6944_v37 = vsub.f32 %v402_v49, %v5807_v9  ;;  %v398_v49 = vld [vmem:[%s5408_s15 + $0x538] sm:$0xff] }
 0x226   : > { %1894 = vmatmul.f32.gmra.mxu3 %v9250_v7  ;;  %v1378_v7 = vpop.f32.mrf.mxu2  ;;  %2207 = vmatpush.msra.mxu2 %v6896_v12  ;;  %9255 = vst [vmem:[#allocation255_spill] sm:$0xff] %v6931_v11 }
 0x227   : > { %v1491_v1 = vpop.f32.mrf.mxu3  ;;  %v1379_v34 = vadd.f32 %v1378_v7, %v1266_v56  ;;  %v1155_v46 = vpop.f32.mrf.mxu0  ;;  %2319 = vmatpush.msra.mxu3 %v6893_v8  ;;  %4383 = vmatpush.lsf.msrb.mxu1 %v6906_v27  ;;  %9254 = vst [vmem:[#allocation254_spill] sm:$0xff] %v6928_v35  ;;  %v400_v7 = vld [vmem:[%s5408_s15 + $0x548] sm:$0xff] }
 0x228   : > { %v1268_v26 = vpop.f32.mrf.mxu1  ;;  %v6923_v21 = vpop.trf.xlu2  ;;  %4267 = vmatpush.lsf.msrb.mxu0 %v6909_v13  ;;  %2208 = vmatpush.msra.mxu2 %v6909_v13  ;;  %9259 = vst [vmem:[#allocation257_spill] sm:$0xff] %v6944_v37 }
 0x229   : > { %9253 = vst [vmem:[#allocation253_spill] sm:$0xff] %v6923_v21  ;;  %v6933_v56 = vadd.f32 %v1491_v1, %v1379_v34  ;;  %2320 = vmatpush.msra.mxu3 %v6906_v27  ;;  %v9261_v1 = vld [vmem:[#allocation137_spill] sm:$0xff]  ;;  %4384 = vmatpush.lsf.msrb.mxu1 %v6928_v35  ;;  %v1269_v6 = vadd.f32 %v1268_v26, %v1155_v46 }
 0x22a   : > { %9260 = vst [vmem:[#allocation258_spill] sm:$0xff] %v6947_v41  ;;  %v9262_v34 = vunpack.i.h.bf16 %v9261_v1  ;;  %4268 = vmatpush.lsf.msrb.mxu0 %v6931_v11  ;;  %2209 = vmatpush.msra.mxu2 %v6931_v11  ;;  %v6978_v1 = vsub.f32 %v398_v49, %v5807_v9 }
 0x22b   : > { %9256 = vst [vmem:[#allocation256_spill] sm:$0xff] %v6933_v56  ;;  %1558 = vmatmul.f32.gmra.mxu0 %v9257_v38  ;;  %v9263_v56 = vld [vmem:[#allocation136_spill] sm:$0xff]  ;;  %v6956_v38 = vsub.f32 %v400_v7, %v5807_v9  ;;  %2321 = vmatpush.msra.mxu3 %v6928_v35  ;;  %v396_v7 = vld [vmem:[%s5408_s15 + $0x528] sm:$0xff] }
 0x22c   : > { %1671 = vmatmul.f32.gmra.mxu1 %v9258_v32  ;;  %v9264_v44 = vunpack.i.h.bf16 %v9263_v56  ;;  %v6959_v32 = vsub.f32 %v366_v48, %v5807_v9  ;;  %4269 = vmatpush.lsf.msrb.mxu0 %v6947_v41  ;;  %9267 = vst [vmem:[#allocation261_spill] sm:$0xff] %v6978_v1  ;;  %v6981_v56 = vsub.f32 %v364_v33, %v5807_v9 }
 0x22d   : > { %1784 = vmatmul.f32.gmra.mxu2 %v9262_v34  ;;  %9265 = vst [vmem:[#allocation259_spill] sm:$0xff] %v6956_v38  ;;  %4385 = vmatpush.lsf.msrb.mxu1 %v6944_v37  ;;  %v6994_v49 = vsub.f32 %v396_v7, %v5807_v9  ;;  %v6997_v33 = vsub.f32 %v362_v10, %v5807_v9  ;;  %v9280_v10 = vld [vmem:[#allocation168_spill] sm:$0xff] }
 0x22e   : > { %1897 = vmatmul.f32.gmra.mxu3 %v9264_v44  ;;  %9266 = vst [vmem:[#allocation260_spill] sm:$0xff] %v6959_v32  ;;  %v1381_v44 = vpop.f32.mrf.mxu2  ;;  %2210 = vmatpush.msra.mxu2 %v6947_v41 }
 0x22f   : > { %v1494_v34 = vpop.f32.mrf.mxu3  ;;  %v1382_v48 = vadd.f32 %v1381_v44, %v1269_v6  ;;  %v1158_v46 = vpop.f32.mrf.mxu0  ;;  %2322 = vmatpush.msra.mxu3 %v6944_v37  ;;  %4386 = vmatpush.lsf.msrb.mxu1 %v6956_v38  ;;  %9268 = vst [vmem:[#allocation262_spill] sm:$0xff] %v6981_v56  ;;  %v394_v44 = vld [vmem:[%s5408_s15 + $0x518] sm:$0xff] }
 0x230   : > { %v1271_v26 = vpop.f32.mrf.mxu1  ;;  %v6973_v47 = vpop.trf.xlu2  ;;  %4270 = vmatpush.lsf.msrb.mxu0 %v6959_v32  ;;  %2211 = vmatpush.msra.mxu2 %v6959_v32  ;;  %9272 = vst [vmem:[#allocation264_spill] sm:$0xff] %v6994_v49 }
 0x231   : > { %v6983_v6 = vadd.f32 %v1494_v34, %v1382_v48  ;;  %2323 = vmatpush.msra.mxu3 %v6956_v38  ;;  %9273 = vst [vmem:[#allocation265_spill] sm:$0xff] %v6997_v33  ;;  %v9274_v34 = vld [vmem:[#allocation151_spill] sm:$0xff]  ;;  %4387 = vmatpush.lsf.msrb.mxu1 %v6978_v1  ;;  %v1272_v7 = vadd.f32 %v1271_v26, %v1158_v46  ;;  %v9281_v38 = vld [vmem:[#allocation169_spill] sm:$0xff] }
 0x232   : > { %v9275_v48 = vunpack.i.h.bf16 %v9274_v34  ;;  %4271 = vmatpush.lsf.msrb.mxu0 %v6981_v56  ;;  %2212 = vmatpush.msra.mxu2 %v6981_v56  ;;  %v7025_v26 = vsub.f32 %v392_v55, %v5807_v9 }
 0x233   : > { %9269 = vst [vmem:[#allocation263_spill] sm:$0xff] %v6983_v6  ;;  %1561 = vmatmul.f32.gmra.mxu0 %v9270_v30  ;;  %v9276_v6 = vld [vmem:[#allocation150_spill] sm:$0xff]  ;;  %v7006_v30 = vsub.f32 %v394_v44, %v5807_v9  ;;  %2324 = vmatpush.msra.mxu3 %v6978_v1 }
 0x234   : > { %1674 = vmatmul.f32.gmra.mxu1 %v9271_v54  ;;  %v9277_v36 = vunpack.i.h.bf16 %v9276_v6  ;;  %v7009_v54 = vsub.f32 %v360_v52, %v5807_v9  ;;  %1987 = vmatpush.msra.mxu0 %v9280_v10  ;;  %9282 = vst [vmem:[#allocation268_spill] sm:$0xff] %v7025_v26  ;;  %v9286_v10 = vld [vmem:[#allocation162_spill] sm:$0xff]  ;;  %v9288_v9 = vld [vmem:[#allocation172_spill] sm:$0xff] }
 0x235   : > { %1787 = vmatmul.f32.gmra.mxu2 %v9275_v48  ;;  %9278 = vst [vmem:[#allocation266_spill] sm:$0xff] %v7006_v30  ;;  %4388 = vmatpush.lsf.msrb.mxu1 %v6994_v49  ;;  %v9287_v1 = vunpack.i.h.bf16 %v9286_v10 }
 0x236   : > { %1900 = vmatmul.f32.gmra.mxu3 %v9277_v36  ;;  %9279 = vst [vmem:[#allocation267_spill] sm:$0xff] %v7009_v54  ;;  %v1384_v48 = vpop.f32.mrf.mxu2  ;;  %v8838_v36 = vunpack.i.l.bf16 %v6923_v21  ;;  %4272 = vmatpush.lsf.msrb.mxu0 %v6997_v33 }
 0x237   : > { %v1497_v34 = vpop.f32.mrf.mxu3  ;;  %v1385_v44 = vadd.f32 %v1384_v48, %v1272_v7  ;;  %v1161_v60 = vpop.f32.mrf.mxu0  ;;  %2100 = vmatpush.msra.mxu1 %v9281_v38  ;;  %2325 = vmatpush.msra.mxu3 %v6994_v49  ;;  %v9283_v7 = vunpack.i.h.bf16 %v6923_v21  ;;  %v9284_v48 = vld [vmem:[#allocation163_spill] sm:$0xff]  ;;  %v9289_v21 = vld [vmem:[#allocation173_spill] sm:$0xff] }
 0x238   : > { %v1274_v52 = vpop.f32.mrf.mxu1  ;;  %v7020_v46 = vpop.trf.xlu2  ;;  %4273 = vmatpush.lsf.msrb.mxu0 %v7009_v54  ;;  %v9285_v38 = vunpack.i.h.bf16 %v9284_v48  ;;  %2213 = vmatpush.msra.mxu2 %v6997_v33 }
 0x239   : > { %4389 = vmatpush.lsf.msrb.mxu1 %v7006_v30  ;;  %v7027_v6 = vadd.f32 %v1497_v34, %v1385_v44  ;;  %v1275_v55 = vadd.f32 %v1274_v52, %v1161_v60  ;;  %2326 = vmatpush.msra.mxu3 %v7006_v30 }
 0x23a   : > { %4274 = vllmr.16.mxu0  ;;  %2214 = vmatpush.msra.mxu2 %v7009_v54 }
 0x23b   : > { %1564 = vmatmul.f32.gmra.mxu0 %v8838_v36  ;;  %4390 = vmatpush.lsf.msrb.mxu1 %v7025_v26  ;;  %v8842_v36 = vunpack.i.l.bf16 %v6973_v47 }
 0x23c   : > { %1677 = vmatmul.f32.gmra.mxu1 %v9283_v7  ;;  %1988 = vmatpush.msra.mxu0 %v9288_v9  ;;  %v8844_v7 = vunpack.i.h.bf16 %v6973_v47 }
 0x23d   : > { %1790 = vmatmul.f32.gmra.mxu2 %v9285_v38  ;;  %2101 = vmatpush.msra.mxu1 %v9289_v21 }
 0x23e   : > { %1903 = vmatmul.f32.gmra.mxu3 %v9287_v1  ;;  %v1387_v34 = vpop.f32.mrf.mxu2  ;;  %4291 = vmatpush.lsf.msrb.mxu0 %v9163_v42  ;;  %v9292_v42 = vld [vmem:[#allocation174_spill] sm:$0xff] }
 0x23f   : > { %v1500_v44 = vpop.f32.mrf.mxu3  ;;  %v1388_v38 = vadd.f32 %v1387_v34, %v1275_v55  ;;  %v1164_v1 = vpop.f32.mrf.mxu0  ;;  %2327 = vmatpush.msra.mxu3 %v7025_v26  ;;  %4519 = vmatpush.lsf.msrb.mxu2 %v6818_v39  ;;  %v9290_v55 = vld [vmem:[#allocation175_spill] sm:$0xff]  ;;  %v9293_v48 = vunpack.i.h.bf16 %v9292_v42  ;;  %v8847_v39 = vunpack.i.l.bf16 %v7020_v46 }
 0x240   : > { %v1277_v10 = vpop.f32.mrf.mxu1  ;;  %v7047_v60 = vpop.trf.xlu2  ;;  %4292 = vmatpush.lsf.msrb.mxu0 %v9165_v25  ;;  %v9291_v34 = vunpack.i.h.bf16 %v9290_v55 }
 0x241   : > { %v7051_v52 = vadd.f32 %v1500_v44, %v1388_v38  ;;  %v1278_v44 = vadd.f32 %v1277_v10, %v1164_v1  ;;  %4520 = vmatpush.lsf.msrb.mxu2 %v6838_v62  ;;  %4627 = vmatpush.lsf.msrb.mxu3 %v6823_v29 }
 0x242   : > { %4293 = vmatpush.lsf.msrb.mxu0 %v9168_v23 }
 0x243   : > { %4391 = vllmr.16.mxu1  ;;  %1567 = vmatmul.f32.gmra.mxu0 %v8842_v36 }
 0x244   : > { %1680 = vmatmul.f32.gmra.mxu1 %v8844_v7  ;;  %v8849_v7 = vunpack.i.h.bf16 %v7020_v46  ;;  %4294 = vmatpush.lsf.msrb.mxu0 %v9178_v50 }
 0x245   : > { %4408 = vmatpush.lsf.msrb.mxu1 %v9164_v63  ;;  %1793 = vmatmul.f32.gmra.mxu2 %v9291_v34 }
 0x246   : > { %1906 = vmatmul.f32.gmra.mxu3 %v9293_v48  ;;  %v1390_v38 = vpop.f32.mrf.mxu2  ;;  %4521 = vmatpush.lsf.msrb.mxu2 %v6850_v18 }
 0x247   : > { %4409 = vmatpush.lsf.msrb.mxu1 %v9166_v19  ;;  %v1503_v36 = vpop.f32.mrf.mxu3  ;;  %v1391_v48 = vadd.f32 %v1390_v38, %v1278_v44  ;;  %v1167_v34 = vpop.f32.mrf.mxu0  ;;  %4628 = vmatpush.lsf.msrb.mxu3 %v6841_v14  ;;  %v9294_v44 = vunpack.i.h.bf16 %v6404_v5  ;;  %v9295_v38 = vld [vmem:[#allocation181_spill] sm:$0xff] }
 0x248   : > { %v1280_v19 = vpop.f32.mrf.mxu1  ;;  %v7073_v10 = vpop.trf.xlu2  ;;  %4295 = vmatpush.lsf.msrb.mxu0 %v9180_v45  ;;  %4522 = vmatpush.lsf.msrb.mxu2 %v6860_v3  ;;  %v9296_v14 = vunpack.i.h.bf16 %v9295_v38  ;;  %v9359_v45 = vld [vmem:[#allocation70_spill] sm:$0xff] }
 0x249   : > { %4410 = vmatpush.lsf.msrb.mxu1 %v9169_v16  ;;  %v7077_v1 = vadd.f32 %v1503_v36, %v1391_v48  ;;  %4629 = vmatpush.lsf.msrb.mxu3 %v6855_v20  ;;  %v1281_v36 = vadd.f32 %v1280_v19, %v1167_v34  ;;  %v8851_v20 = vunpack.i.l.bf16 %v7047_v60 }
 0x24a   : > { %4296 = vmatpush.lsf.msrb.mxu0 %v9184_v61  ;;  %4523 = vmatpush.lsf.msrb.mxu2 %v6879_v4 }
 0x24b   : > { %4411 = vmatpush.lsf.msrb.mxu1 %v9179_v31  ;;  %1570 = vmatmul.f32.gmra.mxu0 %v8847_v39 }
 0x24c   : > { %1683 = vmatmul.f32.gmra.mxu1 %v8849_v7  ;;  %4630 = vmatpush.lsf.msrb.mxu3 %v6876_v59  ;;  %v8853_v7 = vunpack.i.h.bf16 %v7047_v60 }
 0x24d   : > { %1796 = vmatmul.f32.gmra.mxu2 %v9294_v44  ;;  %4412 = vmatpush.lsf.msrb.mxu1 %v9181_v24 }
 0x24e   : > { %1909 = vmatmul.f32.gmra.mxu3 %v9296_v14  ;;  %v1393_v48 = vpop.f32.mrf.mxu2  ;;  %4297 = vmatpush.lsf.msrb.mxu0 %v9192_v22 }
 0x24f   : > { %v1506_v39 = vpop.f32.mrf.mxu3  ;;  %4413 = vmatpush.lsf.msrb.mxu1 %v9185_v15  ;;  %v1394_v14 = vadd.f32 %v1393_v48, %v1281_v36  ;;  %v1170_v44 = vpop.f32.mrf.mxu0  ;;  %4524 = vmatpush.lsf.msrb.mxu2 %v6896_v12  ;;  %v9297_v36 = vunpack.i.h.bf16 %v6444_v53  ;;  %v9298_v48 = vunpack.i.h.bf16 %v6442_v57 }
 0x250   : > { %v1283_v3 = vpop.f32.mrf.mxu1  ;;  %4631 = vmatpush.lsf.msrb.mxu3 %v6893_v8  ;;  %v7099_v19 = vpop.trf.xlu2  ;;  %4298 = vmatpush.lsf.msrb.mxu0 %v9194_v40 }
 0x251   : > { %4414 = vmatpush.lsf.msrb.mxu1 %v9193_v2  ;;  %v7103_v34 = vadd.f32 %v1506_v39, %v1394_v14  ;;  %4525 = vmatpush.lsf.msrb.mxu2 %v6909_v13  ;;  %v1284_v39 = vadd.f32 %v1283_v3, %v1170_v44 }
 0x252   : > { %4632 = vmatpush.lsf.msrb.mxu3 %v6906_v27  ;;  %4299 = vmatpush.lsf.msrb.mxu0 %v9197_v17  ;;  %v8860_v27 = vunpack.i.l.bf16 %v7073_v10 }
 0x253   : > { %1573 = vmatmul.f32.gmra.mxu0 %v8851_v20  ;;  %4415 = vmatpush.lsf.msrb.mxu1 %v9195_v51 }
 0x254   : > { %1686 = vmatmul.f32.gmra.mxu1 %v8853_v7  ;;  %4526 = vmatpush.lsf.msrb.mxu2 %v6931_v11  ;;  %v9299_v7 = vld [vmem:[#allocation259_spill] sm:$0xff] }
 0x255   : > { %1799 = vmatmul.f32.gmra.mxu2 %v9297_v36  ;;  %4633 = vmatpush.lsf.msrb.mxu3 %v6928_v35  ;;  %v9308_v11 = vld [vmem:[#allocation155_spill] sm:$0xff] }
 0x256   : > { %1912 = vmatmul.f32.gmra.mxu3 %v9298_v48  ;;  %v1396_v14 = vpop.f32.mrf.mxu2  ;;  %4416 = vmatpush.lsf.msrb.mxu1 %v9198_v28 }
 0x257   : > { %v1509_v20 = vpop.f32.mrf.mxu3  ;;  %4300 = vmatpush.lsf.msrb.mxu0 %v9206_v0  ;;  %v1397_v36 = vadd.f32 %v1396_v14, %v1284_v39  ;;  %v1173_v48 = vpop.f32.mrf.mxu0  ;;  %4527 = vmatpush.lsf.msrb.mxu2 %v6947_v41  ;;  %v9300_v39 = vunpack.i.h.bf16 %v7073_v10  ;;  %v9301_v14 = vld [vmem:[#allocation190_spill] sm:$0xff]  ;;  %v9303_v41 = vld [vmem:[#allocation189_spill] sm:$0xff] }
 0x258   : > { %v1286_v13 = vpop.f32.mrf.mxu1  ;;  %4634 = vmatpush.lsf.msrb.mxu3 %v6944_v37  ;;  %v7125_v3 = vpop.trf.xlu2  ;;  %4417 = vmatpush.lsf.msrb.mxu1 %v9207_v43  ;;  %v9302_v37 = vunpack.i.h.bf16 %v9301_v14  ;;  %v9304_v35 = vunpack.i.h.bf16 %v9303_v41  ;;  %v9305_v43 = vld [vmem:[#allocation149_spill] sm:$0xff] }
 0x259   : > { %4301 = vmatpush.lsf.msrb.mxu0 %v9209_v58  ;;  %v7129_v44 = vadd.f32 %v1509_v20, %v1397_v36  ;;  %4528 = vmatpush.lsf.msrb.mxu2 %v6959_v32  ;;  %v9306_v20 = vld [vmem:[#allocation154_spill] sm:$0xff]  ;;  %v1287_v36 = vadd.f32 %v1286_v13, %v1173_v48  ;;  %v8868_v58 = vunpack.i.l.bf16 %v7099_v19  ;;  %v9310_v13 = vld [vmem:[#allocation159_spill] sm:$0xff]  ;;  %v9311_v48 = vld [vmem:[#allocation164_spill] sm:$0xff] }
 0x25a   : > { %4635 = vmatpush.lsf.msrb.mxu3 %v9299_v7  ;;  %4418 = vmatpush.lsf.msrb.mxu1 %v9305_v43  ;;  %v9307_v7 = vld [vmem:[#allocation261_spill] sm:$0xff] }
 0x25b   : > { %1576 = vmatmul.f32.gmra.mxu0 %v8860_v27  ;;  %4529 = vmatpush.lsf.msrb.mxu2 %v6981_v56 }
 0x25c   : > { %1689 = vmatmul.f32.gmra.mxu1 %v9300_v39  ;;  %4302 = vmatpush.lsf.msrb.mxu0 %v9306_v20  ;;  %v8869_v39 = vunpack.i.h.bf16 %v7099_v19 }
 0x25d   : > { %1802 = vmatmul.f32.gmra.mxu2 %v9302_v37  ;;  %4636 = vmatpush.lsf.msrb.mxu3 %v9307_v7  ;;  %v9309_v37 = vld [vmem:[#allocation158_spill] sm:$0xff] }
 0x25e   : > { %1915 = vmatmul.f32.gmra.mxu3 %v9304_v35  ;;  %v1399_v32 = vpop.f32.mrf.mxu2  ;;  %4419 = vmatpush.lsf.msrb.mxu1 %v9308_v11 }
 0x25f   : > { %v1512_v27 = vpop.f32.mrf.mxu3  ;;  %4303 = vmatpush.lsf.msrb.mxu0 %v9309_v37  ;;  %v1400_v35 = vadd.f32 %v1399_v32, %v1287_v36  ;;  %v1176_v28 = vpop.f32.mrf.mxu0  ;;  %4530 = vmatpush.lsf.msrb.mxu2 %v6997_v33  ;;  %v9312_v32 = vld [vmem:[#allocation194_spill] sm:$0xff] }
 0x260   : > { %v1289_v43 = vpop.f32.mrf.mxu1  ;;  %4637 = vmatpush.lsf.msrb.mxu3 %v6994_v49  ;;  %4420 = vmatpush.lsf.msrb.mxu1 %v9310_v13  ;;  %v9313_v36 = vunpack.i.h.bf16 %v9312_v32  ;;  %v9314_v49 = vld [vmem:[#allocation193_spill] sm:$0xff] }
 0x261   : > { %4304 = vmatpush.lsf.msrb.mxu0 %v9311_v48  ;;  %v7153_v7 = vadd.f32 %v1512_v27, %v1400_v35  ;;  %4531 = vmatpush.lsf.msrb.mxu2 %v7009_v54  ;;  %v9315_v33 = vunpack.i.h.bf16 %v9314_v49  ;;  %v9316_v13 = vld [vmem:[#allocation165_spill] sm:$0xff]  ;;  %v9317_v27 = vld [vmem:[#allocation168_spill] sm:$0xff]  ;;  %v1290_v35 = vadd.f32 %v1289_v43, %v1176_v28  ;;  %v8875_v48 = vunpack.i.h.bf16 %v7125_v3  ;;  %v9319_v28 = vld [vmem:[#allocation202_spill] sm:$0xff] }
 0x262   : > { %4638 = vmatpush.lsf.msrb.mxu3 %v7006_v30  ;;  %4421 = vmatpush.lsf.msrb.mxu1 %v9316_v13  ;;  %v9320_v43 = vunpack.i.h.bf16 %v9319_v28 }
 0x263   : > { %1579 = vmatmul.f32.gmra.mxu0 %v8868_v58  ;;  %v8874_v58 = vunpack.i.l.bf16 %v7125_v3 }
 0x264   : > { %1692 = vmatmul.f32.gmra.mxu1 %v8869_v39  ;;  %4305 = vmatpush.lsf.msrb.mxu0 %v9317_v27  ;;  %v9318_v39 = vld [vmem:[#allocation169_spill] sm:$0xff] }
 0x265   : > { %1805 = vmatmul.f32.gmra.mxu2 %v9313_v36  ;;  %4639 = vmatpush.lsf.msrb.mxu3 %v7025_v26  ;;  %v9321_v26 = vld [vmem:[#allocation201_spill] sm:$0xff] }
 0x266   : > { %1918 = vmatmul.f32.gmra.mxu3 %v9315_v33  ;;  %v1402_v30 = vpop.f32.mrf.mxu2  ;;  %4422 = vmatpush.lsf.msrb.mxu1 %v9318_v39  ;;  %v9322_v39 = vunpack.i.h.bf16 %v9321_v26 }
 0x267   : > { %v1515_v54 = vpop.f32.mrf.mxu3  ;;  %4306 = vmatpush.lsf.msrb.mxu0 %v9288_v9  ;;  %v1403_v36 = vadd.f32 %v1402_v30, %v1290_v35  ;;  %v1179_v56 = vpop.f32.mrf.mxu0 }
 0x268   : > { %v1292_v33 = vpop.f32.mrf.mxu1  ;;  %4423 = vmatpush.lsf.msrb.mxu1 %v9289_v21 }
 0x269   : > { %v7173_v13 = vadd.f32 %v1515_v54, %v1403_v36  ;;  %v1293_v9 = vadd.f32 %v1292_v33, %v1179_v56  ;;  %v9323_v54 = vld [vmem:[#allocation203_spill] sm:$0xff]  ;;  %v9324_v33 = vld [vmem:[#allocation204_spill] sm:$0xff] }
 0x26b   : > { %1582 = vmatmul.f32.gmra.mxu0 %v8874_v58 }
 0x26c   : > { %1695 = vmatmul.f32.gmra.mxu1 %v8875_v48 }
 0x26d   : > { %1808 = vmatmul.f32.gmra.mxu2 %v9320_v43 }
 0x26e   : > { %1921 = vmatmul.f32.gmra.mxu3 %v9322_v39  ;;  %v1405_v30 = vpop.f32.mrf.mxu2 }
 0x26f   : > { %v1518_v35 = vpop.f32.mrf.mxu3  ;;  %v1406_v27 = vadd.f32 %v1405_v30, %v1293_v9  ;;  %v1538_v11 = vpop.f32.mrf.mxu0 }
 0x270   : > { %v1651_v21 = vpop.f32.mrf.mxu1  ;;  %v1539_v36 = vadd.f32 %v1538_v11, %v9323_v54  ;;  %v9325_v54 = vld [vmem:[#allocation205_spill] sm:$0xff] }
 0x271   : > { %v7184_v37 = vadd.f32 %v1518_v35, %v1406_v27 }
 0x272   : > { %v1652_v58 = vadd.f32 %v1651_v21, %v1539_v36 }
 0x273   : > { %4275 = vmatmul.lmr.bf16.gmra.16.mxu0 }
 0x274   : > { %4392 = vmatmul.lmr.bf16.gmra.16.mxu1  ;;  %2489 = vst [vmem:[#allocation2] sm:$0xff] %v1652_v58 }
 0x275   : > { %4500 = vmatmul.lmr.bf16.gmra.16.mxu2 }
 0x276   : > { %4608 = vmatmul.lmr.bf16.gmra.16.mxu3  ;;  %v1764_v43 = vpop.f32.mrf.mxu2 }
 0x277   : > { %v1877_v48 = vpop.f32.mrf.mxu3  ;;  %v1541_v56 = vpop.f32.mrf.mxu0 }
 0x278   : > { %v7186_v20 = vadd.f32 %v1877_v48, %v1764_v43  ;;  %v1654_v39 = vpop.f32.mrf.mxu1  ;;  %v1542_v9 = vadd.f32 %v1541_v56, %v9324_v33 }
 0x27a   : > { %v1655_v30 = vadd.f32 %v1654_v39, %v1542_v9 }
 0x27b   : > { %4276 = vmatmul.lmr.bf16.gmra.16.mxu0 }
 0x27c   : > { %4393 = vmatmul.lmr.bf16.gmra.16.mxu1  ;;  %2491 = vst [vmem:[#allocation2 + $0x10] sm:$0xff] %v1655_v30  ;;  %v9326_v30 = vld [vmem:[#allocation206_spill] sm:$0xff] }
 0x27d   : > { %4501 = vmatmul.lmr.bf16.gmra.16.mxu2 }
 0x27e   : > { %4609 = vmatmul.lmr.bf16.gmra.16.mxu3 }
 0x27f   : > { %v1880_v11 = vpop.f32.mrf.mxu3 }
 0x280   : > { %v1767_v21 = vpop.f32.mrf.mxu2  ;;  %v1544_v35 = vpop.f32.mrf.mxu0 }
 0x281   : > { %v7189_v27 = vadd.f32 %v1880_v11, %v1767_v21  ;;  %v1657_v58 = vpop.f32.mrf.mxu1  ;;  %v1545_v36 = vadd.f32 %v1544_v35, %v9325_v54 }
 0x283   : > { %v1658_v48 = vadd.f32 %v1657_v58, %v1545_v36  ;;  %4277 = vmatmul.lmr.bf16.gmra.16.mxu0 }
 0x284   : > { %4394 = vmatmul.lmr.bf16.gmra.16.mxu1 }
 0x285   : > { %4502 = vmatmul.lmr.bf16.gmra.16.mxu2  ;;  %2493 = vst [vmem:[#allocation2 + $0x20] sm:$0xff] %v1658_v48  ;;  %v9327_v48 = vld [vmem:[#allocation207_spill] sm:$0xff] }
 0x286   : > { %4610 = vmatmul.lmr.bf16.gmra.16.mxu3 }
 0x288   : > { %v1770_v43 = vpop.f32.mrf.mxu2  ;;  %v1547_v33 = vpop.f32.mrf.mxu0 }
 0x289   : > { %v1883_v56 = vpop.f32.mrf.mxu3  ;;  %v1660_v9 = vpop.f32.mrf.mxu1  ;;  %v1548_v0 = vadd.f32 %v1547_v33, %v9326_v30 }
 0x28a   : > { %v7192_v39 = vadd.f32 %v1883_v56, %v1770_v43 }
 0x28b   : > { %v1661_v21 = vadd.f32 %v1660_v9, %v1548_v0  ;;  %4278 = vmatmul.lmr.bf16.gmra.16.mxu0 }
 0x28c   : > { %4395 = vmatmul.lmr.bf16.gmra.16.mxu1 }
 0x28d   : > { %4503 = vmatmul.lmr.bf16.gmra.16.mxu2  ;;  %2495 = vst [vmem:[#allocation2 + $0x30] sm:$0xff] %v1661_v21  ;;  %v9328_v21 = vld [vmem:[#allocation208_spill] sm:$0xff] }
 0x28e   : > { %4611 = vmatmul.lmr.bf16.gmra.16.mxu3 }
 0x290   : > { %v1773_v11 = vpop.f32.mrf.mxu2  ;;  %v1550_v54 = vpop.f32.mrf.mxu0 }
 0x291   : > { %v1886_v35 = vpop.f32.mrf.mxu3  ;;  %v1663_v36 = vpop.f32.mrf.mxu1  ;;  %v1551_v51 = vadd.f32 %v1550_v54, %v9327_v48 }
 0x292   : > { %v7195_v58 = vadd.f32 %v1886_v35, %v1773_v11 }
 0x293   : > { %v1664_v43 = vadd.f32 %v1663_v36, %v1551_v51  ;;  %4279 = vmatmul.lmr.bf16.gmra.16.mxu0 }
 0x294   : > { %4396 = vmatmul.lmr.bf16.gmra.16.mxu1 }
 0x295   : > { %4504 = vmatmul.lmr.bf16.gmra.16.mxu2  ;;  %2497 = vst [vmem:[#allocation2 + $0x40] sm:$0xff] %v1664_v43  ;;  %v9329_v43 = vld [vmem:[#allocation209_spill] sm:$0xff] }
 0x296   : > { %4612 = vmatmul.lmr.bf16.gmra.16.mxu3 }
 0x298   : > { %v1776_v0 = vpop.f32.mrf.mxu2  ;;  %v1553_v9 = vpop.f32.mrf.mxu0 }
 0x299   : > { %v1889_v56 = vpop.f32.mrf.mxu3  ;;  %v1666_v30 = vpop.f32.mrf.mxu1  ;;  %v1554_v17 = vadd.f32 %v1553_v9, %v9328_v21 }
 0x29a   : > { %v7198_v33 = vadd.f32 %v1889_v56, %v1776_v0 }
 0x29b   : > { %v1667_v11 = vadd.f32 %v1666_v30, %v1554_v17  ;;  %4280 = vmatmul.lmr.bf16.gmra.16.mxu0 }
 0x29c   : > { %4397 = vmatmul.lmr.bf16.gmra.16.mxu1 }
 0x29d   : > { %4505 = vmatmul.lmr.bf16.gmra.16.mxu2  ;;  %2499 = vst [vmem:[#allocation2 + $0x50] sm:$0xff] %v1667_v11  ;;  %v9330_v11 = vld [vmem:[#allocation210_spill] sm:$0xff] }
 0x29e   : > { %4613 = vmatmul.lmr.bf16.gmra.16.mxu3 }
 0x2a0   : > { %v1779_v51 = vpop.f32.mrf.mxu2  ;;  %v1556_v36 = vpop.f32.mrf.mxu0 }
 0x2a1   : > { %v1892_v35 = vpop.f32.mrf.mxu3  ;;  %v1669_v48 = vpop.f32.mrf.mxu1  ;;  %v1557_v8 = vadd.f32 %v1556_v36, %v9329_v43 }
 0x2a2   : > { %v7201_v54 = vadd.f32 %v1892_v35, %v1779_v51 }
 0x2a3   : > { %v1670_v0 = vadd.f32 %v1669_v48, %v1557_v8  ;;  %4281 = vmatmul.lmr.bf16.gmra.16.mxu0 }
 0x2a4   : > { %4398 = vmatmul.lmr.bf16.gmra.16.mxu1 }
 0x2a5   : > { %4506 = vmatmul.lmr.bf16.gmra.16.mxu2  ;;  %2501 = vst [vmem:[#allocation2 + $0x60] sm:$0xff] %v1670_v0  ;;  %v9331_v0 = vld [vmem:[#allocation211_spill] sm:$0xff] }
 0x2a6   : > { %4614 = vmatmul.lmr.bf16.gmra.16.mxu3 }
 0x2a8   : > { %v1782_v17 = vpop.f32.mrf.mxu2  ;;  %v1559_v30 = vpop.f32.mrf.mxu0 }
 0x2a9   : > { %v1895_v56 = vpop.f32.mrf.mxu3  ;;  %v1672_v21 = vpop.f32.mrf.mxu1  ;;  %v1560_v12 = vadd.f32 %v1559_v30, %v9330_v11 }
 0x2aa   : > { %v7204_v9 = vadd.f32 %v1895_v56, %v1782_v17 }
 0x2ab   : > { %v1673_v51 = vadd.f32 %v1672_v21, %v1560_v12  ;;  %4282 = vmatmul.lmr.bf16.gmra.16.mxu0 }
 0x2ac   : > { %4399 = vmatmul.lmr.bf16.gmra.16.mxu1 }
 0x2ad   : > { %4507 = vmatmul.lmr.bf16.gmra.16.mxu2  ;;  %2503 = vst [vmem:[#allocation2 + $0x70] sm:$0xff] %v1673_v51  ;;  %v9332_v51 = vld [vmem:[#allocation212_spill] sm:$0xff] }
 0x2ae   : > { %4615 = vmatmul.lmr.bf16.gmra.16.mxu3 }
 0x2b0   : > { %v1785_v8 = vpop.f32.mrf.mxu2  ;;  %v1562_v48 = vpop.f32.mrf.mxu0 }
 0x2b1   : > { %v1898_v35 = vpop.f32.mrf.mxu3  ;;  %v1675_v43 = vpop.f32.mrf.mxu1  ;;  %v1563_v2 = vadd.f32 %v1562_v48, %v9331_v0 }
 0x2b2   : > { %v7207_v36 = vadd.f32 %v1898_v35, %v1785_v8 }
 0x2b3   : > { %v1676_v17 = vadd.f32 %v1675_v43, %v1563_v2  ;;  %4283 = vmatmul.lmr.bf16.gmra.16.mxu0 }
 0x2b4   : > { %4400 = vmatmul.lmr.bf16.gmra.16.mxu1 }
 0x2b5   : > { %4508 = vmatmul.lmr.bf16.gmra.16.mxu2  ;;  %2505 = vst [vmem:[#allocation2 + $0x80] sm:$0xff] %v1676_v17  ;;  %v9333_v17 = vld [vmem:[#allocation213_spill] sm:$0xff] }
 0x2b6   : > { %4616 = vmatmul.lmr.bf16.gmra.16.mxu3 }
 0x2b8   : > { %v1788_v12 = vpop.f32.mrf.mxu2  ;;  %v1565_v21 = vpop.f32.mrf.mxu0 }
 0x2b9   : > { %v1901_v56 = vpop.f32.mrf.mxu3  ;;  %v1678_v11 = vpop.f32.mrf.mxu1  ;;  %v1566_v40 = vadd.f32 %v1565_v21, %v9332_v51 }
 0x2ba   : > { %v7210_v30 = vadd.f32 %v1901_v56, %v1788_v12 }
 0x2bb   : > { %v1679_v8 = vadd.f32 %v1678_v11, %v1566_v40  ;;  %4284 = vmatmul.lmr.bf16.gmra.16.mxu0 }
 0x2bc   : > { %4401 = vmatmul.lmr.bf16.gmra.16.mxu1 }
 0x2bd   : > { %4509 = vmatmul.lmr.bf16.gmra.16.mxu2  ;;  %2507 = vst [vmem:[#allocation2 + $0x90] sm:$0xff] %v1679_v8  ;;  %v9334_v8 = vld [vmem:[#allocation214_spill] sm:$0xff] }
 0x2be   : > { %4617 = vmatmul.lmr.bf16.gmra.16.mxu3 }
 0x2c0   : > { %v1791_v2 = vpop.f32.mrf.mxu2  ;;  %v1568_v43 = vpop.f32.mrf.mxu0 }
 0x2c1   : > { %v1904_v35 = vpop.f32.mrf.mxu3  ;;  %v1681_v0 = vpop.f32.mrf.mxu1  ;;  %v1569_v59 = vadd.f32 %v1568_v43, %v9333_v17 }
 0x2c2   : > { %v7213_v48 = vadd.f32 %v1904_v35, %v1791_v2 }
 0x2c3   : > { %v1682_v12 = vadd.f32 %v1681_v0, %v1569_v59  ;;  %4285 = vmatmul.lmr.bf16.gmra.16.mxu0 }
 0x2c4   : > { %4402 = vmatmul.lmr.bf16.gmra.16.mxu1 }
 0x2c5   : > { %4510 = vmatmul.lmr.bf16.gmra.16.mxu2  ;;  %2509 = vst [vmem:[#allocation2 + $0xa0] sm:$0xff] %v1682_v12  ;;  %v9335_v12 = vld [vmem:[#allocation215_spill] sm:$0xff] }
 0x2c6   : > { %4618 = vmatmul.lmr.bf16.gmra.16.mxu3 }
 0x2c8   : > { %v1794_v40 = vpop.f32.mrf.mxu2  ;;  %v1571_v11 = vpop.f32.mrf.mxu0 }
 0x2c9   : > { %v1907_v56 = vpop.f32.mrf.mxu3  ;;  %v1684_v51 = vpop.f32.mrf.mxu1  ;;  %v1572_v4 = vadd.f32 %v1571_v11, %v9334_v8 }
 0x2ca   : > { %v7216_v21 = vadd.f32 %v1907_v56, %v1794_v40 }
 0x2cb   : > { %v1685_v2 = vadd.f32 %v1684_v51, %v1572_v4  ;;  %4286 = vmatmul.lmr.bf16.gmra.16.mxu0 }
 0x2cc   : > { %4403 = vmatmul.lmr.bf16.gmra.16.mxu1 }
 0x2cd   : > { %4511 = vmatmul.lmr.bf16.gmra.16.mxu2  ;;  %2511 = vst [vmem:[#allocation2 + $0xb0] sm:$0xff] %v1685_v2  ;;  %v9336_v2 = vld [vmem:[#allocation217_spill] sm:$0xff] }
 0x2ce   : > { %4619 = vmatmul.lmr.bf16.gmra.16.mxu3 }
 0x2d0   : > { %v1797_v59 = vpop.f32.mrf.mxu2  ;;  %v1574_v0 = vpop.f32.mrf.mxu0 }
 0x2d1   : > { %v1910_v35 = vpop.f32.mrf.mxu3  ;;  %v1687_v17 = vpop.f32.mrf.mxu1  ;;  %v1575_v15 = vadd.f32 %v1574_v0, %v9335_v12 }
 0x2d2   : > { %v7219_v43 = vadd.f32 %v1910_v35, %v1797_v59 }
 0x2d3   : > { %v1688_v40 = vadd.f32 %v1687_v17, %v1575_v15  ;;  %4287 = vmatmul.lmr.bf16.gmra.16.mxu0 }
 0x2d4   : > { %4404 = vmatmul.lmr.bf16.gmra.16.mxu1 }
 0x2d5   : > { %4512 = vmatmul.lmr.bf16.gmra.16.mxu2  ;;  %2513 = vst [vmem:[#allocation2 + $0xc0] sm:$0xff] %v1688_v40  ;;  %v9337_v40 = vld [vmem:[#allocation219_spill] sm:$0xff] }
 0x2d6   : > { %4620 = vmatmul.lmr.bf16.gmra.16.mxu3 }
 0x2d8   : > { %v1800_v4 = vpop.f32.mrf.mxu2  ;;  %v1577_v51 = vpop.f32.mrf.mxu0 }
 0x2d9   : > { %v1913_v56 = vpop.f32.mrf.mxu3  ;;  %v1690_v8 = vpop.f32.mrf.mxu1  ;;  %v1578_v22 = vadd.f32 %v1577_v51, %v9336_v2 }
 0x2da   : > { %v7222_v11 = vadd.f32 %v1913_v56, %v1800_v4 }
 0x2db   : > { %v1691_v59 = vadd.f32 %v1690_v8, %v1578_v22  ;;  %4288 = vmatmul.lmr.bf16.gmra.16.mxu0 }
 0x2dc   : > { %4405 = vmatmul.lmr.bf16.gmra.16.mxu1 }
 0x2dd   : > { %4513 = vmatmul.lmr.bf16.gmra.16.mxu2  ;;  %2515 = vst [vmem:[#allocation2 + $0xd0] sm:$0xff] %v1691_v59  ;;  %v9338_v59 = vld [vmem:[#allocation223_spill] sm:$0xff] }
 0x2de   : > { %4621 = vmatmul.lmr.bf16.gmra.16.mxu3 }
 0x2e0   : > { %v1803_v15 = vpop.f32.mrf.mxu2  ;;  %v1580_v17 = vpop.f32.mrf.mxu0 }
 0x2e1   : > { %v1916_v35 = vpop.f32.mrf.mxu3  ;;  %v1693_v12 = vpop.f32.mrf.mxu1  ;;  %v1581_v24 = vadd.f32 %v1580_v17, %v9337_v40 }
 0x2e2   : > { %v7225_v0 = vadd.f32 %v1916_v35, %v1803_v15 }
 0x2e3   : > { %v1694_v4 = vadd.f32 %v1693_v12, %v1581_v24  ;;  %4289 = vmatmul.lmr.bf16.gmra.16.mxu0 }
 0x2e4   : > { %4406 = vmatmul.lmr.bf16.gmra.16.mxu1 }
 0x2e5   : > { %4514 = vmatmul.lmr.bf16.gmra.16.mxu2  ;;  %2517 = vst [vmem:[#allocation2 + $0xe0] sm:$0xff] %v1694_v4  ;;  %v9339_v4 = vld [vmem:[#allocation225_spill] sm:$0xff] }
 0x2e6   : > { %4622 = vmatmul.lmr.bf16.gmra.16.mxu3 }
 0x2e8   : > { %v1806_v22 = vpop.f32.mrf.mxu2  ;;  %v1583_v8 = vpop.f32.mrf.mxu0 }
 0x2e9   : > { %v1919_v56 = vpop.f32.mrf.mxu3  ;;  %v1696_v2 = vpop.f32.mrf.mxu1  ;;  %v1584_v61 = vadd.f32 %v1583_v8, %v9338_v59 }
 0x2ea   : > { %v7228_v51 = vadd.f32 %v1919_v56, %v1806_v22  ;;  %v9340_v56 = vld [vmem:[#allocation81_spill] sm:$0xff] }
 0x2eb   : > { %v1697_v15 = vadd.f32 %v1696_v2, %v1584_v61  ;;  %4290 = vmatmul.lmr.bf16.gmra.16.mxu0  ;;  %v9341_v31 = vunpack.i.l.bf16 %v9340_v56  ;;  %v9342_v61 = vld [vmem:[#allocation80_spill] sm:$0xff]  ;;  %v9352_v56 = vld [vmem:[#allocation65_spill] sm:$0xff] }
 0x2ec   : > { %4407 = vmatmul.lmr.bf16.gmra.16.mxu1  ;;  %v9343_v8 = vunpack.i.l.bf16 %v9342_v61  ;;  %v9344_v2 = vld [vmem:[#allocation216_spill] sm:$0xff] }
 0x2ed   : > { %4515 = vmatmul.lmr.bf16.gmra.16.mxu2  ;;  %2519 = vst [vmem:[#allocation2 + $0xf0] sm:$0xff] %v1697_v15  ;;  %v9345_v59 = vunpack.i.l.bf16 %v9344_v2  ;;  %v9346_v15 = vunpack.i.h.bf16 %v9344_v2 }
 0x2ee   : > { %4623 = vmatmul.lmr.bf16.gmra.16.mxu3 }
 0x2f0   : > { %v1809_v24 = vpop.f32.mrf.mxu2  ;;  %v1586_v12 = vpop.f32.mrf.mxu0 }
 0x2f1   : > { %v1922_v35 = vpop.f32.mrf.mxu3  ;;  %v1699_v40 = vpop.f32.mrf.mxu1  ;;  %v1587_v18 = vadd.f32 %v1586_v12, %v9339_v4  ;;  %v9349_v12 = vld [vmem:[#allocation68_spill] sm:$0xff] }
 0x2f2   : > { %v7231_v17 = vadd.f32 %v1922_v35, %v1809_v24  ;;  %4307 = vllmr.16.mxu0  ;;  %v9347_v24 = vld [vmem:[#allocation67_spill] sm:$0xff]  ;;  %v9350_v4 = vld [vmem:[#allocation64_spill] sm:$0xff] }
 0x2f3   : > { %4424 = vllmr.16.mxu1  ;;  %v1700_v22 = vadd.f32 %v1699_v40, %v1587_v18  ;;  %1989 = vmatmul.f32.vlgmr.msra.gmra.mxu0 %v9341_v31  ;;  %v9348_v35 = vld [vmem:[#allocation63_spill] sm:$0xff]  ;;  %v9351_v40 = vld [vmem:[#allocation72_spill] sm:$0xff] }
 0x2f4   : > { %2102 = vmatmul.f32.vlgmr.msra.gmra.mxu1 %v9343_v8  ;;  %2555 = vmatpush.msra.mxu0 %v9347_v24  ;;  %v9355_v24 = vld [vmem:[#allocation229_spill] sm:$0xff] }
 0x2f5   : > { %2215 = vmatmul.f32.vlgmr.msra.gmra.mxu2 %v9345_v59  ;;  %2575 = vmatpush.msra.mxu1 %v9348_v35  ;;  %2521 = vst [vmem:[#allocation2 + $0x100] sm:$0xff] %v1700_v22  ;;  %v9353_v59 = vld [vmem:[#allocation73_spill] sm:$0xff]  ;;  %v9358_v22 = vld [vmem:[#allocation78_spill] sm:$0xff] }
 0x2f6   : > { %2328 = vmatmul.f32.vlgmr.msra.gmra.mxu3 %v9346_v15  ;;  %2595 = vmatpush.msra.mxu2 %v9349_v12  ;;  %v9354_v15 = vld [vmem:[#allocation66_spill] sm:$0xff]  ;;  %v9356_v12 = vld [vmem:[#allocation77_spill] sm:$0xff] }
 0x2f7   : > { %2615 = vmatpush.msra.mxu3 %v9350_v4  ;;  %2556 = vmatpush.msra.mxu0 %v9351_v40  ;;  %v9357_v4 = vld [vmem:[#allocation69_spill] sm:$0xff] }
 0x2f8   : > { %v1812_v18 = vpop.f32.mrf.mxu2  ;;  %2576 = vmatpush.msra.mxu1 %v9352_v56  ;;  %v1589_v8 = vpop.f32.mrf.mxu0  ;;  %2596 = vmatpush.msra.mxu2 %v9353_v59  ;;  %v9360_v56 = vld [vmem:[#allocation87_spill] sm:$0xff]  ;;  %v9364_v59 = vld [vmem:[#allocation218_spill] sm:$0xff] }
 0x2f9   : > { %v1925_v31 = vpop.f32.mrf.mxu3  ;;  %v1702_v2 = vpop.f32.mrf.mxu1  ;;  %2616 = vmatpush.msra.mxu3 %v9354_v15  ;;  %v1590_v35 = vadd.f32 %v1589_v8, %v9355_v24  ;;  %2557 = vmatpush.msra.mxu0 %v9356_v12  ;;  %v9365_v62 = vunpack.i.l.bf16 %v9364_v59  ;;  %v9366_v8 = vunpack.i.h.bf16 %v9364_v59  ;;  %v9367_v15 = vld [vmem:[#allocation75_spill] sm:$0xff]  ;;  %v9369_v12 = vld [vmem:[#allocation76_spill] sm:$0xff] }
 0x2fa   : > { %v7248_v61 = vadd.f32 %v1925_v31, %v1812_v18  ;;  %2577 = vmatpush.msra.mxu1 %v9357_v4  ;;  %2597 = vmatpush.msra.mxu2 %v9358_v22  ;;  %v9361_v18 = vunpack.i.l.bf16 %v9360_v56  ;;  %v9362_v31 = vld [vmem:[#allocation86_spill] sm:$0xff]  ;;  %v9368_v24 = vld [vmem:[#allocation71_spill] sm:$0xff]  ;;  %v9371_v4 = vld [vmem:[#allocation61_spill] sm:$0xff] }
 0x2fb   : > { %2617 = vmatpush.msra.mxu3 %v9359_v45  ;;  %v1703_v40 = vadd.f32 %v1702_v2, %v1590_v35  ;;  %v9363_v29 = vunpack.i.l.bf16 %v9362_v31  ;;  %2558 = vmatpush.msra.mxu0 %v9367_v15  ;;  %v9370_v45 = vld [vmem:[#allocation74_spill] sm:$0xff]  ;;  %v9374_v31 = vld [vmem:[#allocation60_spill] sm:$0xff]  ;;  %v9375_v59 = vld [vmem:[#allocation231_spill] sm:$0xff] }
 0x2fc   : > { %1992 = vmatmul.f32.gmra.mxu0 %v9361_v18  ;;  %2578 = vmatpush.msra.mxu1 %v9368_v24  ;;  %v9373_v18 = vld [vmem:[#allocation62_spill] sm:$0xff]  ;;  %v9376_v15 = vld [vmem:[#allocation57_spill] sm:$0xff]  ;;  %v9377_v24 = vld [vmem:[#allocation55_spill] sm:$0xff] }
 0x2fd   : > { %2105 = vmatmul.f32.gmra.mxu1 %v9363_v29  ;;  %2218 = vmatmul.f32.gmra.mxu2 %v9365_v62  ;;  %2523 = vst [vmem:[#allocation2 + $0x110] sm:$0xff] %v1703_v40  ;;  %v9372_v29 = vld [vmem:[#allocation59_spill] sm:$0xff] }
 0x2fe   : > { %2331 = vmatmul.f32.gmra.mxu3 %v9366_v8  ;;  %2598 = vmatpush.msra.mxu2 %v9369_v12  ;;  %v9378_v12 = vld [vmem:[#allocation93_spill] sm:$0xff] }
 0x2ff   : > { %2618 = vmatpush.msra.mxu3 %v9370_v45  ;;  %2559 = vmatpush.msra.mxu0 %v9371_v4  ;;  %v9379_v45 = vunpack.i.l.bf16 %v9378_v12  ;;  %v9382_v4 = vld [vmem:[#allocation222_spill] sm:$0xff]  ;;  %v9390_v12 = vld [vmem:[#allocation47_spill] sm:$0xff] }
 0x300   : > { %v1815_v2 = vpop.f32.mrf.mxu2  ;;  %2579 = vmatpush.msra.mxu1 %v9372_v29  ;;  %v1592_v62 = vpop.f32.mrf.mxu0  ;;  %2599 = vmatpush.msra.mxu2 %v9373_v18  ;;  %v9383_v29 = vunpack.i.l.bf16 %v9382_v4  ;;  %v9384_v18 = vunpack.i.h.bf16 %v9382_v4  ;;  %v9391_v4 = vld [vmem:[#allocation54_spill] sm:$0xff] }
 0x301   : > { %v1928_v35 = vpop.f32.mrf.mxu3  ;;  %v1705_v56 = vpop.f32.mrf.mxu1  ;;  %2619 = vmatpush.msra.mxu3 %v9374_v31  ;;  %v1593_v8 = vadd.f32 %v1592_v62, %v9375_v59  ;;  %2560 = vmatpush.msra.mxu0 %v9376_v15  ;;  %v9385_v62 = vld [vmem:[#allocation53_spill] sm:$0xff]  ;;  %v9386_v31 = vld [vmem:[#allocation51_spill] sm:$0xff]  ;;  %v9387_v59 = vld [vmem:[#allocation58_spill] sm:$0xff] }
 0x302   : > { %v7271_v22 = vadd.f32 %v1928_v35, %v1815_v2  ;;  %2580 = vmatpush.msra.mxu1 %v9377_v24  ;;  %v9380_v2 = vld [vmem:[#allocation92_spill] sm:$0xff]  ;;  %2600 = vmatpush.msra.mxu2 %v9387_v59  ;;  %v9389_v24 = vld [vmem:[#allocation49_spill] sm:$0xff]  ;;  %v9395_v59 = vld [vmem:[#allocation43_spill] sm:$0xff] }
 0x303   : > { %v1706_v40 = vadd.f32 %v1705_v56, %v1593_v8  ;;  %v9381_v35 = vunpack.i.l.bf16 %v9380_v2  ;;  %2561 = vmatpush.msra.mxu0 %v9385_v62  ;;  %v9388_v15 = vld [vmem:[#allocation56_spill] sm:$0xff] }
 0x304   : > { %4532 = vllmr.16.mxu2  ;;  %1995 = vmatmul.f32.gmra.mxu0 %v9379_v45 }
 0x305   : > { %4640 = vllmr.16.mxu3  ;;  %2108 = vmatmul.f32.gmra.mxu1 %v9381_v35  ;;  %2525 = vst [vmem:[#allocation2 + $0x120] sm:$0xff] %v1706_v40  ;;  %v9396_v40 = vld [vmem:[#allocation50_spill] sm:$0xff] }
 0x306   : > { %2221 = vmatmul.f32.gmra.mxu2 %v9383_v29  ;;  %2334 = vmatmul.f32.gmra.mxu3 %v9384_v18  ;;  %v9392_v29 = vld [vmem:[#allocation52_spill] sm:$0xff]  ;;  %v9393_v18 = vld [vmem:[#allocation235_spill] sm:$0xff] }
 0x307   : > { %2581 = vmatpush.msra.mxu1 %v9386_v31  ;;  %2620 = vmatpush.msra.mxu3 %v9388_v15  ;;  %v9394_v31 = vld [vmem:[#allocation45_spill] sm:$0xff]  ;;  %v9397_v15 = vld [vmem:[#allocation48_spill] sm:$0xff] }
 0x308   : > { %v1818_v56 = vpop.f32.mrf.mxu2  ;;  %2562 = vmatpush.msra.mxu0 %v9389_v24  ;;  %v1595_v2 = vpop.f32.mrf.mxu0  ;;  %2601 = vmatpush.msra.mxu2 %v9391_v4  ;;  %v9402_v4 = vld [vmem:[#allocation224_spill] sm:$0xff] }
 0x309   : > { %v1931_v8 = vpop.f32.mrf.mxu3  ;;  %2582 = vmatpush.msra.mxu1 %v9390_v12  ;;  %v1708_v35 = vpop.f32.mrf.mxu1  ;;  %2621 = vmatpush.msra.mxu3 %v9392_v29  ;;  %v1596_v62 = vadd.f32 %v1595_v2, %v9393_v18  ;;  %v9398_v12 = vld [vmem:[#allocation97_spill] sm:$0xff]  ;;  %v9403_v50 = vunpack.i.l.bf16 %v9402_v4  ;;  %v9404_v2 = vunpack.i.h.bf16 %v9402_v4  ;;  %v9406_v18 = vld [vmem:[#allocation39_spill] sm:$0xff] }
 0x30a   : > { %v7292_v45 = vadd.f32 %v1931_v8, %v1818_v56  ;;  %2563 = vmatpush.msra.mxu0 %v9394_v31  ;;  %2602 = vmatpush.msra.mxu2 %v9396_v40  ;;  %v9399_v56 = vunpack.i.l.bf16 %v9398_v12  ;;  %v9400_v8 = vld [vmem:[#allocation96_spill] sm:$0xff]  ;;  %v9405_v29 = vld [vmem:[#allocation41_spill] sm:$0xff]  ;;  %v9407_v31 = vld [vmem:[#allocation46_spill] sm:$0xff] }
 0x30b   : > { %2583 = vmatpush.msra.mxu1 %v9395_v59  ;;  %2622 = vmatpush.msra.mxu3 %v9397_v15  ;;  %v1709_v24 = vadd.f32 %v1708_v35, %v1596_v62  ;;  %v9401_v16 = vunpack.i.l.bf16 %v9400_v8  ;;  %v9408_v59 = vld [vmem:[#allocation44_spill] sm:$0xff]  ;;  %v9409_v40 = vld [vmem:[#allocation37_spill] sm:$0xff]  ;;  %v9413_v4 = vld [vmem:[#allocation239_spill] sm:$0xff] }
 0x30c   : > { %1998 = vmatmul.f32.gmra.mxu0 %v9399_v56  ;;  %2603 = vmatpush.msra.mxu2 %v9407_v31  ;;  %v9411_v56 = vld [vmem:[#allocation42_spill] sm:$0xff]  ;;  %v9412_v8 = vld [vmem:[#allocation40_spill] sm:$0xff] }
 0x30d   : > { %2111 = vmatmul.f32.gmra.mxu1 %v9401_v16  ;;  %2564 = vmatpush.msra.mxu0 %v9405_v29  ;;  %2527 = vst [vmem:[#allocation2 + $0x130] sm:$0xff] %v1709_v24  ;;  %v9410_v16 = vld [vmem:[#allocation35_spill] sm:$0xff]  ;;  %v9414_v29 = vld [vmem:[#allocation33_spill] sm:$0xff]  ;;  %v9416_v24 = vld [vmem:[#allocation38_spill] sm:$0xff] }
 0x30e   : > { %2224 = vmatmul.f32.gmra.mxu2 %v9403_v50  ;;  %2337 = vmatmul.f32.gmra.mxu3 %v9404_v2  ;;  %v9417_v31 = vld [vmem:[#allocation36_spill] sm:$0xff] }
 0x30f   : > { %2584 = vmatpush.msra.mxu1 %v9406_v18  ;;  %2623 = vmatpush.msra.mxu3 %v9408_v59  ;;  %v9415_v18 = vld [vmem:[#allocation31_spill] sm:$0xff] }
 0x310   : > { %v1821_v35 = vpop.f32.mrf.mxu2  ;;  %2565 = vmatpush.msra.mxu0 %v9409_v40  ;;  %v1598_v50 = vpop.f32.mrf.mxu0  ;;  %2604 = vmatpush.msra.mxu2 %v9411_v56  ;;  %v9418_v40 = vld [vmem:[#allocation101_spill] sm:$0xff]  ;;  %v9422_v56 = vld [vmem:[#allocation228_spill] sm:$0xff] }
 0x311   : > { %v1934_v62 = vpop.f32.mrf.mxu3  ;;  %2585 = vmatpush.msra.mxu1 %v9410_v16  ;;  %v1711_v12 = vpop.f32.mrf.mxu1  ;;  %2624 = vmatpush.msra.mxu3 %v9412_v8  ;;  %v1599_v2 = vadd.f32 %v1598_v50, %v9413_v4  ;;  %v9423_v23 = vunpack.i.l.bf16 %v9422_v56  ;;  %v9424_v50 = vunpack.i.h.bf16 %v9422_v56  ;;  %v9425_v8 = vld [vmem:[#allocation29_spill] sm:$0xff]  ;;  %v9426_v4 = vld [vmem:[#allocation27_spill] sm:$0xff]  ;;  %v9433_v56 = vld [vmem:[#allocation248_spill] sm:$0xff] }
 0x312   : > { %v7315_v15 = vadd.f32 %v1934_v62, %v1821_v35  ;;  %2566 = vmatpush.msra.mxu0 %v9414_v29  ;;  %2605 = vmatpush.msra.mxu2 %v9416_v24  ;;  %v9419_v35 = vunpack.i.l.bf16 %v9418_v40  ;;  %v9420_v62 = vld [vmem:[#allocation100_spill] sm:$0xff]  ;;  %v9427_v29 = vld [vmem:[#allocation34_spill] sm:$0xff]  ;;  %v9429_v24 = vld [vmem:[#allocation25_spill] sm:$0xff] }
 0x313   : > { %2586 = vmatpush.msra.mxu1 %v9415_v18  ;;  %2625 = vmatpush.msra.mxu3 %v9417_v31  ;;  %v1712_v59 = vadd.f32 %v1711_v12, %v1599_v2  ;;  %v9421_v16 = vunpack.i.l.bf16 %v9420_v62  ;;  %v9428_v18 = vld [vmem:[#allocation32_spill] sm:$0xff]  ;;  %v9430_v31 = vld [vmem:[#allocation23_spill] sm:$0xff]  ;;  %v9431_v62 = vld [vmem:[#allocation30_spill] sm:$0xff] }
 0x314   : > { %2001 = vmatmul.f32.gmra.mxu0 %v9419_v35  ;;  %2606 = vmatpush.msra.mxu2 %v9427_v29  ;;  %v9437_v29 = vld [vmem:[#allocation24_spill] sm:$0xff] }
 0x315   : > { %2114 = vmatmul.f32.gmra.mxu1 %v9421_v16  ;;  %2567 = vmatpush.msra.mxu0 %v9425_v8  ;;  %2529 = vst [vmem:[#allocation2 + $0x140] sm:$0xff] %v1712_v59  ;;  %v9432_v16 = vld [vmem:[#allocation28_spill] sm:$0xff]  ;;  %v9434_v8 = vld [vmem:[#allocation21_spill] sm:$0xff]  ;;  %v9436_v59 = vld [vmem:[#allocation26_spill] sm:$0xff] }
 0x316   : > { %2227 = vmatmul.f32.gmra.mxu2 %v9423_v23  ;;  %2340 = vmatmul.f32.gmra.mxu3 %v9424_v50 }
 0x317   : > { %2587 = vmatpush.msra.mxu1 %v9426_v4  ;;  %2626 = vmatpush.msra.mxu3 %v9428_v18  ;;  %v9435_v4 = vld [vmem:[#allocation19_spill] sm:$0xff] }
 0x318   : > { %v1824_v12 = vpop.f32.mrf.mxu2  ;;  %2568 = vmatpush.msra.mxu0 %v9429_v24  ;;  %v1601_v23 = vpop.f32.mrf.mxu0  ;;  %2607 = vmatpush.msra.mxu2 %v9431_v62  ;;  %v9438_v24 = vld [vmem:[#allocation111_spill] sm:$0xff]  ;;  %v9442_v62 = vld [vmem:[#allocation230_spill] sm:$0xff] }
 0x319   : > { %v1937_v2 = vpop.f32.mrf.mxu3  ;;  %2588 = vmatpush.msra.mxu1 %v9430_v31  ;;  %v1714_v35 = vpop.f32.mrf.mxu1  ;;  %2627 = vmatpush.msra.mxu3 %v9432_v16  ;;  %v1602_v50 = vadd.f32 %v1601_v23, %v9433_v56  ;;  %v9443_v63 = vunpack.i.l.bf16 %v9442_v62  ;;  %v9444_v23 = vunpack.i.h.bf16 %v9442_v62  ;;  %v9445_v16 = vld [vmem:[#allocation17_spill] sm:$0xff]  ;;  %v9446_v56 = vld [vmem:[#allocation15_spill] sm:$0xff] }
 0x31a   : > { %v7338_v40 = vadd.f32 %v1937_v2, %v1824_v12  ;;  %2569 = vmatpush.msra.mxu0 %v9434_v8  ;;  %2608 = vmatpush.msra.mxu2 %v9436_v59  ;;  %v9439_v12 = vunpack.i.l.bf16 %v9438_v24  ;;  %v9440_v2 = vld [vmem:[#allocation110_spill] sm:$0xff] }
 0x31b   : > { %2589 = vmatpush.msra.mxu1 %v9435_v4  ;;  %2628 = vmatpush.msra.mxu3 %v9437_v29  ;;  %v1715_v18 = vadd.f32 %v1714_v35, %v1602_v50  ;;  %v9441_v31 = vunpack.i.l.bf16 %v9440_v2  ;;  %v9447_v8 = vld [vmem:[#allocation22_spill] sm:$0xff]  ;;  %v9448_v4 = vld [vmem:[#allocation20_spill] sm:$0xff] }
 0x31c   : > { %2004 = vmatmul.f32.gmra.mxu0 %v9439_v12  ;;  %2609 = vmatpush.msra.mxu2 %v9447_v8  ;;  %v9450_v12 = vld [vmem:[#allocation18_spill] sm:$0xff]  ;;  %v9452_v2 = vld [vmem:[#allocation256_spill] sm:$0xff] }
 0x31d   : > { %2117 = vmatmul.f32.gmra.mxu1 %v9441_v31  ;;  %2570 = vmatpush.msra.mxu0 %v9445_v16  ;;  %2531 = vst [vmem:[#allocation2 + $0x150] sm:$0xff] %v1715_v18  ;;  %v9457_v18 = vld [vmem:[#allocation234_spill] sm:$0xff] }
 0x31e   : > { %2230 = vmatmul.f32.gmra.mxu2 %v9443_v63  ;;  %2343 = vmatmul.f32.gmra.mxu3 %v9444_v23  ;;  %v9451_v63 = vld [vmem:[#allocation16_spill] sm:$0xff]  ;;  %v9453_v23 = vld [vmem:[#allocation123_spill] sm:$0xff] }
 0x31f   : > { %2590 = vmatpush.msra.mxu1 %v9446_v56  ;;  %2629 = vmatpush.msra.mxu3 %v9448_v4  ;;  %v9454_v16 = vunpack.i.l.bf16 %v9453_v23  ;;  %v9455_v56 = vld [vmem:[#allocation122_spill] sm:$0xff]  ;;  %v9458_v4 = vunpack.i.l.bf16 %v9457_v18  ;;  %v9461_v23 = vld [vmem:[#allocation137_spill] sm:$0xff] }
 0x320   : > { %v1827_v35 = vpop.f32.mrf.mxu2  ;;  %v1604_v29 = vpop.f32.mrf.mxu0  ;;  %2610 = vmatpush.msra.mxu2 %v9450_v12  ;;  %v9456_v8 = vunpack.i.l.bf16 %v9455_v56  ;;  %v9463_v56 = vld [vmem:[#allocation136_spill] sm:$0xff] }
 0x321   : > { %v1940_v50 = vpop.f32.mrf.mxu3  ;;  %v1717_v24 = vpop.f32.mrf.mxu1  ;;  %2630 = vmatpush.msra.mxu3 %v9451_v63  ;;  %v1605_v31 = vadd.f32 %v1604_v29, %v9452_v2 }
 0x322   : > { %v7359_v59 = vadd.f32 %v1940_v50, %v1827_v35  ;;  %v9459_v35 = vunpack.i.h.bf16 %v9457_v18 }
 0x323   : > { %v1718_v62 = vadd.f32 %v1717_v24, %v1605_v31  ;;  %v9460_v24 = vld [vmem:[#allocation263_spill] sm:$0xff] }
 0x324   : > { %9449 = vst [vmem:[#allocation175_spill] sm:$0xff] %v7359_v59  ;;  %2007 = vmatmul.f32.gmra.mxu0 %v9454_v16  ;;  %v9462_v16 = vunpack.i.l.bf16 %v9461_v23 }
 0x325   : > { %2120 = vmatmul.f32.gmra.mxu1 %v9456_v8  ;;  %2533 = vst [vmem:[#allocation2 + $0x160] sm:$0xff] %v1718_v62  ;;  %v9464_v8 = vunpack.i.l.bf16 %v9463_v56 }
 0x326   : > { %2233 = vmatmul.f32.gmra.mxu2 %v9458_v4  ;;  %2346 = vmatmul.f32.gmra.mxu3 %v9459_v35  ;;  %v9465_v4 = vld [vmem:[#allocation237_spill] sm:$0xff] }
 0x327   : > { %v9466_v25 = vunpack.i.l.bf16 %v9465_v4  ;;  %v9467_v62 = vunpack.i.h.bf16 %v9465_v4 }
 0x328   : > { %v1830_v50 = vpop.f32.mrf.mxu2  ;;  %v1607_v63 = vpop.f32.mrf.mxu0 }
 0x329   : > { %v1943_v12 = vpop.f32.mrf.mxu3  ;;  %v1720_v29 = vpop.f32.mrf.mxu1  ;;  %v1608_v2 = vadd.f32 %v1607_v63, %v9460_v24 }
 0x32a   : > { %v7372_v59 = vadd.f32 %v1943_v12, %v1830_v50 }
 0x32b   : > { %v1721_v31 = vadd.f32 %v1720_v29, %v1608_v2  ;;  %v9468_v2 = vld [vmem:[#allocation151_spill] sm:$0xff] }
 0x32c   : > { %2010 = vmatmul.f32.gmra.mxu0 %v9462_v16  ;;  %v9469_v23 = vunpack.i.l.bf16 %v9468_v2  ;;  %v9470_v16 = vld [vmem:[#allocation150_spill] sm:$0xff] }
 0x32d   : > { %2123 = vmatmul.f32.gmra.mxu1 %v9464_v8  ;;  %2535 = vst [vmem:[#allocation2 + $0x170] sm:$0xff] %v1721_v31  ;;  %v9471_v56 = vunpack.i.l.bf16 %v9470_v16 }
 0x32e   : > { %2236 = vmatmul.f32.gmra.mxu2 %v9466_v25  ;;  %2349 = vmatmul.f32.gmra.mxu3 %v9467_v62  ;;  %v9472_v25 = vld [vmem:[#allocation245_spill] sm:$0xff] }
 0x32f   : > { %v9473_v8 = vunpack.i.l.bf16 %v9472_v25  ;;  %v9474_v31 = vunpack.i.h.bf16 %v9472_v25 }
 0x330   : > { %v1833_v18 = vpop.f32.mrf.mxu2  ;;  %v1610_v12 = vpop.f32.mrf.mxu0 }
 0x331   : > { %v1946_v35 = vpop.f32.mrf.mxu3  ;;  %v1723_v63 = vpop.f32.mrf.mxu1  ;;  %v1611_v29 = vadd.f32 %v1610_v12, %v7027_v6 }
 0x332   : > { %v7383_v50 = vadd.f32 %v1946_v35, %v1833_v18 }
 0x333   : > { %v1724_v24 = vadd.f32 %v1723_v63, %v1611_v29  ;;  %v9475_v29 = vld [vmem:[#allocation163_spill] sm:$0xff] }
 0x334   : > { %2013 = vmatmul.f32.gmra.mxu0 %v9469_v23  ;;  %v9476_v2 = vunpack.i.l.bf16 %v9475_v29  ;;  %v9477_v23 = vld [vmem:[#allocation162_spill] sm:$0xff]  ;;  %v9483_v29 = vunpack.i.l.bf16 %v9292_v42  ;;  %v9487_v42 = vunpack.i.l.bf16 %v9295_v38  ;;  %v9491_v38 = vunpack.i.l.bf16 %v6442_v57 }
 0x335   : > { %2126 = vmatmul.f32.gmra.mxu1 %v9471_v56  ;;  %2537 = vst [vmem:[#allocation2 + $0x180] sm:$0xff] %v1724_v24  ;;  %v9478_v16 = vunpack.i.l.bf16 %v9477_v23  ;;  %v9479_v56 = vld [vmem:[#allocation253_spill] sm:$0xff]  ;;  %v9495_v57 = vunpack.i.l.bf16 %v9303_v41  ;;  %v9499_v41 = vunpack.i.l.bf16 %v9314_v49  ;;  %v9503_v49 = vunpack.i.l.bf16 %v9321_v26 }
 0x336   : > { %2239 = vmatmul.f32.gmra.mxu2 %v9473_v8  ;;  %2352 = vmatmul.f32.gmra.mxu3 %v9474_v31  ;;  %v9480_v8 = vunpack.i.l.bf16 %v9479_v56  ;;  %v9481_v24 = vunpack.i.h.bf16 %v9479_v56 }
 0x338   : > { %v1836_v4 = vpop.f32.mrf.mxu2  ;;  %v1613_v35 = vpop.f32.mrf.mxu0 }
 0x339   : > { %v1949_v62 = vpop.f32.mrf.mxu3  ;;  %v1726_v6 = vpop.f32.mrf.mxu1  ;;  %v1614_v12 = vadd.f32 %v1613_v35, %v7051_v52 }
 0x33a   : > { %v7394_v18 = vadd.f32 %v1949_v62, %v1836_v4 }
 0x33b   : > { %v1727_v63 = vadd.f32 %v1726_v6, %v1614_v12  ;;  %v9482_v12 = vunpack.i.l.bf16 %v9290_v55 }
 0x33c   : > { %2016 = vmatmul.f32.gmra.mxu0 %v9476_v2  ;;  %v9484_v2 = vunpack.i.l.bf16 %v6973_v47 }
 0x33d   : > { %2129 = vmatmul.f32.gmra.mxu1 %v9478_v16  ;;  %2539 = vst [vmem:[#allocation2 + $0x190] sm:$0xff] %v1727_v63  ;;  %v9485_v63 = vunpack.i.h.bf16 %v6973_v47  ;;  %v9489_v47 = vunpack.i.h.bf16 %v7020_v46 }
 0x33e   : > { %2242 = vmatmul.f32.gmra.mxu2 %v9480_v8  ;;  %2355 = vmatmul.f32.gmra.mxu3 %v9481_v24 }
 0x340   : > { %v1839_v25 = vpop.f32.mrf.mxu2  ;;  %v1616_v62 = vpop.f32.mrf.mxu0 }
 0x341   : > { %v1952_v31 = vpop.f32.mrf.mxu3  ;;  %v1729_v52 = vpop.f32.mrf.mxu1  ;;  %v1617_v35 = vadd.f32 %v1616_v62, %v7077_v1 }
 0x342   : > { %v7405_v4 = vadd.f32 %v1952_v31, %v1839_v25  ;;  %v9486_v25 = vunpack.i.l.bf16 %v6404_v5  ;;  %v9488_v31 = vunpack.i.l.bf16 %v7020_v46  ;;  %v9493_v46 = vunpack.i.h.bf16 %v7047_v60 }
 0x343   : > { %v1730_v6 = vadd.f32 %v1729_v52, %v1617_v35 }
 0x344   : > { %2019 = vmatmul.f32.gmra.mxu0 %v9482_v12 }
 0x345   : > { %2132 = vmatmul.f32.gmra.mxu1 %v9483_v29  ;;  %2541 = vst [vmem:[#allocation2 + $0x1a0] sm:$0xff] %v1730_v6  ;;  %v9490_v29 = vunpack.i.l.bf16 %v6444_v53 }
 0x346   : > { %2245 = vmatmul.f32.gmra.mxu2 %v9484_v2  ;;  %2358 = vmatmul.f32.gmra.mxu3 %v9485_v63  ;;  %v9492_v2 = vunpack.i.l.bf16 %v7047_v60  ;;  %v9497_v60 = vunpack.i.h.bf16 %v7073_v10 }
 0x348   : > { %v1842_v23 = vpop.f32.mrf.mxu2  ;;  %v1619_v8 = vpop.f32.mrf.mxu0 }
 0x349   : > { %v1955_v16 = vpop.f32.mrf.mxu3  ;;  %v1732_v1 = vpop.f32.mrf.mxu1  ;;  %v1620_v24 = vadd.f32 %v1619_v8, %v7103_v34 }
 0x34a   : > { %v7416_v56 = vadd.f32 %v1955_v16, %v1842_v23 }
 0x34b   : > { %v1733_v55 = vadd.f32 %v1732_v1, %v1620_v24  ;;  %v9494_v24 = vunpack.i.l.bf16 %v9301_v14 }
 0x34c   : > { %2022 = vmatmul.f32.gmra.mxu0 %v9486_v25 }
 0x34d   : > { %2135 = vmatmul.f32.gmra.mxu1 %v9487_v42  ;;  %2543 = vst [vmem:[#allocation2 + $0x1b0] sm:$0xff] %v1733_v55  ;;  %v9496_v55 = vunpack.i.l.bf16 %v7073_v10  ;;  %v9501_v10 = vunpack.i.h.bf16 %v7099_v19 }
 0x34e   : > { %2248 = vmatmul.f32.gmra.mxu2 %v9488_v31  ;;  %2361 = vmatmul.f32.gmra.mxu3 %v9489_v47 }
 0x350   : > { %v1845_v62 = vpop.f32.mrf.mxu2  ;;  %v1622_v6 = vpop.f32.mrf.mxu0 }
 0x351   : > { %v1958_v52 = vpop.f32.mrf.mxu3  ;;  %v1735_v34 = vpop.f32.mrf.mxu1  ;;  %v1623_v12 = vadd.f32 %v1622_v6, %v7129_v44  ;;  %v9500_v6 = vunpack.i.l.bf16 %v7099_v19  ;;  %v9505_v19 = vunpack.i.h.bf16 %v7125_v3 }
 0x352   : > { %v7427_v35 = vadd.f32 %v1958_v52, %v1845_v62  ;;  %v9498_v52 = vunpack.i.l.bf16 %v9312_v32 }
 0x353   : > { %v1736_v5 = vadd.f32 %v1735_v34, %v1623_v12 }
 0x354   : > { %2025 = vmatmul.f32.gmra.mxu0 %v9490_v29 }
 0x355   : > { %2138 = vmatmul.f32.gmra.mxu1 %v9491_v38  ;;  %2545 = vst [vmem:[#allocation2 + $0x1c0] sm:$0xff] %v1736_v5 }
 0x356   : > { %2251 = vmatmul.f32.gmra.mxu2 %v9492_v2  ;;  %2364 = vmatmul.f32.gmra.mxu3 %v9493_v46  ;;  %v9502_v2 = vunpack.i.l.bf16 %v9319_v28  ;;  %v9504_v46 = vunpack.i.l.bf16 %v7125_v3 }
 0x358   : > { %v1848_v63 = vpop.f32.mrf.mxu2  ;;  %v1625_v8 = vpop.f32.mrf.mxu0 }
 0x359   : > { %v1961_v23 = vpop.f32.mrf.mxu3  ;;  %v1738_v44 = vpop.f32.mrf.mxu1  ;;  %v1626_v1 = vadd.f32 %v1625_v8, %v7153_v7 }
 0x35a   : > { %v7438_v16 = vadd.f32 %v1961_v23, %v1848_v63 }
 0x35b   : > { %v1739_v53 = vadd.f32 %v1738_v44, %v1626_v1 }
 0x35c   : > { %2028 = vmatmul.f32.gmra.mxu0 %v9494_v24 }
 0x35d   : > { %2141 = vmatmul.f32.gmra.mxu1 %v9495_v57  ;;  %2547 = vst [vmem:[#allocation2 + $0x1d0] sm:$0xff] %v1739_v53 }
 0x35e   : > { %2254 = vmatmul.f32.gmra.mxu2 %v9496_v55  ;;  %2367 = vmatmul.f32.gmra.mxu3 %v9497_v60 }
 0x360   : > { %v1851_v25 = vpop.f32.mrf.mxu2  ;;  %v1628_v47 = vpop.f32.mrf.mxu0 }
 0x361   : > { %v1964_v42 = vpop.f32.mrf.mxu3  ;;  %v1741_v7 = vpop.f32.mrf.mxu1  ;;  %v1629_v62 = vadd.f32 %v1628_v47, %v7173_v13 }
 0x362   : > { %v7449_v31 = vadd.f32 %v1964_v42, %v1851_v25 }
 0x363   : > { %v1742_v14 = vadd.f32 %v1741_v7, %v1629_v62 }
 0x364   : > { %2031 = vmatmul.f32.gmra.mxu0 %v9498_v52 }
 0x365   : > { %2144 = vmatmul.f32.gmra.mxu1 %v9499_v41  ;;  %2549 = vst [vmem:[#allocation2 + $0x1e0] sm:$0xff] %v1742_v14 }
 0x366   : > { %2257 = vmatmul.f32.gmra.mxu2 %v9500_v6  ;;  %2370 = vmatmul.f32.gmra.mxu3 %v9501_v10 }
 0x368   : > { %v1854_v34 = vpop.f32.mrf.mxu2  ;;  %v1631_v29 = vpop.f32.mrf.mxu0 }
 0x369   : > { %v1967_v12 = vpop.f32.mrf.mxu3  ;;  %v1744_v13 = vpop.f32.mrf.mxu1  ;;  %v1632_v38 = vadd.f32 %v1631_v29, %v7184_v37 }
 0x36a   : > { %v7460_v5 = vadd.f32 %v1967_v12, %v1854_v34 }
 0x36b   : > { %v1745_v32 = vadd.f32 %v1744_v13, %v1632_v38 }
 0x36c   : > { %2034 = vmatmul.f32.gmra.mxu0 %v9502_v2 }
 0x36d   : > { %2147 = vmatmul.f32.gmra.mxu1 %v9503_v49  ;;  %2551 = vst [vmem:[#allocation2 + $0x1f0] sm:$0xff] %v1745_v32 }
 0x36e   : > { %2260 = vmatmul.f32.gmra.mxu2 %v9504_v46  ;;  %2373 = vmatmul.f32.gmra.mxu3 %v9505_v19 }
 0x370   : > { %v1857_v63 = vpop.f32.mrf.mxu2  ;;  %v1990_v44 = vpop.f32.mrf.mxu0 }
 0x371   : > { %v1970_v23 = vpop.f32.mrf.mxu3  ;;  %v2103_v37 = vpop.f32.mrf.mxu1  ;;  %v1991_v1 = vadd.f32 %v1990_v44, %v7186_v20 }
 0x372   : > { %v7471_v8 = vadd.f32 %v1970_v23, %v1857_v63 }
 0x373   : > { %v2104_v26 = vadd.f32 %v2103_v37, %v1991_v1 }
 0x374   : > { %4308 = vmatmul.lmr.bf16.gmra.16.mxu0 }
 0x375   : > { %4425 = vmatmul.lmr.bf16.gmra.16.mxu1 }
 0x376   : > { %4533 = vmatmul.lmr.bf16.gmra.16.mxu2  ;;  %4641 = vmatmul.lmr.bf16.gmra.16.mxu3 }
 0x378   : > { %v2216_v28 = vpop.f32.mrf.mxu2 }
 0x379   : > { %v2329_v53 = vpop.f32.mrf.mxu3  ;;  %v2217_v24 = vadd.f32 %v2216_v28, %v2104_v26  ;;  %v1993_v57 = vpop.f32.mrf.mxu0 }
 0x37a   : > { %v2106_v3 = vpop.f32.mrf.mxu1  ;;  %v1994_v60 = vadd.f32 %v1993_v57, %v7189_v27 }
 0x37b   : > { %v2330_v55 = vadd.f32 %v2329_v53, %v2217_v24 }
 0x37c   : > { %4309 = vmatmul.lmr.bf16.gmra.16.mxu0  ;;  %v2107_v25 = vadd.f32 %v2106_v3, %v1994_v60 }
 0x37d   : > { %4426 = vmatmul.lmr.bf16.gmra.16.mxu1  ;;  %2490 = vst [vmem:[#allocation2 + $0x8] sm:$0xff] %v2330_v55 }
 0x37e   : > { %4534 = vmatmul.lmr.bf16.gmra.16.mxu2  ;;  %4642 = vmatmul.lmr.bf16.gmra.16.mxu3 }
 0x380   : > { %v2219_v20 = vpop.f32.mrf.mxu2 }
 0x381   : > { %v2332_v42 = vpop.f32.mrf.mxu3  ;;  %v2220_v47 = vadd.f32 %v2219_v20, %v2107_v25  ;;  %v1996_v7 = vpop.f32.mrf.mxu0 }
 0x382   : > { %v2109_v62 = vpop.f32.mrf.mxu1  ;;  %v1997_v52 = vadd.f32 %v1996_v7, %v7192_v39 }
 0x383   : > { %v2333_v14 = vadd.f32 %v2332_v42, %v2220_v47 }
 0x384   : > { %4310 = vmatmul.lmr.bf16.gmra.16.mxu0  ;;  %v2110_v27 = vadd.f32 %v2109_v62, %v1997_v52 }
 0x385   : > { %4427 = vmatmul.lmr.bf16.gmra.16.mxu1  ;;  %2492 = vst [vmem:[#allocation2 + $0x18] sm:$0xff] %v2333_v14 }
 0x386   : > { %4535 = vmatmul.lmr.bf16.gmra.16.mxu2  ;;  %4643 = vmatmul.lmr.bf16.gmra.16.mxu3 }
 0x389   : > { %v2222_v41 = vpop.f32.mrf.mxu2  ;;  %v2335_v6 = vpop.f32.mrf.mxu3 }
 0x38a   : > { %v2223_v10 = vadd.f32 %v2222_v41, %v2110_v27  ;;  %v1999_v34 = vpop.f32.mrf.mxu0  ;;  %v2112_v12 = vpop.f32.mrf.mxu1 }
 0x38b   : > { %v2000_v13 = vadd.f32 %v1999_v34, %v7195_v58 }
 0x38c   : > { %v2336_v29 = vadd.f32 %v2335_v6, %v2223_v10  ;;  %4311 = vmatmul.lmr.bf16.gmra.16.mxu0 }
 0x38d   : > { %4428 = vmatmul.lmr.bf16.gmra.16.mxu1  ;;  %v2113_v39 = vadd.f32 %v2112_v12, %v2000_v13 }
 0x38e   : > { %4536 = vmatmul.lmr.bf16.gmra.16.mxu2  ;;  %4644 = vmatmul.lmr.bf16.gmra.16.mxu3  ;;  %2494 = vst [vmem:[#allocation2 + $0x28] sm:$0xff] %v2336_v29 }
 0x391   : > { %v2225_v38 = vpop.f32.mrf.mxu2  ;;  %v2338_v32 = vpop.f32.mrf.mxu3 }
 0x392   : > { %v2226_v2 = vadd.f32 %v2225_v38, %v2113_v39  ;;  %v2002_v49 = vpop.f32.mrf.mxu0  ;;  %v2115_v46 = vpop.f32.mrf.mxu1 }
 0x393   : > { %v2003_v63 = vadd.f32 %v2002_v49, %v7198_v33 }
 0x394   : > { %v2339_v19 = vadd.f32 %v2338_v32, %v2226_v2  ;;  %4312 = vmatmul.lmr.bf16.gmra.16.mxu0 }
 0x395   : > { %4429 = vmatmul.lmr.bf16.gmra.16.mxu1  ;;  %v2116_v58 = vadd.f32 %v2115_v46, %v2003_v63 }
 0x396   : > { %4537 = vmatmul.lmr.bf16.gmra.16.mxu2  ;;  %4645 = vmatmul.lmr.bf16.gmra.16.mxu3  ;;  %2496 = vst [vmem:[#allocation2 + $0x38] sm:$0xff] %v2339_v19 }
 0x399   : > { %v2228_v23 = vpop.f32.mrf.mxu2  ;;  %v2341_v44 = vpop.f32.mrf.mxu3 }
 0x39a   : > { %v2229_v37 = vadd.f32 %v2228_v23, %v2116_v58  ;;  %v2005_v1 = vpop.f32.mrf.mxu0  ;;  %v2118_v26 = vpop.f32.mrf.mxu1 }
 0x39b   : > { %v2006_v53 = vadd.f32 %v2005_v1, %v7201_v54 }
 0x39c   : > { %v2342_v28 = vadd.f32 %v2341_v44, %v2229_v37  ;;  %4313 = vmatmul.lmr.bf16.gmra.16.mxu0 }
 0x39d   : > { %4430 = vmatmul.lmr.bf16.gmra.16.mxu1  ;;  %v2119_v33 = vadd.f32 %v2118_v26, %v2006_v53 }
 0x39e   : > { %4538 = vmatmul.lmr.bf16.gmra.16.mxu2  ;;  %4646 = vmatmul.lmr.bf16.gmra.16.mxu3  ;;  %2498 = vst [vmem:[#allocation2 + $0x48] sm:$0xff] %v2342_v28 }
 0x3a1   : > { %v2231_v24 = vpop.f32.mrf.mxu2  ;;  %v2344_v57 = vpop.f32.mrf.mxu3 }
 0x3a2   : > { %v2232_v3 = vadd.f32 %v2231_v24, %v2119_v33  ;;  %v2008_v55 = vpop.f32.mrf.mxu0  ;;  %v2121_v60 = vpop.f32.mrf.mxu1 }
 0x3a3   : > { %v2009_v20 = vadd.f32 %v2008_v55, %v7204_v9 }
 0x3a4   : > { %v2345_v25 = vadd.f32 %v2344_v57, %v2232_v3  ;;  %4314 = vmatmul.lmr.bf16.gmra.16.mxu0 }
 0x3a5   : > { %4431 = vmatmul.lmr.bf16.gmra.16.mxu1  ;;  %v2122_v54 = vadd.f32 %v2121_v60, %v2009_v20 }
 0x3a6   : > { %4539 = vmatmul.lmr.bf16.gmra.16.mxu2  ;;  %4647 = vmatmul.lmr.bf16.gmra.16.mxu3  ;;  %2500 = vst [vmem:[#allocation2 + $0x58] sm:$0xff] %v2345_v25 }
 0x3a9   : > { %v2234_v42 = vpop.f32.mrf.mxu2  ;;  %v2347_v47 = vpop.f32.mrf.mxu3 }
 0x3aa   : > { %v2235_v7 = vadd.f32 %v2234_v42, %v2122_v54  ;;  %v2011_v62 = vpop.f32.mrf.mxu0  ;;  %v2124_v14 = vpop.f32.mrf.mxu1 }
 0x3ab   : > { %v2012_v27 = vadd.f32 %v2011_v62, %v7207_v36 }
 0x3ac   : > { %v2348_v52 = vadd.f32 %v2347_v47, %v2235_v7  ;;  %4315 = vmatmul.lmr.bf16.gmra.16.mxu0 }
 0x3ad   : > { %4432 = vmatmul.lmr.bf16.gmra.16.mxu1  ;;  %v2125_v9 = vadd.f32 %v2124_v14, %v2012_v27 }
 0x3ae   : > { %4540 = vmatmul.lmr.bf16.gmra.16.mxu2  ;;  %4648 = vmatmul.lmr.bf16.gmra.16.mxu3  ;;  %2502 = vst [vmem:[#allocation2 + $0x68] sm:$0xff] %v2348_v52 }
 0x3b1   : > { %v2237_v41 = vpop.f32.mrf.mxu2  ;;  %v2350_v6 = vpop.f32.mrf.mxu3 }
 0x3b2   : > { %v2238_v10 = vadd.f32 %v2237_v41, %v2125_v9  ;;  %v2014_v34 = vpop.f32.mrf.mxu0  ;;  %v2127_v12 = vpop.f32.mrf.mxu1 }
 0x3b3   : > { %v2015_v13 = vadd.f32 %v2014_v34, %v7210_v30 }
 0x3b4   : > { %v2351_v29 = vadd.f32 %v2350_v6, %v2238_v10  ;;  %4316 = vmatmul.lmr.bf16.gmra.16.mxu0 }
 0x3b5   : > { %4433 = vmatmul.lmr.bf16.gmra.16.mxu1  ;;  %v2128_v36 = vadd.f32 %v2127_v12, %v2015_v13 }
 0x3b6   : > { %4541 = vmatmul.lmr.bf16.gmra.16.mxu2  ;;  %4649 = vmatmul.lmr.bf16.gmra.16.mxu3  ;;  %2504 = vst [vmem:[#allocation2 + $0x78] sm:$0xff] %v2351_v29 }
 0x3b9   : > { %v2240_v39 = vpop.f32.mrf.mxu2  ;;  %v2353_v38 = vpop.f32.mrf.mxu3 }
 0x3ba   : > { %v2241_v32 = vadd.f32 %v2240_v39, %v2128_v36  ;;  %v2017_v2 = vpop.f32.mrf.mxu0  ;;  %v2130_v49 = vpop.f32.mrf.mxu1 }
 0x3bb   : > { %v2018_v19 = vadd.f32 %v2017_v2, %v7213_v48 }
 0x3bc   : > { %v2354_v46 = vadd.f32 %v2353_v38, %v2241_v32  ;;  %4317 = vmatmul.lmr.bf16.gmra.16.mxu0 }
 0x3bd   : > { %4434 = vmatmul.lmr.bf16.gmra.16.mxu1  ;;  %v2131_v30 = vadd.f32 %v2130_v49, %v2018_v19 }
 0x3be   : > { %4542 = vmatmul.lmr.bf16.gmra.16.mxu2  ;;  %4650 = vmatmul.lmr.bf16.gmra.16.mxu3  ;;  %2506 = vst [vmem:[#allocation2 + $0x88] sm:$0xff] %v2354_v46 }
 0x3c1   : > { %v2243_v63 = vpop.f32.mrf.mxu2  ;;  %v2356_v58 = vpop.f32.mrf.mxu3 }
 0x3c2   : > { %v2244_v23 = vadd.f32 %v2243_v63, %v2131_v30  ;;  %v2020_v44 = vpop.f32.mrf.mxu0  ;;  %v2133_v37 = vpop.f32.mrf.mxu1 }
 0x3c3   : > { %v2021_v26 = vadd.f32 %v2020_v44, %v7216_v21 }
 0x3c4   : > { %v2357_v1 = vadd.f32 %v2356_v58, %v2244_v23  ;;  %4318 = vmatmul.lmr.bf16.gmra.16.mxu0 }
 0x3c5   : > { %4435 = vmatmul.lmr.bf16.gmra.16.mxu1  ;;  %v2134_v48 = vadd.f32 %v2133_v37, %v2021_v26 }
 0x3c6   : > { %4543 = vmatmul.lmr.bf16.gmra.16.mxu2  ;;  %4651 = vmatmul.lmr.bf16.gmra.16.mxu3  ;;  %2508 = vst [vmem:[#allocation2 + $0x98] sm:$0xff] %v2357_v1 }
 0x3c9   : > { %v2246_v28 = vpop.f32.mrf.mxu2  ;;  %v2359_v53 = vpop.f32.mrf.mxu3 }
 0x3ca   : > { %v2247_v33 = vadd.f32 %v2246_v28, %v2134_v48  ;;  %v2023_v24 = vpop.f32.mrf.mxu0  ;;  %v2136_v57 = vpop.f32.mrf.mxu1  ;;  %v5306_v48 = vmov 1.0   ;;  %v9507_v28 = vld [vmem:[#allocation14_spill] sm:$0xff] }
 0x3cb   : > { %v2024_v55 = vadd.f32 %v2023_v24, %v7219_v43  ;;  %v9509_v24 = vld [vmem:[#allocation83_spill] sm:$0xff] }
 0x3cc   : > { %v2360_v3 = vadd.f32 %v2359_v53, %v2247_v33  ;;  %4319 = vmatmul.lmr.bf16.gmra.16.mxu0  ;;  %v9508_v33 = vld [vmem:[#allocation84_spill] sm:$0xff] }
 0x3cd   : > { %4436 = vmatmul.lmr.bf16.gmra.16.mxu1  ;;  %v2137_v21 = vadd.f32 %v2136_v57, %v2024_v55  ;;  %v9511_v57 = vld [vmem:[#allocation79_spill] sm:$0xff] }
 0x3ce   : > { %4544 = vmatmul.lmr.bf16.gmra.16.mxu2  ;;  %4652 = vmatmul.lmr.bf16.gmra.16.mxu3  ;;  %2510 = vst [vmem:[#allocation2 + $0xa8] sm:$0xff] %v2360_v3 }
 0x3d1   : > { %v2249_v60 = vpop.f32.mrf.mxu2  ;;  %v2362_v25 = vpop.f32.mrf.mxu3 }
 0x3d2   : > { %v2250_v20 = vadd.f32 %v2249_v60, %v2137_v21  ;;  %v2026_v54 = vpop.f32.mrf.mxu0  ;;  %v2139_v42 = vpop.f32.mrf.mxu1  ;;  %v9512_v60 = vld [vmem:[#allocation88_spill] sm:$0xff] }
 0x3d3   : > { %v2027_v7 = vadd.f32 %v2026_v54, %v7222_v11 }
 0x3d4   : > { %v2363_v47 = vadd.f32 %v2362_v25, %v2250_v20  ;;  %4320 = vmatmul.lmr.bf16.gmra.16.mxu0  ;;  %v9513_v25 = vld [vmem:[#allocation85_spill] sm:$0xff] }
 0x3d5   : > { %4437 = vmatmul.lmr.bf16.gmra.16.mxu1  ;;  %v2140_v43 = vadd.f32 %v2139_v42, %v2027_v7  ;;  %v9514_v42 = vld [vmem:[#allocation98_spill] sm:$0xff] }
 0x3d6   : > { %4545 = vmatmul.lmr.bf16.gmra.16.mxu2  ;;  %4653 = vmatmul.lmr.bf16.gmra.16.mxu3  ;;  %2512 = vst [vmem:[#allocation2 + $0xb8] sm:$0xff] %v2363_v47  ;;  %v9515_v47 = vld [vmem:[#allocation91_spill] sm:$0xff] }
 0x3d9   : > { %v2252_v62 = vpop.f32.mrf.mxu2  ;;  %v2365_v14 = vpop.f32.mrf.mxu3 }
 0x3da   : > { %v2253_v52 = vadd.f32 %v2252_v62, %v2140_v43  ;;  %v2029_v27 = vpop.f32.mrf.mxu0  ;;  %v2142_v9 = vpop.f32.mrf.mxu1  ;;  %v9516_v62 = vld [vmem:[#allocation94_spill] sm:$0xff] }
 0x3db   : > { %v2030_v6 = vadd.f32 %v2029_v27, %v7225_v0  ;;  %v9519_v27 = vld [vmem:[#allocation99_spill] sm:$0xff] }
 0x3dc   : > { %v2366_v41 = vadd.f32 %v2365_v14, %v2253_v52  ;;  %4321 = vmatmul.lmr.bf16.gmra.16.mxu0  ;;  %v9517_v14 = vld [vmem:[#allocation89_spill] sm:$0xff]  ;;  %v9518_v52 = vld [vmem:[#allocation112_spill] sm:$0xff] }
 0x3dd   : > { %4438 = vmatmul.lmr.bf16.gmra.16.mxu1  ;;  %v2143_v11 = vadd.f32 %v2142_v9, %v2030_v6  ;;  %v9520_v9 = vld [vmem:[#allocation106_spill] sm:$0xff]  ;;  %v9522_v6 = vld [vmem:[#allocation116_spill] sm:$0xff] }
 0x3de   : > { %4546 = vmatmul.lmr.bf16.gmra.16.mxu2  ;;  %4654 = vmatmul.lmr.bf16.gmra.16.mxu3  ;;  %2514 = vst [vmem:[#allocation2 + $0xc8] sm:$0xff] %v2366_v41  ;;  %v9521_v41 = vld [vmem:[#allocation95_spill] sm:$0xff] }
 0x3e1   : > { %v2255_v10 = vpop.f32.mrf.mxu2  ;;  %v2368_v34 = vpop.f32.mrf.mxu3 }
 0x3e2   : > { %v2256_v12 = vadd.f32 %v2255_v10, %v2143_v11  ;;  %v2032_v29 = vpop.f32.mrf.mxu0  ;;  %v2145_v13 = vpop.f32.mrf.mxu1  ;;  %v9523_v11 = vld [vmem:[#allocation113_spill] sm:$0xff] }
 0x3e3   : > { %v2033_v39 = vadd.f32 %v2032_v29, %v7228_v51  ;;  %v9527_v29 = vld [vmem:[#allocation117_spill] sm:$0xff] }
 0x3e4   : > { %v2369_v36 = vadd.f32 %v2368_v34, %v2256_v12  ;;  %4322 = vmatmul.lmr.bf16.gmra.16.mxu0  ;;  %v9525_v34 = vld [vmem:[#allocation108_spill] sm:$0xff] }
 0x3e5   : > { %4439 = vmatmul.lmr.bf16.gmra.16.mxu1  ;;  %v2146_v0 = vadd.f32 %v2145_v13, %v2033_v39  ;;  %v9526_v12 = vld [vmem:[#allocation120_spill] sm:$0xff]  ;;  %v9528_v39 = vlaneseq }
 0x3e6   : > { %4547 = vmatmul.lmr.bf16.gmra.16.mxu2  ;;  %4655 = vmatmul.lmr.bf16.gmra.16.mxu3  ;;  %2516 = vst [vmem:[#allocation2 + $0xd8] sm:$0xff] %v2369_v36 }
 0x3e9   : > { %v2258_v38 = vpop.f32.mrf.mxu2  ;;  %v2371_v32 = vpop.f32.mrf.mxu3 }
 0x3ea   : > { %v2259_v2 = vadd.f32 %v2258_v38, %v2146_v0  ;;  %v2035_v49 = vpop.f32.mrf.mxu0  ;;  %v2148_v46 = vpop.f32.mrf.mxu1  ;;  %v7518_v0 = vshrl.u32 %v9528_v39, 7 }
 0x3eb   : > { %v2036_v30 = vadd.f32 %v2035_v49, %v7231_v17  ;;  %v9506_v17 = vld [vmem:[#allocation82_spill] sm:$0xff] }
 0x3ec   : > { %v2372_v19 = vadd.f32 %v2371_v32, %v2259_v2  ;;  %4323 = vmatmul.lmr.bf16.gmra.16.mxu0  ;;  %v9529_v32 = vld [vmem:[#allocation178_spill] sm:$0xff]  ;;  %v9530_v2 = vld [vmem:[#allocation147_spill] sm:$0xff] }
 0x3ed   : > { %4440 = vmatmul.lmr.bf16.gmra.16.mxu1  ;;  %v2149_v51 = vadd.f32 %v2148_v46, %v2036_v30  ;;  %v9532_v30 = vld [vmem:[#allocation121_spill] sm:$0xff] }
 0x3ee   : > { %4548 = vmatmul.lmr.bf16.gmra.16.mxu2  ;;  %4656 = vmatmul.lmr.bf16.gmra.16.mxu3  ;;  %2518 = vst [vmem:[#allocation2 + $0xe8] sm:$0xff] %v2372_v19  ;;  %v9531_v19 = vld [vmem:[#allocation126_spill] sm:$0xff] }
 0x3f1   : > { %v2261_v63 = vpop.f32.mrf.mxu2  ;;  %v2374_v58 = vpop.f32.mrf.mxu3 }
 0x3f2   : > { %v2262_v23 = vadd.f32 %v2261_v63, %v2149_v51  ;;  %v2038_v44 = vpop.f32.mrf.mxu0  ;;  %v2151_v37 = vpop.f32.mrf.mxu1  ;;  %v7525_v51 = vand.u32 127, %v9528_v39  ;;  %v2827_v63 = vadd.s32 8, %v7518_v0 }
 0x3f3   : > { %v2039_v26 = vadd.f32 %v2038_v44, %v7248_v61  ;;  %v9510_v61 = vld [vmem:[#allocation90_spill] sm:$0xff]  ;;  %v9533_v44 = vld [vmem:[#allocation180_spill] sm:$0xff] }
 0x3f4   : > { %v2375_v1 = vadd.f32 %v2374_v58, %v2262_v23  ;;  %2571 = vmatmul.f32.vlgmr.msra.gmra.mxu0 %v5306_v48  ;;  %vm7538_vm1 = vcmp.eq.s32.totalorder %v2827_v63, %v7525_v51  ;;  %vm7544_vm2 = vcmp.eq.s32.totalorder %v7518_v0, %v7525_v51 }
 0x3f5   : > { %2591 = vmatmul.f32.vlgmr.msra.gmra.mxu1 %v5306_v48  ;;  %2635 = vmatpush.msra.mxu0 %v9506_v17  ;;  %v2152_v53 = vadd.f32 %v2151_v37, %v2039_v26  ;;  %v9534_v37 = vld [vmem:[#allocation179_spill] sm:$0xff] }
 0x3f6   : > { %2611 = vmatmul.f32.vlgmr.msra.gmra.mxu2 %v5306_v48  ;;  %2631 = vmatmul.f32.vlgmr.msra.gmra.mxu3 %v5306_v48  ;;  %2520 = vst [vmem:[#allocation2 + $0xf8] sm:$0xff] %v2375_v1  ;;  %v9535_v1 = vld [vmem:[#allocation130_spill] sm:$0xff]  ;;  %v9536_v26 = vld [vmem:[#allocation127_spill] sm:$0xff] }
 0x3f7   : > { %2675 = vmatpush.msra.mxu2 %v9507_v28  ;;  %2636 = vmatpush.msra.mxu0 %v9508_v33  ;;  %v9537_v17 = vld [vmem:[#allocation187_spill] sm:$0xff]  ;;  %v9538_v28 = vld [vmem:[#allocation184_spill] sm:$0xff] }
 0x3f8   : > { %2655 = vmatpush.msra.mxu1 %v9509_v24  ;;  %2695 = vmatpush.msra.mxu3 %v9511_v57  ;;  %v9540_v33 = vld [vmem:[#allocation131_spill] sm:$0xff]  ;;  %v9545_v57 = vld [vmem:[#allocation197_spill] sm:$0xff] }
 0x3f9   : > { %2676 = vmatpush.msra.mxu2 %v9510_v61  ;;  %v2264_v3 = vpop.f32.mrf.mxu2  ;;  %v2377_v55 = vpop.f32.mrf.mxu3  ;;  %2637 = vmatpush.msra.mxu0 %v9512_v60  ;;  %v9547_v60 = vld [vmem:[#allocation141_spill] sm:$0xff] }
 0x3fa   : > { %v2265_v21 = vadd.f32 %v2264_v3, %v2152_v53  ;;  %2656 = vmatpush.msra.mxu1 %v9513_v25  ;;  %v2041_v20 = vpop.f32.mrf.mxu0  ;;  %v2154_v54 = vpop.f32.mrf.mxu1  ;;  %2696 = vmatpush.msra.mxu3 %v9515_v47  ;;  %v9539_v53 = vld [vmem:[#allocation134_spill] sm:$0xff]  ;;  %v9546_v3 = vld [vmem:[#allocation188_spill] sm:$0xff]  ;;  %v9548_v25 = vld [vmem:[#allocation135_spill] sm:$0xff] }
 0x3fb   : > { %2677 = vmatpush.msra.mxu2 %v9514_v42  ;;  %v2042_v7 = vadd.f32 %v2041_v20, %v7271_v22  ;;  %2638 = vmatpush.msra.mxu0 %v9516_v62  ;;  %v9524_v22 = vld [vmem:[#allocation143_spill] sm:$0xff]  ;;  %v9550_v62 = vld [vmem:[#allocation198_spill] sm:$0xff] }
 0x3fc   : > { %v2378_v43 = vadd.f32 %v2377_v55, %v2265_v21  ;;  %2657 = vmatpush.msra.mxu1 %v9517_v14  ;;  %2697 = vmatpush.msra.mxu3 %v9519_v27  ;;  %v9551_v27 = vld [vmem:[#allocation145_spill] sm:$0xff] }
 0x3fd   : > { %2678 = vmatpush.msra.mxu2 %v9518_v52  ;;  %2639 = vmatpush.msra.mxu0 %v9520_v9  ;;  %v2155_v10 = vadd.f32 %v2154_v54, %v2042_v7  ;;  %v9549_v7 = vld [vmem:[#allocation199_spill] sm:$0xff]  ;;  %v9552_v9 = vld [vmem:[#allocation140_spill] sm:$0xff] }
 0x3fe   : > { %2658 = vmatpush.msra.mxu1 %v9521_v41  ;;  %2698 = vmatpush.msra.mxu3 %v9523_v11  ;;  %2522 = vst [vmem:[#allocation2 + $0x108] sm:$0xff] %v2378_v43  ;;  %v3076_v21 = vsel %vm7544_vm2, %v2378_v43, 0.0  ;;  %v2828_v43 = vadd.s32 16, %v7518_v0  ;;  %v9553_v11 = vld [vmem:[#allocation195_spill] sm:$0xff] }
 0x3ff   : > { %2679 = vmatpush.msra.mxu2 %v9522_v6  ;;  %2640 = vmatpush.msra.mxu0 %v9524_v22  ;;  %v9555_v22 = vld [vmem:[#allocation152_spill] sm:$0xff] }
 0x400   : > { %2659 = vmatpush.msra.mxu1 %v9525_v34  ;;  %2699 = vmatpush.msra.mxu3 %v9527_v29  ;;  %v9556_v34 = vld [vmem:[#allocation146_spill] sm:$0xff]  ;;  %v9558_v29 = vld [vmem:[#allocation196_spill] sm:$0xff]  ;;  %vm7571_vm3 = vcmp.eq.s32.totalorder %v2828_v43, %v7525_v51 }
 0x401   : > { %2680 = vmatpush.msra.mxu2 %v9526_v12  ;;  %v2267_v13 = vpop.f32.mrf.mxu2  ;;  %v2380_v36 = vpop.f32.mrf.mxu3  ;;  %2641 = vmatpush.msra.mxu0 %v9529_v32  ;;  %v9557_v12 = vld [vmem:[#allocation191_spill] sm:$0xff]  ;;  %v9563_v32 = vld [vmem:[#allocation185_spill] sm:$0xff] }
 0x402   : > { %v2268_v38 = vadd.f32 %v2267_v13, %v2155_v10  ;;  %2660 = vmatpush.msra.mxu1 %v9530_v2  ;;  %v2044_v49 = vpop.f32.mrf.mxu0  ;;  %v2157_v46 = vpop.f32.mrf.mxu1  ;;  %2700 = vmatpush.msra.mxu3 %v9532_v30  ;;  %v9554_v10 = vld [vmem:[#allocation200_spill] sm:$0xff] }
 0x403   : > { %2681 = vmatpush.msra.mxu2 %v9531_v19  ;;  %v2045_v58 = vadd.f32 %v2044_v49, %v7292_v45  ;;  %2642 = vmatpush.msra.mxu0 %v9533_v44  ;;  %v9559_v13 = vld [vmem:[#allocation156_spill] sm:$0xff]  ;;  %v9566_v19 = vld [vmem:[#allocation157_spill] sm:$0xff]  ;;  %v9567_v44 = vld [vmem:[#allocation182_spill] sm:$0xff] }
 0x404   : > { %v2381_v23 = vadd.f32 %v2380_v36, %v2268_v38  ;;  %2661 = vmatpush.msra.mxu1 %v9534_v37  ;;  %2701 = vmatpush.msra.mxu3 %v9536_v26  ;;  %v9560_v36 = vld [vmem:[#allocation153_spill] sm:$0xff]  ;;  %v9564_v2 = vld [vmem:[#allocation192_spill] sm:$0xff]  ;;  %v9568_v37 = vld [vmem:[#allocation186_spill] sm:$0xff] }
 0x405   : > { %2682 = vmatpush.msra.mxu2 %v9535_v1  ;;  %2643 = vmatpush.msra.mxu0 %v9537_v17  ;;  %v2158_v61 = vadd.f32 %v2157_v46, %v2045_v58  ;;  %v9565_v46 = vld [vmem:[#allocation160_spill] sm:$0xff]  ;;  %v9569_v17 = vld [vmem:[#allocation166_spill] sm:$0xff] }
 0x406   : > { %2662 = vmatpush.msra.mxu1 %v9538_v28  ;;  %2702 = vmatpush.msra.mxu3 %v9540_v33  ;;  %2524 = vst [vmem:[#allocation2 + $0x118] sm:$0xff] %v2381_v23  ;;  %v3077_v55 = vsel %vm7538_vm1, %v2381_v23, 0.0  ;;  %v9570_v28 = vld [vmem:[#allocation161_spill] sm:$0xff] }
 0x407   : > { %2683 = vmatpush.msra.mxu2 %v9539_v53  ;;  %2644 = vmatpush.msra.mxu0 %v9545_v57  ;;  %v3092_v42 = vadd.f32 %v3077_v55, %v3076_v21  ;;  %v2829_v53 = vadd.s32 24, %v7518_v0  ;;  %v9571_v57 = vld [vmem:[#allocation176_spill] sm:$0xff]  ;;  %v9573_v55 = vld [vmem:[#allocation170_spill] sm:$0xff]  ;;  %v9574_v21 = vld [vmem:[#allocation167_spill] sm:$0xff] }
 0x408   : > { %2663 = vmatpush.msra.mxu1 %v9546_v3  ;;  %2703 = vmatpush.msra.mxu3 %v9548_v25  ;;  %v9572_v3 = vld [vmem:[#allocation183_spill] sm:$0xff] }
 0x409   : > { %2684 = vmatpush.msra.mxu2 %v9547_v60  ;;  %v2270_v20 = vpop.f32.mrf.mxu2  ;;  %v2383_v54 = vpop.f32.mrf.mxu3  ;;  %2645 = vmatpush.msra.mxu0 %v9549_v7  ;;  %v9575_v60 = vld [vmem:[#allocation177_spill] sm:$0xff]  ;;  %v9576_v25 = vld [vmem:[#allocation171_spill] sm:$0xff]  ;;  %vm7596_vm4 = vcmp.eq.s32.totalorder %v2829_v53, %v7525_v51 }
 0x40a   : > { %v2271_v47 = vadd.f32 %v2270_v20, %v2158_v61  ;;  %2664 = vmatpush.msra.mxu1 %v9550_v62  ;;  %v2047_v14 = vpop.f32.mrf.mxu0  ;;  %v2160_v52 = vpop.f32.mrf.mxu1  ;;  %2704 = vmatpush.msra.mxu3 %v9552_v9  ;;  %v9601_v53 = vld [vmem:[#allocation241_spill] sm:$0xff] }
 0x40b   : > { %2685 = vmatpush.msra.mxu2 %v9551_v27  ;;  %v2048_v41 = vadd.f32 %v2047_v14, %v7315_v15  ;;  %2646 = vmatpush.msra.mxu0 %v9553_v11  ;;  %v9582_v27 = vld [vmem:[#allocation221_spill] sm:$0xff]  ;;  %v9584_v11 = vld [vmem:[#allocation103_spill] sm:$0xff] }
 0x40c   : > { %v2384_v6 = vadd.f32 %v2383_v54, %v2271_v47  ;;  %2665 = vmatpush.msra.mxu1 %v9554_v10  ;;  %2705 = vmatpush.msra.mxu3 %v9556_v34  ;;  %v9579_v54 = vld [vmem:[#allocation220_spill] sm:$0xff]  ;;  %v9580_v47 = vld [vmem:[#allocation102_spill] sm:$0xff]  ;;  %v2830_v10 = vadd.s32 32, %v7518_v0  ;;  %v9586_v34 = vld [vmem:[#allocation227_spill] sm:$0xff] }
 0x40d   : > { %2686 = vmatpush.msra.mxu2 %v9555_v22  ;;  %2647 = vmatpush.msra.mxu0 %v9557_v12  ;;  %v2161_v38 = vadd.f32 %v2160_v52, %v2048_v41  ;;  %v9581_v52 = vld [vmem:[#allocation226_spill] sm:$0xff]  ;;  %v9585_v22 = vld [vmem:[#allocation232_spill] sm:$0xff]  ;;  %v9587_v12 = vld [vmem:[#allocation175_spill] sm:$0xff] }
 0x40e   : > { %2666 = vmatpush.msra.mxu1 %v9558_v29  ;;  %2706 = vmatpush.msra.mxu3 %v9560_v36  ;;  %2526 = vst [vmem:[#allocation2 + $0x128] sm:$0xff] %v2384_v6  ;;  %v3078_v49 = vsel %vm7571_vm3, %v2384_v6, 0.0  ;;  %v9583_v6 = vld [vmem:[#allocation104_spill] sm:$0xff]  ;;  %v9588_v36 = vld [vmem:[#allocation107_spill] sm:$0xff]  ;;  %vm7621_vm5 = vcmp.eq.s32.totalorder %v2830_v10, %v7525_v51 }
 0x40f   : > { %2687 = vmatpush.msra.mxu2 %v9559_v13  ;;  %2648 = vmatpush.msra.mxu0 %v9563_v32  ;;  %v3093_v58 = vadd.f32 %v3092_v42, %v3078_v49  ;;  %v9590_v32 = vld [vmem:[#allocation236_spill] sm:$0xff]  ;;  %v9592_v49 = vld [vmem:[#allocation114_spill] sm:$0xff] }
 0x410   : > { %2667 = vmatpush.msra.mxu1 %v9564_v2  ;;  %2707 = vmatpush.msra.mxu3 %v9566_v19  ;;  %v9591_v2 = vld [vmem:[#allocation233_spill] sm:$0xff] }
 0x411   : > { %2688 = vmatpush.msra.mxu2 %v9565_v46  ;;  %v2273_v30 = vpop.f32.mrf.mxu2  ;;  %v2386_v63 = vpop.f32.mrf.mxu3  ;;  %2649 = vmatpush.msra.mxu0 %v9567_v44  ;;  %v9593_v46 = vld [vmem:[#allocation109_spill] sm:$0xff]  ;;  %v9598_v44 = vld [vmem:[#allocation118_spill] sm:$0xff] }
 0x412   : > { %v2274_v23 = vadd.f32 %v2273_v30, %v2161_v38  ;;  %2668 = vmatpush.msra.mxu1 %v9568_v37  ;;  %v2050_v1 = vpop.f32.mrf.mxu0  ;;  %v2163_v26 = vpop.f32.mrf.mxu1  ;;  %2708 = vmatpush.msra.mxu3 %v9570_v28  ;;  %v9589_v38 = vld [vmem:[#allocation105_spill] sm:$0xff]  ;;  %v9599_v37 = vld [vmem:[#allocation115_spill] sm:$0xff]  ;;  %v9600_v28 = vld [vmem:[#allocation242_spill] sm:$0xff] }
 0x413   : > { %2689 = vmatpush.msra.mxu2 %v9569_v17  ;;  %v2051_v33 = vadd.f32 %v2050_v1, %v7338_v40  ;;  %2650 = vmatpush.msra.mxu0 %v9571_v57 }
 0x414   : > { %v2387_v61 = vadd.f32 %v2386_v63, %v2274_v23  ;;  %2669 = vmatpush.msra.mxu1 %v9572_v3  ;;  %2709 = vmatpush.msra.mxu3 %v9574_v21  ;;  %v9596_v63 = vld [vmem:[#allocation240_spill] sm:$0xff]  ;;  %v2831_v21 = vadd.s32 40, %v7518_v0 }
 0x415   : > { %2690 = vmatpush.msra.mxu2 %v9573_v55  ;;  %2651 = vmatmul.f32.vlgmr.msra.gmra.mxu0 %v5306_v48  ;;  %v2164_v20 = vadd.f32 %v2163_v26, %v2051_v33  ;;  %v9602_v3 = vld [vmem:[#allocation124_spill] sm:$0xff]  ;;  %v9603_v55 = vld [vmem:[#allocation119_spill] sm:$0xff] }
 0x416   : > { %2670 = vmatpush.msra.mxu1 %v9575_v60  ;;  %2691 = vmatmul.f32.vlgmr.msra.gmra.mxu2 %v5306_v48  ;;  %2528 = vst [vmem:[#allocation2 + $0x138] sm:$0xff] %v2387_v61  ;;  %v3079_v42 = vsel %vm7596_vm4, %v2387_v61, 0.0  ;;  %v9604_v60 = vld [vmem:[#allocation244_spill] sm:$0xff]  ;;  %vm7646_vm6 = vcmp.eq.s32.totalorder %v2831_v21, %v7525_v51 }
 0x417   : > { %2710 = vmatpush.msra.mxu3 %v9576_v25  ;;  %2755 = vmatpush.msra.mxu2 %v9579_v54  ;;  %v3094_v14 = vadd.f32 %v3093_v58, %v3079_v42  ;;  %v9597_v58 = vld [vmem:[#allocation238_spill] sm:$0xff]  ;;  %v9605_v25 = vld [vmem:[#allocation243_spill] sm:$0xff]  ;;  %v9606_v42 = vld [vmem:[#allocation128_spill] sm:$0xff] }
 0x418   : > { %2671 = vmatmul.f32.vlgmr.msra.gmra.mxu1 %v5306_v48  ;;  %2711 = vmatmul.f32.vlgmr.msra.gmra.mxu3 %v5306_v48 }
 0x419   : > { %2715 = vmatpush.msra.mxu0 %v9580_v47  ;;  %v2276_v7 = vpop.f32.mrf.mxu2  ;;  %v2389_v62 = vpop.f32.mrf.mxu3  ;;  %2756 = vmatpush.msra.mxu2 %v9581_v52  ;;  %v9607_v47 = vld [vmem:[#allocation125_spill] sm:$0xff] }
 0x41a   : > { %2775 = vmatpush.msra.mxu3 %v9582_v27  ;;  %v2277_v9 = vadd.f32 %v2276_v7, %v2164_v20  ;;  %v2053_v43 = vpop.f32.mrf.mxu0  ;;  %v2166_v41 = vpop.f32.mrf.mxu1  ;;  %2735 = vmatpush.msra.mxu1 %v9584_v11  ;;  %v9608_v7 = vld [vmem:[#allocation247_spill] sm:$0xff]  ;;  %v9611_v52 = vld [vmem:[#allocation129_spill] sm:$0xff] }
 0x41b   : > { %2716 = vmatpush.msra.mxu0 %v9583_v6  ;;  %2757 = vmatpush.msra.mxu2 %v9585_v22  ;;  %v2054_v29 = vadd.f32 %v2053_v43, %v9587_v12  ;;  %v9615_v43 = vld [vmem:[#allocation249_spill] sm:$0xff]  ;;  %v9616_v6 = vld [vmem:[#allocation138_spill] sm:$0xff]  ;;  %v9618_v12 = vld [vmem:[#allocation252_spill] sm:$0xff] }
 0x41c   : > { %2776 = vmatpush.msra.mxu3 %v9586_v34  ;;  %v2390_v13 = vadd.f32 %v2389_v62, %v2277_v9  ;;  %2736 = vmatpush.msra.mxu1 %v9589_v38  ;;  %v9609_v62 = vld [vmem:[#allocation246_spill] sm:$0xff]  ;;  %v9617_v11 = vld [vmem:[#allocation133_spill] sm:$0xff] }
 0x41d   : > { %2717 = vmatpush.msra.mxu0 %v9588_v36  ;;  %2758 = vmatpush.msra.mxu2 %v9590_v32  ;;  %v2167_v30 = vadd.f32 %v2166_v41, %v2054_v29  ;;  %v9619_v29 = vld [vmem:[#allocation251_spill] sm:$0xff]  ;;  %v9620_v32 = vld [vmem:[#allocation142_spill] sm:$0xff] }
 0x41e   : > { %2777 = vmatpush.msra.mxu3 %v9591_v2  ;;  %2737 = vmatpush.msra.mxu1 %v9593_v46  ;;  %2530 = vst [vmem:[#allocation2 + $0x148] sm:$0xff] %v2390_v13  ;;  %v3080_v23 = vsel %vm7621_vm5, %v2390_v13, 0.0  ;;  %v9621_v2 = vld [vmem:[#allocation139_spill] sm:$0xff] }
 0x41f   : > { %2718 = vmatpush.msra.mxu0 %v9592_v49  ;;  %2759 = vmatpush.msra.mxu2 %v9596_v63  ;;  %v3095_v17 = vadd.f32 %v3094_v14, %v3080_v23  ;;  %v9610_v14 = vld [vmem:[#allocation132_spill] sm:$0xff]  ;;  %v2832_v49 = vadd.s32 48, %v7518_v0  ;;  %v9622_v46 = vld [vmem:[#allocation255_spill] sm:$0xff] }
 0x420   : > { %2778 = vmatpush.msra.mxu3 %v9597_v58  ;;  %2738 = vmatpush.msra.mxu1 %v9599_v37  ;;  %v9624_v23 = vld [vmem:[#allocation148_spill] sm:$0xff]  ;;  %v9626_v37 = vld [vmem:[#allocation258_spill] sm:$0xff] }
 0x421   : > { %2719 = vmatpush.msra.mxu0 %v9598_v44  ;;  %v2279_v1 = vpop.f32.mrf.mxu2  ;;  %v2392_v26 = vpop.f32.mrf.mxu3  ;;  %2760 = vmatpush.msra.mxu2 %v9600_v28  ;;  %v9625_v44 = vld [vmem:[#allocation144_spill] sm:$0xff]  ;;  %vm7671_vm7 = vcmp.eq.s32.totalorder %v2832_v49, %v7525_v51 }
 0x422   : > { %2779 = vmatpush.msra.mxu3 %v9601_v53  ;;  %v2280_v33 = vadd.f32 %v2279_v1, %v2167_v30  ;;  %v2056_v61 = vpop.f32.mrf.mxu0  ;;  %v2169_v57 = vpop.f32.mrf.mxu1  ;;  %2739 = vmatpush.msra.mxu1 %v9603_v55  ;;  %v9623_v30 = vld [vmem:[#allocation254_spill] sm:$0xff]  ;;  %v9627_v1 = vld [vmem:[#allocation257_spill] sm:$0xff] }
 0x423   : > { %2720 = vmatpush.msra.mxu0 %v9602_v3  ;;  %2761 = vmatpush.msra.mxu2 %v9604_v60  ;;  %v2057_v20 = vadd.f32 %v2056_v61, %v7372_v59  ;;  %v9614_v59 = vld [vmem:[#allocation250_spill] sm:$0xff]  ;;  %v9635_v3 = vld [vmem:[#allocation155_spill] sm:$0xff] }
 0x424   : > { %2780 = vmatpush.msra.mxu3 %v9605_v25  ;;  %v2393_v54 = vadd.f32 %v2392_v26, %v2280_v33  ;;  %2740 = vmatpush.msra.mxu1 %v9607_v47  ;;  %v9628_v26 = vld [vmem:[#allocation154_spill] sm:$0xff]  ;;  %v9633_v33 = vld [vmem:[#allocation259_spill] sm:$0xff] }
 0x425   : > { %2721 = vmatpush.msra.mxu0 %v9606_v42  ;;  %2762 = vmatpush.msra.mxu2 %v9608_v7  ;;  %v2170_v9 = vadd.f32 %v2169_v57, %v2057_v20  ;;  %v9634_v57 = vld [vmem:[#allocation158_spill] sm:$0xff]  ;;  %v9637_v20 = vld [vmem:[#allocation261_spill] sm:$0xff]  ;;  %v9638_v7 = vld [vmem:[#allocation164_spill] sm:$0xff] }
 0x426   : > { %2781 = vmatpush.msra.mxu3 %v9609_v62  ;;  %2741 = vmatpush.msra.mxu1 %v9611_v52  ;;  %2532 = vst [vmem:[#allocation2 + $0x158] sm:$0xff] %v2393_v54  ;;  %v3081_v41 = vsel %vm7646_vm6, %v2393_v54, 0.0  ;;  %v9636_v25 = vld [vmem:[#allocation262_spill] sm:$0xff]  ;;  %v9639_v62 = vld [vmem:[#allocation159_spill] sm:$0xff]  ;;  %v9640_v52 = vld [vmem:[#allocation265_spill] sm:$0xff] }
 0x427   : > { %2722 = vmatpush.msra.mxu0 %v9610_v14  ;;  %2763 = vmatpush.msra.mxu2 %v9614_v59  ;;  %v3096_v34 = vadd.f32 %v3095_v17, %v3081_v41  ;;  %v9629_v17 = vld [vmem:[#allocation149_spill] sm:$0xff]  ;;  %v2833_v14 = vadd.s32 56, %v7518_v0  ;;  %v9642_v41 = vld [vmem:[#allocation168_spill] sm:$0xff] }
 0x428   : > { %2782 = vmatpush.msra.mxu3 %v9615_v43  ;;  %2742 = vmatpush.msra.mxu1 %v9617_v11  ;;  %v9644_v11 = vld [vmem:[#allocation267_spill] sm:$0xff] }
 0x429   : > { %2723 = vmatpush.msra.mxu0 %v9616_v6  ;;  %v2282_v10 = vpop.f32.mrf.mxu2  ;;  %v2395_v22 = vpop.f32.mrf.mxu3  ;;  %2764 = vmatpush.msra.mxu2 %v9618_v12  ;;  %v9643_v6 = vld [vmem:[#allocation165_spill] sm:$0xff]  ;;  %vm7696_vm8 = vcmp.eq.s32.totalorder %v2833_v14, %v7525_v51  ;;  %v9656_v14 = vmov 0 }
 0x42a   : > { %2783 = vmatpush.msra.mxu3 %v9619_v29  ;;  %v2283_v13 = vadd.f32 %v2282_v10, %v2170_v9  ;;  %v2059_v36 = vpop.f32.mrf.mxu0  ;;  %v2172_v38 = vpop.f32.mrf.mxu1  ;;  %2743 = vmatpush.msra.mxu1 %v9621_v2  ;;  %v9641_v9 = vld [vmem:[#allocation264_spill] sm:$0xff]  ;;  %v9645_v10 = vld [vmem:[#allocation266_spill] sm:$0xff]  ;;  %v9651_v2 = vld [vmem:[#allocation173_spill] sm:$0xff] }
 0x42b   : > { %2724 = vmatpush.msra.mxu0 %v9620_v32  ;;  %2765 = vmatpush.msra.mxu2 %v9622_v46  ;;  %v2060_v63 = vadd.f32 %v2059_v36, %v7383_v50  ;;  %v9632_v50 = vld [vmem:[#allocation260_spill] sm:$0xff] }
 0x42c   : > { %2784 = vmatpush.msra.mxu3 %v9623_v30  ;;  %v2396_v58 = vadd.f32 %v2395_v22, %v2283_v13  ;;  %2744 = vmatpush.msra.mxu1 %v9625_v44  ;;  %v9646_v22 = vld [vmem:[#allocation172_spill] sm:$0xff] }
 0x42d   : > { %2725 = vmatpush.msra.mxu0 %v9624_v23  ;;  %2766 = vmatpush.msra.mxu2 %v9626_v37  ;;  %v2173_v53 = vadd.f32 %v2172_v38, %v2060_v63  ;;  %v9650_v29 = vld [vmem:[#allocation268_spill] sm:$0xff]  ;;  %v2834_v63 = vadd.s32 64, %v7518_v0 }
 0x42e   : > { %2785 = vmatpush.msra.mxu3 %v9627_v1  ;;  %2745 = vmatpush.msra.mxu1 %v9629_v17  ;;  %2534 = vst [vmem:[#allocation2 + $0x168] sm:$0xff] %v2396_v58  ;;  %v3082_v61 = vsel %vm7671_vm7, %v2396_v58, 0.0 }
 0x42f   : > { %2726 = vmatpush.msra.mxu0 %v9628_v26  ;;  %2767 = vmatpush.msra.mxu2 %v9632_v50  ;;  %v3097_v60 = vadd.f32 %v3096_v34, %v3082_v61  ;;  %v9647_v34 = vmov 0  ;;  %vm7711_vm9 = vcmp.eq.s32.totalorder %v2834_v63, %v7525_v51  ;;  %v2835_v61 = vadd.s32 72, %v7518_v0 }
 0x430   : > { %2786 = vmatpush.msra.mxu3 %v9633_v33  ;;  %2746 = vmatpush.msra.mxu1 %v9635_v3  ;;  %v9648_v34 = vsel %vm7696_vm8, 4294967295, %v9647_v34  ;;  %v9654_v3 = vmov 0 }
 0x431   : > { %2727 = vmatpush.msra.mxu0 %v9634_v57  ;;  %v2285_v55 = vpop.f32.mrf.mxu2  ;;  %v2398_v21 = vpop.f32.mrf.mxu3  ;;  %2768 = vmatpush.msra.mxu2 %v9636_v25  ;;  %vm7720_vm10 = vcmp.eq.s32.totalorder %v2835_v61, %v7525_v51 }
 0x432   : > { %2787 = vmatpush.msra.mxu3 %v9637_v20  ;;  %v2286_v54 = vadd.f32 %v2285_v55, %v2173_v53  ;;  %v2062_v42 = vpop.f32.mrf.mxu0  ;;  %v2175_v47 = vpop.f32.mrf.mxu1  ;;  %2747 = vmatpush.msra.mxu1 %v9639_v62  ;;  %v9655_v3 = vsel %vm7720_vm10, 4294967295, %v9654_v3 }
 0x433   : > { %2728 = vmatpush.msra.mxu0 %v9638_v7  ;;  %2769 = vmatpush.msra.mxu2 %v9640_v52  ;;  %v2063_v59 = vadd.f32 %v2062_v42, %v7394_v18  ;;  %v9649_v18 = vld [vmem:[#allocation169_spill] sm:$0xff]  ;;  %v2836_v7 = vadd.s32 80, %v7518_v0 }
 0x434   : > { %2788 = vmatpush.msra.mxu3 %v9641_v9  ;;  %v2399_v43 = vadd.f32 %v2398_v21, %v2286_v54  ;;  %2748 = vmatpush.msra.mxu1 %v9643_v6 }
 0x435   : > { %2729 = vmatpush.msra.mxu0 %v9642_v41  ;;  %2770 = vmatpush.msra.mxu2 %v9644_v11  ;;  %v2176_v12 = vadd.f32 %v2175_v47, %v2063_v59  ;;  %vm7729_vm11 = vcmp.eq.s32.totalorder %v2836_v7, %v7525_v51 }
 0x436   : > { %2789 = vmatpush.msra.mxu3 %v9645_v10  ;;  %2771 = vmatmul.f32.vlgmr.msra.gmra.mxu2 %v5306_v48  ;;  %2536 = vst [vmem:[#allocation2 + $0x178] sm:$0xff] %v2399_v43  ;;  %v3083_v13 = vsel %vm7696_vm8, %v2399_v43, 0.0  ;;  %v9657_v14 = vsel %vm7729_vm11, 4294967295, %v9656_v14 }
 0x437   : > { %2730 = vmatpush.msra.mxu0 %v9646_v22  ;;  %2749 = vmatpush.msra.mxu1 %v9649_v18  ;;  %v3098_v32 = vadd.f32 %v3097_v60, %v3083_v13  ;;  %v2837_v22 = vadd.s32 88, %v7518_v0  ;;  %v9658_v18 = vmov 0 }
 0x438   : > { %2790 = vmatpush.msra.mxu3 %v9650_v29  ;;  %2731 = vmatmul.f32.vlgmr.msra.gmra.mxu0 %v5306_v48 }
 0x439   : > { %2791 = vmatmul.f32.vlgmr.msra.gmra.mxu3 %v5306_v48  ;;  %v2288_v36 = vpop.f32.mrf.mxu2  ;;  %v2401_v38 = vpop.f32.mrf.mxu3  ;;  %2750 = vmatpush.msra.mxu1 %v9651_v2  ;;  %vm7738_vm12 = vcmp.eq.s32.totalorder %v2837_v22, %v7525_v51  ;;  %v2812_v22 = vld [vmem:[#allocation2 + $0x30] sm:$0xff] }
 0x43a   : > { %v2289_v49 = vadd.f32 %v2288_v36, %v2176_v12  ;;  %v2065_v46 = vpop.f32.mrf.mxu0  ;;  %v2178_v30 = vpop.f32.mrf.mxu1  ;;  %2751 = vmatmul.f32.vlgmr.msra.gmra.mxu1 %v5306_v48  ;;  %v9659_v18 = vsel %vm7738_vm12, 4294967295, %v9658_v18 }
 0x43b   : > { %v2066_v58 = vadd.f32 %v2065_v46, %v7405_v4 }
 0x43c   : > { %v2402_v23 = vadd.f32 %v2401_v38, %v2289_v49 }
 0x43d   : > { %v2179_v37 = vadd.f32 %v2178_v30, %v2066_v58  ;;  %v2838_v30 = vadd.s32 96, %v7518_v0 }
 0x43e   : > { %2538 = vst [vmem:[#allocation2 + $0x188] sm:$0xff] %v2402_v23  ;;  %v3084_v1 = vsel %vm7711_vm9, %v2402_v23, 0.0 }
 0x43f   : > { %v3099_v53 = vadd.f32 %v3098_v32, %v3084_v1  ;;  %vm7747_vm13 = vcmp.eq.s32.totalorder %v2838_v30, %v7525_v51 }
 0x441   : > { %v2291_v26 = vpop.f32.mrf.mxu2  ;;  %v2404_v17 = vpop.f32.mrf.mxu3 }
 0x442   : > { %v2292_v50 = vadd.f32 %v2291_v26, %v2179_v37  ;;  %v2068_v48 = vpop.f32.mrf.mxu0  ;;  %v2181_v33 = vpop.f32.mrf.mxu1 }
 0x443   : > { %v2069_v4 = vadd.f32 %v2068_v48, %v7416_v56  ;;  %v2839_v48 = vadd.s32 104, %v7518_v0 }
 0x444   : > { %v2405_v57 = vadd.f32 %v2404_v17, %v2292_v50 }
 0x445   : > { %v2182_v55 = vadd.f32 %v2181_v33, %v2069_v4  ;;  %vm7756_vm14 = vcmp.eq.s32.totalorder %v2839_v48, %v7525_v51  ;;  %v9662_v4 = vmov 0  ;;  %v2818_v48 = vld [vmem:[#allocation2 + $0x90] sm:$0xff] }
 0x446   : > { %2540 = vst [vmem:[#allocation2 + $0x198] sm:$0xff] %v2405_v57  ;;  %v3085_v21 = vsel %vm7720_vm10, %v2405_v57, 0.0  ;;  %v9663_v4 = vsel %vm7756_vm14, 4294967295, %v9662_v4 }
 0x447   : > { %v3100_v20 = vadd.f32 %v3099_v53, %v3085_v21 }
 0x449   : > { %v2294_v60 = vpop.f32.mrf.mxu2  ;;  %v2407_v25 = vpop.f32.mrf.mxu3 }
 0x44a   : > { %v2295_v54 = vadd.f32 %v2294_v60, %v2182_v55  ;;  %v2071_v42 = vpop.f32.mrf.mxu0  ;;  %v2184_v47 = vpop.f32.mrf.mxu1 }
 0x44b   : > { %v2072_v56 = vadd.f32 %v2071_v42, %v7427_v35  ;;  %v2840_v42 = vadd.s32 112, %v7518_v0 }
 0x44c   : > { %v2408_v62 = vadd.f32 %v2407_v25, %v2295_v54 }
 0x44d   : > { %v2185_v52 = vadd.f32 %v2184_v47, %v2072_v56  ;;  %v2810_v56 = vld [vmem:[#allocation2 + $0x10] sm:$0xff]  ;;  %vm7765_vm15 = vcmp.eq.s32.totalorder %v2840_v42, %v7525_v51 }
 0x44e   : > { %2542 = vst [vmem:[#allocation2 + $0x1a8] sm:$0xff] %v2408_v62  ;;  %v3086_v9 = vsel %vm7729_vm11, %v2408_v62, 0.0 }
 0x44f   : > { %v3101_v41 = vadd.f32 %v3100_v20, %v3086_v9 }
 0x451   : > { %v2297_v59 = vpop.f32.mrf.mxu2  ;;  %v2410_v43 = vpop.f32.mrf.mxu3 }
 0x452   : > { %v2298_v6 = vadd.f32 %v2297_v59, %v2185_v52  ;;  %v2074_v11 = vpop.f32.mrf.mxu0  ;;  %v2187_v10 = vpop.f32.mrf.mxu1 }
 0x453   : > { %v2075_v35 = vadd.f32 %v2074_v11, %v7438_v16 }
 0x454   : > { %v2411_v12 = vadd.f32 %v2410_v43, %v2298_v6  ;;  %v2809_v6 = vld [vmem:[#allocation2] sm:$0xff] }
 0x455   : > { %v2188_v29 = vadd.f32 %v2187_v10, %v2075_v35  ;;  %v2841_v35 = vadd.s32 120, %v7518_v0 }
 0x456   : > { %2544 = vst [vmem:[#allocation2 + $0x1b8] sm:$0xff] %v2411_v12  ;;  %v3087_v13 = vsel %vm7738_vm12, %v2411_v12, 0.0 }
 0x457   : > { %v3102_v32 = vadd.f32 %v3101_v41, %v3087_v13  ;;  %v2811_v41 = vld [vmem:[#allocation2 + $0x20] sm:$0xff]  ;;  %v2860_v13 = vsel %vm7544_vm2, %v2809_v6, 0.0  ;;  %vm7781_vm0 = vcmp.eq.s32.totalorder %v2841_v35, %v7525_v51  ;;  %v2824_v6 = vld [vmem:[#allocation2 + $0xf0] sm:$0xff] }
 0x459   : > { %v2300_v36 = vpop.f32.mrf.mxu2  ;;  %v2413_v38 = vpop.f32.mrf.mxu3 }
 0x45a   : > { %v2301_v2 = vadd.f32 %v2300_v36, %v2188_v29  ;;  %v2077_v49 = vpop.f32.mrf.mxu0  ;;  %v2190_v46 = vpop.f32.mrf.mxu1  ;;  %v2862_v29 = vsel %vm7571_vm3, %v2811_v41, 0.0 }
 0x45b   : > { %v2078_v16 = vadd.f32 %v2077_v49, %v7449_v31  ;;  %v2814_v49 = vld [vmem:[#allocation2 + $0x50] sm:$0xff] }
 0x45c   : > { %v2414_v63 = vadd.f32 %v2413_v38, %v2301_v2  ;;  %v2813_v38 = vld [vmem:[#allocation2 + $0x40] sm:$0xff] }
 0x45d   : > { %v2191_v23 = vadd.f32 %v2190_v46, %v2078_v16  ;;  %v2864_v0 = vsel %vm7621_vm5, %v2813_v38, 0.0 }
 0x45e   : > { %2546 = vst [vmem:[#allocation2 + $0x1c8] sm:$0xff] %v2414_v63  ;;  %v3088_v37 = vsel %vm7747_vm13, %v2414_v63, 0.0  ;;  %v2815_v63 = vld [vmem:[#allocation2 + $0x60] sm:$0xff] }
 0x45f   : > { %v3103_v17 = vadd.f32 %v3102_v32, %v3088_v37  ;;  %v2863_v32 = vsel %vm7596_vm4, %v2812_v22, 0.0  ;;  %v2865_v37 = vsel %vm7646_vm6, %v2814_v49, 0.0  ;;  %v2866_v51 = vsel %vm7671_vm7, %v2815_v63, 0.0 }
 0x461   : > { %v2303_v1 = vpop.f32.mrf.mxu2  ;;  %v2416_v26 = vpop.f32.mrf.mxu3 }
 0x462   : > { %v2304_v53 = vadd.f32 %v2303_v1, %v2191_v23  ;;  %v2080_v50 = vpop.f32.mrf.mxu0  ;;  %v2193_v61 = vpop.f32.mrf.mxu1  ;;  %v2816_v1 = vld [vmem:[#allocation2 + $0x70] sm:$0xff] }
 0x463   : > { %v2081_v31 = vadd.f32 %v2080_v50, %v7460_v5  ;;  %v2867_v50 = vsel %vm7696_vm8, %v2816_v1, 0.0 }
 0x464   : > { %v2417_v33 = vadd.f32 %v2416_v26, %v2304_v53  ;;  %v2817_v53 = vld [vmem:[#allocation2 + $0x80] sm:$0xff] }
 0x465   : > { %v2194_v57 = vadd.f32 %v2193_v61, %v2081_v31  ;;  %v2819_v61 = vld [vmem:[#allocation2 + $0xa0] sm:$0xff] }
 0x466   : > { %2548 = vst [vmem:[#allocation2 + $0x1d8] sm:$0xff] %v2417_v33  ;;  %v3089_v55 = vsel %vm7756_vm14, %v2417_v33, 0.0  ;;  %v2868_v33 = vsel %vm7711_vm9, %v2817_v53, 0.0 }
 0x467   : > { %v3104_v25 = vadd.f32 %v3103_v17, %v3089_v55  ;;  %v2869_v55 = vsel %vm7720_vm10, %v2818_v48, 0.0 }
 0x469   : > { %v2306_v21 = vpop.f32.mrf.mxu2  ;;  %v2419_v60 = vpop.f32.mrf.mxu3 }
 0x46a   : > { %v2307_v20 = vadd.f32 %v2306_v21, %v2194_v57  ;;  %v2083_v54 = vpop.f32.mrf.mxu0  ;;  %v2196_v7 = vpop.f32.mrf.mxu1  ;;  %v2820_v21 = vld [vmem:[#allocation2 + $0xb0] sm:$0xff] }
 0x46b   : > { %v2084_v5 = vadd.f32 %v2083_v54, %v7471_v8  ;;  %v2861_v8 = vsel %vm7538_vm1, %v2810_v56, 0.0  ;;  %v2871_v42 = vsel %vm7738_vm12, %v2820_v21, 0.0 }
 0x46c   : > { %v2420_v47 = vadd.f32 %v2419_v60, %v2307_v20  ;;  %v2876_v36 = vadd.f32 %v2861_v8, %v2860_v13  ;;  %v2821_v20 = vld [vmem:[#allocation2 + $0xc0] sm:$0xff] }
 0x46d   : > { %v2197_v52 = vadd.f32 %v2196_v7, %v2084_v5  ;;  %v2822_v5 = vld [vmem:[#allocation2 + $0xd0] sm:$0xff]  ;;  %v2872_v7 = vsel %vm7747_vm13, %v2821_v20, 0.0 }
 0x46e   : > { %2550 = vst [vmem:[#allocation2 + $0x1e8] sm:$0xff] %v2420_v47  ;;  %v3090_v9 = vsel %vm7765_vm15, %v2420_v47, 0.0  ;;  %v2877_v2 = vadd.f32 %v2876_v36, %v2862_v29 }
 0x46f   : > { %v3105_v11 = vadd.f32 %v3104_v25, %v3090_v9  ;;  %v2870_v25 = vsel %vm7729_vm11, %v2819_v61, 0.0 }
 0x470   : > { %v2878_v16 = vadd.f32 %v2877_v2, %v2863_v32 }
 0x471   : > { %v2309_v59 = vpop.f32.mrf.mxu2  ;;  %v2422_v43 = vpop.f32.mrf.mxu3 }
 0x472   : > { %v2310_v10 = vadd.f32 %v2309_v59, %v2197_v52  ;;  %v2879_v26 = vadd.f32 %v2878_v16, %v2864_v0  ;;  %v2572_v56 = vpop.f32.mrf.mxu0  ;;  %v2592_v52 = vpop.f32.mrf.mxu1  ;;  %v2823_v59 = vld [vmem:[#allocation2 + $0xe0] sm:$0xff] }
 0x473   : > { %v2874_v8 = vsel %vm7765_vm15, %v2823_v59, 0.0 }
 0x474   : > { %v2423_v12 = vadd.f32 %v2422_v43, %v2310_v10  ;;  %v2880_v17 = vadd.f32 %v2879_v26, %v2865_v37  ;;  %v2873_v43 = vsel %vm7756_vm14, %v2822_v5, 0.0  ;;  %v2593_v10 = vadd.f32 %v2592_v52, %v2572_v56 }
 0x476   : > { %2552 = vst [vmem:[#allocation2 + $0x1f8] sm:$0xff] %v2423_v12  ;;  %v3091_v30 = vsel %vm7781_vm0, %v2423_v12, 0.0  ;;  %v2881_v31 = vadd.f32 %v2880_v17, %v2866_v51  ;;  %v2875_v12 = vsel %vm7781_vm0, %v2824_v6, 0.0 }
 0x477   : > { %v7789_v23 = vadd.f32 %v3105_v11, %v3091_v30 }
 0x478   : > { %v2882_v57 = vadd.f32 %v2881_v31, %v2867_v50 }
 0x479   : > { %v2612_v41 = vpop.f32.mrf.mxu2  ;;  %v2632_v29 = vpop.f32.mrf.mxu3  ;;  %v3107_v6 = vrot.slane %v7789_v23, 4 }
 0x47a   : > { %v2883_v60 = vadd.f32 %v2882_v57, %v2868_v33  ;;  %v2613_v35 = vadd.f32 %v2612_v41, %v2593_v10 }
 0x47c   : > { %v2884_v54 = vadd.f32 %v2883_v60, %v2869_v55  ;;  %v2633_v38 = vadd.f32 %v2632_v29, %v2613_v35 }
 0x47e   : > { %v2885_v47 = vadd.f32 %v2884_v54, %v2870_v25 }
 0x480   : > { %v2886_v9 = vadd.f32 %v2885_v47, %v2871_v42 }
 0x482   : > { %v2887_v11 = vadd.f32 %v2886_v9, %v2872_v7 }
 0x484   : > { %v2888_v22 = vadd.f32 %v2887_v11, %v2873_v43 }
 0x486   : > { %v2889_v13 = vadd.f32 %v2888_v22, %v2874_v8 }
 0x488   : > { %v2890_v36 = vadd.f32 %v2889_v13, %v2875_v12 }
 0x48a   : > { %v2891_v0 = vrot.slane %v2890_v36, 4 }
 0x48c   : > { %v2892_v16 = vadd.f32 %v2891_v0, %v2890_v36 }
 0x48e   : > { %v2893_v37 = vrot.slane %v2892_v16, 2 }
 0x490   : > { %v2894_v1 = vadd.f32 %v2893_v37, %v2892_v16 }
 0x492   : > { %v2652_v32 = vpop.f32.mrf.mxu0  ;;  %v2895_v50 = vrot.slane %v2894_v1, 1 }
 0x493   : > { %v2653_v2 = vadd.f32 %v2652_v32, %v2633_v38  ;;  %v3108_v38 = vadd.f32 %v3107_v6, %v7789_v23 }
 0x494   : > { %v2896_v31 = vadd.f32 %v2895_v50, %v2894_v1 }
 0x495   : > { %v2672_v49 = vpop.f32.mrf.mxu1  ;;  %v3109_v0 = vrot.slane %v3108_v38, 2 }
 0x496   : > { %v2673_v30 = vadd.f32 %v2672_v49, %v2653_v2 }
 0x498   : > { %v2804_v63 = vmul.f32 0.0015625, %v2673_v30 }
 0x499   : > { %v2692_v20 = vpop.f32.mrf.mxu2 }
 0x49a   : > { %2806 = vst [vmem:[#allocation3] sm:$0xff] %v2804_v63 }
 0x49b   : > { %v2712_v54 = vpop.f32.mrf.mxu3 }
 0x49c   : > { %v2713_v42 = vadd.f32 %v2712_v54, %v2692_v20 }
 0x4a1   : > { %v7813_v26 = vld [vmem:[#allocation3] ss:$0 sm:$0xff] }
 0x4a2   : > { %v2931_v51 = vsel %vm7571_vm3, %v7813_v26, 0.0  ;;  %v2930_v17 = vsel %vm7538_vm1, %v7813_v26, 0.0  ;;  %v2929_v53 = vsel %vm7544_vm2, %v7813_v26, 0.0  ;;  %v2897_v48 = vmul.f32 %v7813_v26, %v7813_v26 }
 0x4a3   : > { %2949 = vadd.xlane.f32.xlu2 %v2931_v51  ;;  %2947 = vadd.xlane.f32.xlu1 %v2930_v17  ;;  %v2936_v57 = vsel %vm7696_vm8, %v7813_v26, 0.0  ;;  %v2932_v55 = vsel %vm7596_vm4, %v7813_v26, 0.0  ;;  %v2935_v21 = vsel %vm7671_vm7, %v7813_v26, 0.0  ;;  %v2939_v5 = vsel %vm7729_vm11, %v7813_v26, 0.0 }
 0x4a4   : > { %2945 = vadd.xlane.f32.xlu0 %v2929_v53  ;;  %v2898_v33 = vmul.f32 640.0, %v2897_v48  ;;  %v2933_v47 = vsel %vm7621_vm5, %v7813_v26, 0.0  ;;  %v2938_v7 = vsel %vm7720_vm10, %v7813_v26, 0.0  ;;  %v2942_v35 = vsel %vm7756_vm14, %v7813_v26, 0.0 }
 0x4a5   : > { %v2934_v12 = vsel %vm7646_vm6, %v7813_v26, 0.0  ;;  %v2941_v36 = vsel %vm7747_vm13, %v7813_v26, 0.0  ;;  %vm7859_vm14 = vcmp.lt.s32.totalorder %v9528_v39, 128  ;;  %v2937_v37 = vsel %vm7711_vm9, %v7813_v26, 0.0 }
 0x4a6   : > { %v2899_v61 = vsub.f32 %v2896_v31, %v2898_v33  ;;  %v2944_v23 = vsel %vm7781_vm0, %v7813_v26, 0.0  ;;  %v3110_v17 = vadd.f32 %v3109_v0, %v3108_v38 }
 0x4a8   : > { %v7835_v60 = vmul.f32 0.0015649452, %v2899_v61  ;;  %v3111_v48 = vrot.slane %v3110_v17, 1  ;;  %v2940_v61 = vsel %vm7738_vm12, %v7813_v26, 0.0 }
 0x4aa   : > { %v2901_v25 = vmax.f32 %v7835_v60, 0.0 }
 0x4ab   : > { %2959 = vadd.xlane.f32.xlu2 %v2936_v57  ;;  %2951 = vadd.xlane.f32.xlu1 %v2932_v55  ;;  %v3112_v55 = vadd.f32 %v3111_v48, %v3110_v17 }
 0x4ac   : > { %2957 = vadd.xlane.f32.xlu0 %v2935_v21  ;;  %5091 = vrsqrt.f32 %v2901_v25  ;;  %vm2909_vm11 = vcmp.eq.f32.partialorder %v2901_v25, inf  ;;  %v2912_v63 = vand.u32 2147483648, %v2901_v25  ;;  %vm2911_vm8 = vcmp.eq.f32.partialorder %v2901_v25, 0.0 }
 0x4b2   : > { %v5092_v52 = vpop.eup %5091 }
 0x4b3   : > { %2965 = vadd.xlane.f32.xlu2 %v2939_v5  ;;  %2953 = vadd.xlane.f32.xlu1 %v2933_v47  ;;  %v2903_v43 = vmul.f32 %v5092_v52, %v2901_v25 }
 0x4b4   : > { %2963 = vadd.xlane.f32.xlu0 %v2938_v7 }
 0x4b5   : > { %v2732_v56 = vpop.f32.mrf.mxu0  ;;  %v2904_v10 = vmul.f32 %v5092_v52, %v2903_v43 }
 0x4b6   : > { %v2733_v9 = vadd.f32 %v2732_v56, %v2713_v42  ;;  %v2943_v56 = vsel %vm7765_vm15, %v7813_v26, 0.0 }
 0x4b7   : > { %v2752_v59 = vpop.f32.mrf.mxu1  ;;  %v2905_v29 = vmul.f32 0.5, %v2904_v10 }
 0x4b8   : > { %v2753_v41 = vadd.f32 %v2752_v59, %v2733_v9 }
 0x4b9   : > { %v2772_v11 = vpop.f32.mrf.mxu2  ;;  %v2906_v32 = vsub.f32 1.5, %v2905_v29 }
 0x4ba   : > { %v2773_v8 = vadd.f32 %v2772_v11, %v2753_v41 }
 0x4bb   : > { %2971 = vadd.xlane.f32.xlu2 %v2942_v35  ;;  %2955 = vadd.xlane.f32.xlu1 %v2934_v12  ;;  %v2907_v2 = vmul.f32 %v5092_v52, %v2906_v32 }
 0x4bc   : > { %v2792_v22 = vpop.f32.mrf.mxu3  ;;  %2969 = vadd.xlane.f32.xlu0 %v2941_v36 }
 0x4bd   : > { %v2793_v13 = vadd.f32 %v2792_v22, %v2773_v8  ;;  %v2908_v30 = vmul.f32 %v2907_v2, %v2901_v25 }
 0x4bf   : > { %v2805_v49 = vmul.f32 0.0015625, %v2793_v13  ;;  %v2910_v1 = vsel %vm2909_vm11, %v2901_v25, %v2908_v30 }
 0x4c0   : > { %v7869_v51 = vsel %vm2911_vm8, %v2912_v63, %v2910_v1 }
 0x4c1   : > { %2807 = vst [vmem:[#allocation3 + $0x8] sm:$0xff] %v2805_v49  ;;  %v2914_v39 = vmul.f32 %v7869_v51, %v7869_v51  ;;  %v2994_v53 = vsel %vm7544_vm2, %v7869_v51, 0.0  ;;  %v2996_v21 = vsel %vm7571_vm3, %v7869_v51, 0.0  ;;  %v2997_v25 = vsel %vm7596_vm4, %v7869_v51, 0.0 }
 0x4c2   : > { %2928 = vst.msk [vmem:[#allocation4] sm:$0x1] %vm7859_vm14, %v7869_v51  ;;  %v2999_v9 = vsel %vm7646_vm6, %v7869_v51, 0.0  ;;  %v3000_v59 = vsel %vm7671_vm7, %v7869_v51, 0.0  ;;  %v2995_v26 = vsel %vm7538_vm1, %v7869_v51, 0.0  ;;  %v3002_v11 = vsel %vm7711_vm9, %v7869_v51, 0.0 }
 0x4c3   : > { %2961 = vadd.xlane.f32.xlu1 %v2937_v37  ;;  %3010 = vadd.xlane.f32.xlu2 %v2994_v53  ;;  %v2915_v50 = vadd.f32 1e-08, %v2914_v39  ;;  %v3003_v8 = vsel %vm7720_vm10, %v7869_v51, 0.0  ;;  %v2998_v12 = vsel %vm7621_vm5, %v7869_v51, 0.0  ;;  %v3005_v29 = vsel %vm7738_vm12, %v7869_v51, 0.0 }
 0x4c4   : > { %2975 = vadd.xlane.f32.xlu0 %v2944_v23  ;;  %v3006_v36 = vsel %vm7747_vm13, %v7869_v51, 0.0  ;;  %vm9670_vm10 = vnez %v9648_v34  ;;  %v3008_v63 = vsel %vm7765_vm15, %v7869_v51, 0.0  ;;  %v3009_v37 = vsel %vm7781_vm0, %v7869_v51, 0.0 }
 0x4c5   : > { %5093 = vrcp.f32 %v2915_v50  ;;  %v3001_v30 = vsel %vm9670_vm10, %v7869_v51, 0.0 }
 0x4c8   : > { %v7879_v31 = vld [vmem:[#allocation3 + $0x8] ss:$0 sm:$0xff] }
 0x4c9   : > { %v3113_v33 = vmul.f32 %v7879_v31, %v7879_v31  ;;  %v3142_v17 = vsel %vm7538_vm1, %v7879_v31, 0.0  ;;  %v3143_v39 = vsel %vm7571_vm3, %v7879_v31, 0.0  ;;  %v3153_v24 = vsel %vm7747_vm13, %v7879_v31, 0.0 }
 0x4ca   : > { %v3156_v40 = vsel %vm7781_vm0, %v7879_v31, 0.0 }
 0x4cb   : > { %v3114_v57 = vmul.f32 640.0, %v3113_v33  ;;  %2967 = vadd.xlane.f32.xlu1 %v2940_v61  ;;  %3016 = vadd.xlane.f32.xlu2 %v2997_v25  ;;  %v5094_v54 = vpop.eup %5093  ;;  %v3146_v25 = vsel %vm7646_vm6, %v7879_v31, 0.0 }
 0x4cc   : > { %3014 = vadd.xlane.f32.xlu0 %v2996_v21  ;;  %v2917_v42 = vmul.f32 %v5094_v54, %v2915_v50  ;;  %v3145_v21 = vsel %vm7621_vm5, %v7879_v31, 0.0 }
 0x4cd   : > { %v3115_v20 = vsub.f32 %v3112_v55, %v3114_v57 }
 0x4ce   : > { %v2918_v47 = vsub.f32 2.0, %v2917_v42 }
 0x4cf   : > { %v3116_v5 = vmul.f32 0.0015649452, %v3115_v20 }
 0x4d0   : > { %v2919_v52 = vmul.f32 %v5094_v54, %v2918_v47  ;;  %v3148_v47 = vsel %vm9670_vm10, %v7879_v31, 0.0 }
 0x4d1   : > { %v3117_v7 = vmax.f32 %v3116_v5, 0.0 }
 0x4d2   : > { %v2920_v43 = vmul.f32 %v2919_v52, %v7835_v60 }
 0x4d3   : > { %5095 = vrsqrt.f32 %v3117_v7  ;;  %2973 = vadd.xlane.f32.xlu1 %v2943_v56  ;;  %3022 = vadd.xlane.f32.xlu2 %v3000_v59  ;;  %vm3125_vm8 = vcmp.eq.f32.partialorder %v3117_v7, inf  ;;  %v3128_v38 = vand.u32 2147483648, %v3117_v7  ;;  %vm3127_vm11 = vcmp.eq.f32.partialorder %v3117_v7, 0.0 }
 0x4d4   : > { %3020 = vadd.xlane.f32.xlu0 %v2999_v9  ;;  %v2921_v50 = vand.u32 2147483647, %v2920_v43  ;;  %v3144_v56 = vsel %vm7596_vm4, %v7879_v31, 0.0  ;;  %v3152_v9 = vsel %vm7738_vm12, %v7879_v31, 0.0  ;;  %v3147_v59 = vsel %vm7671_vm7, %v7879_v31, 0.0 }
 0x4d5   : > { %vm9674_vm12 = vnez %v9655_v3 }
 0x4d6   : > { %v4165_v57 = vadd.f32 -0.7, %v2921_v50 }
 0x4d8   : > { %v2923_v54 = vmul.f32 %v4165_v57, %v4165_v57 }
 0x4d9   : > { %v5096_v41 = vpop.eup %5095 }
 0x4da   : > { %v3119_v6 = vmul.f32 %v5096_v41, %v3117_v7 }
 0x4db   : > { %3012 = vadd.xlane.f32.xlu1 %v2995_v26  ;;  %3028 = vadd.xlane.f32.xlu2 %v3003_v8 }
 0x4dc   : > { %v3120_v10 = vmul.f32 %v5096_v41, %v3119_v6  ;;  %3026 = vadd.xlane.f32.xlu0 %v3002_v11 }
 0x4de   : > { %v3121_v60 = vmul.f32 0.5, %v3120_v10  ;;  %v3150_v10 = vsel %vm9674_vm12, %v7879_v31, 0.0 }
 0x4e0   : > { %v3122_v22 = vsub.f32 1.5, %v3121_v60 }
 0x4e2   : > { %v3123_v35 = vmul.f32 %v5096_v41, %v3122_v22  ;;  %v3155_v41 = vsel %vm7765_vm15, %v7879_v31, 0.0 }
 0x4e3   : > { %3018 = vadd.xlane.f32.xlu1 %v2998_v12  ;;  %3034 = vadd.xlane.f32.xlu2 %v3006_v36 }
 0x4e4   : > { %v3124_v13 = vmul.f32 %v3123_v35, %v3117_v7  ;;  %3032 = vadd.xlane.f32.xlu0 %v3005_v29 }
 0x4e6   : > { %v3126_v32 = vsel %vm3125_vm8, %v3117_v7, %v3124_v13  ;;  %vm9672_vm8 = vnez %v9663_v4  ;;  %v3149_v7 = vsel %vm7711_vm9, %v7879_v31, 0.0 }
 0x4e7   : > { %v7920_v2 = vsel %vm3127_vm11, %v3128_v38, %v3126_v32  ;;  %v3007_v61 = vsel %vm9672_vm8, %v7869_v51, 0.0  ;;  %v3154_v43 = vsel %vm9672_vm8, %v7879_v31, 0.0  ;;  %vm2977_vm11 = vcmask 7168  }
 0x4e8   : > { %v3130_v49 = vmul.f32 %v7920_v2, %v7920_v2  ;;  %3140 = vst.msk [vmem:[#allocation4 + $0x1] sm:$0x1] %vm7859_vm14, %v7920_v2  ;;  %vm9671_vm14 = vnez %v9657_v14  ;;  %v3206_v8 = vsel %vm7544_vm2, %v7920_v2, 0.0  ;;  %v3207_v60 = vsel %vm7538_vm1, %v7920_v2, 0.0 }
 0x4e9   : > { %v3004_v16 = vsel %vm9671_vm14, %v7869_v51, 0.0  ;;  %v3141_v51 = vsel %vm7544_vm2, %v7879_v31, 0.0  ;;  %v3151_v52 = vsel %vm9671_vm14, %v7879_v31, 0.0  ;;  %v3209_v29 = vsel %vm7596_vm4, %v7920_v2, 0.0 }
 0x4ea   : > { %v3131_v0 = vadd.f32 1e-08, %v3130_v49  ;;  %v3210_v45 = vsel %vm7621_vm5, %v7920_v2, 0.0  ;;  %v3212_v32 = vsel %vm7671_vm7, %v7920_v2, 0.0  ;;  %v3213_v19 = vsel %vm9670_vm10, %v7920_v2, 0.0 }
 0x4eb   : > { %3024 = vadd.xlane.f32.xlu1 %v3001_v30  ;;  %3040 = vadd.xlane.f32.xlu2 %v3009_v37  ;;  %v3208_v28 = vsel %vm7571_vm3, %v7920_v2, 0.0  ;;  %v3215_v31 = vsel %vm9674_vm12, %v7920_v2, 0.0  ;;  %v3216_v34 = vsel %vm9671_vm14, %v7920_v2, 0.0  ;;  %v3211_v15 = vsel %vm7646_vm6, %v7920_v2, 0.0 }
 0x4ec   : > { %5097 = vrcp.f32 %v3131_v0  ;;  %3038 = vadd.xlane.f32.xlu0 %v3008_v63  ;;  %v3218_v3 = vsel %vm7747_vm13, %v7920_v2, 0.0  ;;  %v3219_v14 = vsel %vm9672_vm8, %v7920_v2, 0.0  ;;  %v3214_v27 = vsel %vm7711_vm9, %v7920_v2, 0.0 }
 0x4ed   : > { %v3221_v58 = vsel %vm7781_vm0, %v7920_v2, 0.0  ;;  %vm9675_vm1 = vnez %v9659_v18 }
 0x4ee   : > { %v3217_v44 = vsel %vm9675_vm1, %v7920_v2, 0.0 }
 0x4f2   : > { %v5098_v1 = vpop.eup %5097 }
 0x4f3   : > { %v3133_v23 = vmul.f32 %v5098_v1, %v3131_v0  ;;  %3030 = vadd.xlane.f32.xlu1 %v3004_v16  ;;  %3161 = vadd.xlane.f32.xlu2 %v3143_v39 }
 0x4f4   : > { %3159 = vadd.xlane.f32.xlu0 %v3142_v17 }
 0x4f5   : > { %v3134_v53 = vsub.f32 2.0, %v3133_v23 }
 0x4f7   : > { %v3135_v48 = vmul.f32 %v5098_v1, %v3134_v53 }
 0x4f9   : > { %v3136_v33 = vmul.f32 %v3135_v48, %v3116_v5 }
 0x4fb   : > { %v3137_v55 = vand.u32 2147483647, %v3136_v33  ;;  %3036 = vadd.xlane.f32.xlu1 %v3007_v61  ;;  %3167 = vadd.xlane.f32.xlu2 %v3146_v25  ;;  %v3220_v33 = vsel %vm7765_vm15, %v7920_v2, 0.0 }
 0x4fc   : > { %3165 = vadd.xlane.f32.xlu0 %v3145_v21 }
 0x4fd   : > { %v4166_v20 = vadd.f32 -0.7, %v3137_v55 }
 0x4ff   : > { %v3139_v42 = vmul.f32 %v4166_v20, %v4166_v20 }
 0x501   : > { %v7954_v5 = vadd.f32 %v3139_v42, %v2923_v54 }
 0x503   : > { %9673 = vst [vmem:[#allocation174_spill] sm:$0xff] %v7954_v5  ;;  %3157 = vadd.xlane.f32.xlu1 %v3141_v51  ;;  %3173 = vadd.xlane.f32.xlu2 %v3149_v7 }
 0x504   : > { %3171 = vadd.xlane.f32.xlu0 %v3148_v47 }
 0x50b   : > { %3163 = vadd.xlane.f32.xlu1 %v3144_v56  ;;  %3179 = vadd.xlane.f32.xlu2 %v3152_v9 }
 0x50c   : > { %3177 = vadd.xlane.f32.xlu0 %v3151_v52 }
 0x513   : > { %3169 = vadd.xlane.f32.xlu1 %v3147_v59  ;;  %3185 = vadd.xlane.f32.xlu2 %v3155_v41 }
 0x514   : > { %3183 = vadd.xlane.f32.xlu0 %v3154_v43 }
 0x516   : > { %v2950_v6 = vpop.xlane.xlu2 %2949  ;;  %v2948_v26 = vpop.xlane.xlu1 %2947 }
 0x517   : > { %2980 = vst.msk [vmem:[#allocation5 + $0x10] sm:$0xff] %vm2977_vm11, %v2950_v6  ;;  %v2946_v11 = vpop.xlane.xlu0 %2945 }
 0x518   : > { %2979 = vst.msk [vmem:[#allocation5 + $0x8] sm:$0xff] %vm2977_vm11, %v2948_v26 }
 0x519   : > { %2978 = vst.msk [vmem:[#allocation5] sm:$0xff] %vm2977_vm11, %v2946_v11 }
 0x51b   : > { %3175 = vadd.xlane.f32.xlu1 %v3150_v10  ;;  %3224 = vadd.xlane.f32.xlu2 %v3207_v60 }
 0x51c   : > { %3222 = vadd.xlane.f32.xlu0 %v3206_v8 }
 0x51e   : > { %v2960_v22 = vpop.xlane.xlu2 %2959  ;;  %v2952_v35 = vpop.xlane.xlu1 %2951 }
 0x51f   : > { %2985 = vst.msk [vmem:[#allocation5 + $0x38] sm:$0xff] %vm2977_vm11, %v2960_v22  ;;  %v2958_v12 = vpop.xlane.xlu0 %2957 }
 0x520   : > { %2981 = vst.msk [vmem:[#allocation5 + $0x18] sm:$0xff] %vm2977_vm11, %v2952_v35 }
 0x521   : > { %2984 = vst.msk [vmem:[#allocation5 + $0x30] sm:$0xff] %vm2977_vm11, %v2958_v12 }
 0x523   : > { %3181 = vadd.xlane.f32.xlu1 %v3153_v24  ;;  %3230 = vadd.xlane.f32.xlu2 %v3210_v45 }
 0x524   : > { %3228 = vadd.xlane.f32.xlu0 %v3209_v29 }
 0x526   : > { %v2966_v13 = vpop.xlane.xlu2 %2965  ;;  %v2954_v36 = vpop.xlane.xlu1 %2953 }
 0x527   : > { %2988 = vst.msk [vmem:[#allocation5 + $0x50] sm:$0xff] %vm2977_vm11, %v2966_v13  ;;  %v2964_v38 = vpop.xlane.xlu0 %2963 }
 0x528   : > { %2982 = vst.msk [vmem:[#allocation5 + $0x20] sm:$0xff] %vm2977_vm11, %v2954_v36 }
 0x529   : > { %2987 = vst.msk [vmem:[#allocation5 + $0x48] sm:$0xff] %vm2977_vm11, %v2964_v38 }
 0x52b   : > { %3187 = vadd.xlane.f32.xlu1 %v3156_v40  ;;  %3236 = vadd.xlane.f32.xlu2 %v3213_v19 }
 0x52c   : > { %3234 = vadd.xlane.f32.xlu0 %v3212_v32 }
 0x52e   : > { %v2972_v49 = vpop.xlane.xlu2 %2971  ;;  %v2956_v0 = vpop.xlane.xlu1 %2955 }
 0x52f   : > { %2991 = vst.msk [vmem:[#allocation5 + $0x68] sm:$0xff] %vm2977_vm11, %v2972_v49  ;;  %v2970_v30 = vpop.xlane.xlu0 %2969 }
 0x530   : > { %2983 = vst.msk [vmem:[#allocation5 + $0x28] sm:$0xff] %vm2977_vm11, %v2956_v0 }
 0x531   : > { %2990 = vst.msk [vmem:[#allocation5 + $0x60] sm:$0xff] %vm2977_vm11, %v2970_v30  ;;  %v8108_v30 = vmov 0.0  }
 0x533   : > { %3226 = vadd.xlane.f32.xlu1 %v3208_v28  ;;  %3242 = vadd.xlane.f32.xlu2 %v3216_v34  ;;  %v8110_v28 = vmov 0.0  }
 0x534   : > { %3240 = vadd.xlane.f32.xlu0 %v3215_v31 }
 0x536   : > { %v2962_v63 = vpop.xlane.xlu1 %2961  ;;  %v3011_v1 = vpop.xlane.xlu2 %3010 }
 0x537   : > { %2986 = vst.msk [vmem:[#allocation5 + $0x40] sm:$0xff] %vm2977_vm11, %v2962_v63  ;;  %v2976_v37 = vpop.xlane.xlu0 %2975 }
 0x538   : > { %2993 = vst.msk [vmem:[#allocation5 + $0x78] sm:$0xff] %vm2977_vm11, %v2976_v37 }
 0x539   : > { %3042 = vst.msk [vmem:[#allocation6] sm:$0xff] %vm2977_vm11, %v3011_v1 }
 0x53b   : > { %3232 = vadd.xlane.f32.xlu1 %v3211_v15  ;;  %3248 = vadd.xlane.f32.xlu2 %v3219_v14 }
 0x53c   : > { %3246 = vadd.xlane.f32.xlu0 %v3218_v3 }
 0x53e   : > { %v2968_v16 = vpop.xlane.xlu1 %2967  ;;  %v3017_v17 = vpop.xlane.xlu2 %3016 }
 0x53f   : > { %2989 = vst.msk [vmem:[#allocation5 + $0x58] sm:$0xff] %vm2977_vm11, %v2968_v16  ;;  %v3015_v23 = vpop.xlane.xlu0 %3014 }
 0x540   : > { %3044 = vst.msk [vmem:[#allocation6 + $0x10] sm:$0xff] %vm2977_vm11, %v3015_v23 }
 0x541   : > { %3045 = vst.msk [vmem:[#allocation6 + $0x18] sm:$0xff] %vm2977_vm11, %v3017_v17 }
 0x543   : > { %3238 = vadd.xlane.f32.xlu1 %v3214_v27 }
 0x544   : > { %3252 = vadd.xlane.f32.xlu0 %v3221_v58 }
 0x546   : > { %v2974_v4 = vpop.xlane.xlu1 %2973  ;;  %v3023_v53 = vpop.xlane.xlu2 %3022 }
 0x547   : > { %2992 = vst.msk [vmem:[#allocation5 + $0x70] sm:$0xff] %vm2977_vm11, %v2974_v4  ;;  %v3021_v39 = vpop.xlane.xlu0 %3020 }
 0x548   : > { %3047 = vst.msk [vmem:[#allocation6 + $0x28] sm:$0xff] %vm2977_vm11, %v3021_v39 }
 0x549   : > { %3048 = vst.msk [vmem:[#allocation6 + $0x30] sm:$0xff] %vm2977_vm11, %v3023_v53 }
 0x54b   : > { %3244 = vadd.xlane.f32.xlu1 %v3217_v44 }
 0x54e   : > { %v3013_v50 = vpop.xlane.xlu1 %3012  ;;  %v3029_v46 = vpop.xlane.xlu2 %3028 }
 0x54f   : > { %v3027_v48 = vpop.xlane.xlu0 %3026  ;;  %3043 = vst.msk [vmem:[#allocation6 + $0x8] sm:$0xff] %vm2977_vm11, %v3013_v50 }
 0x550   : > { %3050 = vst.msk [vmem:[#allocation6 + $0x40] sm:$0xff] %vm2977_vm11, %v3027_v48 }
 0x551   : > { %3051 = vst.msk [vmem:[#allocation6 + $0x48] sm:$0xff] %vm2977_vm11, %v3029_v46 }
 0x553   : > { %3250 = vadd.xlane.f32.xlu1 %v3220_v33 }
 0x556   : > { %v3019_v61 = vpop.xlane.xlu1 %3018  ;;  %v3035_v18 = vpop.xlane.xlu2 %3034 }
 0x557   : > { %v3033_v57 = vpop.xlane.xlu0 %3032  ;;  %3046 = vst.msk [vmem:[#allocation6 + $0x20] sm:$0xff] %vm2977_vm11, %v3019_v61 }
 0x558   : > { %3053 = vst.msk [vmem:[#allocation6 + $0x58] sm:$0xff] %vm2977_vm11, %v3033_v57 }
 0x559   : > { %3054 = vst.msk [vmem:[#allocation6 + $0x60] sm:$0xff] %vm2977_vm11, %v3035_v18 }
 0x55e   : > { %v3025_v55 = vpop.xlane.xlu1 %3024  ;;  %v3041_v25 = vpop.xlane.xlu2 %3040 }
 0x55f   : > { %v3039_v21 = vpop.xlane.xlu0 %3038  ;;  %3049 = vst.msk [vmem:[#allocation6 + $0x38] sm:$0xff] %vm2977_vm11, %v3025_v55 }
 0x560   : > { %3056 = vst.msk [vmem:[#allocation6 + $0x70] sm:$0xff] %vm2977_vm11, %v3039_v21 }
 0x561   : > { %3057 = vst.msk [vmem:[#allocation6 + $0x78] sm:$0xff] %vm2977_vm11, %v3041_v25 }
 0x566   : > { %v3031_v62 = vpop.xlane.xlu1 %3030  ;;  %v3162_v20 = vpop.xlane.xlu2 %3161 }
 0x567   : > { %v3160_v2 = vpop.xlane.xlu0 %3159  ;;  %3052 = vst.msk [vmem:[#allocation6 + $0x50] sm:$0xff] %vm2977_vm11, %v3031_v62 }
 0x568   : > { %3191 = vst.msk [vmem:[#allocation5 + $0x88] sm:$0xff] %vm2977_vm11, %v3160_v2 }
 0x569   : > { %3192 = vst.msk [vmem:[#allocation5 + $0x90] sm:$0xff] %vm2977_vm11, %v3162_v20 }
 0x56e   : > { %v3037_v54 = vpop.xlane.xlu1 %3036  ;;  %v3168_v51 = vpop.xlane.xlu2 %3167 }
 0x56f   : > { %v3166_v42 = vpop.xlane.xlu0 %3165  ;;  %3055 = vst.msk [vmem:[#allocation6 + $0x68] sm:$0xff] %vm2977_vm11, %v3037_v54 }
 0x570   : > { %3194 = vst.msk [vmem:[#allocation5 + $0xa0] sm:$0xff] %vm2977_vm11, %v3166_v42 }
 0x571   : > { %3195 = vst.msk [vmem:[#allocation5 + $0xa8] sm:$0xff] %vm2977_vm11, %v3168_v51 }
 0x576   : > { %v3158_v47 = vpop.xlane.xlu1 %3157  ;;  %v3174_v56 = vpop.xlane.xlu2 %3173 }
 0x577   : > { %v3172_v7 = vpop.xlane.xlu0 %3171  ;;  %3190 = vst.msk [vmem:[#allocation5 + $0x80] sm:$0xff] %vm2977_vm11, %v3158_v47 }
 0x578   : > { %3197 = vst.msk [vmem:[#allocation5 + $0xb8] sm:$0xff] %vm2977_vm11, %v3172_v7 }
 0x579   : > { %3198 = vst.msk [vmem:[#allocation5 + $0xc0] sm:$0xff] %vm2977_vm11, %v3174_v56 }
 0x57e   : > { %v3164_v52 = vpop.xlane.xlu1 %3163  ;;  %v3180_v59 = vpop.xlane.xlu2 %3179 }
 0x57f   : > { %v3178_v9 = vpop.xlane.xlu0 %3177  ;;  %3193 = vst.msk [vmem:[#allocation5 + $0x98] sm:$0xff] %vm2977_vm11, %v3164_v52 }
 0x580   : > { %3200 = vst.msk [vmem:[#allocation5 + $0xd0] sm:$0xff] %vm2977_vm11, %v3178_v9 }
 0x581   : > { %3201 = vst.msk [vmem:[#allocation5 + $0xd8] sm:$0xff] %vm2977_vm11, %v3180_v59 }
 0x586   : > { %v3170_v43 = vpop.xlane.xlu1 %3169  ;;  %v3186_v6 = vpop.xlane.xlu2 %3185 }
 0x587   : > { %v3184_v41 = vpop.xlane.xlu0 %3183  ;;  %3196 = vst.msk [vmem:[#allocation5 + $0xb0] sm:$0xff] %vm2977_vm11, %v3170_v43 }
 0x588   : > { %3203 = vst.msk [vmem:[#allocation5 + $0xe8] sm:$0xff] %vm2977_vm11, %v3184_v41 }
 0x589   : > { %3204 = vst.msk [vmem:[#allocation5 + $0xf0] sm:$0xff] %vm2977_vm11, %v3186_v6 }
 0x58e   : > { %v3176_v26 = vpop.xlane.xlu1 %3175  ;;  %v3225_v10 = vpop.xlane.xlu2 %3224 }
 0x58f   : > { %v3223_v11 = vpop.xlane.xlu0 %3222  ;;  %3199 = vst.msk [vmem:[#allocation5 + $0xc8] sm:$0xff] %vm2977_vm11, %v3176_v26 }
 0x590   : > { %3255 = vst.msk [vmem:[#allocation6 + $0x80] sm:$0xff] %vm2977_vm11, %v3223_v11 }
 0x591   : > { %3256 = vst.msk [vmem:[#allocation6 + $0x88] sm:$0xff] %vm2977_vm11, %v3225_v10 }
 0x596   : > { %v3182_v8 = vpop.xlane.xlu1 %3181  ;;  %v3231_v22 = vpop.xlane.xlu2 %3230 }
 0x597   : > { %v3229_v60 = vpop.xlane.xlu0 %3228  ;;  %3202 = vst.msk [vmem:[#allocation5 + $0xe0] sm:$0xff] %vm2977_vm11, %v3182_v8 }
 0x598   : > { %3258 = vst.msk [vmem:[#allocation6 + $0x98] sm:$0xff] %vm2977_vm11, %v3229_v60 }
 0x599   : > { %3259 = vst.msk [vmem:[#allocation6 + $0xa0] sm:$0xff] %vm2977_vm11, %v3231_v22 }
 0x59e   : > { %v3188_v35 = vpop.xlane.xlu1 %3187  ;;  %v3237_v24 = vpop.xlane.xlu2 %3236 }
 0x59f   : > { %v3235_v12 = vpop.xlane.xlu0 %3234  ;;  %3205 = vst.msk [vmem:[#allocation5 + $0xf8] sm:$0xff] %vm2977_vm11, %v3188_v35 }
 0x5a0   : > { %3261 = vst.msk [vmem:[#allocation6 + $0xb0] sm:$0xff] %vm2977_vm11, %v3235_v12 }
 0x5a1   : > { %3262 = vst.msk [vmem:[#allocation6 + $0xb8] sm:$0xff] %vm2977_vm11, %v3237_v24 }
 0x5a6   : > { %v3227_v29 = vpop.xlane.xlu1 %3226  ;;  %v3243_v13 = vpop.xlane.xlu2 %3242 }
 0x5a7   : > { %v3241_v45 = vpop.xlane.xlu0 %3240  ;;  %3257 = vst.msk [vmem:[#allocation6 + $0x90] sm:$0xff] %vm2977_vm11, %v3227_v29 }
 0x5a8   : > { %3264 = vst.msk [vmem:[#allocation6 + $0xc8] sm:$0xff] %vm2977_vm11, %v3241_v45 }
 0x5a9   : > { %3265 = vst.msk [vmem:[#allocation6 + $0xd0] sm:$0xff] %vm2977_vm11, %v3243_v13 }
 0x5ae   : > { %v3233_v36 = vpop.xlane.xlu1 %3232  ;;  %v3249_v40 = vpop.xlane.xlu2 %3248 }
 0x5af   : > { %v3247_v38 = vpop.xlane.xlu0 %3246  ;;  %3260 = vst.msk [vmem:[#allocation6 + $0xa8] sm:$0xff] %vm2977_vm11, %v3233_v36 }
 0x5b0   : > { %3267 = vst.msk [vmem:[#allocation6 + $0xe0] sm:$0xff] %vm2977_vm11, %v3247_v38 }
 0x5b1   : > { %3268 = vst.msk [vmem:[#allocation6 + $0xe8] sm:$0xff] %vm2977_vm11, %v3249_v40 }
 0x5b6   : > { %v3239_v32 = vpop.xlane.xlu1 %3238 }
 0x5b7   : > { %v3253_v19 = vpop.xlane.xlu0 %3252  ;;  %3263 = vst.msk [vmem:[#allocation6 + $0xc0] sm:$0xff] %vm2977_vm11, %v3239_v32 }
 0x5b8   : > { %3270 = vst.msk [vmem:[#allocation6 + $0xf8] sm:$0xff] %vm2977_vm11, %v3253_v19 }
 0x5be   : > { %v3245_v49 = vpop.xlane.xlu1 %3244 }
 0x5bf   : > { %3266 = vst.msk [vmem:[#allocation6 + $0xd8] sm:$0xff] %vm2977_vm11, %v3245_v49 }
 0x5c6   : > { %v3251_v0 = vpop.xlane.xlu1 %3250 }
 0x5c7   : > { %3269 = vst.msk [vmem:[#allocation6 + $0xf0] sm:$0xff] %vm2977_vm11, %v3251_v0 }
 0x5c8 LB: >> { %9676 = vst [vmem:[#allocation269_spill] sm:$0xff] %v5294_v30  ;;  %v5307_v31 = vmov 0   ;;  %s8124_s22 = sshll.u32 %s5302_s18, 7  ;;  %v3352_v59 = vld [vmem:[#allocation3] ss:$8 sm:$0x3]  ;;  %s5302_s18 = sphi %s8112_s18, %s3277_s18   ;;  %v5298_v28 = vphi %v8110_v28, %v9695_v28   ;;  %v5294_v30 = vphi %v8108_v30, %v9694_v30  }
 0x5c9   : >> { %9677 = vst [vmem:[#allocation270_spill] sm:$0xff] %v5298_v28  ;;  %5101 = vset.pattern.permute.xlu2 %v5307_v31  ;;  %5100 = vset.pattern.permute.xlu1 %v5307_v31  ;;  %s8127_s23 = scalar_lea.vmem [#allocation5], %s8124_s22  ;;  %s8145_s24 = scalar_lea.vmem [#allocation6], %s8124_s22  ;;  %v8165_v41 = vperm.slane %v3352_v59, 0  ;;  %v8167_v6 = vperm.slane %v3352_v59, 1 }
 0x5ca   : >> { %5099 = vset.pattern.permute.xlu0 %v5307_v31  ;;  %v3323_v34 = vld [vmem:[%s8127_s23 + $0x20] sm:$0xff]  ;;  %v3321_v63 = vld [vmem:[%s8127_s23 + $0x10] sm:$0xff]  ;;  %v3324_v1 = vld [vmem:[%s8127_s23 + $0x28] sm:$0xff]  ;;  %s3281_s25 = sshra.s32 %s8124_s22, 3  ;;  %s3277_s18 = sadd.s32 1, %s5302_s18  }
 0x5cb   : >> { %v3319_v37 = vld [vmem:[%s8127_s23] sm:$0xff]  ;;  %3376 = vperm.xlu2 %5101, %v3323_v34   ;;  %3366 = vperm.xlu1 %5100, %v3321_v63   ;;  %v3322_v15 = vld [vmem:[%s8127_s23 + $0x18] sm:$0xff]  ;;  %v3320_v3 = vld [vmem:[%s8127_s23 + $0x8] sm:$0xff]  ;;  %9678 = vst [vmem:[#allocation271_spill] sm:$0xff] %v8167_v6  ;;  %s4206_s26 = sshll.u32 %s3281_s25, 4  ;;  %p3274_p4 = scmp.ge.s32.totalorder %s3277_s18, 2  }
 0x5cc   : >> { %3356 = vperm.xlu0 %5099, %v3319_v37   ;;  %v3327_v14 = vld [vmem:[%s8127_s23 + $0x40] sm:$0xff]  ;;  %v3326_v16 = vld [vmem:[%s8127_s23 + $0x38] sm:$0xff]  ;;  %v3325_v23 = vld [vmem:[%s8127_s23 + $0x30] sm:$0xff]  ;;  %s8176_s27 = scalar_lea.vmem [#allocation2], %s4206_s26  ;;  %vm4016_vm2 = vcmask (%p3274_p4), 1040384   ;;  %s4203_s28 = sshll.u32 (%p3274_p4), %s5282_s9, 3 }
 0x5cd   : >> { %v3330_v17 = vld [vmem:[%s8127_s23 + $0x58] sm:$0xff]  ;;  %v3329_v27 = vld [vmem:[%s8127_s23 + $0x50] sm:$0xff]  ;;  %v3328_v58 = vld [vmem:[%s8127_s23 + $0x48] sm:$0xff]  ;;  %s4055_s2 = scalar_lea.hbm (%p3274_p4), %s8507_s1, %s4203_s28  ;;  %s4057_s12 = sshll.u32 (%p3274_p4), %s8106_s17, 4  ;;  %s4058_s12 = int_to_ptr.vmem [resolvable:$true] %s4057_s12 }
 0x5ce   : >> { %v3333_v4 = vld [vmem:[%s8127_s23 + $0x70] sm:$0xff]  ;;  %v3332_v39 = vld [vmem:[%s8127_s23 + $0x68] sm:$0xff]  ;;  %v3331_v53 = vld [vmem:[%s8127_s23 + $0x60] sm:$0xff]  ;;  %s4059_s15 = sshll.u32 (%p3274_p4), %s4055_s2, 4  ;;  %s4045_s18 = scalar_lea.sflag (%p3274_p4), [#allocation10], %s5404_s5  ;;  %s4060_s15 = int_to_ptr.hbm [resolvable:$true] %s4059_s15 }
 0x5cf   : >> { %v3338_v44 = vld [vmem:[%s8145_s24 + $0x10] sm:$0xff]  ;;  %v3337_v50 = vld [vmem:[%s8145_s24 + $0x8] sm:$0xff]  ;;  %v3336_v48 = vld [vmem:[%s8145_s24] sm:$0xff]  ;;  %s5210_s22 = sshra.s32 (%p3274_p4), %s4060_s15, 4  ;;  %s5216_s25 = scalar_lea.hbm (%p3274_p4), %s8507_s1, 16  ;;  %s5211_s22 = int_to_ptr.hbm [resolvable:$true] %s5210_s22 }
 0x5d0   : >> { %v3341_v46 = vld [vmem:[%s8145_s24 + $0x28] sm:$0xff]  ;;  %v3340_v33 = vld [vmem:[%s8145_s24 + $0x20] sm:$0xff]  ;;  %v3339_v61 = vld [vmem:[%s8145_s24 + $0x18] sm:$0xff]  ;;  %p5217_p8 = scmp.lt.s32.totalorder (%p3274_p4), %s5211_s22, %s8507_s1 }
 0x5d1   : >> { %v3344_v57 = vld [vmem:[%s8145_s24 + $0x40] sm:$0xff]  ;;  %v3343_v18 = vld [vmem:[%s8145_s24 + $0x38] sm:$0xff]  ;;  %v3342_v55 = vld [vmem:[%s8145_s24 + $0x30] sm:$0xff] }
 0x5d2   : >> { %v3347_v21 = vld [vmem:[%s8145_s24 + $0x58] sm:$0xff]  ;;  %v3346_v25 = vld [vmem:[%s8145_s24 + $0x50] sm:$0xff]  ;;  %v3345_v62 = vld [vmem:[%s8145_s24 + $0x48] sm:$0xff] }
 0x5d3   : >> { %3381 = vperm.xlu2 %5101, %v3324_v1   ;;  %3371 = vperm.xlu1 %5100, %v3322_v15   ;;  %v3350_v2 = vld [vmem:[%s8145_s24 + $0x70] sm:$0xff]  ;;  %v3349_v20 = vld [vmem:[%s8145_s24 + $0x68] sm:$0xff]  ;;  %v3348_v54 = vld [vmem:[%s8145_s24 + $0x60] sm:$0xff] }
 0x5d4   : >> { %3361 = vperm.xlu0 %5099, %v3320_v3   ;;  %v3334_v42 = vld [vmem:[%s8127_s23 + $0x78] sm:$0xff]  ;;  %v3353_v29 = vld [vmem:[#allocation4] sm:$0x3]  ;;  %v3294_v45 = vld [vmem:[%s8176_s27 + $0x40] sm:$0xff]  ;;  %s5212_s23 = scalar_lea.hbm (%p3274_p4), %s5211_s22, 8 }
 0x5d5   : >> { %v3351_v51 = vld [vmem:[%s8145_s24 + $0x78] sm:$0xff]  ;;  %v3295_v38 = vld [vmem:[%s8176_s27 + $0x48] sm:$0xff]  ;;  %v3296_v40 = vld [vmem:[%s8176_s27 + $0x50] sm:$0xff]  ;;  %v8182_v49 = vperm.slane %v3353_v29, 0  ;;  %v8184_v0 = vperm.slane %v3353_v29, 1  ;;  %p5213_p5 = scmp.ne.s32.totalorder (%p3274_p4), %s5211_s22, %s5212_s23  ;;  %p5218_p10 = scmp.lt.s32.totalorder (%p3274_p4), %s5216_s25, %s5212_s23 }
 0x5d6   : >> { %v3297_v19 = vld [vmem:[%s8176_s27 + $0x58] sm:$0xff]  ;;  %v3302_v15 = vld [vmem:[%s8176_s27 + $0x80] sm:$0xff]  ;;  %v3291_v59 = vld [vmem:[%s8176_s27 + $0x28] sm:$0xff] }
 0x5d7   : > { %p5214_p6 = pnand (%p3274_p4), %p5213_p5, %p5381_p9  ;;  %p5219_p13 = por (%p3274_p4), %p5218_p10, %p5217_p8 }
 0x5d9   : > { %p5215_p7 = pneg (%p3274_p4), %p5214_p6 }
 0x5db   : >> { %3396 = vperm.xlu2 %5101, %v3327_v14   ;;  %3391 = vperm.xlu1 %5100, %v3326_v16   ;;  %p5220_p0 = pnand (%p3274_p4), %p5219_p13, %p5215_p7 }
 0x5dc   : >> { %3386 = vperm.xlu0 %5099, %v3325_v23  }
 0x5e3   : >> { %3411 = vperm.xlu2 %5101, %v3330_v17   ;;  %3406 = vperm.xlu1 %5100, %v3329_v27  }
 0x5e4   : >> { %3401 = vperm.xlu0 %5099, %v3328_v58  }
 0x5eb   : >> { %3426 = vperm.xlu2 %5101, %v3333_v4   ;;  %3421 = vperm.xlu1 %5100, %v3332_v39  }
 0x5ec   : >> { %3416 = vperm.xlu0 %5099, %v3331_v53  }
 0x5f3   : >> { %3579 = vperm.xlu2 %5101, %v3338_v44   ;;  %3574 = vperm.xlu1 %5100, %v3337_v50  }
 0x5f4   : >> { %3569 = vperm.xlu0 %5099, %v3336_v48  }
 0x5fb   : >> { %3594 = vperm.xlu2 %5101, %v3341_v46   ;;  %3589 = vperm.xlu1 %5100, %v3340_v33   ;;  %v3303_v46 = vld [vmem:[%s8176_s27 + $0x88] sm:$0xff] }
 0x5fc   : >> { %3584 = vperm.xlu0 %5099, %v3339_v61  }
 0x603   : >> { %3609 = vperm.xlu2 %5101, %v3344_v57   ;;  %3604 = vperm.xlu1 %5100, %v3343_v18   ;;  %v3308_v57 = vld [vmem:[%s8176_s27 + $0xb0] sm:$0xff] }
 0x604   : >> { %3599 = vperm.xlu0 %5099, %v3342_v55  }
 0x60b   : >> { %3624 = vperm.xlu2 %5101, %v3347_v21   ;;  %3619 = vperm.xlu1 %5100, %v3346_v25  }
 0x60c   : >> { %3614 = vperm.xlu0 %5099, %v3345_v62  }
 0x613   : >> { %3639 = vperm.xlu2 %5101, %v3350_v2   ;;  %3634 = vperm.xlu1 %5100, %v3349_v20   ;;  %v3309_v2 = vld [vmem:[%s8176_s27 + $0xb8] sm:$0xff] }
 0x614   : >> { %3629 = vperm.xlu0 %5099, %v3348_v54  }
 0x61b   : >> { %3431 = vperm.xlu1 %5100, %v3334_v42   ;;  %v3290_v42 = vld [vmem:[%s8176_s27 + $0x20] sm:$0xff] }
 0x61c   : >> { %3644 = vperm.xlu0 %5099, %v3351_v51  }
 0x625   : >> { %v3377_v47 = vpop.permute.xlu2 %3376 }
 0x626   : >> { %v3447_v26 = vmul.f32 %v8165_v41, %v3377_v47  ;;  %v3448_v11 = vmul.f32 %v8167_v6, %v3377_v47 }
 0x628   : >> { %v3479_v12 = vmul.f32 640.0, %v3447_v26  ;;  %v3480_v13 = vmul.f32 640.0, %v3448_v11  ;;  %v3287_v26 = vld [vmem:[%s8176_s27 + $0x8] sm:$0xff] }
 0x62a   : >> { %v3511_v31 = vsub.f32 %v3294_v45, %v3479_v12  ;;  %v3512_v37 = vsub.f32 %v3295_v38, %v3480_v13 }
 0x62c   : >> { %v8200_v48 = vmul.f32 0.0015649452, %v3511_v31  ;;  %v8204_v18 = vmul.f32 0.0015649452, %v3512_v37  ;;  %v3314_v31 = vld [vmem:[%s8176_s27 + $0xe0] sm:$0xff] }
 0x62d   : >> { %v3382_v7 = vpop.permute.xlu2 %3381 }
 0x62e   : >> { %v3449_v10 = vmul.f32 %v8165_v41, %v3382_v7  ;;  %v3450_v8 = vmul.f32 %v8167_v6, %v3382_v7 }
 0x630   : >> { %v3481_v36 = vmul.f32 640.0, %v3449_v10  ;;  %v3482_v32 = vmul.f32 640.0, %v3450_v8 }
 0x632   : >> { %v3513_v1 = vsub.f32 %v3296_v40, %v3481_v36  ;;  %v3514_v16 = vsub.f32 %v3297_v19, %v3482_v32 }
 0x634   : >> { %v8206_v55 = vmul.f32 0.0015649452, %v3513_v1  ;;  %v8208_v62 = vmul.f32 0.0015649452, %v3514_v16 }
 0x635   : >> { %v3397_v56 = vpop.permute.xlu2 %3396 }
 0x636   : >> { %v3455_v24 = vmul.f32 %v8165_v41, %v3397_v56  ;;  %v3456_v34 = vmul.f32 %v8167_v6, %v3397_v56 }
 0x638   : >> { %v3487_v63 = vmul.f32 640.0, %v3455_v24  ;;  %v3488_v33 = vmul.f32 640.0, %v3456_v34 }
 0x63a   : >> { %v3519_v61 = vsub.f32 %v3302_v15, %v3487_v63  ;;  %v3292_v15 = vld [vmem:[%s8176_s27 + $0x30] sm:$0xff] }
 0x63d   : >> { %v3412_v52 = vpop.permute.xlu2 %3411  ;;  %v3367_v9 = vpop.permute.xlu1 %3366 }
 0x63e   : >> { %v3357_v43 = vpop.permute.xlu0 %3356  ;;  %v3461_v3 = vmul.f32 %v8165_v41, %v3412_v52  ;;  %v3462_v14 = vmul.f32 %v8167_v6, %v3412_v52  ;;  %v3443_v23 = vmul.f32 %v8165_v41, %v3367_v9  ;;  %v3444_v17 = vmul.f32 %v8167_v6, %v3367_v9 }
 0x63f   : >> { %v3439_v4 = vmul.f32 %v8165_v41, %v3357_v43  ;;  %v3440_v39 = vmul.f32 %v8167_v6, %v3357_v43  ;;  %v3520_v52 = vsub.f32 %v3303_v46, %v3488_v33  ;;  %v8216_v9 = vmul.f32 0.0015649452, %v3519_v61  ;;  %v3286_v43 = vld [vmem:[%s8176_s27] sm:$0xff] }
 0x640   : >> { %v3493_v21 = vmul.f32 640.0, %v3461_v3  ;;  %v3494_v25 = vmul.f32 640.0, %v3462_v14  ;;  %v3475_v20 = vmul.f32 640.0, %v3443_v23  ;;  %v3476_v51 = vmul.f32 640.0, %v3444_v17 }
 0x641   : >> { %v3471_v47 = vmul.f32 640.0, %v3439_v4  ;;  %v3472_v7 = vmul.f32 640.0, %v3440_v39  ;;  %v8233_v63 = vmul.f32 0.0015649452, %v3520_v52  ;;  %v3288_v4 = vld [vmem:[%s8176_s27 + $0x10] sm:$0xff]  ;;  %v8248_v39 = vld [vmem:[%s8176_s27 + $0x18] sm:$0xff] }
 0x642   : >> { %v3525_v8 = vsub.f32 %v3308_v57, %v3493_v21  ;;  %v3526_v12 = vsub.f32 %v3309_v2, %v3494_v25  ;;  %v3507_v45 = vsub.f32 %v3290_v42, %v3475_v20 }
 0x643   : >> { %v3503_v32 = vsub.f32 %v3286_v43, %v3471_v47  ;;  %v3504_v19 = vsub.f32 %v3287_v26, %v3472_v7 }
 0x644   : >> { %v8240_v14 = vmul.f32 0.0015649452, %v3525_v8  ;;  %v8242_v16 = vmul.f32 0.0015649452, %v3526_v12 }
 0x645   : >> { %v3427_v60 = vpop.permute.xlu2 %3426  ;;  %v3372_v22 = vpop.permute.xlu1 %3371  ;;  %v8256_v61 = vmul.f32 0.0015649452, %v3503_v32  ;;  %v8258_v57 = vmul.f32 0.0015649452, %v3504_v19 }
 0x646   : >> { %v8173_v35 = vpop.permute.xlu0 %3361  ;;  %v3467_v11 = vmul.f32 %v8165_v41, %v3427_v60  ;;  %v3468_v10 = vmul.f32 %v8167_v6, %v3427_v60  ;;  %v3445_v24 = vmul.f32 %v8165_v41, %v3372_v22  ;;  %v3446_v29 = vmul.f32 %v8167_v6, %v3372_v22  ;;  %v3315_v22 = vld [vmem:[%s8176_s27 + $0xe8] sm:$0xff] }
 0x647   : >> { %v3441_v13 = vmul.f32 %v8165_v41, %v8173_v35  ;;  %v3442_v36 = vmul.f32 %v8167_v6, %v8173_v35  ;;  %v3508_v60 = vsub.f32 %v3291_v59, %v3476_v51  ;;  %v8237_v35 = vld [vmem:[%s8176_s27 + $0x38] sm:$0xff] }
 0x648   : >> { %v3499_v37 = vmul.f32 640.0, %v3467_v11  ;;  %v3500_v1 = vmul.f32 640.0, %v3468_v10  ;;  %v3477_v23 = vmul.f32 640.0, %v3445_v24  ;;  %v3478_v17 = vmul.f32 640.0, %v3446_v29 }
 0x649   : >> { %v8254_v33 = vmul.f32 0.0015649452, %v3508_v60  ;;  %v3301_v60 = vld [vmem:[%s8176_s27 + $0x78] sm:$0xff] }
 0x64a   : >> { %v3531_v2 = vsub.f32 %v3314_v31, %v3499_v37  ;;  %v3532_v20 = vsub.f32 %v3315_v22, %v3500_v1  ;;  %v3509_v7 = vsub.f32 %v3292_v15, %v3477_v23  ;;  %v3510_v52 = vsub.f32 %v8237_v35, %v3478_v17  ;;  %v3298_v1 = vld [vmem:[%s8176_s27 + $0x60] sm:$0xff]  ;;  %v3299_v15 = vld [vmem:[%s8176_s27 + $0x68] sm:$0xff] }
 0x64c   : >> { %v8287_v19 = vmul.f32 0.0015649452, %v3531_v2  ;;  %v8289_v37 = vmul.f32 0.0015649452, %v3532_v20  ;;  %v8300_v20 = vmul.f32 0.0015649452, %v3510_v52 }
 0x64d   : >> { %v3580_v27 = vpop.permute.xlu2 %3579  ;;  %v8192_v58 = vpop.permute.xlu1 %3391 }
 0x64e   : >> { %v3656_v53 = vmul.f32 %v8182_v49, %v3580_v27  ;;  %v3657_v44 = vmul.f32 %v8184_v0, %v3580_v27  ;;  %v8198_v50 = vpop.permute.xlu0 %3386  ;;  %v8244_v27 = vmul.f32 0.0015649452, %v3507_v45  ;;  %v3453_v46 = vmul.f32 %v8165_v41, %v8192_v58  ;;  %9679 = vst [vmem:[#allocation272_spill] sm:$0xff] %v8287_v19 }
 0x64f   : >> { %v3454_v42 = vmul.f32 %v8167_v6, %v8192_v58  ;;  %v3451_v59 = vmul.f32 %v8165_v41, %v8198_v50  ;;  %v3452_v43 = vmul.f32 %v8167_v6, %v8198_v50  ;;  %9680 = vst [vmem:[#allocation273_spill] sm:$0xff] %v8289_v37 }
 0x650   : >> { %v8211_v54 = vadd.f32 1e-08, %v3656_v53  ;;  %v8214_v56 = vadd.f32 1e-08, %v3657_v44  ;;  %v3473_v53 = vmul.f32 640.0, %v3441_v13  ;;  %v8250_v44 = vmul.f32 640.0, %v3442_v36 }
 0x651   : >> { %v3485_v10 = vmul.f32 640.0, %v3453_v46  ;;  %v3486_v32 = vmul.f32 640.0, %v3454_v42  ;;  %v3483_v31 = vmul.f32 640.0, %v3451_v59  ;;  %v3484_v22 = vmul.f32 640.0, %v3452_v43 }
 0x652   : >> { %5102 = vrcp.f32 %v8211_v54  ;;  %v3505_v26 = vsub.f32 %v3288_v4, %v3473_v53  ;;  %v3506_v11 = vsub.f32 %v8248_v39, %v8250_v44  ;;  %v3306_v4 = vld [vmem:[%s8176_s27 + $0xa0] sm:$0xff]  ;;  %v8297_v53 = vmul.f32 0.0015649452, %v3509_v7 }
 0x653   : >> { %5104 = vrcp.f32 %v8214_v56  ;;  %v3518_v46 = vsub.f32 %v3301_v60, %v3486_v32  ;;  %v3515_v42 = vsub.f32 %v3298_v1, %v3483_v31  ;;  %v3516_v59 = vsub.f32 %v3299_v15, %v3484_v22  ;;  %v3305_v60 = vld [vmem:[%s8176_s27 + $0x98] sm:$0xff] }
 0x654   : >> { %v8302_v43 = vmul.f32 0.0015649452, %v3505_v26  ;;  %v8304_v7 = vmul.f32 0.0015649452, %v3506_v11 }
 0x655   : >> { %v3595_v38 = vpop.permute.xlu2 %3594  ;;  %v3407_v40 = vpop.permute.xlu1 %3406  ;;  %v8310_v32 = vmul.f32 0.0015649452, %v3518_v46  ;;  %v8313_v31 = vmul.f32 0.0015649452, %v3515_v42  ;;  %v8315_v22 = vmul.f32 0.0015649452, %v3516_v59 }
 0x656   : >> { %v3402_v34 = vpop.permute.xlu0 %3401  ;;  %v3662_v3 = vmul.f32 %v8182_v49, %v3595_v38  ;;  %v3663_v21 = vmul.f32 %v8184_v0, %v3595_v38  ;;  %v3459_v58 = vmul.f32 %v8165_v41, %v3407_v40  ;;  %v3460_v45 = vmul.f32 %v8167_v6, %v3407_v40  ;;  %v3300_v38 = vld [vmem:[%s8176_s27 + $0x70] sm:$0xff] }
 0x657   : >> { %v3517_v17 = vsub.f32 %v3300_v38, %v3485_v10  ;;  %v3304_v38 = vld [vmem:[%s8176_s27 + $0x90] sm:$0xff] }
 0x658   : >> { %v5103_v25 = vpop.eup %5102  ;;  %v8263_v51 = vadd.f32 1e-08, %v3662_v3  ;;  %v8276_v29 = vadd.f32 1e-08, %v3663_v21  ;;  %v3491_v35 = vmul.f32 640.0, %v3459_v58  ;;  %v3458_v3 = vmul.f32 %v8167_v6, %v3402_v34  ;;  %v3307_v21 = vld [vmem:[%s8176_s27 + $0xa8] sm:$0xff] }
 0x659   : >> { %v5105_v47 = vpop.eup %5104  ;;  %v3752_v24 = vmul.f32 %v5103_v25, %v8211_v54  ;;  %v3492_v39 = vmul.f32 640.0, %v3460_v45 }
 0x65a   : >> { %v3753_v36 = vmul.f32 %v5105_v47, %v8214_v56  ;;  %5106 = vrcp.f32 %v8263_v51  ;;  %v3457_v56 = vmul.f32 %v8165_v41, %v3402_v34  ;;  %v3523_v10 = vsub.f32 %v3306_v4, %v3491_v35 }
 0x65b   : >> { %v3784_v23 = vsub.f32 2.0, %v3752_v24  ;;  %5108 = vrcp.f32 %v8276_v29 }
 0x65c   : >> { %v3785_v44 = vsub.f32 2.0, %v3753_v36  ;;  %v3489_v58 = vmul.f32 640.0, %v3457_v56  ;;  %v3524_v36 = vsub.f32 %v3307_v21, %v3492_v39  ;;  %v8319_v15 = vmul.f32 0.0015649452, %v3523_v10 }
 0x65d   : >> { %v3610_v8 = vpop.permute.xlu2 %3609  ;;  %v8273_v12 = vpop.permute.xlu1 %3421  ;;  %v3816_v45 = vmul.f32 %v5103_v25, %v3784_v23 }
 0x65e   : >> { %v3668_v50 = vmul.f32 %v8182_v49, %v3610_v8  ;;  %v8280_v13 = vpop.permute.xlu0 %3416  ;;  %v3669_v54 = vmul.f32 %v8184_v0, %v3610_v8  ;;  %v3490_v8 = vmul.f32 640.0, %v3458_v3  ;;  %v3817_v52 = vmul.f32 %v5105_v47, %v3785_v44 }
 0x65f   : >> { %v3521_v35 = vsub.f32 %v3304_v38, %v3489_v58  ;;  %v8322_v4 = vmul.f32 0.0015649452, %v3524_v36  ;;  %v3465_v39 = vmul.f32 %v8165_v41, %v8273_v12  ;;  %v3466_v21 = vmul.f32 %v8167_v6, %v8273_v12 }
 0x660   : >> { %v3700_v40 = vadd.f32 1e-08, %v3668_v50  ;;  %v3701_v2 = vadd.f32 1e-08, %v3669_v54  ;;  %v5107_v34 = vpop.eup %5106  ;;  %v8306_v50 = vmul.f32 0.0015649452, %v3517_v17  ;;  %v3522_v56 = vsub.f32 %v3305_v60, %v3490_v8 }
 0x661   : >> { %v5109_v26 = vpop.eup %5108  ;;  %v3758_v11 = vmul.f32 %v5107_v34, %v8263_v51  ;;  %v3848_v17 = vmul.f32 %v3816_v45, %v8244_v27  ;;  %v3849_v51 = vmul.f32 %v3817_v52, %v8254_v33  ;;  %v8334_v45 = vmul.f32 0.0015649452, %v3521_v35  ;;  %v3312_v52 = vld [vmem:[%s8176_s27 + $0xd0] sm:$0xff]  ;;  %v3313_v35 = vld [vmem:[%s8176_s27 + $0xd8] sm:$0xff] }
 0x662   : >> { %5110 = vrcp.f32 %v3700_v40  ;;  %v3759_v46 = vmul.f32 %v5109_v26, %v8276_v29  ;;  %v3497_v29 = vmul.f32 640.0, %v3465_v39  ;;  %v3463_v12 = vmul.f32 %v8165_v41, %v8280_v13 }
 0x663   : >> { %5112 = vrcp.f32 %v3701_v2  ;;  %v3790_v59 = vsub.f32 2.0, %v3758_v11  ;;  %v3880_v38 = vand.u32 2147483647, %v3848_v17  ;;  %v8340_v39 = vmul.f32 0.0015649452, %v3522_v56 }
 0x664   : >> { %v3791_v60 = vsub.f32 2.0, %v3759_v46  ;;  %v3529_v28 = vsub.f32 %v3312_v52, %v3497_v29  ;;  %v3464_v17 = vmul.f32 %v8167_v6, %v8280_v13 }
 0x665   : >> { %v3575_v24 = vpop.permute.xlu1 %3574  ;;  %v3625_v47 = vpop.permute.xlu2 %3624 }
 0x666   : >> { %v3654_v54 = vmul.f32 %v8182_v49, %v3575_v24  ;;  %v3655_v25 = vmul.f32 %v8184_v0, %v3575_v24  ;;  %v3570_v1 = vpop.permute.xlu0 %3569  ;;  %v3674_v10 = vmul.f32 %v8182_v49, %v3625_v47  ;;  %v3675_v24 = vmul.f32 %v8184_v0, %v3625_v47 }
 0x667   : >> { %v3652_v42 = vmul.f32 %v8182_v49, %v3570_v1  ;;  %v3653_v27 = vmul.f32 %v8184_v0, %v3570_v1  ;;  %v3881_v47 = vand.u32 2147483647, %v3849_v51  ;;  %v3823_v37 = vmul.f32 %v5109_v26, %v3791_v60 }
 0x668   : >> { %v3686_v3 = vadd.f32 1e-08, %v3654_v54  ;;  %v5111_v23 = vpop.eup %5110  ;;  %v3687_v44 = vadd.f32 1e-08, %v3655_v25  ;;  %v3498_v54 = vmul.f32 640.0, %v3466_v21  ;;  %v3822_v25 = vmul.f32 %v5107_v34, %v3790_v59 }
 0x669   : >> { %v5113_v58 = vpop.eup %5112  ;;  %v3764_v8 = vmul.f32 %v5111_v23, %v3700_v40  ;;  %v3684_v33 = vadd.f32 1e-08, %v3652_v42  ;;  %v3685_v36 = vadd.f32 1e-08, %v3653_v27  ;;  %v3706_v1 = vadd.f32 1e-08, %v3674_v10 }
 0x66a   : >> { %5114 = vrcp.f32 %v3686_v3  ;;  %v3765_v40 = vmul.f32 %v5113_v58, %v3701_v2  ;;  %v3707_v5 = vadd.f32 1e-08, %v3675_v24  ;;  %v4174_v27 = vadd.f32 -0.7, %v3880_v38 }
 0x66b   : >> { %5116 = vrcp.f32 %v3687_v44  ;;  %v3796_v42 = vsub.f32 2.0, %v3764_v8  ;;  %v3495_v34 = vmul.f32 640.0, %v3463_v12  ;;  %v3854_v59 = vmul.f32 %v3822_v25, %v8206_v55 }
 0x66c   : >> { %5118 = vrcp.f32 %v3684_v33  ;;  %v3797_v51 = vsub.f32 2.0, %v3765_v40  ;;  %v3530_v10 = vsub.f32 %v3313_v35, %v3498_v54  ;;  %v4175_v56 = vadd.f32 -0.7, %v3881_v47  ;;  %v3310_v54 = vld [vmem:[%s8176_s27 + $0xc0] sm:$0xff] }
 0x66d   : >> { %v3590_v11 = vpop.permute.xlu1 %3589  ;;  %5120 = vrcp.f32 %v3685_v36  ;;  %v3828_v24 = vmul.f32 %v5111_v23, %v3796_v42  ;;  %v3640_v29 = vpop.permute.xlu2 %3639  ;;  %v8347_v19 = vmul.f32 0.0015649452, %v3529_v28  ;;  %v8349_v55 = vmul.f32 %v4174_v27, %v4174_v27  ;;  %v3311_v42 = vld [vmem:[%s8176_s27 + $0xc8] sm:$0xff] }
 0x66e   : >> { %v3660_v46 = vmul.f32 %v8182_v49, %v3590_v11  ;;  %5122 = vrcp.f32 %v3706_v1  ;;  %v3661_v13 = vmul.f32 %v8184_v0, %v3590_v11  ;;  %v3585_v38 = vpop.permute.xlu0 %3584  ;;  %v3855_v60 = vmul.f32 %v3823_v37, %v8208_v62 }
 0x66f   : >> { %5124 = vrcp.f32 %v3707_v5  ;;  %9681 = vst [vmem:[#allocation274_spill] sm:$0xff] %v8347_v19  ;;  %v3496_v25 = vmul.f32 640.0, %v3464_v17  ;;  %v3886_v23 = vand.u32 2147483647, %v3854_v59  ;;  %v3829_v47 = vmul.f32 %v5113_v58, %v3797_v51 }
 0x670   : >> { %v5115_v30 = vpop.eup %5114  ;;  %v3680_v11 = vmul.f32 %v8182_v49, %v3640_v29  ;;  %v3860_v28 = vmul.f32 %v3828_v24, %v8216_v9  ;;  %v8356_v19 = vmul.f32 0.0015649452, %v3530_v10  ;;  %v3527_v27 = vsub.f32 %v3310_v54, %v3495_v34 }
 0x671   : >> { %v5117_v21 = vpop.eup %5116  ;;  %v3750_v2 = vmul.f32 %v5115_v30, %v3686_v3  ;;  %v3692_v3 = vadd.f32 1e-08, %v3660_v46  ;;  %v3681_v62 = vmul.f32 %v8184_v0, %v3640_v29  ;;  %v8359_v17 = vmul.f32 %v4175_v56, %v4175_v56 }
 0x672   : >> { %v5119_v8 = vpop.eup %5118  ;;  %v3751_v26 = vmul.f32 %v5117_v21, %v3687_v44  ;;  %9682 = vst [vmem:[#allocation275_spill] sm:$0xff] %v8356_v19  ;;  %v3887_v58 = vand.u32 2147483647, %v3855_v60  ;;  %v4180_v51 = vadd.f32 -0.7, %v3886_v23  ;;  %v3861_v9 = vmul.f32 %v3829_v47, %v8233_v63 }
 0x673   : >> { %v5121_v52 = vpop.eup %5120  ;;  %v3748_v12 = vmul.f32 %v5119_v8, %v3684_v33  ;;  %v3782_v40 = vsub.f32 2.0, %v3750_v2  ;;  %v3693_v33 = vadd.f32 1e-08, %v3661_v13  ;;  %5126 = vrcp.f32 %v3692_v3 }
 0x674   : >> { %v3749_v35 = vmul.f32 %v5121_v52, %v3685_v36  ;;  %v5123_v46 = vpop.eup %5122  ;;  %v3783_v6 = vsub.f32 2.0, %v3751_v26  ;;  %v3528_v2 = vsub.f32 %v3311_v42, %v3496_v25  ;;  %v8362_v24 = vadd.f32 1e-08, %v3680_v11 }
 0x675   : >> { %v3780_v44 = vsub.f32 2.0, %v3748_v12  ;;  %v5125_v37 = vpop.eup %5124  ;;  %v3814_v36 = vmul.f32 %v5115_v30, %v3782_v40  ;;  %v3605_v59 = vpop.permute.xlu1 %3604  ;;  %v3892_v13 = vand.u32 2147483647, %v3860_v28  ;;  %v3770_v12 = vmul.f32 %v5123_v46, %v3706_v1 }
 0x676   : >> { %v3781_v10 = vsub.f32 2.0, %v3749_v35  ;;  %5128 = vrcp.f32 %v3693_v33  ;;  %v3771_v26 = vmul.f32 %v5125_v37, %v3707_v5  ;;  %v3815_v29 = vmul.f32 %v5117_v21, %v3783_v6  ;;  %v3600_v5 = vpop.permute.xlu0 %3599 }
 0x677   : >> { %v3812_v34 = vmul.f32 %v5119_v8, %v3780_v44  ;;  %v8364_v54 = vadd.f32 1e-08, %v3681_v62  ;;  %v3658_v56 = vmul.f32 %v8182_v49, %v3585_v38  ;;  %v8367_v60 = vmul.f32 0.0015649452, %v3527_v27 }
 0x678   : >> { %v8369_v30 = vmul.f32 0.0015649452, %v3528_v2  ;;  %v3846_v25 = vmul.f32 %v3814_v36, %v8302_v43  ;;  %v3659_v63 = vmul.f32 %v8184_v0, %v3585_v38  ;;  %v4181_v23 = vadd.f32 -0.7, %v3887_v58 }
 0x679   : >> { %9683 = vst [vmem:[#allocation276_spill] sm:$0xff] %v8367_v60  ;;  %v5127_v40 = vpop.eup %5126  ;;  %v8373_v47 = vmul.f32 %v4180_v51, %v4180_v51  ;;  %v3893_v1 = vand.u32 2147483647, %v3861_v9  ;;  %v3813_v8 = vmul.f32 %v5121_v52, %v3781_v10  ;;  %v4186_v6 = vadd.f32 -0.7, %v3892_v13 }
 0x67a   : >> { %9684 = vst [vmem:[#allocation277_spill] sm:$0xff] %v8369_v30  ;;  %v3802_v21 = vsub.f32 2.0, %v3770_v12  ;;  %v3844_v42 = vmul.f32 %v3812_v34, %v8256_v61  ;;  %5130 = vrcp.f32 %v8362_v24  ;;  %v3803_v35 = vsub.f32 2.0, %v3771_v26 }
 0x67b   : >> { %v3847_v11 = vmul.f32 %v3815_v29, %v8304_v7  ;;  %5132 = vrcp.f32 %v8364_v54  ;;  %v3690_v43 = vadd.f32 1e-08, %v3658_v56  ;;  %v3878_v28 = vand.u32 2147483647, %v3846_v25 }
 0x67c   : >> { %v5129_v38 = vpop.eup %5128  ;;  %v3756_v44 = vmul.f32 %v5127_v40, %v3692_v3  ;;  %v3691_v27 = vadd.f32 1e-08, %v3659_v63  ;;  %v3666_v62 = vmul.f32 %v8182_v49, %v3605_v59  ;;  %v8380_v52 = vmul.f32 %v4181_v23, %v4181_v23 }
 0x67d   : >> { %v8382_v58 = vadd.f32 -0.7, %v3893_v1  ;;  %v3845_v61 = vmul.f32 %v3813_v8, %v8258_v57  ;;  %5134 = vrcp.f32 %v3690_v43  ;;  %v8385_v2 = vmul.f32 %v4186_v6, %v4186_v6  ;;  %v3620_v51 = vpop.permute.xlu1 %3619 }
 0x67e   : >> { %v3834_v36 = vmul.f32 %v5123_v46, %v3802_v21  ;;  %v3876_v7 = vand.u32 2147483647, %v3844_v42  ;;  %5136 = vrcp.f32 %v3691_v27  ;;  %v8387_v9 = vmul.f32 %v5125_v37, %v3803_v35  ;;  %v3615_v42 = vpop.permute.xlu0 %3614 }
 0x67f   : >> { %v3879_v10 = vand.u32 2147483647, %v3847_v11  ;;  %v3757_v3 = vmul.f32 %v5129_v38, %v3693_v33  ;;  %v3667_v13 = vmul.f32 %v8184_v0, %v3605_v59  ;;  %v4172_v34 = vadd.f32 -0.7, %v3878_v28 }
 0x680   : >> { %v8390_v12 = vpop.eup %5130  ;;  %v3788_v26 = vsub.f32 2.0, %v3756_v44  ;;  %v3698_v29 = vadd.f32 1e-08, %v3666_v62  ;;  %v3664_v57 = vmul.f32 %v8182_v49, %v3600_v5  ;;  %v3877_v25 = vand.u32 2147483647, %v3845_v61 }
 0x681   : >> { %v8393_v56 = vpop.eup %5132  ;;  %v3699_v46 = vadd.f32 1e-08, %v3667_v13  ;;  %v3665_v63 = vmul.f32 %v8184_v0, %v3600_v5  ;;  %v3672_v37 = vmul.f32 %v8182_v49, %v3620_v51  ;;  %v4170_v23 = vadd.f32 -0.7, %v3876_v7 }
 0x682   : >> { %5138 = vrcp.f32 %v3698_v29  ;;  %v3696_v33 = vadd.f32 1e-08, %v3664_v57  ;;  %v3673_v59 = vmul.f32 %v8184_v0, %v3620_v51  ;;  %v3789_v8 = vsub.f32 2.0, %v3757_v3 }
 0x683   : >> { %v5135_v1 = vpop.eup %5134  ;;  %5140 = vrcp.f32 %v3699_v46  ;;  %v3697_v6 = vadd.f32 1e-08, %v3665_v63  ;;  %v3704_v21 = vadd.f32 1e-08, %v3672_v37  ;;  %v3820_v11 = vmul.f32 %v5127_v40, %v3788_v26 }
 0x684   : >> { %v5137_v35 = vpop.eup %5136  ;;  %v3754_v28 = vmul.f32 %v5135_v1, %v3690_v43  ;;  %5142 = vrcp.f32 %v3696_v33  ;;  %v3705_v44 = vadd.f32 1e-08, %v3673_v59  ;;  %v4173_v62 = vadd.f32 -0.7, %v3879_v10 }
 0x685   : >> { %v4171_v5 = vadd.f32 -0.7, %v3877_v25  ;;  %v3755_v61 = vmul.f32 %v5137_v35, %v3691_v27  ;;  %5144 = vrcp.f32 %v3697_v6  ;;  %v3942_v7 = vmul.f32 %v4172_v34, %v4172_v34  ;;  %v3635_v19 = vpop.permute.xlu1 %3634 }
 0x686   : >> { %v3940_v13 = vmul.f32 %v4170_v23, %v4170_v23  ;;  %v3786_v57 = vsub.f32 2.0, %v3754_v28  ;;  %v3670_v51 = vmul.f32 %v8182_v49, %v3615_v42  ;;  %v8400_v3 = vmul.f32 %v3834_v36, %v8240_v14 }
 0x687   : >> { %v3787_v63 = vsub.f32 2.0, %v3755_v61  ;;  %5146 = vrcp.f32 %v3704_v21  ;;  %v3671_v37 = vmul.f32 %v8184_v0, %v3615_v42  ;;  %v3821_v43 = vmul.f32 %v5129_v38, %v3789_v8 }
 0x688   : >> { %v5139_v40 = vpop.eup %5138  ;;  %v3852_v26 = vmul.f32 %v3820_v11, %v8200_v48  ;;  %v3818_v10 = vmul.f32 %v5135_v1, %v3786_v57  ;;  %5148 = vrcp.f32 %v3705_v44  ;;  %v3943_v25 = vmul.f32 %v4173_v62, %v4173_v62 }
 0x689   : >> { %v5141_v27 = vpop.eup %5140  ;;  %v3941_v34 = vmul.f32 %v4171_v5, %v4171_v5  ;;  %v3819_v23 = vmul.f32 %v5137_v35, %v3787_v63  ;;  %v3762_v59 = vmul.f32 %v5139_v40, %v3698_v29  ;;  %v3972_v30 = vadd.f32 %v3942_v7, %v3940_v13 }
 0x68a   : >> { %v5143_v28 = vpop.eup %5142  ;;  %v3850_v14 = vmul.f32 %v3818_v10, %v8297_v53  ;;  %v3763_v36 = vmul.f32 %v5141_v27, %v3699_v46  ;;  %v3702_v61 = vadd.f32 1e-08, %v3670_v51  ;;  %v3703_v48 = vadd.f32 1e-08, %v3671_v37 }
 0x68b   : >> { %v5145_v60 = vpop.eup %5144  ;;  %v3851_v42 = vmul.f32 %v3819_v23, %v8300_v20  ;;  %v3794_v38 = vsub.f32 2.0, %v3762_v59  ;;  %v3760_v8 = vmul.f32 %v5143_v28, %v3696_v33  ;;  %v3853_v1 = vmul.f32 %v3821_v43, %v8204_v18 }
 0x68c   : >> { %v3884_v11 = vand.u32 2147483647, %v3852_v26  ;;  %v3882_v62 = vand.u32 2147483647, %v3850_v14  ;;  %v3761_v5 = vmul.f32 %v5145_v60, %v3697_v6  ;;  %v3678_v7 = vmul.f32 %v8182_v49, %v3635_v19 }
 0x68d   : >> { %v5147_v35 = vpop.eup %5146  ;;  %v3883_v29 = vand.u32 2147483647, %v3851_v42  ;;  %v3792_v57 = vsub.f32 2.0, %v3760_v8  ;;  %v3679_v53 = vmul.f32 %v8184_v0, %v3635_v19  ;;  %v3795_v51 = vsub.f32 2.0, %v3763_v36 }
 0x68e   : >> { %v5149_v46 = vpop.eup %5148  ;;  %v4176_v13 = vadd.f32 -0.7, %v3882_v62  ;;  %v3793_v63 = vsub.f32 2.0, %v3761_v5  ;;  %5150 = vrcp.f32 %v3702_v61  ;;  %v3826_v33 = vmul.f32 %v5139_v40, %v3794_v38 }
 0x68f   : >> { %v4177_v20 = vadd.f32 -0.7, %v3883_v29  ;;  %v3824_v37 = vmul.f32 %v5143_v28, %v3792_v57  ;;  %5152 = vrcp.f32 %v3703_v48  ;;  %v3993_v18 = vadd.f32 %v3943_v25, %v3941_v34 }
 0x690   : >> { %v3885_v43 = vand.u32 2147483647, %v3853_v1  ;;  %v3825_v26 = vmul.f32 %v5145_v60, %v3793_v63  ;;  %v3768_v6 = vmul.f32 %v5147_v35, %v3704_v21  ;;  %v4178_v10 = vadd.f32 -0.7, %v3884_v11 }
 0x691   : >> { %v3856_v23 = vmul.f32 %v3824_v37, %v8313_v31  ;;  %v3769_v59 = vmul.f32 %v5149_v46, %v3705_v44  ;;  %v3710_v14 = vadd.f32 1e-08, %v3678_v7  ;;  %v3946_v42 = vmul.f32 %v4176_v13, %v4176_v13 }
 0x692   : >> { %v3827_v19 = vmul.f32 %v5141_v27, %v3795_v51  ;;  %v3857_v8 = vmul.f32 %v3825_v26, %v8315_v22  ;;  %v3711_v36 = vadd.f32 1e-08, %v3679_v53  ;;  %v8413_v62 = vmul.f32 %v8387_v9, %v8242_v16  ;;  %v3630_v22 = vpop.permute.xlu0 %3629 }
 0x693   : >> { %v8417_v40 = vmul.f32 %v8390_v12, %v8362_v24  ;;  %v3947_v60 = vmul.f32 %v4177_v20, %v4177_v20  ;;  %v3858_v21 = vmul.f32 %v3826_v33, %v8306_v50  ;;  %v3973_v31 = vadd.f32 %v3972_v30, %v8349_v55 }
 0x694   : >> { %v5151_v25 = vpop.eup %5150  ;;  %v3994_v44 = vadd.f32 %v3993_v18, %v8359_v17  ;;  %v3888_v27 = vand.u32 2147483647, %v3856_v23  ;;  %v3800_v34 = vsub.f32 2.0, %v3768_v6  ;;  %v4179_v38 = vadd.f32 -0.7, %v3885_v43 }
 0x695   : >> { %v5153_v28 = vpop.eup %5152  ;;  %v3889_v1 = vand.u32 2147483647, %v3857_v8  ;;  %v3801_v16 = vsub.f32 2.0, %v3769_v59  ;;  %5154 = vrcp.f32 %v3710_v14  ;;  %v3948_v9 = vmul.f32 %v4178_v10, %v4178_v10 }
 0x696   : >> { %v3974_v11 = vadd.f32 %v3973_v31, %v3946_v42  ;;  %v3859_v24 = vmul.f32 %v3827_v19, %v8310_v32  ;;  %5156 = vrcp.f32 %v3711_v36  ;;  %v3995_v5 = vadd.f32 %v3994_v44, %v3947_v60 }
 0x697   : >> { %v3890_v50 = vand.u32 2147483647, %v3858_v21  ;;  %v3766_v29 = vmul.f32 %v5151_v25, %v3702_v61  ;;  %v3676_v55 = vmul.f32 %v8182_v49, %v3630_v22  ;;  %v4182_v30 = vadd.f32 -0.7, %v3888_v27 }
 0x698   : >> { %v3832_v17 = vmul.f32 %v5147_v35, %v3800_v34  ;;  %v3767_v57 = vmul.f32 %v5153_v28, %v3703_v48  ;;  %v3677_v7 = vmul.f32 %v8184_v0, %v3630_v22  ;;  %v3949_v53 = vmul.f32 %v4179_v38, %v4179_v38 }
 0x699   : >> { %v4183_v13 = vadd.f32 -0.7, %v3889_v1  ;;  %v3833_v51 = vmul.f32 %v5149_v46, %v3801_v16  ;;  %v3798_v63 = vsub.f32 2.0, %v3766_v29  ;;  %v8427_v20 = vmul.f32 %v8393_v56, %v8364_v54 }
 0x69a   : >> { %v3975_v32 = vadd.f32 %v3974_v11, %v3948_v9  ;;  %v3891_v33 = vand.u32 2147483647, %v3859_v24  ;;  %v3799_v37 = vsub.f32 2.0, %v3767_v57  ;;  %v3996_v61 = vadd.f32 %v3995_v5, %v3949_v53 }
 0x69b   : >> { %v5155_v18 = vpop.eup %5154  ;;  %v4184_v43 = vadd.f32 -0.7, %v3890_v50  ;;  %v3830_v26 = vmul.f32 %v5151_v25, %v3798_v63  ;;  %v3708_v6 = vadd.f32 1e-08, %v3676_v55  ;;  %v3952_v48 = vmul.f32 %v4182_v30, %v4182_v30 }
 0x69c   : >> { %v5157_v35 = vpop.eup %5156  ;;  %v3864_v10 = vmul.f32 %v3832_v17, %v8319_v15  ;;  %v3831_v23 = vmul.f32 %v5153_v28, %v3799_v37  ;;  %v3709_v59 = vadd.f32 1e-08, %v3677_v7  ;;  %v3953_v46 = vmul.f32 %v4183_v13, %v4183_v13  ;;  %v3432_v17 = vpop.permute.xlu1 %3431 }
 0x69d   : >> { %v3865_v42 = vmul.f32 %v3833_v51, %v8322_v4  ;;  %v3862_v54 = vmul.f32 %v3830_v26, %v8334_v45  ;;  %5158 = vrcp.f32 %v3708_v6  ;;  %v3976_v19 = vadd.f32 %v3975_v32, %v8373_v47  ;;  %v9685_v26 = vld [vmem:[#allocation271_spill] sm:$0xff] }
 0x69e   : >> { %v3863_v8 = vmul.f32 %v3831_v23, %v8340_v39  ;;  %v3774_v60 = vmul.f32 %v5155_v18, %v3710_v14  ;;  %5160 = vrcp.f32 %v3709_v59  ;;  %v4185_v21 = vadd.f32 -0.7, %v3891_v33  ;;  %v3645_v39 = vpop.permute.xlu0 %3644 }
 0x69f   : >> { %v3997_v25 = vadd.f32 %v3996_v61, %v8380_v52  ;;  %v3894_v31 = vand.u32 2147483647, %v3862_v54  ;;  %v3775_v44 = vmul.f32 %v5157_v35, %v3711_v36  ;;  %v3957_v15 = vmul.f32 %v8382_v58, %v8382_v58 }
 0x6a0   : >> { %v3808_v27 = vsub.f32 2.0, %v8417_v40  ;;  %v3977_v4 = vadd.f32 %v3976_v19, %v3952_v48  ;;  %v3895_v34 = vand.u32 2147483647, %v3863_v8  ;;  %v3898_v45 = vand.u32 2147483647, %v8400_v3  ;;  %v9686_v48 = vld [vmem:[#allocation274_spill] sm:$0xff] }
 0x6a1   : >> { %v3998_v22 = vadd.f32 %v3997_v25, %v3953_v46  ;;  %v3896_v47 = vand.u32 2147483647, %v3864_v10  ;;  %v3897_v28 = vand.u32 2147483647, %v3865_v42  ;;  %v3899_v14 = vand.u32 2147483647, %v8413_v62 }
 0x6a2   : >> { %v3954_v38 = vmul.f32 %v4184_v43, %v4184_v43  ;;  %v4188_v1 = vadd.f32 -0.7, %v3894_v31  ;;  %v3806_v52 = vsub.f32 2.0, %v3774_v60  ;;  %v3809_v36 = vsub.f32 2.0, %v8427_v20 }
 0x6a3   : >> { %v5159_v16 = vpop.eup %5158  ;;  %v3955_v9 = vmul.f32 %v4185_v21, %v4185_v21  ;;  %v4189_v58 = vadd.f32 -0.7, %v3895_v34  ;;  %v3807_v11 = vsub.f32 2.0, %v3775_v44  ;;  %v3840_v24 = vmul.f32 %v8390_v12, %v3808_v27  ;;  %v3316_v44 = vld [vmem:[%s8176_s27 + $0xf0] sm:$0xff] }
 0x6a4   : >> { %v5161_v40 = vpop.eup %5160  ;;  %v3978_v5 = vadd.f32 %v3977_v4, %v3954_v38  ;;  %v3772_v3 = vmul.f32 %v5159_v16, %v3708_v6  ;;  %v3682_v50 = vmul.f32 %v8182_v49, %v3645_v39  ;;  %v4190_v55 = vadd.f32 -0.7, %v3896_v47  ;;  %v9690_v27 = vld [vmem:[#allocation272_spill] sm:$0xff] }
 0x6a5   : >> { %v3999_v29 = vadd.f32 %v3998_v22, %v3955_v9  ;;  %v4191_v30 = vadd.f32 -0.7, %v3897_v28  ;;  %v3773_v62 = vmul.f32 %v5161_v40, %v3709_v59  ;;  %v3958_v57 = vmul.f32 %v4188_v1, %v4188_v1  ;;  %v3317_v47 = vld [vmem:[%s8176_s27 + $0xf8] sm:$0xff] }
 0x6a6   : >> { %v3838_v7 = vmul.f32 %v5155_v18, %v3806_v52  ;;  %v3804_v53 = vsub.f32 2.0, %v3772_v3  ;;  %v3683_v13 = vmul.f32 %v8184_v0, %v3645_v39  ;;  %v3959_v51 = vmul.f32 %v4189_v58, %v4189_v58  ;;  %v9687_v0 = vld [vmem:[#allocation276_spill] sm:$0xff]  ;;  %v9691_v39 = vld [vmem:[#allocation273_spill] sm:$0xff] }
 0x6a7   : >> { %v3839_v63 = vmul.f32 %v5157_v35, %v3807_v11  ;;  %v3805_v20 = vsub.f32 2.0, %v3773_v62  ;;  %v3714_v32 = vadd.f32 1e-08, %v3682_v50  ;;  %v3979_v12 = vadd.f32 %v3978_v5, %v8385_v2  ;;  %v9688_v2 = vld [vmem:[#allocation275_spill] sm:$0xff] }
 0x6a8   : >> { %v3836_v33 = vmul.f32 %v5159_v16, %v3804_v53  ;;  %v3469_v37 = vmul.f32 %v8165_v41, %v3432_v17  ;;  %v3715_v49 = vadd.f32 1e-08, %v3683_v13  ;;  %v4000_v61 = vadd.f32 %v3999_v29, %v3957_v15  ;;  %v9689_v41 = vld [vmem:[#allocation277_spill] sm:$0xff] }
 0x6a9   : >> { %v3837_v43 = vmul.f32 %v5161_v40, %v3805_v20  ;;  %v3470_v6 = vmul.f32 %v9685_v26, %v3432_v17  ;;  %5162 = vrcp.f32 %v3714_v32  ;;  %v3980_v18 = vadd.f32 %v3979_v12, %v3958_v57 }
 0x6aa   : >> { %v3870_v10 = vmul.f32 %v3838_v7, %v9686_v48  ;;  %v3868_v23 = vmul.f32 %v3836_v33, %v9687_v0  ;;  %5164 = vrcp.f32 %v3715_v49  ;;  %v3841_v35 = vmul.f32 %v8393_v56, %v3809_v36 }
 0x6ab   : >> { %v4001_v59 = vadd.f32 %v4000_v61, %v3959_v51  ;;  %v3871_v46 = vmul.f32 %v3839_v63, %v9688_v2  ;;  %v3869_v42 = vmul.f32 %v3837_v43, %v9689_v41  ;;  %v4192_v54 = vadd.f32 -0.7, %v3898_v45 }
 0x6ac   : >> { %v3960_v19 = vmul.f32 %v4190_v55, %v4190_v55  ;;  %v3900_v8 = vand.u32 2147483647, %v3868_v23  ;;  %v3501_v60 = vmul.f32 640.0, %v3469_v37  ;;  %v4193_v21 = vadd.f32 -0.7, %v3899_v14 }
 0x6ad   : >> { %v3961_v25 = vmul.f32 %v4191_v30, %v4191_v30  ;;  %v3901_v31 = vand.u32 2147483647, %v3869_v42  ;;  %v3502_v15 = vmul.f32 640.0, %v3470_v6  ;;  %v3872_v4 = vmul.f32 %v3840_v24, %v9690_v27 }
 0x6ae   : >> { %v3981_v34 = vadd.f32 %v3980_v18, %v3960_v19  ;;  %v3902_v22 = vand.u32 2147483647, %v3870_v10  ;;  %v4194_v56 = vadd.f32 -0.7, %v3900_v8  ;;  %v3873_v38 = vmul.f32 %v3841_v35, %v9691_v39 }
 0x6af   : >> { %v5163_v28 = vpop.eup %5162  ;;  %v4002_v1 = vadd.f32 %v4001_v59, %v3961_v25  ;;  %v3903_v52 = vand.u32 2147483647, %v3871_v46  ;;  %v4195_v45 = vadd.f32 -0.7, %v3901_v31  ;;  %v3962_v36 = vmul.f32 %v4192_v54, %v4192_v54 }
 0x6b0   : >> { %v5165_v16 = vpop.eup %5164  ;;  %v3964_v9 = vmul.f32 %v4194_v56, %v4194_v56  ;;  %v3533_v14 = vsub.f32 %v3316_v44, %v3501_v60  ;;  %v3778_v58 = vmul.f32 %v5163_v28, %v3714_v32  ;;  %v3963_v11 = vmul.f32 %v4193_v21, %v4193_v21 }
 0x6b1   : >> { %v3965_v40 = vmul.f32 %v4195_v45, %v4195_v45  ;;  %v3534_v5 = vsub.f32 %v3317_v47, %v3502_v15  ;;  %v3779_v3 = vmul.f32 %v5165_v16, %v3715_v49  ;;  %v3904_v24 = vand.u32 2147483647, %v3872_v4  ;;  %v9693_v47 = vld [vmem:[#allocation269_spill] sm:$0xff] }
 0x6b2   : >> { %v4196_v50 = vadd.f32 -0.7, %v3902_v22  ;;  %v3982_v29 = vadd.f32 %v3981_v34, %v3962_v36  ;;  %v3810_v55 = vsub.f32 2.0, %v3778_v58  ;;  %v3905_v30 = vand.u32 2147483647, %v3873_v38  ;;  %v9692_v22 = vld [vmem:[#allocation270_spill] sm:$0xff] }
 0x6b3   : >> { %v4197_v62 = vadd.f32 -0.7, %v3903_v52  ;;  %v4003_v17 = vadd.f32 %v4002_v1, %v3963_v11  ;;  %v3811_v57 = vsub.f32 2.0, %v3779_v3  ;;  %v3565_v53 = vmul.f32 0.0015649452, %v3533_v14  ;;  %v9696_v52 = vld [vmem:[#allocation174_spill] sm:$0xff] (%p3274_p4) }
 0x6b4   : >> { %v3983_v7 = vadd.f32 %v3982_v29, %v3964_v9  ;;  %v3842_v13 = vmul.f32 %v5163_v28, %v3810_v55  ;;  %v3566_v63 = vmul.f32 0.0015649452, %v3534_v5  ;;  %v4198_v12 = vadd.f32 -0.7, %v3904_v24 }
 0x6b5   : >> { %v4004_v51 = vadd.f32 %v4003_v17, %v3965_v40  ;;  %v3843_v20 = vmul.f32 %v5165_v16, %v3811_v57  ;;  %v3966_v32 = vmul.f32 %v4196_v50, %v4196_v50  ;;  %v4199_v37 = vadd.f32 -0.7, %v3905_v30 }
 0x6b6   : >> { %v3874_v33 = vmul.f32 %v3842_v13, %v3565_v53  ;;  %v3967_v61 = vmul.f32 %v4197_v62, %v4197_v62  ;;  %v3968_v48 = vmul.f32 %v4198_v12, %v4198_v12  ;;  %v4029_v45 = vsel (%p3274_p4), %vm4016_vm2, %v9696_v52, 0.0 }
 0x6b7   : >> { %v3875_v49 = vmul.f32 %v3843_v20, %v3566_v63  ;;  %v3984_v43 = vadd.f32 %v3983_v7, %v3966_v32  ;;  %v3969_v0 = vmul.f32 %v4199_v37, %v4199_v37 }
 0x6b8   : >> { %v3906_v26 = vand.u32 2147483647, %v3874_v33  ;;  %v4005_v6 = vadd.f32 %v4004_v51, %v3967_v61 }
 0x6b9   : >> { %v3907_v18 = vand.u32 2147483647, %v3875_v49  ;;  %v3985_v59 = vadd.f32 %v3984_v43, %v3968_v48 }
 0x6ba   : >> { %v4200_v10 = vadd.f32 -0.7, %v3906_v26  ;;  %v4006_v46 = vadd.f32 %v4005_v6, %v3969_v0 }
 0x6bb   : >> { %v4201_v23 = vadd.f32 -0.7, %v3907_v18 }
 0x6bc   : >> { %v3970_v35 = vmul.f32 %v4200_v10, %v4200_v10 }
 0x6bd   : >> { %v3971_v2 = vmul.f32 %v4201_v23, %v4201_v23 }
 0x6be   : >> { %v3986_v41 = vadd.f32 %v3985_v59, %v3970_v35 }
 0x6bf   : >> { %v4007_v42 = vadd.f32 %v4006_v46, %v3971_v2 }
 0x6c0   : >> { %v3987_v54 = vrot.slane %v3986_v41, 4 }
 0x6c1   : >> { %v4008_v19 = vrot.slane %v4007_v42, 4 }
 0x6c2   : >> { %v3988_v8 = vadd.f32 %v3987_v54, %v3986_v41 }
 0x6c3   : >> { %v4009_v60 = vadd.f32 %v4008_v19, %v4007_v42 }
 0x6c4   : >> { %v3989_v21 = vrot.slane %v3988_v8, 2 }
 0x6c5   : >> { %v4010_v25 = vrot.slane %v4009_v60, 2 }
 0x6c6   : >> { %v3990_v31 = vadd.f32 %v3989_v21, %v3988_v8 }
 0x6c7   : >> { %v4011_v44 = vadd.f32 %v4010_v25, %v4009_v60 }
 0x6c8   : >> { %v3991_v15 = vrot.slane %v3990_v31, 1 }
 0x6c9   : >> { %v4012_v27 = vrot.slane %v4011_v44, 1 }
 0x6ca   : >> { %v3992_v4 = vadd.f32 %v3991_v15, %v3990_v31 }
 0x6cb   : >> { %v4013_v34 = vadd.f32 %v4012_v27, %v4011_v44  ;;  %3276 = sbr.rel (!%p3274_p4) target bundleno = 1480 (0x5c8), region = 89 }
 0x6cc   : >> { %v4014_v56 = vadd.f32 %v9692_v22, %v3992_v4  }
 0x6cd   : >> { %v4015_v39 = vadd.f32 %v9693_v47, %v4013_v34  }
 0x6ce   : >> { %v9695_v28 = vmov %v4014_v56 }
 0x6cf   : >> { %v9694_v30 = vmov %v4015_v39  ;;  %v4017_v28 = vsel (%p3274_p4), %vm4016_vm2, %v4014_v56, 0.0  ;;  %v4018_v38 = vsel (%p3274_p4), %vm4016_vm2, %v4015_v39, 0.0 }
 0x6d0   : > { %v4019_v1 = vadd.f32 %v4018_v38, %v4017_v28 }
 0x6d2   : > { %4020 = vadd.xlane.f32.xlu0 %v4019_v1 }
 0x6da   : > { %4030 = vadd.xlane.f32.xlu0 %v4029_v45 }
 0x745   : > { %v4021_v16 = vpop.xlane.xlu0 %4020 }
 0x746   : > { %v4022_v36 = vrot.slane %v4021_v16, 4 }
 0x748   : > { %v4023_v9 = vadd.f32 %v4022_v36, %v4021_v16 }
 0x74a   : > { %v4024_v14 = vrot.slane %v4023_v9, 2 }
 0x74c   : > { %v4025_v58 = vadd.f32 %v4024_v14, %v4023_v9 }
 0x74d   : > { %v4031_v11 = vpop.xlane.xlu0 %4030 }
 0x74e   : > { %v4032_v40 = vrot.slane %v4031_v11, 4  ;;  %v4026_v5 = vrot.slane %v4025_v58, 1 }
 0x750   : > { %v4033_v3 = vadd.f32 %v4032_v40, %v4031_v11  ;;  %v4027_v24 = vadd.f32 %v4026_v5, %v4025_v58 }
 0x752   : > { %v4034_v50 = vrot.slane %v4033_v3, 2  ;;  %4660 = vpush %v4027_v24 }
 0x754   : > { %v4035_v29 = vadd.f32 %v4034_v50, %v4033_v3 }
 0x756   : > { %v4036_v55 = vrot.slane %v4035_v29, 1 }
 0x758   : > { %v4037_v30 = vadd.f32 %v4036_v55, %v4035_v29 }
 0x75a   : > { %4662 = vpush %v4037_v30 }
 0x783   : > { %s4661_s3 = spop %4660 }
 0x78b   : > { %s4663_s4 = spop %4662 }
 0x78c   : > { %s4039_s13 = ssub.f32 %s4661_s3, %s4663_s4 }
 0x78e   : > { %s4040_s16 = smul.f32 1.5318628e-05, %s4039_s13 }
 0x790   : > { %v4041_v62 = vstv %s4040_s16 }
 0x791   : > { %4043 = vst [vmem:[%s8106_s17] sm:$0xff] %v4041_v62 }
 0x792   : > { %5223 = shalt.err (!%p5220_p0)
}
 0x793   : > { %4666 = dma.vmem_to_hbm [thread:$0]  (%p5381_p9), %s4058_s12, 128, %s4060_s15, %s4045_s18  }
 0x794 PF: > { %s4071_s5 = sand.u32 1, %s5270_s6   ;;  %p4673_p1 = pnand %p4161_p12, %p5388_p11 }
 0x795   : > { %s4072_s17 = scalar_lea.sflag [#allocation10], %s4071_s5 }
 0x796   : > { %p4674_p2 = pneg %p4673_p1 }
 0x798   : > { %5265 = dma.done.wait (%p4674_p2), %s4072_s17, 128  }
 0x799   : > { %5267 = vsyncadd (%p4674_p2), %s4072_s17, 4294967168  ;;  %s17_s11 = sadd.s32 1, %s5290_s11   ;;  %s9697_s6 = smov %s5274_s7 }
 0x79a   : > { %p14_p3 = scmp.ge.s32.totalorder %s17_s11, 4   ;;  %s9698_s7 = smov %s5278_s8 }
 0x79b   : > { %s9699_s8 = smov %s5386_s20  ;;  %s9700_s9 = smov %s5286_s10 }
 0x79c   : > { %s9701_s10 = smov %s9703_s14  ;;  %16 = sbr.rel (!%p14_p3) target bundleno = 6 (0x6), region = 100 }
 0x7a1   :  { %4078 = vsyncpa [#allocation9], 1 }
 0x7a2   :  { %4080 = vsyncpa [#allocation9 + $0x1], 1 }
 0x7a3   :  { %4081 = vsyncpa [#allocation10], 1 }
 0x7a4   :  { %4083 = vsyncpa [#allocation10 + $0x1], 1 }

</bundles_post_ra>
